<compile_context>
chip_gen: v5e
topology: v5e:2x2
jax: 0.10.0
libtpu: 0.0.40
codegen_flags: <defaults>
</compile_context>

<pallas_src>
import functools
import math

import jax
import jax.numpy as jnp
from jax.experimental import pallas as pl
from jax.experimental.pallas import tpu as pltpu

# ----------------------------- configuration --------------------------------
VOCAB_SIZE = 112                          # torch: vocabulary_size = (2 + 112//8)*8
V = (2 + VOCAB_SIZE // 8) * 8             # = 128 (>= 100 so top_k(k=100) is valid)
N_EMB = 16
N_HIDDEN = 32
N_LAYER = 2
N_HEAD = 4
B = 2
S = 8
GEN = 4                                   # generation steps (torch default size=32)

HEAD_DIM = N_HIDDEN // N_HEAD             # 8
HEAD_V = N_HIDDEN // 2                    # 16  (per-head value dim)
ATT_DIM = HEAD_DIM * N_HEAD               # 32
VAL_DIM = HEAD_V * N_HEAD                 # 64
COMB_OUT = 2 * ATT_DIM + VAL_DIM          # 128
INV_SCALE = 1.0 / math.sqrt(HEAD_DIM)
INV_TEMP = 1.0 / 0.9


def _full_spec(shape):
    # whole-array block (full dims are always legal regardless of (8,128) tiling)
    return pl.BlockSpec(shape, lambda *_: (0,) * len(shape))


_ARB = pltpu.CompilerParams(dimension_semantics=("arbitrary",))


# --------------------------- in-kernel helpers -------------------------------
def _leaky_relu(x):                        # F.leaky_relu, slope 0.01
    return jnp.where(x >= 0.0, x, 0.01 * x)


def _selu(x):                              # nn.SELU
    alpha = 1.6732632423543772
    scale = 1.0507009873554805
    return scale * jnp.where(x > 0.0, x, alpha * (jnp.exp(x) - 1.0))


def _gelu(x):
    # exact (erf) GELU via Abramowitz & Stegun 7.1.26 (|err| < 1.5e-7)
    z = x * 0.7071067811865476
    az = jnp.abs(z)
    t = 1.0 / (1.0 + 0.3275911 * az)
    poly = t * (0.254829592 + t * (-0.284496736 + t * (1.421413741
               + t * (-1.453152027 + t * 1.061405429))))
    erf_abs = 1.0 - poly * jnp.exp(-az * az)
    erf = jnp.where(z >= 0.0, erf_abs, -erf_abs)
    return 0.5 * x * (1.0 + erf)


def _layer_norm(x, g, b):                  # x (M, D); g/b (1, D)
    mu = jnp.mean(x, axis=-1, keepdims=True)
    xc = x - mu
    var = jnp.mean(xc * xc, axis=-1, keepdims=True)
    return xc * jax.lax.rsqrt(var + 1e-5) * g + b


def _softmax_lastdim(s):
    m = jnp.max(s, axis=-1, keepdims=True)
    p = jnp.exp(s - m)
    return p * pl.reciprocal(jnp.sum(p, axis=-1, keepdims=True), approx=True)


def _block_tail(x_ln, att, wo, bo, ln_g, ln_b, w1, b1, w2, b2):
    # output projection + residual LN + MLP (SELU) + gelu residual
    proj = _leaky_relu(jnp.dot(att, wo, preferred_element_type=jnp.float32) + bo)
    inter = _layer_norm(x_ln + proj, ln_g, ln_b)
    h1 = _selu(jnp.dot(inter, w1, preferred_element_type=jnp.float32) + b1)
    h2 = jnp.dot(h1, w2, preferred_element_type=jnp.float32) + b2
    return inter + _gelu(h2)


def _project_logits(x, wp, bp, emb_t):
    # Project: tied-embedding output of leaky_relu(project(x)); /0.9 temperature
    p = _leaky_relu(jnp.dot(x, wp, preferred_element_type=jnp.float32) + bp)
    return jnp.dot(p, emb_t, preferred_element_type=jnp.float32) * INV_TEMP


# ------------------------------ fused kernels ---------------------------------
def _prefill_kernel(we_ref, wih_ref, whh_ref, brnn_ref,
                    ln1g_ref, ln1b_ref, wc_ref, bc_ref, wo_ref, bo_ref,
                    lng_ref, lnb_ref, w1_ref, b1_ref, w2_ref, b2_ref,
                    olng_ref, olnb_ref, wp_ref, bp_ref, embt_ref,
                    logits_ref, h_ref, kc_ref, vc_ref):
    Bb, Ss, E = we_ref.shape

    # --- RNN encoder: hoisted input projection, statically unrolled recurrence
    xp = (jnp.dot(we_ref[...].reshape(Bb * Ss, E), wih_ref[...],
                  preferred_element_type=jnp.float32) + brnn_ref[...])
    xp = xp.reshape(Bb, Ss, N_HIDDEN)
    whh = whh_ref[...]
    h = jnp.zeros((Bb, N_HIDDEN), jnp.float32)
    steps = []
    for t in range(Ss):                                          # static unroll
        h = jnp.tanh(xp[:, t, :]
                     + jnp.dot(h, whh, preferred_element_type=jnp.float32))
        steps.append(h)
    h_ref[...] = h
    x = jnp.stack(steps, axis=1)                                 # (B, S, H)

    ln1g, ln1b = ln1g_ref[...], ln1b_ref[...]
    wc, bc = wc_ref[...], bc_ref[...]
    wo, bo = wo_ref[...], bo_ref[...]
    lng, lnb = lng_ref[...], lnb_ref[...]
    w1, b1 = w1_ref[...], b1_ref[...]
    w2, b2 = w2_ref[...], b2_ref[...]

    row = jax.lax.broadcasted_iota(jnp.int32, (Ss, Ss), 0)
    col = jax.lax.broadcasted_iota(jnp.int32, (Ss, Ss), 1)
    causal = (col > row)[None, :, :]                             # (1, S, S)

    # --- N_LAYER shared-weight attention blocks (causal self-attention)
    for l in range(N_LAYER):
        x_ln = _layer_norm(x.reshape(Bb * Ss, N_HIDDEN),
                           ln1g[l:l + 1, :], ln1b[l:l + 1, :])
        cp = _leaky_relu(jnp.dot(x_ln, wc, preferred_element_type=jnp.float32) + bc)
        cp3 = cp.reshape(Bb, Ss, COMB_OUT)
        q = cp3[..., :ATT_DIM] * INV_SCALE                       # fold 1/sqrt(d)
        k = cp3[..., ATT_DIM:2 * ATT_DIM]
        v = cp3[..., 2 * ATT_DIM:]
        # KV cache stored in merged-head channel layout (head h -> contiguous cols)
        kc_ref[l] = k
        vc_ref[l] = v
        heads = []
        for hd in range(N_HEAD):
            qh = q[..., hd * HEAD_DIM:(hd + 1) * HEAD_DIM]
            kh = k[..., hd * HEAD_DIM:(hd + 1) * HEAD_DIM]
            vh = v[..., hd * HEAD_V:(hd + 1) * HEAD_V]
            s = jnp.einsum('bqd,bkd->bqk', qh, kh,
                           preferred_element_type=jnp.float32)
            s = jnp.where(causal, -jnp.inf, s)
            p = _softmax_lastdim(s)
            heads.append(jnp.einsum('bqk,bkd->bqd', p, vh,
                                    preferred_element_type=jnp.float32))
        att = jnp.concatenate(heads, axis=-1).reshape(Bb * Ss, VAL_DIM)
        x = _block_tail(x_ln, att, wo, bo, lng, lnb,
                        w1, b1, w2, b2).reshape(Bb, Ss, N_HIDDEN)

    out = _layer_norm(x.reshape(Bb * Ss, N_HIDDEN), olng_ref[...], olnb_ref[...])
    enc_last = out.reshape(Bb, Ss, N_HIDDEN)[:, Ss - 1, :]       # (B, H)
    logits_ref[...] = _project_logits(enc_last, wp_ref[...], bp_ref[...],
                                      embt_ref[...])


def _decode_kernel(we_ref, h_ref, kc_ref, vc_ref, mask_ref,
                   wih_ref, whh_ref, brnn_ref,
                   ln1g_ref, ln1b_ref, wc_ref, bc_ref, wo_ref, bo_ref,
                   lng_ref, lnb_ref, w1_ref, b1_ref, w2_ref, b2_ref,
                   olng_ref, olnb_ref, wp_ref, bp_ref, embt_ref,
                   logits_ref, hnew_ref, nk_ref, nv_ref):
    Bb = we_ref.shape[0]

    # --- single RNN step
    h = jnp.tanh(jnp.dot(we_ref[...], wih_ref[...],
                         preferred_element_type=jnp.float32)
                 + jnp.dot(h_ref[...], whh_ref[...],
                           preferred_element_type=jnp.float32)
                 + brnn_ref[...])
    hnew_ref[...] = h
    x = h                                                        # (B, H), T = 1

    ln1g, ln1b = ln1g_ref[...], ln1b_ref[...]
    wc, bc = wc_ref[...], bc_ref[...]
    wo, bo = wo_ref[...], bo_ref[...]
    lng, lnb = lng_ref[...], lnb_ref[...]
    w1, b1 = w1_ref[...], b1_ref[...]
    w2, b2 = w2_ref[...], b2_ref[...]
    mask = mask_ref[...][:, None, :]                             # (1, 1, S_TOT)

    for l in range(N_LAYER):
        x_ln = _layer_norm(x, ln1g[l:l + 1, :], ln1b[l:l + 1, :])
        cp = _leaky_relu(jnp.dot(x_ln, wc, preferred_element_type=jnp.float32) + bc)
        q = cp[:, :ATT_DIM] * INV_SCALE
        k = cp[:, ATT_DIM:2 * ATT_DIM]
        v = cp[:, 2 * ATT_DIM:]
        nk_ref[l] = k                                            # new cache entries
        nv_ref[l] = v
        kc = kc_ref[l]                                           # (B, S_TOT, ATT_DIM)
        vc = vc_ref[l]                                           # (B, S_TOT, VAL_DIM)
        heads = []
        for hd in range(N_HEAD):
            qh = q[:, hd * HEAD_DIM:(hd + 1) * HEAD_DIM].reshape(Bb, 1, HEAD_DIM)
            kh_n = k[:, hd * HEAD_DIM:(hd + 1) * HEAD_DIM].reshape(Bb, 1, HEAD_DIM)
            vh_n = v[:, hd * HEAD_V:(hd + 1) * HEAD_V].reshape(Bb, 1, HEAD_V)
            kh_c = kc[:, :, hd * HEAD_DIM:(hd + 1) * HEAD_DIM]
            vh_c = vc[:, :, hd * HEAD_V:(hd + 1) * HEAD_V]
            # softmax over [valid cache entries, current token] (no causal mask
            # needed beyond the length mask; matches torch inference path)
            s_c = jnp.einsum('bqd,bkd->bqk', qh, kh_c,
                             preferred_element_type=jnp.float32) + mask
            s_n = jnp.sum(qh * kh_n, axis=-1, keepdims=True)     # (B, 1, 1)
            m = jnp.maximum(jnp.max(s_c, axis=-1, keepdims=True), s_n)
            p_c = jnp.exp(s_c - m)
            p_n = jnp.exp(s_n - m)
            denom = jnp.sum(p_c, axis=-1, keepdims=True) + p_n
            inv = pl.reciprocal(denom, approx=True)
            o = (jnp.einsum('bqk,bkd->bqd', p_c, vh_c,
                            preferred_element_type=jnp.float32)
                 + p_n * vh_n) * inv                             # (B, 1, HEAD_V)
            heads.append(o.reshape(Bb, HEAD_V))
        att = jnp.concatenate(heads, axis=-1)                    # (B, VAL_DIM)
        x = _block_tail(x_ln, att, wo, bo, lng, lnb, w1, b1, w2, b2)

    out = _layer_norm(x, olng_ref[...], olnb_ref[...])
    logits_ref[...] = _project_logits(out, wp_ref[...], bp_ref[...], embt_ref[...])


# ------------------------------ pallas wrappers -------------------------------
def _weight_args(params):
    blk = params["block"]
    return [params["WihT"], params["WhhT"], params["b_rnn"],
            params["ln1_g"], params["ln1_b"],
            blk["WcT"], blk["bc"], blk["WoT"], blk["bo"], blk["ln_g"], blk["ln_b"],
            blk["W1T"], blk["b1"], blk["W2T"], blk["b2"],
            params["out_ln_g"], params["out_ln_b"],
            params["WpT"], params["bp"]]


def prefill(params, we, emb_t):
    Bb, Ss, _ = we.shape
    args = [we] + _weight_args(params) + [emb_t]
    out_shape = (
        jax.ShapeDtypeStruct((Bb, V), jnp.float32),              # logits of last pos
        jax.ShapeDtypeStruct((Bb, N_HIDDEN), jnp.float32),       # final RNN hidden
        jax.ShapeDtypeStruct((N_LAYER, Bb, Ss, ATT_DIM), jnp.float32),
        jax.ShapeDtypeStruct((N_LAYER, Bb, Ss, VAL_DIM), jnp.float32),
    )
    return pl.pallas_call(
        _prefill_kernel,
        grid=(1,),
        in_specs=[_full_spec(a.shape) for a in args],
        out_specs=tuple(_full_spec(s.shape) for s in out_shape),
        out_shape=out_shape,
        compiler_params=_ARB,
    )(*args)


def decode_step(params, we, h, k_cache, v_cache, mask, emb_t):
    Bb = we.shape[0]
    args = [we, h, k_cache, v_cache, mask] + _weight_args(params) + [emb_t]
    out_shape = (
        jax.ShapeDtypeStruct((Bb, V), jnp.float32),              # next-step logits
        jax.ShapeDtypeStruct((Bb, N_HIDDEN), jnp.float32),       # new RNN hidden
        jax.ShapeDtypeStruct((N_LAYER, Bb, ATT_DIM), jnp.float32),
        jax.ShapeDtypeStruct((N_LAYER, Bb, VAL_DIM), jnp.float32),
    )
    return pl.pallas_call(
        _decode_kernel,
        grid=(1,),
        in_specs=[_full_spec(a.shape) for a in args],
        out_specs=tuple(_full_spec(s.shape) for s in out_shape),
        out_shape=out_shape,
        compiler_params=_ARB,
    )(*args)


# ------------------------------- model glue -----------------------------------
def top_k_logits(logits, k):
    # k=100 of V=128: threshold via one full sort (cheaper than a near-full
    # selection network on the serial decode path); semantics match torch.topk.
    sorted_logits = jnp.sort(logits, axis=-1)                    # ascending
    thresh = sorted_logits[:, logits.shape[-1] - k][:, None]     # k-th largest
    return jnp.where(logits < thresh, jnp.float32(-1e10), logits)


@functools.partial(jax.jit, static_argnames=("size",))
def gpt_forward(params, source, key, size=GEN):
    Bb, Ss = source.shape
    emb = params["emb"]                                          # (V, E), tied
    emb_t = emb.T                                                # (E, V), hoisted once
    s_tot = Ss + size

    we = emb[source]                                             # (B, S, E)
    logits0, h0, k_init, v_init = prefill(params, we, emb_t)

    # static pre-allocated KV cache, filled by prefill then per-step updates
    k_cache = jnp.zeros((N_LAYER, Bb, s_tot, ATT_DIM), jnp.float32)
    v_cache = jnp.zeros((N_LAYER, Bb, s_tot, VAL_DIM), jnp.float32)
    k_cache = jax.lax.dynamic_update_slice(k_cache, k_init, (0, 0, 0, 0))
    v_cache = jax.lax.dynamic_update_slice(v_cache, v_init, (0, 0, 0, 0))

    idx = jnp.arange(s_tot, dtype=jnp.int32)

    def step(carry, i):
        logits, h, kc, vc, key = carry
        key, sk = jax.random.split(key)
        topk = top_k_logits(logits, 100)
        # TODO(synk): torch.multinomial(F.softmax(topk), 1) is stochastic; use the
        # equivalent jax.random.categorical sampling in glue (no Pallas equivalent).
        word = jax.random.categorical(sk, topk, axis=-1).astype(jnp.int32)   # (B,)
        we_step = emb[word]                                      # (B, E)
        valid_len = Ss + i
        mask = jnp.where(idx < valid_len, 0.0, -1e30).astype(jnp.float32)
        mask = mask.reshape(1, s_tot)
        logits_n, h_n, nk, nv = decode_step(params, we_step, h, kc, vc, mask, emb_t)
        kc = jax.lax.dynamic_update_slice(kc, nk[:, :, None, :], (0, 0, valid_len, 0))
        vc = jax.lax.dynamic_update_slice(vc, nv[:, :, None, :], (0, 0, valid_len, 0))
        return (logits_n, h_n, kc, vc, key), word

    carry0 = (logits0, h0, k_cache, v_cache, key)
    _, words = jax.lax.scan(step, carry0, jnp.arange(size, dtype=jnp.int32))
    return jnp.transpose(words, (1, 0))                          # (B, size)


# -------------------------------- parameters ----------------------------------
def init_params(key):
    ks = jax.random.split(key, 10)

    def w(k, shape, s=0.05):
        return (jax.random.normal(k, shape) * s).astype(jnp.float32)

    # all weights stored pre-transposed to (K, N); biases stored as (1, N)
    return {
        "emb": w(ks[0], (V, N_EMB), 0.1),                        # tied output proj
        "WihT": w(ks[1], (N_EMB, N_HIDDEN)),
        "WhhT": w(ks[2], (N_HIDDEN, N_HIDDEN)),
        "b_rnn": jnp.zeros((1, N_HIDDEN), jnp.float32),          # b_ih + b_hh
        "block": {
            "WcT": w(ks[3], (N_HIDDEN, COMB_OUT)),               # combined_projection
            "bc": jnp.zeros((1, COMB_OUT), jnp.float32),
            "WoT": w(ks[4], (VAL_DIM, N_HIDDEN)),                # output_projection
            "bo": jnp.zeros((1, N_HIDDEN), jnp.float32),
            "W1T": w(ks[5], (N_HIDDEN, N_HIDDEN)),               # mlp[0]
            "b1": jnp.zeros((1, N_HIDDEN), jnp.float32),
            "W2T": w(ks[6], (N_HIDDEN, N_HIDDEN)),               # mlp[2]
            "b2": jnp.zeros((1, N_HIDDEN), jnp.float32),
            "ln_g": jnp.ones((1, N_HIDDEN), jnp.float32),
            "ln_b": jnp.zeros((1, N_HIDDEN), jnp.float32),
        },
        "ln1_g": jnp.ones((N_LAYER, N_HIDDEN), jnp.float32),
        "ln1_b": jnp.zeros((N_LAYER, N_HIDDEN), jnp.float32),
        "out_ln_g": jnp.ones((1, N_HIDDEN), jnp.float32),
        "out_ln_b": jnp.zeros((1, N_HIDDEN), jnp.float32),
        "WpT": w(ks[7], (N_HIDDEN, N_EMB)),                      # Project.project
        "bp": jnp.zeros((1, N_EMB), jnp.float32),
    }


if __name__ == "__main__":
    key = jax.random.PRNGKey(0)
    pkey, skey, dkey = jax.random.split(key, 3)
    params = init_params(pkey)
    source = jax.random.randint(skey, (B, S), 0, VOCAB_SIZE, dtype=jnp.int32)
    out = gpt_forward(params, source, dkey, size=GEN)
    out = jax.block_until_ready(out)
    assert out.shape == (B, GEN) and out.dtype == jnp.int32
    print("KERNEL_OK")
</pallas_src>

<mosaic_0001>
module attributes {stable_mosaic.version = 11 : i64} {
  func.func @_prefill_kernel(%arg0: i32, %arg1: memref<2x8x16xf32, #tpu.memory_space<vmem>>, %arg2: memref<16x32xf32, #tpu.memory_space<vmem>>, %arg3: memref<32x32xf32, #tpu.memory_space<vmem>>, %arg4: memref<1x32xf32, #tpu.memory_space<vmem>>, %arg5: memref<2x32xf32, #tpu.memory_space<vmem>>, %arg6: memref<2x32xf32, #tpu.memory_space<vmem>>, %arg7: memref<32x128xf32, #tpu.memory_space<vmem>>, %arg8: memref<1x128xf32, #tpu.memory_space<vmem>>, %arg9: memref<64x32xf32, #tpu.memory_space<vmem>>, %arg10: memref<1x32xf32, #tpu.memory_space<vmem>>, %arg11: memref<1x32xf32, #tpu.memory_space<vmem>>, %arg12: memref<1x32xf32, #tpu.memory_space<vmem>>, %arg13: memref<32x32xf32, #tpu.memory_space<vmem>>, %arg14: memref<1x32xf32, #tpu.memory_space<vmem>>, %arg15: memref<32x32xf32, #tpu.memory_space<vmem>>, %arg16: memref<1x32xf32, #tpu.memory_space<vmem>>, %arg17: memref<1x32xf32, #tpu.memory_space<vmem>>, %arg18: memref<1x32xf32, #tpu.memory_space<vmem>>, %arg19: memref<32x16xf32, #tpu.memory_space<vmem>>, %arg20: memref<1x16xf32, #tpu.memory_space<vmem>>, %arg21: memref<16x128xf32, #tpu.memory_space<vmem>>, %arg22: memref<2x128xf32, #tpu.memory_space<vmem>>, %arg23: memref<2x32xf32, #tpu.memory_space<vmem>>, %arg24: memref<2x2x8x32xf32, #tpu.memory_space<vmem>>, %arg25: memref<2x2x8x64xf32, #tpu.memory_space<vmem>>) attributes {dimension_semantics = [#tpu.dimension_semantics<arbitrary>], iteration_bounds = array<i64: 1>, scalar_prefetch = 0 : i64, scratch_operands = 0 : i64, tpu.core_type = #tpu.core_type<tc>, window_params = [{pipeline_mode = #tpu.pipeline_mode<synchronous>, transform_indices = @transform_0, window_bounds = array<i64: 2, 8, 16>}, {pipeline_mode = #tpu.pipeline_mode<synchronous>, transform_indices = @transform_1, window_bounds = array<i64: 16, 32>}, {pipeline_mode = #tpu.pipeline_mode<synchronous>, transform_indices = @transform_2, window_bounds = array<i64: 32, 32>}, {pipeline_mode = #tpu.pipeline_mode<synchronous>, transform_indices = @transform_3, window_bounds = array<i64: 1, 32>}, {pipeline_mode = #tpu.pipeline_mode<synchronous>, transform_indices = @transform_4, window_bounds = array<i64: 2, 32>}, {pipeline_mode = #tpu.pipeline_mode<synchronous>, transform_indices = @transform_5, window_bounds = array<i64: 2, 32>}, {pipeline_mode = #tpu.pipeline_mode<synchronous>, transform_indices = @transform_6, window_bounds = array<i64: 32, 128>}, {pipeline_mode = #tpu.pipeline_mode<synchronous>, transform_indices = @transform_7, window_bounds = array<i64: 1, 128>}, {pipeline_mode = #tpu.pipeline_mode<synchronous>, transform_indices = @transform_8, window_bounds = array<i64: 64, 32>}, {pipeline_mode = #tpu.pipeline_mode<synchronous>, transform_indices = @transform_9, window_bounds = array<i64: 1, 32>}, {pipeline_mode = #tpu.pipeline_mode<synchronous>, transform_indices = @transform_10, window_bounds = array<i64: 1, 32>}, {pipeline_mode = #tpu.pipeline_mode<synchronous>, transform_indices = @transform_11, window_bounds = array<i64: 1, 32>}, {pipeline_mode = #tpu.pipeline_mode<synchronous>, transform_indices = @transform_12, window_bounds = array<i64: 32, 32>}, {pipeline_mode = #tpu.pipeline_mode<synchronous>, transform_indices = @transform_13, window_bounds = array<i64: 1, 32>}, {pipeline_mode = #tpu.pipeline_mode<synchronous>, transform_indices = @transform_14, window_bounds = array<i64: 32, 32>}, {pipeline_mode = #tpu.pipeline_mode<synchronous>, transform_indices = @transform_15, window_bounds = array<i64: 1, 32>}, {pipeline_mode = #tpu.pipeline_mode<synchronous>, transform_indices = @transform_16, window_bounds = array<i64: 1, 32>}, {pipeline_mode = #tpu.pipeline_mode<synchronous>, transform_indices = @transform_17, window_bounds = array<i64: 1, 32>}, {pipeline_mode = #tpu.pipeline_mode<synchronous>, transform_indices = @transform_18, window_bounds = array<i64: 32, 16>}, {pipeline_mode = #tpu.pipeline_mode<synchronous>, transform_indices = @transform_19, window_bounds = array<i64: 1, 16>}, {pipeline_mode = #tpu.pipeline_mode<synchronous>, transform_indices = @transform_20, window_bounds = array<i64: 16, 128>}, {pipeline_mode = #tpu.pipeline_mode<synchronous>, transform_indices = @transform_21, window_bounds = array<i64: 2, 128>}, {pipeline_mode = #tpu.pipeline_mode<synchronous>, transform_indices = @transform_22, window_bounds = array<i64: 2, 32>}, {pipeline_mode = #tpu.pipeline_mode<synchronous>, transform_indices = @transform_23, window_bounds = array<i64: 2, 2, 8, 32>}, {pipeline_mode = #tpu.pipeline_mode<synchronous>, transform_indices = @transform_24, window_bounds = array<i64: 2, 2, 8, 64>}]} {
    %c0 = arith.constant 0 : index
    %c0_0 = arith.constant 0 : index
    %c0_1 = arith.constant 0 : index
    %0 = vector.load %arg1[%c0, %c0_0, %c0_1] : memref<2x8x16xf32, #tpu.memory_space<vmem>>, vector<2x8x16xf32>
    %1 = vector.shape_cast %0 : vector<2x8x16xf32> to vector<16x16xf32>
    %c0_2 = arith.constant 0 : index
    %c0_3 = arith.constant 0 : index
    %2 = vector.load %arg2[%c0_2, %c0_3] : memref<16x32xf32, #tpu.memory_space<vmem>>, vector<16x32xf32>
    %cst = arith.constant dense<0.000000e+00> : vector<16x32xf32>
    %3 = tpu.matmul %1, %2, %cst {dimension_numbers = #tpu.dot_dimension_numbers<[1], [0], [0], [1], [0, 0, 1, 1], [], []>} : vector<16x16xf32>, vector<16x32xf32>, vector<16x32xf32> -> vector<16x32xf32>
    %c0_4 = arith.constant 0 : index
    %c0_5 = arith.constant 0 : index
    %4 = vector.load %arg4[%c0_4, %c0_5] : memref<1x32xf32, #tpu.memory_space<vmem>>, vector<1x32xf32>
    %5 = vector.broadcast %4 : vector<1x32xf32> to vector<16x32xf32>
    %6 = arith.addf %3, %5 : vector<16x32xf32>
    %7 = vector.shape_cast %6 : vector<16x32xf32> to vector<2x8x32xf32>
    %c0_6 = arith.constant 0 : index
    %c0_7 = arith.constant 0 : index
    %8 = vector.load %arg3[%c0_6, %c0_7] : memref<32x32xf32, #tpu.memory_space<vmem>>, vector<32x32xf32>
    %cst_8 = arith.constant 0.000000e+00 : f32
    %9 = vector.broadcast %cst_8 : f32 to vector<2x32xf32>
    %10 = vector.extract_strided_slice %7 {offsets = [0, 0, 0], sizes = [2, 1, 32], strides = [1, 1, 1]} : vector<2x8x32xf32> to vector<2x1x32xf32>
    %11 = vector.shape_cast %10 : vector<2x1x32xf32> to vector<2x32xf32>
    %cst_9 = arith.constant dense<0.000000e+00> : vector<2x32xf32>
    %12 = tpu.matmul %9, %8, %cst_9 {dimension_numbers = #tpu.dot_dimension_numbers<[1], [0], [0], [1], [0, 0, 1, 1], [], []>} : vector<2x32xf32>, vector<32x32xf32>, vector<2x32xf32> -> vector<2x32xf32>
    %13 = arith.addf %11, %12 : vector<2x32xf32>
    %14 = math.tanh %13 : vector<2x32xf32>
    %15 = vector.extract_strided_slice %7 {offsets = [0, 1, 0], sizes = [2, 1, 32], strides = [1, 1, 1]} : vector<2x8x32xf32> to vector<2x1x32xf32>
    %16 = vector.shape_cast %15 : vector<2x1x32xf32> to vector<2x32xf32>
    %cst_10 = arith.constant dense<0.000000e+00> : vector<2x32xf32>
    %17 = tpu.matmul %14, %8, %cst_10 {dimension_numbers = #tpu.dot_dimension_numbers<[1], [0], [0], [1], [0, 0, 1, 1], [], []>} : vector<2x32xf32>, vector<32x32xf32>, vector<2x32xf32> -> vector<2x32xf32>
    %18 = arith.addf %16, %17 : vector<2x32xf32>
    %19 = math.tanh %18 : vector<2x32xf32>
    %20 = vector.extract_strided_slice %7 {offsets = [0, 2, 0], sizes = [2, 1, 32], strides = [1, 1, 1]} : vector<2x8x32xf32> to vector<2x1x32xf32>
    %21 = vector.shape_cast %20 : vector<2x1x32xf32> to vector<2x32xf32>
    %cst_11 = arith.constant dense<0.000000e+00> : vector<2x32xf32>
    %22 = tpu.matmul %19, %8, %cst_11 {dimension_numbers = #tpu.dot_dimension_numbers<[1], [0], [0], [1], [0, 0, 1, 1], [], []>} : vector<2x32xf32>, vector<32x32xf32>, vector<2x32xf32> -> vector<2x32xf32>
    %23 = arith.addf %21, %22 : vector<2x32xf32>
    %24 = math.tanh %23 : vector<2x32xf32>
    %25 = vector.extract_strided_slice %7 {offsets = [0, 3, 0], sizes = [2, 1, 32], strides = [1, 1, 1]} : vector<2x8x32xf32> to vector<2x1x32xf32>
    %26 = vector.shape_cast %25 : vector<2x1x32xf32> to vector<2x32xf32>
    %cst_12 = arith.constant dense<0.000000e+00> : vector<2x32xf32>
    %27 = tpu.matmul %24, %8, %cst_12 {dimension_numbers = #tpu.dot_dimension_numbers<[1], [0], [0], [1], [0, 0, 1, 1], [], []>} : vector<2x32xf32>, vector<32x32xf32>, vector<2x32xf32> -> vector<2x32xf32>
    %28 = arith.addf %26, %27 : vector<2x32xf32>
    %29 = math.tanh %28 : vector<2x32xf32>
    %30 = vector.extract_strided_slice %7 {offsets = [0, 4, 0], sizes = [2, 1, 32], strides = [1, 1, 1]} : vector<2x8x32xf32> to vector<2x1x32xf32>
    %31 = vector.shape_cast %30 : vector<2x1x32xf32> to vector<2x32xf32>
    %cst_13 = arith.constant dense<0.000000e+00> : vector<2x32xf32>
    %32 = tpu.matmul %29, %8, %cst_13 {dimension_numbers = #tpu.dot_dimension_numbers<[1], [0], [0], [1], [0, 0, 1, 1], [], []>} : vector<2x32xf32>, vector<32x32xf32>, vector<2x32xf32> -> vector<2x32xf32>
    %33 = arith.addf %31, %32 : vector<2x32xf32>
    %34 = math.tanh %33 : vector<2x32xf32>
    %35 = vector.extract_strided_slice %7 {offsets = [0, 5, 0], sizes = [2, 1, 32], strides = [1, 1, 1]} : vector<2x8x32xf32> to vector<2x1x32xf32>
    %36 = vector.shape_cast %35 : vector<2x1x32xf32> to vector<2x32xf32>
    %cst_14 = arith.constant dense<0.000000e+00> : vector<2x32xf32>
    %37 = tpu.matmul %34, %8, %cst_14 {dimension_numbers = #tpu.dot_dimension_numbers<[1], [0], [0], [1], [0, 0, 1, 1], [], []>} : vector<2x32xf32>, vector<32x32xf32>, vector<2x32xf32> -> vector<2x32xf32>
    %38 = arith.addf %36, %37 : vector<2x32xf32>
    %39 = math.tanh %38 : vector<2x32xf32>
    %40 = vector.extract_strided_slice %7 {offsets = [0, 6, 0], sizes = [2, 1, 32], strides = [1, 1, 1]} : vector<2x8x32xf32> to vector<2x1x32xf32>
    %41 = vector.shape_cast %40 : vector<2x1x32xf32> to vector<2x32xf32>
    %cst_15 = arith.constant dense<0.000000e+00> : vector<2x32xf32>
    %42 = tpu.matmul %39, %8, %cst_15 {dimension_numbers = #tpu.dot_dimension_numbers<[1], [0], [0], [1], [0, 0, 1, 1], [], []>} : vector<2x32xf32>, vector<32x32xf32>, vector<2x32xf32> -> vector<2x32xf32>
    %43 = arith.addf %41, %42 : vector<2x32xf32>
    %44 = math.tanh %43 : vector<2x32xf32>
    %45 = vector.extract_strided_slice %7 {offsets = [0, 7, 0], sizes = [2, 1, 32], strides = [1, 1, 1]} : vector<2x8x32xf32> to vector<2x1x32xf32>
    %46 = vector.shape_cast %45 : vector<2x1x32xf32> to vector<2x32xf32>
    %cst_16 = arith.constant dense<0.000000e+00> : vector<2x32xf32>
    %47 = tpu.matmul %44, %8, %cst_16 {dimension_numbers = #tpu.dot_dimension_numbers<[1], [0], [0], [1], [0, 0, 1, 1], [], []>} : vector<2x32xf32>, vector<32x32xf32>, vector<2x32xf32> -> vector<2x32xf32>
    %48 = arith.addf %46, %47 : vector<2x32xf32>
    %49 = math.tanh %48 : vector<2x32xf32>
    %c0_17 = arith.constant 0 : index
    %c0_18 = arith.constant 0 : index
    %50 = vector.load %arg23[%c0_17, %c0_18] : memref<2x32xf32, #tpu.memory_space<vmem>>, vector<2x32xf32>
    tpu.vector_store %arg23[%c0_17, %c0_18], %49 {strides = array<i32>} : memref<2x32xf32, #tpu.memory_space<vmem>>, vector<2x32xf32>,
    %51 = vector.shape_cast %14 : vector<2x32xf32> to vector<2x1x32xf32>
    %52 = vector.shape_cast %19 : vector<2x32xf32> to vector<2x1x32xf32>
    %53 = vector.shape_cast %24 : vector<2x32xf32> to vector<2x1x32xf32>
    %54 = vector.shape_cast %29 : vector<2x32xf32> to vector<2x1x32xf32>
    %55 = vector.shape_cast %34 : vector<2x32xf32> to vector<2x1x32xf32>
    %56 = vector.shape_cast %39 : vector<2x32xf32> to vector<2x1x32xf32>
    %57 = vector.shape_cast %44 : vector<2x32xf32> to vector<2x1x32xf32>
    %58 = vector.shape_cast %49 : vector<2x32xf32> to vector<2x1x32xf32>
    %59 = tpu.concatenate %51, %52, %53, %54, %55, %56, %57, %58 in 1 : vector<2x1x32xf32>, vector<2x1x32xf32>, vector<2x1x32xf32>, vector<2x1x32xf32>, vector<2x1x32xf32>, vector<2x1x32xf32>, vector<2x1x32xf32>, vector<2x1x32xf32> -> vector<2x8x32xf32>
    %c0_19 = arith.constant 0 : index
    %c0_20 = arith.constant 0 : index
    %60 = vector.load %arg5[%c0_19, %c0_20] : memref<2x32xf32, #tpu.memory_space<vmem>>, vector<2x32xf32>
    %c0_21 = arith.constant 0 : index
    %c0_22 = arith.constant 0 : index
    %61 = vector.load %arg6[%c0_21, %c0_22] : memref<2x32xf32, #tpu.memory_space<vmem>>, vector<2x32xf32>
    %c0_23 = arith.constant 0 : index
    %c0_24 = arith.constant 0 : index
    %62 = vector.load %arg7[%c0_23, %c0_24] : memref<32x128xf32, #tpu.memory_space<vmem>>, vector<32x128xf32>
    %c0_25 = arith.constant 0 : index
    %c0_26 = arith.constant 0 : index
    %63 = vector.load %arg8[%c0_25, %c0_26] : memref<1x128xf32, #tpu.memory_space<vmem>>, vector<1x128xf32>
    %c0_27 = arith.constant 0 : index
    %c0_28 = arith.constant 0 : index
    %64 = vector.load %arg9[%c0_27, %c0_28] : memref<64x32xf32, #tpu.memory_space<vmem>>, vector<64x32xf32>
    %c0_29 = arith.constant 0 : index
    %c0_30 = arith.constant 0 : index
    %65 = vector.load %arg10[%c0_29, %c0_30] : memref<1x32xf32, #tpu.memory_space<vmem>>, vector<1x32xf32>
    %c0_31 = arith.constant 0 : index
    %c0_32 = arith.constant 0 : index
    %66 = vector.load %arg11[%c0_31, %c0_32] : memref<1x32xf32, #tpu.memory_space<vmem>>, vector<1x32xf32>
    %c0_33 = arith.constant 0 : index
    %c0_34 = arith.constant 0 : index
    %67 = vector.load %arg12[%c0_33, %c0_34] : memref<1x32xf32, #tpu.memory_space<vmem>>, vector<1x32xf32>
    %c0_35 = arith.constant 0 : index
    %c0_36 = arith.constant 0 : index
    %68 = vector.load %arg13[%c0_35, %c0_36] : memref<32x32xf32, #tpu.memory_space<vmem>>, vector<32x32xf32>
    %c0_37 = arith.constant 0 : index
    %c0_38 = arith.constant 0 : index
    %69 = vector.load %arg14[%c0_37, %c0_38] : memref<1x32xf32, #tpu.memory_space<vmem>>, vector<1x32xf32>
    %c0_39 = arith.constant 0 : index
    %c0_40 = arith.constant 0 : index
    %70 = vector.load %arg15[%c0_39, %c0_40] : memref<32x32xf32, #tpu.memory_space<vmem>>, vector<32x32xf32>
    %c0_41 = arith.constant 0 : index
    %c0_42 = arith.constant 0 : index
    %71 = vector.load %arg16[%c0_41, %c0_42] : memref<1x32xf32, #tpu.memory_space<vmem>>, vector<1x32xf32>
    %72 = tpu.iota {dimensions = array<i32: 0>} : vector<8x8xi32>
    %73 = tpu.iota {dimensions = array<i32: 1>} : vector<8x8xi32>
    %74 = arith.cmpi sgt, %73, %72 : vector<8x8xi32>
    %75 = vector.shape_cast %74 : vector<8x8xi1> to vector<1x8x8xi1>
    %76 = vector.shape_cast %59 : vector<2x8x32xf32> to vector<16x32xf32>
    %77 = vector.extract_strided_slice %60 {offsets = [0, 0], sizes = [1, 32], strides = [1, 1]} : vector<2x32xf32> to vector<1x32xf32>
    %78 = vector.extract_strided_slice %61 {offsets = [0, 0], sizes = [1, 32], strides = [1, 1]} : vector<2x32xf32> to vector<1x32xf32>
    %cst_43 = arith.constant dense<0.000000e+00> : vector<16xf32>
    %79 = vector.multi_reduction <add>, %76, %cst_43 [1] : vector<16x32xf32> to vector<16xf32>
    %80 = vector.shape_cast %79 : vector<16xf32> to vector<16x1xf32>
    %cst_44 = arith.constant 3.200000e+01 : f32
    %81 = vector.broadcast %cst_44 : f32 to vector<16x1xf32>
    %82 = arith.divf %80, %81 : vector<16x1xf32>
    %83 = vector.broadcast %82 : vector<16x1xf32> to vector<16x32xf32>
    %84 = arith.subf %76, %83 : vector<16x32xf32>
    %85 = arith.mulf %84, %84 : vector<16x32xf32>
    %cst_45 = arith.constant dense<0.000000e+00> : vector<16xf32>
    %86 = vector.multi_reduction <add>, %85, %cst_45 [1] : vector<16x32xf32> to vector<16xf32>
    %87 = vector.shape_cast %86 : vector<16xf32> to vector<16x1xf32>
    %cst_46 = arith.constant 3.200000e+01 : f32
    %88 = vector.broadcast %cst_46 : f32 to vector<16x1xf32>
    %89 = arith.divf %87, %88 : vector<16x1xf32>
    %cst_47 = arith.constant 9.99999974E-6 : f32
    %90 = vector.broadcast %cst_47 : f32 to vector<16x1xf32>
    %91 = arith.addf %89, %90 : vector<16x1xf32>
    %92 = math.rsqrt %91 : vector<16x1xf32>
    %93 = vector.broadcast %92 : vector<16x1xf32> to vector<16x32xf32>
    %94 = arith.mulf %84, %93 : vector<16x32xf32>
    %95 = vector.broadcast %77 : vector<1x32xf32> to vector<16x32xf32>
    %96 = arith.mulf %94, %95 : vector<16x32xf32>
    %97 = vector.broadcast %78 : vector<1x32xf32> to vector<16x32xf32>
    %98 = arith.addf %96, %97 : vector<16x32xf32>
    %cst_48 = arith.constant dense<0.000000e+00> : vector<16x128xf32>
    %99 = tpu.matmul %98, %62, %cst_48 {dimension_numbers = #tpu.dot_dimension_numbers<[1], [0], [0], [1], [0, 0, 1, 1], [], []>} : vector<16x32xf32>, vector<32x128xf32>, vector<16x128xf32> -> vector<16x128xf32>
    %100 = vector.broadcast %63 : vector<1x128xf32> to vector<16x128xf32>
    %101 = arith.addf %99, %100 : vector<16x128xf32>
    %cst_49 = arith.constant 0.000000e+00 : f32
    %102 = vector.broadcast %cst_49 : f32 to vector<16x128xf32>
    %103 = arith.cmpf oge, %101, %102 : vector<16x128xf32>
    %cst_50 = arith.constant 0.00999999977 : f32
    %104 = vector.broadcast %cst_50 : f32 to vector<16x128xf32>
    %105 = arith.mulf %104, %101 : vector<16x128xf32>
    %106 = arith.select %103, %101, %105 : vector<16x128xi1>, vector<16x128xf32>
    %107 = vector.shape_cast %106 : vector<16x128xf32> to vector<2x8x128xf32>
    %108 = vector.extract_strided_slice %107 {offsets = [0, 0, 0], sizes = [2, 8, 32], strides = [1, 1, 1]} : vector<2x8x128xf32> to vector<2x8x32xf32>
    %cst_51 = arith.constant 0.353553385 : f32
    %109 = vector.broadcast %cst_51 : f32 to vector<2x8x32xf32>
    %110 = arith.mulf %108, %109 : vector<2x8x32xf32>
    %111 = vector.extract_strided_slice %107 {offsets = [0, 0, 32], sizes = [2, 8, 32], strides = [1, 1, 1]} : vector<2x8x128xf32> to vector<2x8x32xf32>
    %112 = vector.extract_strided_slice %107 {offsets = [0, 0, 64], sizes = [2, 8, 64], strides = [1, 1, 1]} : vector<2x8x128xf32> to vector<2x8x64xf32>
    %c0_52 = arith.constant 0 : index
    %c0_53 = arith.constant 0 : index
    %c0_54 = arith.constant 0 : index
    %c0_55 = arith.constant 0 : index
    %113 = vector.load %arg24[%c0_52, %c0_53, %c0_54, %c0_55] : memref<2x2x8x32xf32, #tpu.memory_space<vmem>>, vector<1x2x8x32xf32>
    %114 = vector.shape_cast %113 : vector<1x2x8x32xf32> to vector<2x8x32xf32>
    %115 = vector.shape_cast %111 : vector<2x8x32xf32> to vector<1x2x8x32xf32>
    tpu.vector_store %arg24[%c0_52, %c0_53, %c0_54, %c0_55], %115 {strides = array<i32>} : memref<2x2x8x32xf32, #tpu.memory_space<vmem>>, vector<1x2x8x32xf32>,
    %c0_56 = arith.constant 0 : index
    %c0_57 = arith.constant 0 : index
    %c0_58 = arith.constant 0 : index
    %c0_59 = arith.constant 0 : index
    %116 = vector.load %arg25[%c0_56, %c0_57, %c0_58, %c0_59] : memref<2x2x8x64xf32, #tpu.memory_space<vmem>>, vector<1x2x8x64xf32>
    %117 = vector.shape_cast %116 : vector<1x2x8x64xf32> to vector<2x8x64xf32>
    %118 = vector.shape_cast %112 : vector<2x8x64xf32> to vector<1x2x8x64xf32>
    tpu.vector_store %arg25[%c0_56, %c0_57, %c0_58, %c0_59], %118 {strides = array<i32>} : memref<2x2x8x64xf32, #tpu.memory_space<vmem>>, vector<1x2x8x64xf32>,
    %119 = vector.extract_strided_slice %110 {offsets = [0, 0, 0], sizes = [2, 8, 8], strides = [1, 1, 1]} : vector<2x8x32xf32> to vector<2x8x8xf32>
    %120 = vector.extract_strided_slice %111 {offsets = [0, 0, 0], sizes = [2, 8, 8], strides = [1, 1, 1]} : vector<2x8x32xf32> to vector<2x8x8xf32>
    %121 = vector.extract_strided_slice %112 {offsets = [0, 0, 0], sizes = [2, 8, 16], strides = [1, 1, 1]} : vector<2x8x64xf32> to vector<2x8x16xf32>
    "tpu.trace_start"() <{level = 10 : i32, message = "bqd,bkd->bqk"}> : () -> ()
    %cst_60 = arith.constant dense<0.000000e+00> : vector<2x8x8xf32>
    %122 = tpu.matmul %119, %120, %cst_60 {dimension_numbers = #tpu.dot_dimension_numbers<[2], [2], [1], [1], [0, 0, 0, 1, 1, 1], [0], [0]>} : vector<2x8x8xf32>, vector<2x8x8xf32>, vector<2x8x8xf32> -> vector<2x8x8xf32>
    %cst_61 = arith.constant 0xFF800000 : f32
    "tpu.trace_stop"() : () -> ()
    %123 = vector.shape_cast %75 : vector<1x8x8xi1> to vector<1x8x8xi1>
    %124 = vector.broadcast %123 : vector<1x8x8xi1> to vector<2x8x8xi1>
    %125 = vector.broadcast %cst_61 : f32 to vector<2x8x8xf32>
    %126 = arith.select %124, %125, %122 : vector<2x8x8xi1>, vector<2x8x8xf32>
    %cst_62 = arith.constant dense<0xFF800000> : vector<2x8xf32>
    %127 = vector.multi_reduction <maximumf>, %126, %cst_62 [2] : vector<2x8x8xf32> to vector<2x8xf32>
    %128 = vector.shape_cast %127 : vector<2x8xf32> to vector<2x8x1xf32>
    %129 = vector.broadcast %128 : vector<2x8x1xf32> to vector<2x8x8xf32>
    %130 = arith.subf %126, %129 : vector<2x8x8xf32>
    %131 = math.exp %130 : vector<2x8x8xf32>
    %cst_63 = arith.constant dense<0.000000e+00> : vector<2x8xf32>
    %132 = vector.multi_reduction <add>, %131, %cst_63 [2] : vector<2x8x8xf32> to vector<2x8xf32>
    %133 = vector.shape_cast %132 : vector<2x8xf32> to vector<2x8x1xf32>
    %134 = tpu.reciprocal %133 {approx = true} : vector<2x8x1xf32> -> vector<2x8x1xf32>
    %135 = vector.broadcast %134 : vector<2x8x1xf32> to vector<2x8x8xf32>
    %136 = arith.mulf %131, %135 : vector<2x8x8xf32>
    "tpu.trace_start"() <{level = 10 : i32, message = "bqk,bkd->bqd"}> : () -> ()
    %cst_64 = arith.constant dense<0.000000e+00> : vector<2x8x16xf32>
    %137 = tpu.matmul %136, %121, %cst_64 {dimension_numbers = #tpu.dot_dimension_numbers<[2], [1], [1], [2], [0, 0, 0, 1, 1, 2], [0], [0]>} : vector<2x8x8xf32>, vector<2x8x16xf32>, vector<2x8x16xf32> -> vector<2x8x16xf32>
    "tpu.trace_stop"() : () -> ()
    %138 = vector.extract_strided_slice %110 {offsets = [0, 0, 8], sizes = [2, 8, 8], strides = [1, 1, 1]} : vector<2x8x32xf32> to vector<2x8x8xf32>
    %139 = vector.extract_strided_slice %111 {offsets = [0, 0, 8], sizes = [2, 8, 8], strides = [1, 1, 1]} : vector<2x8x32xf32> to vector<2x8x8xf32>
    %140 = vector.extract_strided_slice %112 {offsets = [0, 0, 16], sizes = [2, 8, 16], strides = [1, 1, 1]} : vector<2x8x64xf32> to vector<2x8x16xf32>
    "tpu.trace_start"() <{level = 10 : i32, message = "bqd,bkd->bqk"}> : () -> ()
    %cst_65 = arith.constant dense<0.000000e+00> : vector<2x8x8xf32>
    %141 = tpu.matmul %138, %139, %cst_65 {dimension_numbers = #tpu.dot_dimension_numbers<[2], [2], [1], [1], [0, 0, 0, 1, 1, 1], [0], [0]>} : vector<2x8x8xf32>, vector<2x8x8xf32>, vector<2x8x8xf32> -> vector<2x8x8xf32>
    %cst_66 = arith.constant 0xFF800000 : f32
    "tpu.trace_stop"() : () -> ()
    %142 = vector.shape_cast %75 : vector<1x8x8xi1> to vector<1x8x8xi1>
    %143 = vector.broadcast %142 : vector<1x8x8xi1> to vector<2x8x8xi1>
    %144 = vector.broadcast %cst_66 : f32 to vector<2x8x8xf32>
    %145 = arith.select %143, %144, %141 : vector<2x8x8xi1>, vector<2x8x8xf32>
    %cst_67 = arith.constant dense<0xFF800000> : vector<2x8xf32>
    %146 = vector.multi_reduction <maximumf>, %145, %cst_67 [2] : vector<2x8x8xf32> to vector<2x8xf32>
    %147 = vector.shape_cast %146 : vector<2x8xf32> to vector<2x8x1xf32>
    %148 = vector.broadcast %147 : vector<2x8x1xf32> to vector<2x8x8xf32>
    %149 = arith.subf %145, %148 : vector<2x8x8xf32>
    %150 = math.exp %149 : vector<2x8x8xf32>
    %cst_68 = arith.constant dense<0.000000e+00> : vector<2x8xf32>
    %151 = vector.multi_reduction <add>, %150, %cst_68 [2] : vector<2x8x8xf32> to vector<2x8xf32>
    %152 = vector.shape_cast %151 : vector<2x8xf32> to vector<2x8x1xf32>
    %153 = tpu.reciprocal %152 {approx = true} : vector<2x8x1xf32> -> vector<2x8x1xf32>
    %154 = vector.broadcast %153 : vector<2x8x1xf32> to vector<2x8x8xf32>
    %155 = arith.mulf %150, %154 : vector<2x8x8xf32>
    "tpu.trace_start"() <{level = 10 : i32, message = "bqk,bkd->bqd"}> : () -> ()
    %cst_69 = arith.constant dense<0.000000e+00> : vector<2x8x16xf32>
    %156 = tpu.matmul %155, %140, %cst_69 {dimension_numbers = #tpu.dot_dimension_numbers<[2], [1], [1], [2], [0, 0, 0, 1, 1, 2], [0], [0]>} : vector<2x8x8xf32>, vector<2x8x16xf32>, vector<2x8x16xf32> -> vector<2x8x16xf32>
    "tpu.trace_stop"() : () -> ()
    %157 = vector.extract_strided_slice %110 {offsets = [0, 0, 16], sizes = [2, 8, 8], strides = [1, 1, 1]} : vector<2x8x32xf32> to vector<2x8x8xf32>
    %158 = vector.extract_strided_slice %111 {offsets = [0, 0, 16], sizes = [2, 8, 8], strides = [1, 1, 1]} : vector<2x8x32xf32> to vector<2x8x8xf32>
    %159 = vector.extract_strided_slice %112 {offsets = [0, 0, 32], sizes = [2, 8, 16], strides = [1, 1, 1]} : vector<2x8x64xf32> to vector<2x8x16xf32>
    "tpu.trace_start"() <{level = 10 : i32, message = "bqd,bkd->bqk"}> : () -> ()
    %cst_70 = arith.constant dense<0.000000e+00> : vector<2x8x8xf32>
    %160 = tpu.matmul %157, %158, %cst_70 {dimension_numbers = #tpu.dot_dimension_numbers<[2], [2], [1], [1], [0, 0, 0, 1, 1, 1], [0], [0]>} : vector<2x8x8xf32>, vector<2x8x8xf32>, vector<2x8x8xf32> -> vector<2x8x8xf32>
    %cst_71 = arith.constant 0xFF800000 : f32
    "tpu.trace_stop"() : () -> ()
    %161 = vector.shape_cast %75 : vector<1x8x8xi1> to vector<1x8x8xi1>
    %162 = vector.broadcast %161 : vector<1x8x8xi1> to vector<2x8x8xi1>
    %163 = vector.broadcast %cst_71 : f32 to vector<2x8x8xf32>
    %164 = arith.select %162, %163, %160 : vector<2x8x8xi1>, vector<2x8x8xf32>
    %cst_72 = arith.constant dense<0xFF800000> : vector<2x8xf32>
    %165 = vector.multi_reduction <maximumf>, %164, %cst_72 [2] : vector<2x8x8xf32> to vector<2x8xf32>
    %166 = vector.shape_cast %165 : vector<2x8xf32> to vector<2x8x1xf32>
    %167 = vector.broadcast %166 : vector<2x8x1xf32> to vector<2x8x8xf32>
    %168 = arith.subf %164, %167 : vector<2x8x8xf32>
    %169 = math.exp %168 : vector<2x8x8xf32>
    %cst_73 = arith.constant dense<0.000000e+00> : vector<2x8xf32>
    %170 = vector.multi_reduction <add>, %169, %cst_73 [2] : vector<2x8x8xf32> to vector<2x8xf32>
    %171 = vector.shape_cast %170 : vector<2x8xf32> to vector<2x8x1xf32>
    %172 = tpu.reciprocal %171 {approx = true} : vector<2x8x1xf32> -> vector<2x8x1xf32>
    %173 = vector.broadcast %172 : vector<2x8x1xf32> to vector<2x8x8xf32>
    %174 = arith.mulf %169, %173 : vector<2x8x8xf32>
    "tpu.trace_start"() <{level = 10 : i32, message = "bqk,bkd->bqd"}> : () -> ()
    %cst_74 = arith.constant dense<0.000000e+00> : vector<2x8x16xf32>
    %175 = tpu.matmul %174, %159, %cst_74 {dimension_numbers = #tpu.dot_dimension_numbers<[2], [1], [1], [2], [0, 0, 0, 1, 1, 2], [0], [0]>} : vector<2x8x8xf32>, vector<2x8x16xf32>, vector<2x8x16xf32> -> vector<2x8x16xf32>
    "tpu.trace_stop"() : () -> ()
    %176 = vector.extract_strided_slice %110 {offsets = [0, 0, 24], sizes = [2, 8, 8], strides = [1, 1, 1]} : vector<2x8x32xf32> to vector<2x8x8xf32>
    %177 = vector.extract_strided_slice %111 {offsets = [0, 0, 24], sizes = [2, 8, 8], strides = [1, 1, 1]} : vector<2x8x32xf32> to vector<2x8x8xf32>
    %178 = vector.extract_strided_slice %112 {offsets = [0, 0, 48], sizes = [2, 8, 16], strides = [1, 1, 1]} : vector<2x8x64xf32> to vector<2x8x16xf32>
    "tpu.trace_start"() <{level = 10 : i32, message = "bqd,bkd->bqk"}> : () -> ()
    %cst_75 = arith.constant dense<0.000000e+00> : vector<2x8x8xf32>
    %179 = tpu.matmul %176, %177, %cst_75 {dimension_numbers = #tpu.dot_dimension_numbers<[2], [2], [1], [1], [0, 0, 0, 1, 1, 1], [0], [0]>} : vector<2x8x8xf32>, vector<2x8x8xf32>, vector<2x8x8xf32> -> vector<2x8x8xf32>
    %cst_76 = arith.constant 0xFF800000 : f32
    "tpu.trace_stop"() : () -> ()
    %180 = vector.shape_cast %75 : vector<1x8x8xi1> to vector<1x8x8xi1>
    %181 = vector.broadcast %180 : vector<1x8x8xi1> to vector<2x8x8xi1>
    %182 = vector.broadcast %cst_76 : f32 to vector<2x8x8xf32>
    %183 = arith.select %181, %182, %179 : vector<2x8x8xi1>, vector<2x8x8xf32>
    %cst_77 = arith.constant dense<0xFF800000> : vector<2x8xf32>
    %184 = vector.multi_reduction <maximumf>, %183, %cst_77 [2] : vector<2x8x8xf32> to vector<2x8xf32>
    %185 = vector.shape_cast %184 : vector<2x8xf32> to vector<2x8x1xf32>
    %186 = vector.broadcast %185 : vector<2x8x1xf32> to vector<2x8x8xf32>
    %187 = arith.subf %183, %186 : vector<2x8x8xf32>
    %188 = math.exp %187 : vector<2x8x8xf32>
    %cst_78 = arith.constant dense<0.000000e+00> : vector<2x8xf32>
    %189 = vector.multi_reduction <add>, %188, %cst_78 [2] : vector<2x8x8xf32> to vector<2x8xf32>
    %190 = vector.shape_cast %189 : vector<2x8xf32> to vector<2x8x1xf32>
    %191 = tpu.reciprocal %190 {approx = true} : vector<2x8x1xf32> -> vector<2x8x1xf32>
    %192 = vector.broadcast %191 : vector<2x8x1xf32> to vector<2x8x8xf32>
    %193 = arith.mulf %188, %192 : vector<2x8x8xf32>
    "tpu.trace_start"() <{level = 10 : i32, message = "bqk,bkd->bqd"}> : () -> ()
    %cst_79 = arith.constant dense<0.000000e+00> : vector<2x8x16xf32>
    %194 = tpu.matmul %193, %178, %cst_79 {dimension_numbers = #tpu.dot_dimension_numbers<[2], [1], [1], [2], [0, 0, 0, 1, 1, 2], [0], [0]>} : vector<2x8x8xf32>, vector<2x8x16xf32>, vector<2x8x16xf32> -> vector<2x8x16xf32>
    "tpu.trace_stop"() : () -> ()
    %195 = tpu.concatenate %137, %156, %175, %194 in 2 : vector<2x8x16xf32>, vector<2x8x16xf32>, vector<2x8x16xf32>, vector<2x8x16xf32> -> vector<2x8x64xf32>
    %196 = vector.shape_cast %195 : vector<2x8x64xf32> to vector<16x64xf32>
    %cst_80 = arith.constant dense<0.000000e+00> : vector<16x32xf32>
    %197 = tpu.matmul %196, %64, %cst_80 {dimension_numbers = #tpu.dot_dimension_numbers<[1], [0], [0], [1], [0, 0, 1, 1], [], []>} : vector<16x64xf32>, vector<64x32xf32>, vector<16x32xf32> -> vector<16x32xf32>
    %198 = vector.broadcast %65 : vector<1x32xf32> to vector<16x32xf32>
    %199 = arith.addf %197, %198 : vector<16x32xf32>
    %cst_81 = arith.constant 0.000000e+00 : f32
    %200 = vector.broadcast %cst_81 : f32 to vector<16x32xf32>
    %201 = arith.cmpf oge, %199, %200 : vector<16x32xf32>
    %cst_82 = arith.constant 0.00999999977 : f32
    %202 = vector.broadcast %cst_82 : f32 to vector<16x32xf32>
    %203 = arith.mulf %202, %199 : vector<16x32xf32>
    %204 = arith.select %201, %199, %203 : vector<16x32xi1>, vector<16x32xf32>
    %205 = arith.addf %98, %204 : vector<16x32xf32>
    %cst_83 = arith.constant dense<0.000000e+00> : vector<16xf32>
    %206 = vector.multi_reduction <add>, %205, %cst_83 [1] : vector<16x32xf32> to vector<16xf32>
    %207 = vector.shape_cast %206 : vector<16xf32> to vector<16x1xf32>
    %cst_84 = arith.constant 3.200000e+01 : f32
    %208 = vector.broadcast %cst_84 : f32 to vector<16x1xf32>
    %209 = arith.divf %207, %208 : vector<16x1xf32>
    %210 = vector.broadcast %209 : vector<16x1xf32> to vector<16x32xf32>
    %211 = arith.subf %205, %210 : vector<16x32xf32>
    %212 = arith.mulf %211, %211 : vector<16x32xf32>
    %cst_85 = arith.constant dense<0.000000e+00> : vector<16xf32>
    %213 = vector.multi_reduction <add>, %212, %cst_85 [1] : vector<16x32xf32> to vector<16xf32>
    %214 = vector.shape_cast %213 : vector<16xf32> to vector<16x1xf32>
    %cst_86 = arith.constant 3.200000e+01 : f32
    %215 = vector.broadcast %cst_86 : f32 to vector<16x1xf32>
    %216 = arith.divf %214, %215 : vector<16x1xf32>
    %cst_87 = arith.constant 9.99999974E-6 : f32
    %217 = vector.broadcast %cst_87 : f32 to vector<16x1xf32>
    %218 = arith.addf %216, %217 : vector<16x1xf32>
    %219 = math.rsqrt %218 : vector<16x1xf32>
    %220 = vector.broadcast %219 : vector<16x1xf32> to vector<16x32xf32>
    %221 = arith.mulf %211, %220 : vector<16x32xf32>
    %222 = vector.broadcast %66 : vector<1x32xf32> to vector<16x32xf32>
    %223 = arith.mulf %221, %222 : vector<16x32xf32>
    %224 = vector.broadcast %67 : vector<1x32xf32> to vector<16x32xf32>
    %225 = arith.addf %223, %224 : vector<16x32xf32>
    %cst_88 = arith.constant dense<0.000000e+00> : vector<16x32xf32>
    %226 = tpu.matmul %225, %68, %cst_88 {dimension_numbers = #tpu.dot_dimension_numbers<[1], [0], [0], [1], [0, 0, 1, 1], [], []>} : vector<16x32xf32>, vector<32x32xf32>, vector<16x32xf32> -> vector<16x32xf32>
    %227 = vector.broadcast %69 : vector<1x32xf32> to vector<16x32xf32>
    %228 = arith.addf %226, %227 : vector<16x32xf32>
    %cst_89 = arith.constant 0.000000e+00 : f32
    %229 = vector.broadcast %cst_89 : f32 to vector<16x32xf32>
    %230 = arith.cmpf ogt, %228, %229 : vector<16x32xf32>
    %231 = math.exp %228 : vector<16x32xf32>
    %cst_90 = arith.constant 1.000000e+00 : f32
    %232 = vector.broadcast %cst_90 : f32 to vector<16x32xf32>
    %233 = arith.subf %231, %232 : vector<16x32xf32>
    %cst_91 = arith.constant 1.67326319 : f32
    %234 = vector.broadcast %cst_91 : f32 to vector<16x32xf32>
    %235 = arith.mulf %234, %233 : vector<16x32xf32>
    %236 = arith.select %230, %228, %235 : vector<16x32xi1>, vector<16x32xf32>
    %cst_92 = arith.constant 1.05070102 : f32
    %237 = vector.broadcast %cst_92 : f32 to vector<16x32xf32>
    %238 = arith.mulf %237, %236 : vector<16x32xf32>
    %cst_93 = arith.constant dense<0.000000e+00> : vector<16x32xf32>
    %239 = tpu.matmul %238, %70, %cst_93 {dimension_numbers = #tpu.dot_dimension_numbers<[1], [0], [0], [1], [0, 0, 1, 1], [], []>} : vector<16x32xf32>, vector<32x32xf32>, vector<16x32xf32> -> vector<16x32xf32>
    %240 = vector.broadcast %71 : vector<1x32xf32> to vector<16x32xf32>
    %241 = arith.addf %239, %240 : vector<16x32xf32>
    %cst_94 = arith.constant 0.707106769 : f32
    %242 = vector.broadcast %cst_94 : f32 to vector<16x32xf32>
    %243 = arith.mulf %241, %242 : vector<16x32xf32>
    %244 = math.absf %243 : vector<16x32xf32>
    %cst_95 = arith.constant 0.327591091 : f32
    %245 = vector.broadcast %cst_95 : f32 to vector<16x32xf32>
    %246 = arith.mulf %245, %244 : vector<16x32xf32>
    %cst_96 = arith.constant 1.000000e+00 : f32
    %247 = vector.broadcast %cst_96 : f32 to vector<16x32xf32>
    %248 = arith.addf %247, %246 : vector<16x32xf32>
    %cst_97 = arith.constant 1.000000e+00 : f32
    %249 = vector.broadcast %cst_97 : f32 to vector<16x32xf32>
    %250 = arith.divf %249, %248 : vector<16x32xf32>
    %cst_98 = arith.constant 1.06140542 : f32
    %251 = vector.broadcast %cst_98 : f32 to vector<16x32xf32>
    %252 = arith.mulf %250, %251 : vector<16x32xf32>
    %cst_99 = arith.constant -1.45315206 : f32
    %253 = vector.broadcast %cst_99 : f32 to vector<16x32xf32>
    %254 = arith.addf %253, %252 : vector<16x32xf32>
    %255 = arith.mulf %250, %254 : vector<16x32xf32>
    %cst_100 = arith.constant 1.42141378 : f32
    %256 = vector.broadcast %cst_100 : f32 to vector<16x32xf32>
    %257 = arith.addf %256, %255 : vector<16x32xf32>
    %258 = arith.mulf %250, %257 : vector<16x32xf32>
    %cst_101 = arith.constant -0.284496725 : f32
    %259 = vector.broadcast %cst_101 : f32 to vector<16x32xf32>
    %260 = arith.addf %259, %258 : vector<16x32xf32>
    %261 = arith.mulf %250, %260 : vector<16x32xf32>
    %cst_102 = arith.constant 0.254829586 : f32
    %262 = vector.broadcast %cst_102 : f32 to vector<16x32xf32>
    %263 = arith.addf %262, %261 : vector<16x32xf32>
    %264 = arith.mulf %250, %263 : vector<16x32xf32>
    %cst_103 = arith.constant 0.000000e+00 : f32
    %265 = vector.broadcast %cst_103 : f32 to vector<16x32xf32>
    %266 = arith.subf %265, %244 : vector<16x32xf32>
    %267 = arith.mulf %266, %244 : vector<16x32xf32>
    %268 = math.exp %267 : vector<16x32xf32>
    %269 = arith.mulf %264, %268 : vector<16x32xf32>
    %cst_104 = arith.constant 1.000000e+00 : f32
    %270 = vector.broadcast %cst_104 : f32 to vector<16x32xf32>
    %271 = arith.subf %270, %269 : vector<16x32xf32>
    %cst_105 = arith.constant 0.000000e+00 : f32
    %272 = vector.broadcast %cst_105 : f32 to vector<16x32xf32>
    %273 = arith.cmpf oge, %243, %272 : vector<16x32xf32>
    %cst_106 = arith.constant 0.000000e+00 : f32
    %274 = vector.broadcast %cst_106 : f32 to vector<16x32xf32>
    %275 = arith.subf %274, %271 : vector<16x32xf32>
    %276 = arith.select %273, %271, %275 : vector<16x32xi1>, vector<16x32xf32>
    %cst_107 = arith.constant 5.000000e-01 : f32
    %277 = vector.broadcast %cst_107 : f32 to vector<16x32xf32>
    %278 = arith.mulf %277, %241 : vector<16x32xf32>
    %cst_108 = arith.constant 1.000000e+00 : f32
    %279 = vector.broadcast %cst_108 : f32 to vector<16x32xf32>
    %280 = arith.addf %279, %276 : vector<16x32xf32>
    %281 = arith.mulf %278, %280 : vector<16x32xf32>
    %282 = arith.addf %225, %281 : vector<16x32xf32>
    %283 = vector.shape_cast %282 : vector<16x32xf32> to vector<2x8x32xf32>
    %284 = vector.shape_cast %283 : vector<2x8x32xf32> to vector<16x32xf32>
    %285 = vector.extract_strided_slice %60 {offsets = [1, 0], sizes = [1, 32], strides = [1, 1]} : vector<2x32xf32> to vector<1x32xf32>
    %286 = vector.extract_strided_slice %61 {offsets = [1, 0], sizes = [1, 32], strides = [1, 1]} : vector<2x32xf32> to vector<1x32xf32>
    %cst_109 = arith.constant dense<0.000000e+00> : vector<16xf32>
    %287 = vector.multi_reduction <add>, %284, %cst_109 [1] : vector<16x32xf32> to vector<16xf32>
    %288 = vector.shape_cast %287 : vector<16xf32> to vector<16x1xf32>
    %cst_110 = arith.constant 3.200000e+01 : f32
    %289 = vector.broadcast %cst_110 : f32 to vector<16x1xf32>
    %290 = arith.divf %288, %289 : vector<16x1xf32>
    %291 = vector.broadcast %290 : vector<16x1xf32> to vector<16x32xf32>
    %292 = arith.subf %284, %291 : vector<16x32xf32>
    %293 = arith.mulf %292, %292 : vector<16x32xf32>
    %cst_111 = arith.constant dense<0.000000e+00> : vector<16xf32>
    %294 = vector.multi_reduction <add>, %293, %cst_111 [1] : vector<16x32xf32> to vector<16xf32>
    %295 = vector.shape_cast %294 : vector<16xf32> to vector<16x1xf32>
    %cst_112 = arith.constant 3.200000e+01 : f32
    %296 = vector.broadcast %cst_112 : f32 to vector<16x1xf32>
    %297 = arith.divf %295, %296 : vector<16x1xf32>
    %cst_113 = arith.constant 9.99999974E-6 : f32
    %298 = vector.broadcast %cst_113 : f32 to vector<16x1xf32>
    %299 = arith.addf %297, %298 : vector<16x1xf32>
    %300 = math.rsqrt %299 : vector<16x1xf32>
    %301 = vector.broadcast %300 : vector<16x1xf32> to vector<16x32xf32>
    %302 = arith.mulf %292, %301 : vector<16x32xf32>
    %303 = vector.broadcast %285 : vector<1x32xf32> to vector<16x32xf32>
    %304 = arith.mulf %302, %303 : vector<16x32xf32>
    %305 = vector.broadcast %286 : vector<1x32xf32> to vector<16x32xf32>
    %306 = arith.addf %304, %305 : vector<16x32xf32>
    %cst_114 = arith.constant dense<0.000000e+00> : vector<16x128xf32>
    %307 = tpu.matmul %306, %62, %cst_114 {dimension_numbers = #tpu.dot_dimension_numbers<[1], [0], [0], [1], [0, 0, 1, 1], [], []>} : vector<16x32xf32>, vector<32x128xf32>, vector<16x128xf32> -> vector<16x128xf32>
    %308 = vector.broadcast %63 : vector<1x128xf32> to vector<16x128xf32>
    %309 = arith.addf %307, %308 : vector<16x128xf32>
    %cst_115 = arith.constant 0.000000e+00 : f32
    %310 = vector.broadcast %cst_115 : f32 to vector<16x128xf32>
    %311 = arith.cmpf oge, %309, %310 : vector<16x128xf32>
    %cst_116 = arith.constant 0.00999999977 : f32
    %312 = vector.broadcast %cst_116 : f32 to vector<16x128xf32>
    %313 = arith.mulf %312, %309 : vector<16x128xf32>
    %314 = arith.select %311, %309, %313 : vector<16x128xi1>, vector<16x128xf32>
    %315 = vector.shape_cast %314 : vector<16x128xf32> to vector<2x8x128xf32>
    %316 = vector.extract_strided_slice %315 {offsets = [0, 0, 0], sizes = [2, 8, 32], strides = [1, 1, 1]} : vector<2x8x128xf32> to vector<2x8x32xf32>
    %cst_117 = arith.constant 0.353553385 : f32
    %317 = vector.broadcast %cst_117 : f32 to vector<2x8x32xf32>
    %318 = arith.mulf %316, %317 : vector<2x8x32xf32>
    %319 = vector.extract_strided_slice %315 {offsets = [0, 0, 32], sizes = [2, 8, 32], strides = [1, 1, 1]} : vector<2x8x128xf32> to vector<2x8x32xf32>
    %320 = vector.extract_strided_slice %315 {offsets = [0, 0, 64], sizes = [2, 8, 64], strides = [1, 1, 1]} : vector<2x8x128xf32> to vector<2x8x64xf32>
    %c1 = arith.constant 1 : index
    %c0_118 = arith.constant 0 : index
    %c0_119 = arith.constant 0 : index
    %c0_120 = arith.constant 0 : index
    %321 = vector.load %arg24[%c1, %c0_118, %c0_119, %c0_120] : memref<2x2x8x32xf32, #tpu.memory_space<vmem>>, vector<1x2x8x32xf32>
    %322 = vector.shape_cast %321 : vector<1x2x8x32xf32> to vector<2x8x32xf32>
    %323 = vector.shape_cast %319 : vector<2x8x32xf32> to vector<1x2x8x32xf32>
    tpu.vector_store %arg24[%c1, %c0_118, %c0_119, %c0_120], %323 {strides = array<i32>} : memref<2x2x8x32xf32, #tpu.memory_space<vmem>>, vector<1x2x8x32xf32>,
    %c1_121 = arith.constant 1 : index
    %c0_122 = arith.constant 0 : index
    %c0_123 = arith.constant 0 : index
    %c0_124 = arith.constant 0 : index
    %324 = vector.load %arg25[%c1_121, %c0_122, %c0_123, %c0_124] : memref<2x2x8x64xf32, #tpu.memory_space<vmem>>, vector<1x2x8x64xf32>
    %325 = vector.shape_cast %324 : vector<1x2x8x64xf32> to vector<2x8x64xf32>
    %326 = vector.shape_cast %320 : vector<2x8x64xf32> to vector<1x2x8x64xf32>
    tpu.vector_store %arg25[%c1_121, %c0_122, %c0_123, %c0_124], %326 {strides = array<i32>} : memref<2x2x8x64xf32, #tpu.memory_space<vmem>>, vector<1x2x8x64xf32>,
    %327 = vector.extract_strided_slice %318 {offsets = [0, 0, 0], sizes = [2, 8, 8], strides = [1, 1, 1]} : vector<2x8x32xf32> to vector<2x8x8xf32>
    %328 = vector.extract_strided_slice %319 {offsets = [0, 0, 0], sizes = [2, 8, 8], strides = [1, 1, 1]} : vector<2x8x32xf32> to vector<2x8x8xf32>
    %329 = vector.extract_strided_slice %320 {offsets = [0, 0, 0], sizes = [2, 8, 16], strides = [1, 1, 1]} : vector<2x8x64xf32> to vector<2x8x16xf32>
    "tpu.trace_start"() <{level = 10 : i32, message = "bqd,bkd->bqk"}> : () -> ()
    %cst_125 = arith.constant dense<0.000000e+00> : vector<2x8x8xf32>
    %330 = tpu.matmul %327, %328, %cst_125 {dimension_numbers = #tpu.dot_dimension_numbers<[2], [2], [1], [1], [0, 0, 0, 1, 1, 1], [0], [0]>} : vector<2x8x8xf32>, vector<2x8x8xf32>, vector<2x8x8xf32> -> vector<2x8x8xf32>
    %cst_126 = arith.constant 0xFF800000 : f32
    "tpu.trace_stop"() : () -> ()
    %331 = vector.shape_cast %75 : vector<1x8x8xi1> to vector<1x8x8xi1>
    %332 = vector.broadcast %331 : vector<1x8x8xi1> to vector<2x8x8xi1>
    %333 = vector.broadcast %cst_126 : f32 to vector<2x8x8xf32>
    %334 = arith.select %332, %333, %330 : vector<2x8x8xi1>, vector<2x8x8xf32>
    %cst_127 = arith.constant dense<0xFF800000> : vector<2x8xf32>
    %335 = vector.multi_reduction <maximumf>, %334, %cst_127 [2] : vector<2x8x8xf32> to vector<2x8xf32>
    %336 = vector.shape_cast %335 : vector<2x8xf32> to vector<2x8x1xf32>
    %337 = vector.broadcast %336 : vector<2x8x1xf32> to vector<2x8x8xf32>
    %338 = arith.subf %334, %337 : vector<2x8x8xf32>
    %339 = math.exp %338 : vector<2x8x8xf32>
    %cst_128 = arith.constant dense<0.000000e+00> : vector<2x8xf32>
    %340 = vector.multi_reduction <add>, %339, %cst_128 [2] : vector<2x8x8xf32> to vector<2x8xf32>
    %341 = vector.shape_cast %340 : vector<2x8xf32> to vector<2x8x1xf32>
    %342 = tpu.reciprocal %341 {approx = true} : vector<2x8x1xf32> -> vector<2x8x1xf32>
    %343 = vector.broadcast %342 : vector<2x8x1xf32> to vector<2x8x8xf32>
    %344 = arith.mulf %339, %343 : vector<2x8x8xf32>
    "tpu.trace_start"() <{level = 10 : i32, message = "bqk,bkd->bqd"}> : () -> ()
    %cst_129 = arith.constant dense<0.000000e+00> : vector<2x8x16xf32>
    %345 = tpu.matmul %344, %329, %cst_129 {dimension_numbers = #tpu.dot_dimension_numbers<[2], [1], [1], [2], [0, 0, 0, 1, 1, 2], [0], [0]>} : vector<2x8x8xf32>, vector<2x8x16xf32>, vector<2x8x16xf32> -> vector<2x8x16xf32>
    "tpu.trace_stop"() : () -> ()
    %346 = vector.extract_strided_slice %318 {offsets = [0, 0, 8], sizes = [2, 8, 8], strides = [1, 1, 1]} : vector<2x8x32xf32> to vector<2x8x8xf32>
    %347 = vector.extract_strided_slice %319 {offsets = [0, 0, 8], sizes = [2, 8, 8], strides = [1, 1, 1]} : vector<2x8x32xf32> to vector<2x8x8xf32>
    %348 = vector.extract_strided_slice %320 {offsets = [0, 0, 16], sizes = [2, 8, 16], strides = [1, 1, 1]} : vector<2x8x64xf32> to vector<2x8x16xf32>
    "tpu.trace_start"() <{level = 10 : i32, message = "bqd,bkd->bqk"}> : () -> ()
    %cst_130 = arith.constant dense<0.000000e+00> : vector<2x8x8xf32>
    %349 = tpu.matmul %346, %347, %cst_130 {dimension_numbers = #tpu.dot_dimension_numbers<[2], [2], [1], [1], [0, 0, 0, 1, 1, 1], [0], [0]>} : vector<2x8x8xf32>, vector<2x8x8xf32>, vector<2x8x8xf32> -> vector<2x8x8xf32>
    %cst_131 = arith.constant 0xFF800000 : f32
    "tpu.trace_stop"() : () -> ()
    %350 = vector.shape_cast %75 : vector<1x8x8xi1> to vector<1x8x8xi1>
    %351 = vector.broadcast %350 : vector<1x8x8xi1> to vector<2x8x8xi1>
    %352 = vector.broadcast %cst_131 : f32 to vector<2x8x8xf32>
    %353 = arith.select %351, %352, %349 : vector<2x8x8xi1>, vector<2x8x8xf32>
    %cst_132 = arith.constant dense<0xFF800000> : vector<2x8xf32>
    %354 = vector.multi_reduction <maximumf>, %353, %cst_132 [2] : vector<2x8x8xf32> to vector<2x8xf32>
    %355 = vector.shape_cast %354 : vector<2x8xf32> to vector<2x8x1xf32>
    %356 = vector.broadcast %355 : vector<2x8x1xf32> to vector<2x8x8xf32>
    %357 = arith.subf %353, %356 : vector<2x8x8xf32>
    %358 = math.exp %357 : vector<2x8x8xf32>
    %cst_133 = arith.constant dense<0.000000e+00> : vector<2x8xf32>
    %359 = vector.multi_reduction <add>, %358, %cst_133 [2] : vector<2x8x8xf32> to vector<2x8xf32>
    %360 = vector.shape_cast %359 : vector<2x8xf32> to vector<2x8x1xf32>
    %361 = tpu.reciprocal %360 {approx = true} : vector<2x8x1xf32> -> vector<2x8x1xf32>
    %362 = vector.broadcast %361 : vector<2x8x1xf32> to vector<2x8x8xf32>
    %363 = arith.mulf %358, %362 : vector<2x8x8xf32>
    "tpu.trace_start"() <{level = 10 : i32, message = "bqk,bkd->bqd"}> : () -> ()
    %cst_134 = arith.constant dense<0.000000e+00> : vector<2x8x16xf32>
    %364 = tpu.matmul %363, %348, %cst_134 {dimension_numbers = #tpu.dot_dimension_numbers<[2], [1], [1], [2], [0, 0, 0, 1, 1, 2], [0], [0]>} : vector<2x8x8xf32>, vector<2x8x16xf32>, vector<2x8x16xf32> -> vector<2x8x16xf32>
    "tpu.trace_stop"() : () -> ()
    %365 = vector.extract_strided_slice %318 {offsets = [0, 0, 16], sizes = [2, 8, 8], strides = [1, 1, 1]} : vector<2x8x32xf32> to vector<2x8x8xf32>
    %366 = vector.extract_strided_slice %319 {offsets = [0, 0, 16], sizes = [2, 8, 8], strides = [1, 1, 1]} : vector<2x8x32xf32> to vector<2x8x8xf32>
    %367 = vector.extract_strided_slice %320 {offsets = [0, 0, 32], sizes = [2, 8, 16], strides = [1, 1, 1]} : vector<2x8x64xf32> to vector<2x8x16xf32>
    "tpu.trace_start"() <{level = 10 : i32, message = "bqd,bkd->bqk"}> : () -> ()
    %cst_135 = arith.constant dense<0.000000e+00> : vector<2x8x8xf32>
    %368 = tpu.matmul %365, %366, %cst_135 {dimension_numbers = #tpu.dot_dimension_numbers<[2], [2], [1], [1], [0, 0, 0, 1, 1, 1], [0], [0]>} : vector<2x8x8xf32>, vector<2x8x8xf32>, vector<2x8x8xf32> -> vector<2x8x8xf32>
    %cst_136 = arith.constant 0xFF800000 : f32
    "tpu.trace_stop"() : () -> ()
    %369 = vector.shape_cast %75 : vector<1x8x8xi1> to vector<1x8x8xi1>
    %370 = vector.broadcast %369 : vector<1x8x8xi1> to vector<2x8x8xi1>
    %371 = vector.broadcast %cst_136 : f32 to vector<2x8x8xf32>
    %372 = arith.select %370, %371, %368 : vector<2x8x8xi1>, vector<2x8x8xf32>
    %cst_137 = arith.constant dense<0xFF800000> : vector<2x8xf32>
    %373 = vector.multi_reduction <maximumf>, %372, %cst_137 [2] : vector<2x8x8xf32> to vector<2x8xf32>
    %374 = vector.shape_cast %373 : vector<2x8xf32> to vector<2x8x1xf32>
    %375 = vector.broadcast %374 : vector<2x8x1xf32> to vector<2x8x8xf32>
    %376 = arith.subf %372, %375 : vector<2x8x8xf32>
    %377 = math.exp %376 : vector<2x8x8xf32>
    %cst_138 = arith.constant dense<0.000000e+00> : vector<2x8xf32>
    %378 = vector.multi_reduction <add>, %377, %cst_138 [2] : vector<2x8x8xf32> to vector<2x8xf32>
    %379 = vector.shape_cast %378 : vector<2x8xf32> to vector<2x8x1xf32>
    %380 = tpu.reciprocal %379 {approx = true} : vector<2x8x1xf32> -> vector<2x8x1xf32>
    %381 = vector.broadcast %380 : vector<2x8x1xf32> to vector<2x8x8xf32>
    %382 = arith.mulf %377, %381 : vector<2x8x8xf32>
    "tpu.trace_start"() <{level = 10 : i32, message = "bqk,bkd->bqd"}> : () -> ()
    %cst_139 = arith.constant dense<0.000000e+00> : vector<2x8x16xf32>
    %383 = tpu.matmul %382, %367, %cst_139 {dimension_numbers = #tpu.dot_dimension_numbers<[2], [1], [1], [2], [0, 0, 0, 1, 1, 2], [0], [0]>} : vector<2x8x8xf32>, vector<2x8x16xf32>, vector<2x8x16xf32> -> vector<2x8x16xf32>
    "tpu.trace_stop"() : () -> ()
    %384 = vector.extract_strided_slice %318 {offsets = [0, 0, 24], sizes = [2, 8, 8], strides = [1, 1, 1]} : vector<2x8x32xf32> to vector<2x8x8xf32>
    %385 = vector.extract_strided_slice %319 {offsets = [0, 0, 24], sizes = [2, 8, 8], strides = [1, 1, 1]} : vector<2x8x32xf32> to vector<2x8x8xf32>
    %386 = vector.extract_strided_slice %320 {offsets = [0, 0, 48], sizes = [2, 8, 16], strides = [1, 1, 1]} : vector<2x8x64xf32> to vector<2x8x16xf32>
    "tpu.trace_start"() <{level = 10 : i32, message = "bqd,bkd->bqk"}> : () -> ()
    %cst_140 = arith.constant dense<0.000000e+00> : vector<2x8x8xf32>
    %387 = tpu.matmul %384, %385, %cst_140 {dimension_numbers = #tpu.dot_dimension_numbers<[2], [2], [1], [1], [0, 0, 0, 1, 1, 1], [0], [0]>} : vector<2x8x8xf32>, vector<2x8x8xf32>, vector<2x8x8xf32> -> vector<2x8x8xf32>
    %cst_141 = arith.constant 0xFF800000 : f32
    "tpu.trace_stop"() : () -> ()
    %388 = vector.shape_cast %75 : vector<1x8x8xi1> to vector<1x8x8xi1>
    %389 = vector.broadcast %388 : vector<1x8x8xi1> to vector<2x8x8xi1>
    %390 = vector.broadcast %cst_141 : f32 to vector<2x8x8xf32>
    %391 = arith.select %389, %390, %387 : vector<2x8x8xi1>, vector<2x8x8xf32>
    %cst_142 = arith.constant dense<0xFF800000> : vector<2x8xf32>
    %392 = vector.multi_reduction <maximumf>, %391, %cst_142 [2] : vector<2x8x8xf32> to vector<2x8xf32>
    %393 = vector.shape_cast %392 : vector<2x8xf32> to vector<2x8x1xf32>
    %394 = vector.broadcast %393 : vector<2x8x1xf32> to vector<2x8x8xf32>
    %395 = arith.subf %391, %394 : vector<2x8x8xf32>
    %396 = math.exp %395 : vector<2x8x8xf32>
    %cst_143 = arith.constant dense<0.000000e+00> : vector<2x8xf32>
    %397 = vector.multi_reduction <add>, %396, %cst_143 [2] : vector<2x8x8xf32> to vector<2x8xf32>
    %398 = vector.shape_cast %397 : vector<2x8xf32> to vector<2x8x1xf32>
    %399 = tpu.reciprocal %398 {approx = true} : vector<2x8x1xf32> -> vector<2x8x1xf32>
    %400 = vector.broadcast %399 : vector<2x8x1xf32> to vector<2x8x8xf32>
    %401 = arith.mulf %396, %400 : vector<2x8x8xf32>
    "tpu.trace_start"() <{level = 10 : i32, message = "bqk,bkd->bqd"}> : () -> ()
    %cst_144 = arith.constant dense<0.000000e+00> : vector<2x8x16xf32>
    %402 = tpu.matmul %401, %386, %cst_144 {dimension_numbers = #tpu.dot_dimension_numbers<[2], [1], [1], [2], [0, 0, 0, 1, 1, 2], [0], [0]>} : vector<2x8x8xf32>, vector<2x8x16xf32>, vector<2x8x16xf32> -> vector<2x8x16xf32>
    "tpu.trace_stop"() : () -> ()
    %403 = tpu.concatenate %345, %364, %383, %402 in 2 : vector<2x8x16xf32>, vector<2x8x16xf32>, vector<2x8x16xf32>, vector<2x8x16xf32> -> vector<2x8x64xf32>
    %404 = vector.shape_cast %403 : vector<2x8x64xf32> to vector<16x64xf32>
    %cst_145 = arith.constant dense<0.000000e+00> : vector<16x32xf32>
    %405 = tpu.matmul %404, %64, %cst_145 {dimension_numbers = #tpu.dot_dimension_numbers<[1], [0], [0], [1], [0, 0, 1, 1], [], []>} : vector<16x64xf32>, vector<64x32xf32>, vector<16x32xf32> -> vector<16x32xf32>
    %406 = vector.broadcast %65 : vector<1x32xf32> to vector<16x32xf32>
    %407 = arith.addf %405, %406 : vector<16x32xf32>
    %cst_146 = arith.constant 0.000000e+00 : f32
    %408 = vector.broadcast %cst_146 : f32 to vector<16x32xf32>
    %409 = arith.cmpf oge, %407, %408 : vector<16x32xf32>
    %cst_147 = arith.constant 0.00999999977 : f32
    %410 = vector.broadcast %cst_147 : f32 to vector<16x32xf32>
    %411 = arith.mulf %410, %407 : vector<16x32xf32>
    %412 = arith.select %409, %407, %411 : vector<16x32xi1>, vector<16x32xf32>
    %413 = arith.addf %306, %412 : vector<16x32xf32>
    %cst_148 = arith.constant dense<0.000000e+00> : vector<16xf32>
    %414 = vector.multi_reduction <add>, %413, %cst_148 [1] : vector<16x32xf32> to vector<16xf32>
    %415 = vector.shape_cast %414 : vector<16xf32> to vector<16x1xf32>
    %cst_149 = arith.constant 3.200000e+01 : f32
    %416 = vector.broadcast %cst_149 : f32 to vector<16x1xf32>
    %417 = arith.divf %415, %416 : vector<16x1xf32>
    %418 = vector.broadcast %417 : vector<16x1xf32> to vector<16x32xf32>
    %419 = arith.subf %413, %418 : vector<16x32xf32>
    %420 = arith.mulf %419, %419 : vector<16x32xf32>
    %cst_150 = arith.constant dense<0.000000e+00> : vector<16xf32>
    %421 = vector.multi_reduction <add>, %420, %cst_150 [1] : vector<16x32xf32> to vector<16xf32>
    %422 = vector.shape_cast %421 : vector<16xf32> to vector<16x1xf32>
    %cst_151 = arith.constant 3.200000e+01 : f32
    %423 = vector.broadcast %cst_151 : f32 to vector<16x1xf32>
    %424 = arith.divf %422, %423 : vector<16x1xf32>
    %cst_152 = arith.constant 9.99999974E-6 : f32
    %425 = vector.broadcast %cst_152 : f32 to vector<16x1xf32>
    %426 = arith.addf %424, %425 : vector<16x1xf32>
    %427 = math.rsqrt %426 : vector<16x1xf32>
    %428 = vector.broadcast %427 : vector<16x1xf32> to vector<16x32xf32>
    %429 = arith.mulf %419, %428 : vector<16x32xf32>
    %430 = vector.broadcast %66 : vector<1x32xf32> to vector<16x32xf32>
    %431 = arith.mulf %429, %430 : vector<16x32xf32>
    %432 = vector.broadcast %67 : vector<1x32xf32> to vector<16x32xf32>
    %433 = arith.addf %431, %432 : vector<16x32xf32>
    %cst_153 = arith.constant dense<0.000000e+00> : vector<16x32xf32>
    %434 = tpu.matmul %433, %68, %cst_153 {dimension_numbers = #tpu.dot_dimension_numbers<[1], [0], [0], [1], [0, 0, 1, 1], [], []>} : vector<16x32xf32>, vector<32x32xf32>, vector<16x32xf32> -> vector<16x32xf32>
    %435 = vector.broadcast %69 : vector<1x32xf32> to vector<16x32xf32>
    %436 = arith.addf %434, %435 : vector<16x32xf32>
    %cst_154 = arith.constant 0.000000e+00 : f32
    %437 = vector.broadcast %cst_154 : f32 to vector<16x32xf32>
    %438 = arith.cmpf ogt, %436, %437 : vector<16x32xf32>
    %439 = math.exp %436 : vector<16x32xf32>
    %cst_155 = arith.constant 1.000000e+00 : f32
    %440 = vector.broadcast %cst_155 : f32 to vector<16x32xf32>
    %441 = arith.subf %439, %440 : vector<16x32xf32>
    %cst_156 = arith.constant 1.67326319 : f32
    %442 = vector.broadcast %cst_156 : f32 to vector<16x32xf32>
    %443 = arith.mulf %442, %441 : vector<16x32xf32>
    %444 = arith.select %438, %436, %443 : vector<16x32xi1>, vector<16x32xf32>
    %cst_157 = arith.constant 1.05070102 : f32
    %445 = vector.broadcast %cst_157 : f32 to vector<16x32xf32>
    %446 = arith.mulf %445, %444 : vector<16x32xf32>
    %cst_158 = arith.constant dense<0.000000e+00> : vector<16x32xf32>
    %447 = tpu.matmul %446, %70, %cst_158 {dimension_numbers = #tpu.dot_dimension_numbers<[1], [0], [0], [1], [0, 0, 1, 1], [], []>} : vector<16x32xf32>, vector<32x32xf32>, vector<16x32xf32> -> vector<16x32xf32>
    %448 = vector.broadcast %71 : vector<1x32xf32> to vector<16x32xf32>
    %449 = arith.addf %447, %448 : vector<16x32xf32>
    %cst_159 = arith.constant 0.707106769 : f32
    %450 = vector.broadcast %cst_159 : f32 to vector<16x32xf32>
    %451 = arith.mulf %449, %450 : vector<16x32xf32>
    %452 = math.absf %451 : vector<16x32xf32>
    %cst_160 = arith.constant 0.327591091 : f32
    %453 = vector.broadcast %cst_160 : f32 to vector<16x32xf32>
    %454 = arith.mulf %453, %452 : vector<16x32xf32>
    %cst_161 = arith.constant 1.000000e+00 : f32
    %455 = vector.broadcast %cst_161 : f32 to vector<16x32xf32>
    %456 = arith.addf %455, %454 : vector<16x32xf32>
    %cst_162 = arith.constant 1.000000e+00 : f32
    %457 = vector.broadcast %cst_162 : f32 to vector<16x32xf32>
    %458 = arith.divf %457, %456 : vector<16x32xf32>
    %cst_163 = arith.constant 1.06140542 : f32
    %459 = vector.broadcast %cst_163 : f32 to vector<16x32xf32>
    %460 = arith.mulf %458, %459 : vector<16x32xf32>
    %cst_164 = arith.constant -1.45315206 : f32
    %461 = vector.broadcast %cst_164 : f32 to vector<16x32xf32>
    %462 = arith.addf %461, %460 : vector<16x32xf32>
    %463 = arith.mulf %458, %462 : vector<16x32xf32>
    %cst_165 = arith.constant 1.42141378 : f32
    %464 = vector.broadcast %cst_165 : f32 to vector<16x32xf32>
    %465 = arith.addf %464, %463 : vector<16x32xf32>
    %466 = arith.mulf %458, %465 : vector<16x32xf32>
    %cst_166 = arith.constant -0.284496725 : f32
    %467 = vector.broadcast %cst_166 : f32 to vector<16x32xf32>
    %468 = arith.addf %467, %466 : vector<16x32xf32>
    %469 = arith.mulf %458, %468 : vector<16x32xf32>
    %cst_167 = arith.constant 0.254829586 : f32
    %470 = vector.broadcast %cst_167 : f32 to vector<16x32xf32>
    %471 = arith.addf %470, %469 : vector<16x32xf32>
    %472 = arith.mulf %458, %471 : vector<16x32xf32>
    %cst_168 = arith.constant 0.000000e+00 : f32
    %473 = vector.broadcast %cst_168 : f32 to vector<16x32xf32>
    %474 = arith.subf %473, %452 : vector<16x32xf32>
    %475 = arith.mulf %474, %452 : vector<16x32xf32>
    %476 = math.exp %475 : vector<16x32xf32>
    %477 = arith.mulf %472, %476 : vector<16x32xf32>
    %cst_169 = arith.constant 1.000000e+00 : f32
    %478 = vector.broadcast %cst_169 : f32 to vector<16x32xf32>
    %479 = arith.subf %478, %477 : vector<16x32xf32>
    %cst_170 = arith.constant 0.000000e+00 : f32
    %480 = vector.broadcast %cst_170 : f32 to vector<16x32xf32>
    %481 = arith.cmpf oge, %451, %480 : vector<16x32xf32>
    %cst_171 = arith.constant 0.000000e+00 : f32
    %482 = vector.broadcast %cst_171 : f32 to vector<16x32xf32>
    %483 = arith.subf %482, %479 : vector<16x32xf32>
    %484 = arith.select %481, %479, %483 : vector<16x32xi1>, vector<16x32xf32>
    %cst_172 = arith.constant 5.000000e-01 : f32
    %485 = vector.broadcast %cst_172 : f32 to vector<16x32xf32>
    %486 = arith.mulf %485, %449 : vector<16x32xf32>
    %cst_173 = arith.constant 1.000000e+00 : f32
    %487 = vector.broadcast %cst_173 : f32 to vector<16x32xf32>
    %488 = arith.addf %487, %484 : vector<16x32xf32>
    %489 = arith.mulf %486, %488 : vector<16x32xf32>
    %490 = arith.addf %433, %489 : vector<16x32xf32>
    %491 = vector.shape_cast %490 : vector<16x32xf32> to vector<2x8x32xf32>
    %492 = vector.shape_cast %491 : vector<2x8x32xf32> to vector<16x32xf32>
    %c0_174 = arith.constant 0 : index
    %c0_175 = arith.constant 0 : index
    %493 = vector.load %arg17[%c0_174, %c0_175] : memref<1x32xf32, #tpu.memory_space<vmem>>, vector<1x32xf32>
    %c0_176 = arith.constant 0 : index
    %c0_177 = arith.constant 0 : index
    %494 = vector.load %arg18[%c0_176, %c0_177] : memref<1x32xf32, #tpu.memory_space<vmem>>, vector<1x32xf32>
    %cst_178 = arith.constant dense<0.000000e+00> : vector<16xf32>
    %495 = vector.multi_reduction <add>, %492, %cst_178 [1] : vector<16x32xf32> to vector<16xf32>
    %496 = vector.shape_cast %495 : vector<16xf32> to vector<16x1xf32>
    %cst_179 = arith.constant 3.200000e+01 : f32
    %497 = vector.broadcast %cst_179 : f32 to vector<16x1xf32>
    %498 = arith.divf %496, %497 : vector<16x1xf32>
    %499 = vector.broadcast %498 : vector<16x1xf32> to vector<16x32xf32>
    %500 = arith.subf %492, %499 : vector<16x32xf32>
    %501 = arith.mulf %500, %500 : vector<16x32xf32>
    %cst_180 = arith.constant dense<0.000000e+00> : vector<16xf32>
    %502 = vector.multi_reduction <add>, %501, %cst_180 [1] : vector<16x32xf32> to vector<16xf32>
    %503 = vector.shape_cast %502 : vector<16xf32> to vector<16x1xf32>
    %cst_181 = arith.constant 3.200000e+01 : f32
    %504 = vector.broadcast %cst_181 : f32 to vector<16x1xf32>
    %505 = arith.divf %503, %504 : vector<16x1xf32>
    %cst_182 = arith.constant 9.99999974E-6 : f32
    %506 = vector.broadcast %cst_182 : f32 to vector<16x1xf32>
    %507 = arith.addf %505, %506 : vector<16x1xf32>
    %508 = math.rsqrt %507 : vector<16x1xf32>
    %509 = vector.broadcast %508 : vector<16x1xf32> to vector<16x32xf32>
    %510 = arith.mulf %500, %509 : vector<16x32xf32>
    %511 = vector.broadcast %493 : vector<1x32xf32> to vector<16x32xf32>
    %512 = arith.mulf %510, %511 : vector<16x32xf32>
    %513 = vector.broadcast %494 : vector<1x32xf32> to vector<16x32xf32>
    %514 = arith.addf %512, %513 : vector<16x32xf32>
    %515 = vector.shape_cast %514 : vector<16x32xf32> to vector<2x8x32xf32>
    %516 = vector.extract_strided_slice %515 {offsets = [0, 7, 0], sizes = [2, 1, 32], strides = [1, 1, 1]} : vector<2x8x32xf32> to vector<2x1x32xf32>
    %517 = vector.shape_cast %516 : vector<2x1x32xf32> to vector<2x32xf32>
    %c0_183 = arith.constant 0 : index
    %c0_184 = arith.constant 0 : index
    %518 = vector.load %arg19[%c0_183, %c0_184] : memref<32x16xf32, #tpu.memory_space<vmem>>, vector<32x16xf32>
    %c0_185 = arith.constant 0 : index
    %c0_186 = arith.constant 0 : index
    %519 = vector.load %arg20[%c0_185, %c0_186] : memref<1x16xf32, #tpu.memory_space<vmem>>, vector<1x16xf32>
    %c0_187 = arith.constant 0 : index
    %c0_188 = arith.constant 0 : index
    %520 = vector.load %arg21[%c0_187, %c0_188] : memref<16x128xf32, #tpu.memory_space<vmem>>, vector<16x128xf32>
    %cst_189 = arith.constant dense<0.000000e+00> : vector<2x16xf32>
    %521 = tpu.matmul %517, %518, %cst_189 {dimension_numbers = #tpu.dot_dimension_numbers<[1], [0], [0], [1], [0, 0, 1, 1], [], []>} : vector<2x32xf32>, vector<32x16xf32>, vector<2x16xf32> -> vector<2x16xf32>
    %522 = vector.broadcast %519 : vector<1x16xf32> to vector<2x16xf32>
    %523 = arith.addf %521, %522 : vector<2x16xf32>
    %cst_190 = arith.constant 0.000000e+00 : f32
    %524 = vector.broadcast %cst_190 : f32 to vector<2x16xf32>
    %525 = arith.cmpf oge, %523, %524 : vector<2x16xf32>
    %cst_191 = arith.constant 0.00999999977 : f32
    %526 = vector.broadcast %cst_191 : f32 to vector<2x16xf32>
    %527 = arith.mulf %526, %523 : vector<2x16xf32>
    %528 = arith.select %525, %523, %527 : vector<2x16xi1>, vector<2x16xf32>
    %cst_192 = arith.constant dense<0.000000e+00> : vector<2x128xf32>
    %529 = tpu.matmul %528, %520, %cst_192 {dimension_numbers = #tpu.dot_dimension_numbers<[1], [0], [0], [1], [0, 0, 1, 1], [], []>} : vector<2x16xf32>, vector<16x128xf32>, vector<2x128xf32> -> vector<2x128xf32>
    %cst_193 = arith.constant 1.11111116 : f32
    %530 = vector.broadcast %cst_193 : f32 to vector<2x128xf32>
    %531 = arith.mulf %529, %530 : vector<2x128xf32>
    %c0_194 = arith.constant 0 : index
    %c0_195 = arith.constant 0 : index
    %532 = vector.load %arg22[%c0_194, %c0_195] : memref<2x128xf32, #tpu.memory_space<vmem>>, vector<2x128xf32>
    tpu.vector_store %arg22[%c0_194, %c0_195], %531 {strides = array<i32>} : memref<2x128xf32, #tpu.memory_space<vmem>>, vector<2x128xf32>,
    return
  }
  func.func @transform_0(%arg0: i32) -> (i32, i32, i32) {
    %c0_i32 = arith.constant 0 : i32
    %c0_i32_0 = arith.constant 0 : i32
    %c0_i32_1 = arith.constant 0 : i32
    %c0_i32_2 = arith.constant 0 : i32
    return %c0_i32, %c0_i32_0, %c0_i32_1 : i32, i32, i32
  }
  func.func @transform_1(%arg0: i32) -> (i32, i32) {
    %c0_i32 = arith.constant 0 : i32
    %c0_i32_0 = arith.constant 0 : i32
    %c0_i32_1 = arith.constant 0 : i32
    return %c0_i32, %c0_i32_0 : i32, i32
  }
  func.func @transform_2(%arg0: i32) -> (i32, i32) {
    %c0_i32 = arith.constant 0 : i32
    %c0_i32_0 = arith.constant 0 : i32
    %c0_i32_1 = arith.constant 0 : i32
    return %c0_i32, %c0_i32_0 : i32, i32
  }
  func.func @transform_3(%arg0: i32) -> (i32, i32) {
    %c0_i32 = arith.constant 0 : i32
    %c0_i32_0 = arith.constant 0 : i32
    %c0_i32_1 = arith.constant 0 : i32
    return %c0_i32, %c0_i32_0 : i32, i32
  }
  func.func @transform_4(%arg0: i32) -> (i32, i32) {
    %c0_i32 = arith.constant 0 : i32
    %c0_i32_0 = arith.constant 0 : i32
    %c0_i32_1 = arith.constant 0 : i32
    return %c0_i32, %c0_i32_0 : i32, i32
  }
  func.func @transform_5(%arg0: i32) -> (i32, i32) {
    %c0_i32 = arith.constant 0 : i32
    %c0_i32_0 = arith.constant 0 : i32
    %c0_i32_1 = arith.constant 0 : i32
    return %c0_i32, %c0_i32_0 : i32, i32
  }
  func.func @transform_6(%arg0: i32) -> (i32, i32) {
    %c0_i32 = arith.constant 0 : i32
    %c0_i32_0 = arith.constant 0 : i32
    %c0_i32_1 = arith.constant 0 : i32
    return %c0_i32, %c0_i32_0 : i32, i32
  }
  func.func @transform_7(%arg0: i32) -> (i32, i32) {
    %c0_i32 = arith.constant 0 : i32
    %c0_i32_0 = arith.constant 0 : i32
    %c0_i32_1 = arith.constant 0 : i32
    return %c0_i32, %c0_i32_0 : i32, i32
  }
  func.func @transform_8(%arg0: i32) -> (i32, i32) {
    %c0_i32 = arith.constant 0 : i32
    %c0_i32_0 = arith.constant 0 : i32
    %c0_i32_1 = arith.constant 0 : i32
    return %c0_i32, %c0_i32_0 : i32, i32
  }
  func.func @transform_9(%arg0: i32) -> (i32, i32) {
    %c0_i32 = arith.constant 0 : i32
    %c0_i32_0 = arith.constant 0 : i32
    %c0_i32_1 = arith.constant 0 : i32
    return %c0_i32, %c0_i32_0 : i32, i32
  }
  func.func @transform_10(%arg0: i32) -> (i32, i32) {
    %c0_i32 = arith.constant 0 : i32
    %c0_i32_0 = arith.constant 0 : i32
    %c0_i32_1 = arith.constant 0 : i32
    return %c0_i32, %c0_i32_0 : i32, i32
  }
  func.func @transform_11(%arg0: i32) -> (i32, i32) {
    %c0_i32 = arith.constant 0 : i32
    %c0_i32_0 = arith.constant 0 : i32
    %c0_i32_1 = arith.constant 0 : i32
    return %c0_i32, %c0_i32_0 : i32, i32
  }
  func.func @transform_12(%arg0: i32) -> (i32, i32) {
    %c0_i32 = arith.constant 0 : i32
    %c0_i32_0 = arith.constant 0 : i32
    %c0_i32_1 = arith.constant 0 : i32
    return %c0_i32, %c0_i32_0 : i32, i32
  }
  func.func @transform_13(%arg0: i32) -> (i32, i32) {
    %c0_i32 = arith.constant 0 : i32
    %c0_i32_0 = arith.constant 0 : i32
    %c0_i32_1 = arith.constant 0 : i32
    return %c0_i32, %c0_i32_0 : i32, i32
  }
  func.func @transform_14(%arg0: i32) -> (i32, i32) {
    %c0_i32 = arith.constant 0 : i32
    %c0_i32_0 = arith.constant 0 : i32
    %c0_i32_1 = arith.constant 0 : i32
    return %c0_i32, %c0_i32_0 : i32, i32
  }
  func.func @transform_15(%arg0: i32) -> (i32, i32) {
    %c0_i32 = arith.constant 0 : i32
    %c0_i32_0 = arith.constant 0 : i32
    %c0_i32_1 = arith.constant 0 : i32
    return %c0_i32, %c0_i32_0 : i32, i32
  }
  func.func @transform_16(%arg0: i32) -> (i32, i32) {
    %c0_i32 = arith.constant 0 : i32
    %c0_i32_0 = arith.constant 0 : i32
    %c0_i32_1 = arith.constant 0 : i32
    return %c0_i32, %c0_i32_0 : i32, i32
  }
  func.func @transform_17(%arg0: i32) -> (i32, i32) {
    %c0_i32 = arith.constant 0 : i32
    %c0_i32_0 = arith.constant 0 : i32
    %c0_i32_1 = arith.constant 0 : i32
    return %c0_i32, %c0_i32_0 : i32, i32
  }
  func.func @transform_18(%arg0: i32) -> (i32, i32) {
    %c0_i32 = arith.constant 0 : i32
    %c0_i32_0 = arith.constant 0 : i32
    %c0_i32_1 = arith.constant 0 : i32
    return %c0_i32, %c0_i32_0 : i32, i32
  }
  func.func @transform_19(%arg0: i32) -> (i32, i32) {
    %c0_i32 = arith.constant 0 : i32
    %c0_i32_0 = arith.constant 0 : i32
    %c0_i32_1 = arith.constant 0 : i32
    return %c0_i32, %c0_i32_0 : i32, i32
  }
  func.func @transform_20(%arg0: i32) -> (i32, i32) {
    %c0_i32 = arith.constant 0 : i32
    %c0_i32_0 = arith.constant 0 : i32
    %c0_i32_1 = arith.constant 0 : i32
    return %c0_i32, %c0_i32_0 : i32, i32
  }
  func.func @transform_21(%arg0: i32) -> (i32, i32) {
    %c0_i32 = arith.constant 0 : i32
    %c0_i32_0 = arith.constant 0 : i32
    %c0_i32_1 = arith.constant 0 : i32
    return %c0_i32, %c0_i32_0 : i32, i32
  }
  func.func @transform_22(%arg0: i32) -> (i32, i32) {
    %c0_i32 = arith.constant 0 : i32
    %c0_i32_0 = arith.constant 0 : i32
    %c0_i32_1 = arith.constant 0 : i32
    return %c0_i32, %c0_i32_0 : i32, i32
  }
  func.func @transform_23(%arg0: i32) -> (i32, i32, i32, i32) {
    %c0_i32 = arith.constant 0 : i32
    %c0_i32_0 = arith.constant 0 : i32
    %c0_i32_1 = arith.constant 0 : i32
    %c0_i32_2 = arith.constant 0 : i32
    %c0_i32_3 = arith.constant 0 : i32
    return %c0_i32, %c0_i32_0, %c0_i32_1, %c0_i32_2 : i32, i32, i32, i32
  }
  func.func @transform_24(%arg0: i32) -> (i32, i32, i32, i32) {
    %c0_i32 = arith.constant 0 : i32
    %c0_i32_0 = arith.constant 0 : i32
    %c0_i32_1 = arith.constant 0 : i32
    %c0_i32_2 = arith.constant 0 : i32
    %c0_i32_3 = arith.constant 0 : i32
    return %c0_i32, %c0_i32_0, %c0_i32_1, %c0_i32_2 : i32, i32, i32, i32
  }
}

module attributes {stable_mosaic.version = 11 : i64} {
  func.func @_decode_kernel(%arg0: i32, %arg1: memref<2x16xf32, #tpu.memory_space<vmem>>, %arg2: memref<2x32xf32, #tpu.memory_space<vmem>>, %arg3: memref<2x2x12x32xf32, #tpu.memory_space<vmem>>, %arg4: memref<2x2x12x64xf32, #tpu.memory_space<vmem>>, %arg5: memref<1x12xf32, #tpu.memory_space<vmem>>, %arg6: memref<16x32xf32, #tpu.memory_space<vmem>>, %arg7: memref<32x32xf32, #tpu.memory_space<vmem>>, %arg8: memref<1x32xf32, #tpu.memory_space<vmem>>, %arg9: memref<2x32xf32, #tpu.memory_space<vmem>>, %arg10: memref<2x32xf32, #tpu.memory_space<vmem>>, %arg11: memref<32x128xf32, #tpu.memory_space<vmem>>, %arg12: memref<1x128xf32, #tpu.memory_space<vmem>>, %arg13: memref<64x32xf32, #tpu.memory_space<vmem>>, %arg14: memref<1x32xf32, #tpu.memory_space<vmem>>, %arg15: memref<1x32xf32, #tpu.memory_space<vmem>>, %arg16: memref<1x32xf32, #tpu.memory_space<vmem>>, %arg17: memref<32x32xf32, #tpu.memory_space<vmem>>, %arg18: memref<1x32xf32, #tpu.memory_space<vmem>>, %arg19: memref<32x32xf32, #tpu.memory_space<vmem>>, %arg20: memref<1x32xf32, #tpu.memory_space<vmem>>, %arg21: memref<1x32xf32, #tpu.memory_space<vmem>>, %arg22: memref<1x32xf32, #tpu.memory_space<vmem>>, %arg23: memref<32x16xf32, #tpu.memory_space<vmem>>, %arg24: memref<1x16xf32, #tpu.memory_space<vmem>>, %arg25: memref<16x128xf32, #tpu.memory_space<vmem>>, %arg26: memref<2x128xf32, #tpu.memory_space<vmem>>, %arg27: memref<2x32xf32, #tpu.memory_space<vmem>>, %arg28: memref<2x2x32xf32, #tpu.memory_space<vmem>>, %arg29: memref<2x2x64xf32, #tpu.memory_space<vmem>>) attributes {dimension_semantics = [#tpu.dimension_semantics<arbitrary>], iteration_bounds = array<i64: 1>, scalar_prefetch = 0 : i64, scratch_operands = 0 : i64, tpu.core_type = #tpu.core_type<tc>, window_params = [{pipeline_mode = #tpu.pipeline_mode<synchronous>, transform_indices = @transform_0, window_bounds = array<i64: 2, 16>}, {pipeline_mode = #tpu.pipeline_mode<synchronous>, transform_indices = @transform_1, window_bounds = array<i64: 2, 32>}, {pipeline_mode = #tpu.pipeline_mode<synchronous>, transform_indices = @transform_2, window_bounds = array<i64: 2, 2, 12, 32>}, {pipeline_mode = #tpu.pipeline_mode<synchronous>, transform_indices = @transform_3, window_bounds = array<i64: 2, 2, 12, 64>}, {pipeline_mode = #tpu.pipeline_mode<synchronous>, transform_indices = @transform_4, window_bounds = array<i64: 1, 12>}, {pipeline_mode = #tpu.pipeline_mode<synchronous>, transform_indices = @transform_5, window_bounds = array<i64: 16, 32>}, {pipeline_mode = #tpu.pipeline_mode<synchronous>, transform_indices = @transform_6, window_bounds = array<i64: 32, 32>}, {pipeline_mode = #tpu.pipeline_mode<synchronous>, transform_indices = @transform_7, window_bounds = array<i64: 1, 32>}, {pipeline_mode = #tpu.pipeline_mode<synchronous>, transform_indices = @transform_8, window_bounds = array<i64: 2, 32>}, {pipeline_mode = #tpu.pipeline_mode<synchronous>, transform_indices = @transform_9, window_bounds = array<i64: 2, 32>}, {pipeline_mode = #tpu.pipeline_mode<synchronous>, transform_indices = @transform_10, window_bounds = array<i64: 32, 128>}, {pipeline_mode = #tpu.pipeline_mode<synchronous>, transform_indices = @transform_11, window_bounds = array<i64: 1, 128>}, {pipeline_mode = #tpu.pipeline_mode<synchronous>, transform_indices = @transform_12, window_bounds = array<i64: 64, 32>}, {pipeline_mode = #tpu.pipeline_mode<synchronous>, transform_indices = @transform_13, window_bounds = array<i64: 1, 32>}, {pipeline_mode = #tpu.pipeline_mode<synchronous>, transform_indices = @transform_14, window_bounds = array<i64: 1, 32>}, {pipeline_mode = #tpu.pipeline_mode<synchronous>, transform_indices = @transform_15, window_bounds = array<i64: 1, 32>}, {pipeline_mode = #tpu.pipeline_mode<synchronous>, transform_indices = @transform_16, window_bounds = array<i64: 32, 32>}, {pipeline_mode = #tpu.pipeline_mode<synchronous>, transform_indices = @transform_17, window_bounds = array<i64: 1, 32>}, {pipeline_mode = #tpu.pipeline_mode<synchronous>, transform_indices = @transform_18, window_bounds = array<i64: 32, 32>}, {pipeline_mode = #tpu.pipeline_mode<synchronous>, transform_indices = @transform_19, window_bounds = array<i64: 1, 32>}, {pipeline_mode = #tpu.pipeline_mode<synchronous>, transform_indices = @transform_20, window_bounds = array<i64: 1, 32>}, {pipeline_mode = #tpu.pipeline_mode<synchronous>, transform_indices = @transform_21, window_bounds = array<i64: 1, 32>}, {pipeline_mode = #tpu.pipeline_mode<synchronous>, transform_indices = @transform_22, window_bounds = array<i64: 32, 16>}, {pipeline_mode = #tpu.pipeline_mode<synchronous>, transform_indices = @transform_23, window_bounds = array<i64: 1, 16>}, {pipeline_mode = #tpu.pipeline_mode<synchronous>, transform_indices = @transform_24, window_bounds = array<i64: 16, 128>}, {pipeline_mode = #tpu.pipeline_mode<synchronous>, transform_indices = @transform_25, window_bounds = array<i64: 2, 128>}, {pipeline_mode = #tpu.pipeline_mode<synchronous>, transform_indices = @transform_26, window_bounds = array<i64: 2, 32>}, {pipeline_mode = #tpu.pipeline_mode<synchronous>, transform_indices = @transform_27, window_bounds = array<i64: 2, 2, 32>}, {pipeline_mode = #tpu.pipeline_mode<synchronous>, transform_indices = @transform_28, window_bounds = array<i64: 2, 2, 64>}]} {
    %c0 = arith.constant 0 : index
    %c0_0 = arith.constant 0 : index
    %0 = vector.load %arg1[%c0, %c0_0] : memref<2x16xf32, #tpu.memory_space<vmem>>, vector<2x16xf32>
    %c0_1 = arith.constant 0 : index
    %c0_2 = arith.constant 0 : index
    %1 = vector.load %arg6[%c0_1, %c0_2] : memref<16x32xf32, #tpu.memory_space<vmem>>, vector<16x32xf32>
    %cst = arith.constant dense<0.000000e+00> : vector<2x32xf32>
    %2 = tpu.matmul %0, %1, %cst {dimension_numbers = #tpu.dot_dimension_numbers<[1], [0], [0], [1], [0, 0, 1, 1], [], []>} : vector<2x16xf32>, vector<16x32xf32>, vector<2x32xf32> -> vector<2x32xf32>
    %c0_3 = arith.constant 0 : index
    %c0_4 = arith.constant 0 : index
    %3 = vector.load %arg2[%c0_3, %c0_4] : memref<2x32xf32, #tpu.memory_space<vmem>>, vector<2x32xf32>
    %c0_5 = arith.constant 0 : index
    %c0_6 = arith.constant 0 : index
    %4 = vector.load %arg7[%c0_5, %c0_6] : memref<32x32xf32, #tpu.memory_space<vmem>>, vector<32x32xf32>
    %cst_7 = arith.constant dense<0.000000e+00> : vector<2x32xf32>
    %5 = tpu.matmul %3, %4, %cst_7 {dimension_numbers = #tpu.dot_dimension_numbers<[1], [0], [0], [1], [0, 0, 1, 1], [], []>} : vector<2x32xf32>, vector<32x32xf32>, vector<2x32xf32> -> vector<2x32xf32>
    %6 = arith.addf %2, %5 : vector<2x32xf32>
    %c0_8 = arith.constant 0 : index
    %c0_9 = arith.constant 0 : index
    %7 = vector.load %arg8[%c0_8, %c0_9] : memref<1x32xf32, #tpu.memory_space<vmem>>, vector<1x32xf32>
    %8 = vector.broadcast %7 : vector<1x32xf32> to vector<2x32xf32>
    %9 = arith.addf %6, %8 : vector<2x32xf32>
    %10 = math.tanh %9 : vector<2x32xf32>
    %c0_10 = arith.constant 0 : index
    %c0_11 = arith.constant 0 : index
    %11 = vector.load %arg27[%c0_10, %c0_11] : memref<2x32xf32, #tpu.memory_space<vmem>>, vector<2x32xf32>
    tpu.vector_store %arg27[%c0_10, %c0_11], %10 {strides = array<i32>} : memref<2x32xf32, #tpu.memory_space<vmem>>, vector<2x32xf32>,
    %c0_12 = arith.constant 0 : index
    %c0_13 = arith.constant 0 : index
    %12 = vector.load %arg9[%c0_12, %c0_13] : memref<2x32xf32, #tpu.memory_space<vmem>>, vector<2x32xf32>
    %c0_14 = arith.constant 0 : index
    %c0_15 = arith.constant 0 : index
    %13 = vector.load %arg10[%c0_14, %c0_15] : memref<2x32xf32, #tpu.memory_space<vmem>>, vector<2x32xf32>
    %c0_16 = arith.constant 0 : index
    %c0_17 = arith.constant 0 : index
    %14 = vector.load %arg11[%c0_16, %c0_17] : memref<32x128xf32, #tpu.memory_space<vmem>>, vector<32x128xf32>
    %c0_18 = arith.constant 0 : index
    %c0_19 = arith.constant 0 : index
    %15 = vector.load %arg12[%c0_18, %c0_19] : memref<1x128xf32, #tpu.memory_space<vmem>>, vector<1x128xf32>
    %c0_20 = arith.constant 0 : index
    %c0_21 = arith.constant 0 : index
    %16 = vector.load %arg13[%c0_20, %c0_21] : memref<64x32xf32, #tpu.memory_space<vmem>>, vector<64x32xf32>
    %c0_22 = arith.constant 0 : index
    %c0_23 = arith.constant 0 : index
    %17 = vector.load %arg14[%c0_22, %c0_23] : memref<1x32xf32, #tpu.memory_space<vmem>>, vector<1x32xf32>
    %c0_24 = arith.constant 0 : index
    %c0_25 = arith.constant 0 : index
    %18 = vector.load %arg15[%c0_24, %c0_25] : memref<1x32xf32, #tpu.memory_space<vmem>>, vector<1x32xf32>
    %c0_26 = arith.constant 0 : index
    %c0_27 = arith.constant 0 : index
    %19 = vector.load %arg16[%c0_26, %c0_27] : memref<1x32xf32, #tpu.memory_space<vmem>>, vector<1x32xf32>
    %c0_28 = arith.constant 0 : index
    %c0_29 = arith.constant 0 : index
    %20 = vector.load %arg17[%c0_28, %c0_29] : memref<32x32xf32, #tpu.memory_space<vmem>>, vector<32x32xf32>
    %c0_30 = arith.constant 0 : index
    %c0_31 = arith.constant 0 : index
    %21 = vector.load %arg18[%c0_30, %c0_31] : memref<1x32xf32, #tpu.memory_space<vmem>>, vector<1x32xf32>
    %c0_32 = arith.constant 0 : index
    %c0_33 = arith.constant 0 : index
    %22 = vector.load %arg19[%c0_32, %c0_33] : memref<32x32xf32, #tpu.memory_space<vmem>>, vector<32x32xf32>
    %c0_34 = arith.constant 0 : index
    %c0_35 = arith.constant 0 : index
    %23 = vector.load %arg20[%c0_34, %c0_35] : memref<1x32xf32, #tpu.memory_space<vmem>>, vector<1x32xf32>
    %c0_36 = arith.constant 0 : index
    %c0_37 = arith.constant 0 : index
    %24 = vector.load %arg5[%c0_36, %c0_37] : memref<1x12xf32, #tpu.memory_space<vmem>>, vector<1x12xf32>
    %25 = vector.shape_cast %24 : vector<1x12xf32> to vector<1x1x12xf32>
    %26 = vector.extract_strided_slice %12 {offsets = [0, 0], sizes = [1, 32], strides = [1, 1]} : vector<2x32xf32> to vector<1x32xf32>
    %27 = vector.extract_strided_slice %13 {offsets = [0, 0], sizes = [1, 32], strides = [1, 1]} : vector<2x32xf32> to vector<1x32xf32>
    %cst_38 = arith.constant dense<0.000000e+00> : vector<2xf32>
    %28 = vector.multi_reduction <add>, %10, %cst_38 [1] : vector<2x32xf32> to vector<2xf32>
    %29 = vector.shape_cast %28 : vector<2xf32> to vector<2x1xf32>
    %cst_39 = arith.constant 3.200000e+01 : f32
    %30 = vector.broadcast %cst_39 : f32 to vector<2x1xf32>
    %31 = arith.divf %29, %30 : vector<2x1xf32>
    %32 = vector.broadcast %31 : vector<2x1xf32> to vector<2x32xf32>
    %33 = arith.subf %10, %32 : vector<2x32xf32>
    %34 = arith.mulf %33, %33 : vector<2x32xf32>
    %cst_40 = arith.constant dense<0.000000e+00> : vector<2xf32>
    %35 = vector.multi_reduction <add>, %34, %cst_40 [1] : vector<2x32xf32> to vector<2xf32>
    %36 = vector.shape_cast %35 : vector<2xf32> to vector<2x1xf32>
    %cst_41 = arith.constant 3.200000e+01 : f32
    %37 = vector.broadcast %cst_41 : f32 to vector<2x1xf32>
    %38 = arith.divf %36, %37 : vector<2x1xf32>
    %cst_42 = arith.constant 9.99999974E-6 : f32
    %39 = vector.broadcast %cst_42 : f32 to vector<2x1xf32>
    %40 = arith.addf %38, %39 : vector<2x1xf32>
    %41 = math.rsqrt %40 : vector<2x1xf32>
    %42 = vector.broadcast %41 : vector<2x1xf32> to vector<2x32xf32>
    %43 = arith.mulf %33, %42 : vector<2x32xf32>
    %44 = vector.broadcast %26 : vector<1x32xf32> to vector<2x32xf32>
    %45 = arith.mulf %43, %44 : vector<2x32xf32>
    %46 = vector.broadcast %27 : vector<1x32xf32> to vector<2x32xf32>
    %47 = arith.addf %45, %46 : vector<2x32xf32>
    %cst_43 = arith.constant dense<0.000000e+00> : vector<2x128xf32>
    %48 = tpu.matmul %47, %14, %cst_43 {dimension_numbers = #tpu.dot_dimension_numbers<[1], [0], [0], [1], [0, 0, 1, 1], [], []>} : vector<2x32xf32>, vector<32x128xf32>, vector<2x128xf32> -> vector<2x128xf32>
    %49 = vector.broadcast %15 : vector<1x128xf32> to vector<2x128xf32>
    %50 = arith.addf %48, %49 : vector<2x128xf32>
    %cst_44 = arith.constant 0.000000e+00 : f32
    %51 = vector.broadcast %cst_44 : f32 to vector<2x128xf32>
    %52 = arith.cmpf oge, %50, %51 : vector<2x128xf32>
    %cst_45 = arith.constant 0.00999999977 : f32
    %53 = vector.broadcast %cst_45 : f32 to vector<2x128xf32>
    %54 = arith.mulf %53, %50 : vector<2x128xf32>
    %55 = arith.select %52, %50, %54 : vector<2x128xi1>, vector<2x128xf32>
    %56 = vector.extract_strided_slice %55 {offsets = [0, 0], sizes = [2, 32], strides = [1, 1]} : vector<2x128xf32> to vector<2x32xf32>
    %cst_46 = arith.constant 0.353553385 : f32
    %57 = vector.broadcast %cst_46 : f32 to vector<2x32xf32>
    %58 = arith.mulf %56, %57 : vector<2x32xf32>
    %59 = vector.extract_strided_slice %55 {offsets = [0, 32], sizes = [2, 32], strides = [1, 1]} : vector<2x128xf32> to vector<2x32xf32>
    %60 = vector.extract_strided_slice %55 {offsets = [0, 64], sizes = [2, 64], strides = [1, 1]} : vector<2x128xf32> to vector<2x64xf32>
    %c0_47 = arith.constant 0 : index
    %c0_48 = arith.constant 0 : index
    %c0_49 = arith.constant 0 : index
    %61 = vector.load %arg28[%c0_47, %c0_48, %c0_49] : memref<2x2x32xf32, #tpu.memory_space<vmem>>, vector<1x2x32xf32>
    %62 = vector.shape_cast %61 : vector<1x2x32xf32> to vector<2x32xf32>
    %63 = vector.shape_cast %59 : vector<2x32xf32> to vector<1x2x32xf32>
    tpu.vector_store %arg28[%c0_47, %c0_48, %c0_49], %63 {strides = array<i32>} : memref<2x2x32xf32, #tpu.memory_space<vmem>>, vector<1x2x32xf32>,
    %c0_50 = arith.constant 0 : index
    %c0_51 = arith.constant 0 : index
    %c0_52 = arith.constant 0 : index
    %64 = vector.load %arg29[%c0_50, %c0_51, %c0_52] : memref<2x2x64xf32, #tpu.memory_space<vmem>>, vector<1x2x64xf32>
    %65 = vector.shape_cast %64 : vector<1x2x64xf32> to vector<2x64xf32>
    %66 = vector.shape_cast %60 : vector<2x64xf32> to vector<1x2x64xf32>
    tpu.vector_store %arg29[%c0_50, %c0_51, %c0_52], %66 {strides = array<i32>} : memref<2x2x64xf32, #tpu.memory_space<vmem>>, vector<1x2x64xf32>,
    %c0_53 = arith.constant 0 : index
    %c0_54 = arith.constant 0 : index
    %c0_55 = arith.constant 0 : index
    %c0_56 = arith.constant 0 : index
    %67 = vector.load %arg3[%c0_53, %c0_54, %c0_55, %c0_56] : memref<2x2x12x32xf32, #tpu.memory_space<vmem>>, vector<1x2x12x32xf32>
    %68 = vector.shape_cast %67 : vector<1x2x12x32xf32> to vector<2x12x32xf32>
    %c0_57 = arith.constant 0 : index
    %c0_58 = arith.constant 0 : index
    %c0_59 = arith.constant 0 : index
    %c0_60 = arith.constant 0 : index
    %69 = vector.load %arg4[%c0_57, %c0_58, %c0_59, %c0_60] : memref<2x2x12x64xf32, #tpu.memory_space<vmem>>, vector<1x2x12x64xf32>
    %70 = vector.shape_cast %69 : vector<1x2x12x64xf32> to vector<2x12x64xf32>
    %71 = vector.extract_strided_slice %58 {offsets = [0, 0], sizes = [2, 8], strides = [1, 1]} : vector<2x32xf32> to vector<2x8xf32>
    %72 = vector.shape_cast %71 : vector<2x8xf32> to vector<2x1x8xf32>
    %73 = vector.extract_strided_slice %59 {offsets = [0, 0], sizes = [2, 8], strides = [1, 1]} : vector<2x32xf32> to vector<2x8xf32>
    %74 = vector.shape_cast %73 : vector<2x8xf32> to vector<2x1x8xf32>
    %75 = vector.extract_strided_slice %60 {offsets = [0, 0], sizes = [2, 16], strides = [1, 1]} : vector<2x64xf32> to vector<2x16xf32>
    %76 = vector.shape_cast %75 : vector<2x16xf32> to vector<2x1x16xf32>
    %77 = vector.extract_strided_slice %68 {offsets = [0, 0, 0], sizes = [2, 12, 8], strides = [1, 1, 1]} : vector<2x12x32xf32> to vector<2x12x8xf32>
    %78 = vector.extract_strided_slice %70 {offsets = [0, 0, 0], sizes = [2, 12, 16], strides = [1, 1, 1]} : vector<2x12x64xf32> to vector<2x12x16xf32>
    "tpu.trace_start"() <{level = 10 : i32, message = "bqd,bkd->bqk"}> : () -> ()
    %cst_61 = arith.constant dense<0.000000e+00> : vector<2x1x12xf32>
    %79 = tpu.matmul %72, %77, %cst_61 {dimension_numbers = #tpu.dot_dimension_numbers<[2], [2], [1], [1], [0, 0, 0, 1, 1, 1], [0], [0]>} : vector<2x1x8xf32>, vector<2x12x8xf32>, vector<2x1x12xf32> -> vector<2x1x12xf32>
    "tpu.trace_stop"() : () -> ()
    %80 = vector.broadcast %25 : vector<1x1x12xf32> to vector<2x1x12xf32>
    %81 = arith.addf %79, %80 : vector<2x1x12xf32>
    %82 = arith.mulf %72, %74 : vector<2x1x8xf32>
    %cst_62 = arith.constant dense<0.000000e+00> : vector<2x1xf32>
    %83 = vector.multi_reduction <add>, %82, %cst_62 [2] : vector<2x1x8xf32> to vector<2x1xf32>
    %84 = vector.shape_cast %83 : vector<2x1xf32> to vector<2x1x1xf32>
    %cst_63 = arith.constant dense<0xFF800000> : vector<2x1xf32>
    %85 = vector.multi_reduction <maximumf>, %81, %cst_63 [2] : vector<2x1x12xf32> to vector<2x1xf32>
    %86 = vector.shape_cast %85 : vector<2x1xf32> to vector<2x1x1xf32>
    %87 = arith.maximumf %86, %84 : vector<2x1x1xf32>
    %88 = vector.broadcast %87 : vector<2x1x1xf32> to vector<2x1x12xf32>
    %89 = arith.subf %81, %88 : vector<2x1x12xf32>
    %90 = math.exp %89 : vector<2x1x12xf32>
    %91 = arith.subf %84, %87 : vector<2x1x1xf32>
    %92 = math.exp %91 : vector<2x1x1xf32>
    %cst_64 = arith.constant dense<0.000000e+00> : vector<2x1xf32>
    %93 = vector.multi_reduction <add>, %90, %cst_64 [2] : vector<2x1x12xf32> to vector<2x1xf32>
    %94 = vector.shape_cast %93 : vector<2x1xf32> to vector<2x1x1xf32>
    %95 = arith.addf %94, %92 : vector<2x1x1xf32>
    %96 = tpu.reciprocal %95 {approx = true} : vector<2x1x1xf32> -> vector<2x1x1xf32>
    "tpu.trace_start"() <{level = 10 : i32, message = "bqk,bkd->bqd"}> : () -> ()
    %cst_65 = arith.constant dense<0.000000e+00> : vector<2x1x16xf32>
    %97 = tpu.matmul %90, %78, %cst_65 {dimension_numbers = #tpu.dot_dimension_numbers<[2], [1], [1], [2], [0, 0, 0, 1, 1, 2], [0], [0]>} : vector<2x1x12xf32>, vector<2x12x16xf32>, vector<2x1x16xf32> -> vector<2x1x16xf32>
    "tpu.trace_stop"() : () -> ()
    %98 = vector.broadcast %92 : vector<2x1x1xf32> to vector<2x1x16xf32>
    %99 = arith.mulf %98, %76 : vector<2x1x16xf32>
    %100 = arith.addf %97, %99 : vector<2x1x16xf32>
    %101 = vector.broadcast %96 : vector<2x1x1xf32> to vector<2x1x16xf32>
    %102 = arith.mulf %100, %101 : vector<2x1x16xf32>
    %103 = vector.shape_cast %102 : vector<2x1x16xf32> to vector<2x16xf32>
    %104 = vector.extract_strided_slice %58 {offsets = [0, 8], sizes = [2, 8], strides = [1, 1]} : vector<2x32xf32> to vector<2x8xf32>
    %105 = vector.shape_cast %104 : vector<2x8xf32> to vector<2x1x8xf32>
    %106 = vector.extract_strided_slice %59 {offsets = [0, 8], sizes = [2, 8], strides = [1, 1]} : vector<2x32xf32> to vector<2x8xf32>
    %107 = vector.shape_cast %106 : vector<2x8xf32> to vector<2x1x8xf32>
    %108 = vector.extract_strided_slice %60 {offsets = [0, 16], sizes = [2, 16], strides = [1, 1]} : vector<2x64xf32> to vector<2x16xf32>
    %109 = vector.shape_cast %108 : vector<2x16xf32> to vector<2x1x16xf32>
    %110 = vector.extract_strided_slice %68 {offsets = [0, 0, 8], sizes = [2, 12, 8], strides = [1, 1, 1]} : vector<2x12x32xf32> to vector<2x12x8xf32>
    %111 = vector.extract_strided_slice %70 {offsets = [0, 0, 16], sizes = [2, 12, 16], strides = [1, 1, 1]} : vector<2x12x64xf32> to vector<2x12x16xf32>
    "tpu.trace_start"() <{level = 10 : i32, message = "bqd,bkd->bqk"}> : () -> ()
    %cst_66 = arith.constant dense<0.000000e+00> : vector<2x1x12xf32>
    %112 = tpu.matmul %105, %110, %cst_66 {dimension_numbers = #tpu.dot_dimension_numbers<[2], [2], [1], [1], [0, 0, 0, 1, 1, 1], [0], [0]>} : vector<2x1x8xf32>, vector<2x12x8xf32>, vector<2x1x12xf32> -> vector<2x1x12xf32>
    "tpu.trace_stop"() : () -> ()
    %113 = vector.broadcast %25 : vector<1x1x12xf32> to vector<2x1x12xf32>
    %114 = arith.addf %112, %113 : vector<2x1x12xf32>
    %115 = arith.mulf %105, %107 : vector<2x1x8xf32>
    %cst_67 = arith.constant dense<0.000000e+00> : vector<2x1xf32>
    %116 = vector.multi_reduction <add>, %115, %cst_67 [2] : vector<2x1x8xf32> to vector<2x1xf32>
    %117 = vector.shape_cast %116 : vector<2x1xf32> to vector<2x1x1xf32>
    %cst_68 = arith.constant dense<0xFF800000> : vector<2x1xf32>
    %118 = vector.multi_reduction <maximumf>, %114, %cst_68 [2] : vector<2x1x12xf32> to vector<2x1xf32>
    %119 = vector.shape_cast %118 : vector<2x1xf32> to vector<2x1x1xf32>
    %120 = arith.maximumf %119, %117 : vector<2x1x1xf32>
    %121 = vector.broadcast %120 : vector<2x1x1xf32> to vector<2x1x12xf32>
    %122 = arith.subf %114, %121 : vector<2x1x12xf32>
    %123 = math.exp %122 : vector<2x1x12xf32>
    %124 = arith.subf %117, %120 : vector<2x1x1xf32>
    %125 = math.exp %124 : vector<2x1x1xf32>
    %cst_69 = arith.constant dense<0.000000e+00> : vector<2x1xf32>
    %126 = vector.multi_reduction <add>, %123, %cst_69 [2] : vector<2x1x12xf32> to vector<2x1xf32>
    %127 = vector.shape_cast %126 : vector<2x1xf32> to vector<2x1x1xf32>
    %128 = arith.addf %127, %125 : vector<2x1x1xf32>
    %129 = tpu.reciprocal %128 {approx = true} : vector<2x1x1xf32> -> vector<2x1x1xf32>
    "tpu.trace_start"() <{level = 10 : i32, message = "bqk,bkd->bqd"}> : () -> ()
    %cst_70 = arith.constant dense<0.000000e+00> : vector<2x1x16xf32>
    %130 = tpu.matmul %123, %111, %cst_70 {dimension_numbers = #tpu.dot_dimension_numbers<[2], [1], [1], [2], [0, 0, 0, 1, 1, 2], [0], [0]>} : vector<2x1x12xf32>, vector<2x12x16xf32>, vector<2x1x16xf32> -> vector<2x1x16xf32>
    "tpu.trace_stop"() : () -> ()
    %131 = vector.broadcast %125 : vector<2x1x1xf32> to vector<2x1x16xf32>
    %132 = arith.mulf %131, %109 : vector<2x1x16xf32>
    %133 = arith.addf %130, %132 : vector<2x1x16xf32>
    %134 = vector.broadcast %129 : vector<2x1x1xf32> to vector<2x1x16xf32>
    %135 = arith.mulf %133, %134 : vector<2x1x16xf32>
    %136 = vector.shape_cast %135 : vector<2x1x16xf32> to vector<2x16xf32>
    %137 = vector.extract_strided_slice %58 {offsets = [0, 16], sizes = [2, 8], strides = [1, 1]} : vector<2x32xf32> to vector<2x8xf32>
    %138 = vector.shape_cast %137 : vector<2x8xf32> to vector<2x1x8xf32>
    %139 = vector.extract_strided_slice %59 {offsets = [0, 16], sizes = [2, 8], strides = [1, 1]} : vector<2x32xf32> to vector<2x8xf32>
    %140 = vector.shape_cast %139 : vector<2x8xf32> to vector<2x1x8xf32>
    %141 = vector.extract_strided_slice %60 {offsets = [0, 32], sizes = [2, 16], strides = [1, 1]} : vector<2x64xf32> to vector<2x16xf32>
    %142 = vector.shape_cast %141 : vector<2x16xf32> to vector<2x1x16xf32>
    %143 = vector.extract_strided_slice %68 {offsets = [0, 0, 16], sizes = [2, 12, 8], strides = [1, 1, 1]} : vector<2x12x32xf32> to vector<2x12x8xf32>
    %144 = vector.extract_strided_slice %70 {offsets = [0, 0, 32], sizes = [2, 12, 16], strides = [1, 1, 1]} : vector<2x12x64xf32> to vector<2x12x16xf32>
    "tpu.trace_start"() <{level = 10 : i32, message = "bqd,bkd->bqk"}> : () -> ()
    %cst_71 = arith.constant dense<0.000000e+00> : vector<2x1x12xf32>
    %145 = tpu.matmul %138, %143, %cst_71 {dimension_numbers = #tpu.dot_dimension_numbers<[2], [2], [1], [1], [0, 0, 0, 1, 1, 1], [0], [0]>} : vector<2x1x8xf32>, vector<2x12x8xf32>, vector<2x1x12xf32> -> vector<2x1x12xf32>
    "tpu.trace_stop"() : () -> ()
    %146 = vector.broadcast %25 : vector<1x1x12xf32> to vector<2x1x12xf32>
    %147 = arith.addf %145, %146 : vector<2x1x12xf32>
    %148 = arith.mulf %138, %140 : vector<2x1x8xf32>
    %cst_72 = arith.constant dense<0.000000e+00> : vector<2x1xf32>
    %149 = vector.multi_reduction <add>, %148, %cst_72 [2] : vector<2x1x8xf32> to vector<2x1xf32>
    %150 = vector.shape_cast %149 : vector<2x1xf32> to vector<2x1x1xf32>
    %cst_73 = arith.constant dense<0xFF800000> : vector<2x1xf32>
    %151 = vector.multi_reduction <maximumf>, %147, %cst_73 [2] : vector<2x1x12xf32> to vector<2x1xf32>
    %152 = vector.shape_cast %151 : vector<2x1xf32> to vector<2x1x1xf32>
    %153 = arith.maximumf %152, %150 : vector<2x1x1xf32>
    %154 = vector.broadcast %153 : vector<2x1x1xf32> to vector<2x1x12xf32>
    %155 = arith.subf %147, %154 : vector<2x1x12xf32>
    %156 = math.exp %155 : vector<2x1x12xf32>
    %157 = arith.subf %150, %153 : vector<2x1x1xf32>
    %158 = math.exp %157 : vector<2x1x1xf32>
    %cst_74 = arith.constant dense<0.000000e+00> : vector<2x1xf32>
    %159 = vector.multi_reduction <add>, %156, %cst_74 [2] : vector<2x1x12xf32> to vector<2x1xf32>
    %160 = vector.shape_cast %159 : vector<2x1xf32> to vector<2x1x1xf32>
    %161 = arith.addf %160, %158 : vector<2x1x1xf32>
    %162 = tpu.reciprocal %161 {approx = true} : vector<2x1x1xf32> -> vector<2x1x1xf32>
    "tpu.trace_start"() <{level = 10 : i32, message = "bqk,bkd->bqd"}> : () -> ()
    %cst_75 = arith.constant dense<0.000000e+00> : vector<2x1x16xf32>
    %163 = tpu.matmul %156, %144, %cst_75 {dimension_numbers = #tpu.dot_dimension_numbers<[2], [1], [1], [2], [0, 0, 0, 1, 1, 2], [0], [0]>} : vector<2x1x12xf32>, vector<2x12x16xf32>, vector<2x1x16xf32> -> vector<2x1x16xf32>
    "tpu.trace_stop"() : () -> ()
    %164 = vector.broadcast %158 : vector<2x1x1xf32> to vector<2x1x16xf32>
    %165 = arith.mulf %164, %142 : vector<2x1x16xf32>
    %166 = arith.addf %163, %165 : vector<2x1x16xf32>
    %167 = vector.broadcast %162 : vector<2x1x1xf32> to vector<2x1x16xf32>
    %168 = arith.mulf %166, %167 : vector<2x1x16xf32>
    %169 = vector.shape_cast %168 : vector<2x1x16xf32> to vector<2x16xf32>
    %170 = vector.extract_strided_slice %58 {offsets = [0, 24], sizes = [2, 8], strides = [1, 1]} : vector<2x32xf32> to vector<2x8xf32>
    %171 = vector.shape_cast %170 : vector<2x8xf32> to vector<2x1x8xf32>
    %172 = vector.extract_strided_slice %59 {offsets = [0, 24], sizes = [2, 8], strides = [1, 1]} : vector<2x32xf32> to vector<2x8xf32>
    %173 = vector.shape_cast %172 : vector<2x8xf32> to vector<2x1x8xf32>
    %174 = vector.extract_strided_slice %60 {offsets = [0, 48], sizes = [2, 16], strides = [1, 1]} : vector<2x64xf32> to vector<2x16xf32>
    %175 = vector.shape_cast %174 : vector<2x16xf32> to vector<2x1x16xf32>
    %176 = vector.extract_strided_slice %68 {offsets = [0, 0, 24], sizes = [2, 12, 8], strides = [1, 1, 1]} : vector<2x12x32xf32> to vector<2x12x8xf32>
    %177 = vector.extract_strided_slice %70 {offsets = [0, 0, 48], sizes = [2, 12, 16], strides = [1, 1, 1]} : vector<2x12x64xf32> to vector<2x12x16xf32>
    "tpu.trace_start"() <{level = 10 : i32, message = "bqd,bkd->bqk"}> : () -> ()
    %cst_76 = arith.constant dense<0.000000e+00> : vector<2x1x12xf32>
    %178 = tpu.matmul %171, %176, %cst_76 {dimension_numbers = #tpu.dot_dimension_numbers<[2], [2], [1], [1], [0, 0, 0, 1, 1, 1], [0], [0]>} : vector<2x1x8xf32>, vector<2x12x8xf32>, vector<2x1x12xf32> -> vector<2x1x12xf32>
    "tpu.trace_stop"() : () -> ()
    %179 = vector.broadcast %25 : vector<1x1x12xf32> to vector<2x1x12xf32>
    %180 = arith.addf %178, %179 : vector<2x1x12xf32>
    %181 = arith.mulf %171, %173 : vector<2x1x8xf32>
    %cst_77 = arith.constant dense<0.000000e+00> : vector<2x1xf32>
    %182 = vector.multi_reduction <add>, %181, %cst_77 [2] : vector<2x1x8xf32> to vector<2x1xf32>
    %183 = vector.shape_cast %182 : vector<2x1xf32> to vector<2x1x1xf32>
    %cst_78 = arith.constant dense<0xFF800000> : vector<2x1xf32>
    %184 = vector.multi_reduction <maximumf>, %180, %cst_78 [2] : vector<2x1x12xf32> to vector<2x1xf32>
    %185 = vector.shape_cast %184 : vector<2x1xf32> to vector<2x1x1xf32>
    %186 = arith.maximumf %185, %183 : vector<2x1x1xf32>
    %187 = vector.broadcast %186 : vector<2x1x1xf32> to vector<2x1x12xf32>
    %188 = arith.subf %180, %187 : vector<2x1x12xf32>
    %189 = math.exp %188 : vector<2x1x12xf32>
    %190 = arith.subf %183, %186 : vector<2x1x1xf32>
    %191 = math.exp %190 : vector<2x1x1xf32>
    %cst_79 = arith.constant dense<0.000000e+00> : vector<2x1xf32>
    %192 = vector.multi_reduction <add>, %189, %cst_79 [2] : vector<2x1x12xf32> to vector<2x1xf32>
    %193 = vector.shape_cast %192 : vector<2x1xf32> to vector<2x1x1xf32>
    %194 = arith.addf %193, %191 : vector<2x1x1xf32>
    %195 = tpu.reciprocal %194 {approx = true} : vector<2x1x1xf32> -> vector<2x1x1xf32>
    "tpu.trace_start"() <{level = 10 : i32, message = "bqk,bkd->bqd"}> : () -> ()
    %cst_80 = arith.constant dense<0.000000e+00> : vector<2x1x16xf32>
    %196 = tpu.matmul %189, %177, %cst_80 {dimension_numbers = #tpu.dot_dimension_numbers<[2], [1], [1], [2], [0, 0, 0, 1, 1, 2], [0], [0]>} : vector<2x1x12xf32>, vector<2x12x16xf32>, vector<2x1x16xf32> -> vector<2x1x16xf32>
    "tpu.trace_stop"() : () -> ()
    %197 = vector.broadcast %191 : vector<2x1x1xf32> to vector<2x1x16xf32>
    %198 = arith.mulf %197, %175 : vector<2x1x16xf32>
    %199 = arith.addf %196, %198 : vector<2x1x16xf32>
    %200 = vector.broadcast %195 : vector<2x1x1xf32> to vector<2x1x16xf32>
    %201 = arith.mulf %199, %200 : vector<2x1x16xf32>
    %202 = vector.shape_cast %201 : vector<2x1x16xf32> to vector<2x16xf32>
    %203 = tpu.concatenate %103, %136, %169, %202 in 1 : vector<2x16xf32>, vector<2x16xf32>, vector<2x16xf32>, vector<2x16xf32> -> vector<2x64xf32>
    %cst_81 = arith.constant dense<0.000000e+00> : vector<2x32xf32>
    %204 = tpu.matmul %203, %16, %cst_81 {dimension_numbers = #tpu.dot_dimension_numbers<[1], [0], [0], [1], [0, 0, 1, 1], [], []>} : vector<2x64xf32>, vector<64x32xf32>, vector<2x32xf32> -> vector<2x32xf32>
    %205 = vector.broadcast %17 : vector<1x32xf32> to vector<2x32xf32>
    %206 = arith.addf %204, %205 : vector<2x32xf32>
    %cst_82 = arith.constant 0.000000e+00 : f32
    %207 = vector.broadcast %cst_82 : f32 to vector<2x32xf32>
    %208 = arith.cmpf oge, %206, %207 : vector<2x32xf32>
    %cst_83 = arith.constant 0.00999999977 : f32
    %209 = vector.broadcast %cst_83 : f32 to vector<2x32xf32>
    %210 = arith.mulf %209, %206 : vector<2x32xf32>
    %211 = arith.select %208, %206, %210 : vector<2x32xi1>, vector<2x32xf32>
    %212 = arith.addf %47, %211 : vector<2x32xf32>
    %cst_84 = arith.constant dense<0.000000e+00> : vector<2xf32>
    %213 = vector.multi_reduction <add>, %212, %cst_84 [1] : vector<2x32xf32> to vector<2xf32>
    %214 = vector.shape_cast %213 : vector<2xf32> to vector<2x1xf32>
    %cst_85 = arith.constant 3.200000e+01 : f32
    %215 = vector.broadcast %cst_85 : f32 to vector<2x1xf32>
    %216 = arith.divf %214, %215 : vector<2x1xf32>
    %217 = vector.broadcast %216 : vector<2x1xf32> to vector<2x32xf32>
    %218 = arith.subf %212, %217 : vector<2x32xf32>
    %219 = arith.mulf %218, %218 : vector<2x32xf32>
    %cst_86 = arith.constant dense<0.000000e+00> : vector<2xf32>
    %220 = vector.multi_reduction <add>, %219, %cst_86 [1] : vector<2x32xf32> to vector<2xf32>
    %221 = vector.shape_cast %220 : vector<2xf32> to vector<2x1xf32>
    %cst_87 = arith.constant 3.200000e+01 : f32
    %222 = vector.broadcast %cst_87 : f32 to vector<2x1xf32>
    %223 = arith.divf %221, %222 : vector<2x1xf32>
    %cst_88 = arith.constant 9.99999974E-6 : f32
    %224 = vector.broadcast %cst_88 : f32 to vector<2x1xf32>
    %225 = arith.addf %223, %224 : vector<2x1xf32>
    %226 = math.rsqrt %225 : vector<2x1xf32>
    %227 = vector.broadcast %226 : vector<2x1xf32> to vector<2x32xf32>
    %228 = arith.mulf %218, %227 : vector<2x32xf32>
    %229 = vector.broadcast %18 : vector<1x32xf32> to vector<2x32xf32>
    %230 = arith.mulf %228, %229 : vector<2x32xf32>
    %231 = vector.broadcast %19 : vector<1x32xf32> to vector<2x32xf32>
    %232 = arith.addf %230, %231 : vector<2x32xf32>
    %cst_89 = arith.constant dense<0.000000e+00> : vector<2x32xf32>
    %233 = tpu.matmul %232, %20, %cst_89 {dimension_numbers = #tpu.dot_dimension_numbers<[1], [0], [0], [1], [0, 0, 1, 1], [], []>} : vector<2x32xf32>, vector<32x32xf32>, vector<2x32xf32> -> vector<2x32xf32>
    %234 = vector.broadcast %21 : vector<1x32xf32> to vector<2x32xf32>
    %235 = arith.addf %233, %234 : vector<2x32xf32>
    %cst_90 = arith.constant 0.000000e+00 : f32
    %236 = vector.broadcast %cst_90 : f32 to vector<2x32xf32>
    %237 = arith.cmpf ogt, %235, %236 : vector<2x32xf32>
    %238 = math.exp %235 : vector<2x32xf32>
    %cst_91 = arith.constant 1.000000e+00 : f32
    %239 = vector.broadcast %cst_91 : f32 to vector<2x32xf32>
    %240 = arith.subf %238, %239 : vector<2x32xf32>
    %cst_92 = arith.constant 1.67326319 : f32
    %241 = vector.broadcast %cst_92 : f32 to vector<2x32xf32>
    %242 = arith.mulf %241, %240 : vector<2x32xf32>
    %243 = arith.select %237, %235, %242 : vector<2x32xi1>, vector<2x32xf32>
    %cst_93 = arith.constant 1.05070102 : f32
    %244 = vector.broadcast %cst_93 : f32 to vector<2x32xf32>
    %245 = arith.mulf %244, %243 : vector<2x32xf32>
    %cst_94 = arith.constant dense<0.000000e+00> : vector<2x32xf32>
    %246 = tpu.matmul %245, %22, %cst_94 {dimension_numbers = #tpu.dot_dimension_numbers<[1], [0], [0], [1], [0, 0, 1, 1], [], []>} : vector<2x32xf32>, vector<32x32xf32>, vector<2x32xf32> -> vector<2x32xf32>
    %247 = vector.broadcast %23 : vector<1x32xf32> to vector<2x32xf32>
    %248 = arith.addf %246, %247 : vector<2x32xf32>
    %cst_95 = arith.constant 0.707106769 : f32
    %249 = vector.broadcast %cst_95 : f32 to vector<2x32xf32>
    %250 = arith.mulf %248, %249 : vector<2x32xf32>
    %251 = math.absf %250 : vector<2x32xf32>
    %cst_96 = arith.constant 0.327591091 : f32
    %252 = vector.broadcast %cst_96 : f32 to vector<2x32xf32>
    %253 = arith.mulf %252, %251 : vector<2x32xf32>
    %cst_97 = arith.constant 1.000000e+00 : f32
    %254 = vector.broadcast %cst_97 : f32 to vector<2x32xf32>
    %255 = arith.addf %254, %253 : vector<2x32xf32>
    %cst_98 = arith.constant 1.000000e+00 : f32
    %256 = vector.broadcast %cst_98 : f32 to vector<2x32xf32>
    %257 = arith.divf %256, %255 : vector<2x32xf32>
    %cst_99 = arith.constant 1.06140542 : f32
    %258 = vector.broadcast %cst_99 : f32 to vector<2x32xf32>
    %259 = arith.mulf %257, %258 : vector<2x32xf32>
    %cst_100 = arith.constant -1.45315206 : f32
    %260 = vector.broadcast %cst_100 : f32 to vector<2x32xf32>
    %261 = arith.addf %260, %259 : vector<2x32xf32>
    %262 = arith.mulf %257, %261 : vector<2x32xf32>
    %cst_101 = arith.constant 1.42141378 : f32
    %263 = vector.broadcast %cst_101 : f32 to vector<2x32xf32>
    %264 = arith.addf %263, %262 : vector<2x32xf32>
    %265 = arith.mulf %257, %264 : vector<2x32xf32>
    %cst_102 = arith.constant -0.284496725 : f32
    %266 = vector.broadcast %cst_102 : f32 to vector<2x32xf32>
    %267 = arith.addf %266, %265 : vector<2x32xf32>
    %268 = arith.mulf %257, %267 : vector<2x32xf32>
    %cst_103 = arith.constant 0.254829586 : f32
    %269 = vector.broadcast %cst_103 : f32 to vector<2x32xf32>
    %270 = arith.addf %269, %268 : vector<2x32xf32>
    %271 = arith.mulf %257, %270 : vector<2x32xf32>
    %cst_104 = arith.constant 0.000000e+00 : f32
    %272 = vector.broadcast %cst_104 : f32 to vector<2x32xf32>
    %273 = arith.subf %272, %251 : vector<2x32xf32>
    %274 = arith.mulf %273, %251 : vector<2x32xf32>
    %275 = math.exp %274 : vector<2x32xf32>
    %276 = arith.mulf %271, %275 : vector<2x32xf32>
    %cst_105 = arith.constant 1.000000e+00 : f32
    %277 = vector.broadcast %cst_105 : f32 to vector<2x32xf32>
    %278 = arith.subf %277, %276 : vector<2x32xf32>
    %cst_106 = arith.constant 0.000000e+00 : f32
    %279 = vector.broadcast %cst_106 : f32 to vector<2x32xf32>
    %280 = arith.cmpf oge, %250, %279 : vector<2x32xf32>
    %cst_107 = arith.constant 0.000000e+00 : f32
    %281 = vector.broadcast %cst_107 : f32 to vector<2x32xf32>
    %282 = arith.subf %281, %278 : vector<2x32xf32>
    %283 = arith.select %280, %278, %282 : vector<2x32xi1>, vector<2x32xf32>
    %cst_108 = arith.constant 5.000000e-01 : f32
    %284 = vector.broadcast %cst_108 : f32 to vector<2x32xf32>
    %285 = arith.mulf %284, %248 : vector<2x32xf32>
    %cst_109 = arith.constant 1.000000e+00 : f32
    %286 = vector.broadcast %cst_109 : f32 to vector<2x32xf32>
    %287 = arith.addf %286, %283 : vector<2x32xf32>
    %288 = arith.mulf %285, %287 : vector<2x32xf32>
    %289 = arith.addf %232, %288 : vector<2x32xf32>
    %290 = vector.extract_strided_slice %12 {offsets = [1, 0], sizes = [1, 32], strides = [1, 1]} : vector<2x32xf32> to vector<1x32xf32>
    %291 = vector.extract_strided_slice %13 {offsets = [1, 0], sizes = [1, 32], strides = [1, 1]} : vector<2x32xf32> to vector<1x32xf32>
    %cst_110 = arith.constant dense<0.000000e+00> : vector<2xf32>
    %292 = vector.multi_reduction <add>, %289, %cst_110 [1] : vector<2x32xf32> to vector<2xf32>
    %293 = vector.shape_cast %292 : vector<2xf32> to vector<2x1xf32>
    %cst_111 = arith.constant 3.200000e+01 : f32
    %294 = vector.broadcast %cst_111 : f32 to vector<2x1xf32>
    %295 = arith.divf %293, %294 : vector<2x1xf32>
    %296 = vector.broadcast %295 : vector<2x1xf32> to vector<2x32xf32>
    %297 = arith.subf %289, %296 : vector<2x32xf32>
    %298 = arith.mulf %297, %297 : vector<2x32xf32>
    %cst_112 = arith.constant dense<0.000000e+00> : vector<2xf32>
    %299 = vector.multi_reduction <add>, %298, %cst_112 [1] : vector<2x32xf32> to vector<2xf32>
    %300 = vector.shape_cast %299 : vector<2xf32> to vector<2x1xf32>
    %cst_113 = arith.constant 3.200000e+01 : f32
    %301 = vector.broadcast %cst_113 : f32 to vector<2x1xf32>
    %302 = arith.divf %300, %301 : vector<2x1xf32>
    %cst_114 = arith.constant 9.99999974E-6 : f32
    %303 = vector.broadcast %cst_114 : f32 to vector<2x1xf32>
    %304 = arith.addf %302, %303 : vector<2x1xf32>
    %305 = math.rsqrt %304 : vector<2x1xf32>
    %306 = vector.broadcast %305 : vector<2x1xf32> to vector<2x32xf32>
    %307 = arith.mulf %297, %306 : vector<2x32xf32>
    %308 = vector.broadcast %290 : vector<1x32xf32> to vector<2x32xf32>
    %309 = arith.mulf %307, %308 : vector<2x32xf32>
    %310 = vector.broadcast %291 : vector<1x32xf32> to vector<2x32xf32>
    %311 = arith.addf %309, %310 : vector<2x32xf32>
    %cst_115 = arith.constant dense<0.000000e+00> : vector<2x128xf32>
    %312 = tpu.matmul %311, %14, %cst_115 {dimension_numbers = #tpu.dot_dimension_numbers<[1], [0], [0], [1], [0, 0, 1, 1], [], []>} : vector<2x32xf32>, vector<32x128xf32>, vector<2x128xf32> -> vector<2x128xf32>
    %313 = vector.broadcast %15 : vector<1x128xf32> to vector<2x128xf32>
    %314 = arith.addf %312, %313 : vector<2x128xf32>
    %cst_116 = arith.constant 0.000000e+00 : f32
    %315 = vector.broadcast %cst_116 : f32 to vector<2x128xf32>
    %316 = arith.cmpf oge, %314, %315 : vector<2x128xf32>
    %cst_117 = arith.constant 0.00999999977 : f32
    %317 = vector.broadcast %cst_117 : f32 to vector<2x128xf32>
    %318 = arith.mulf %317, %314 : vector<2x128xf32>
    %319 = arith.select %316, %314, %318 : vector<2x128xi1>, vector<2x128xf32>
    %320 = vector.extract_strided_slice %319 {offsets = [0, 0], sizes = [2, 32], strides = [1, 1]} : vector<2x128xf32> to vector<2x32xf32>
    %cst_118 = arith.constant 0.353553385 : f32
    %321 = vector.broadcast %cst_118 : f32 to vector<2x32xf32>
    %322 = arith.mulf %320, %321 : vector<2x32xf32>
    %323 = vector.extract_strided_slice %319 {offsets = [0, 32], sizes = [2, 32], strides = [1, 1]} : vector<2x128xf32> to vector<2x32xf32>
    %324 = vector.extract_strided_slice %319 {offsets = [0, 64], sizes = [2, 64], strides = [1, 1]} : vector<2x128xf32> to vector<2x64xf32>
    %c1 = arith.constant 1 : index
    %c0_119 = arith.constant 0 : index
    %c0_120 = arith.constant 0 : index
    %325 = vector.load %arg28[%c1, %c0_119, %c0_120] : memref<2x2x32xf32, #tpu.memory_space<vmem>>, vector<1x2x32xf32>
    %326 = vector.shape_cast %325 : vector<1x2x32xf32> to vector<2x32xf32>
    %327 = vector.shape_cast %323 : vector<2x32xf32> to vector<1x2x32xf32>
    tpu.vector_store %arg28[%c1, %c0_119, %c0_120], %327 {strides = array<i32>} : memref<2x2x32xf32, #tpu.memory_space<vmem>>, vector<1x2x32xf32>,
    %c1_121 = arith.constant 1 : index
    %c0_122 = arith.constant 0 : index
    %c0_123 = arith.constant 0 : index
    %328 = vector.load %arg29[%c1_121, %c0_122, %c0_123] : memref<2x2x64xf32, #tpu.memory_space<vmem>>, vector<1x2x64xf32>
    %329 = vector.shape_cast %328 : vector<1x2x64xf32> to vector<2x64xf32>
    %330 = vector.shape_cast %324 : vector<2x64xf32> to vector<1x2x64xf32>
    tpu.vector_store %arg29[%c1_121, %c0_122, %c0_123], %330 {strides = array<i32>} : memref<2x2x64xf32, #tpu.memory_space<vmem>>, vector<1x2x64xf32>,
    %c1_124 = arith.constant 1 : index
    %c0_125 = arith.constant 0 : index
    %c0_126 = arith.constant 0 : index
    %c0_127 = arith.constant 0 : index
    %331 = vector.load %arg3[%c1_124, %c0_125, %c0_126, %c0_127] : memref<2x2x12x32xf32, #tpu.memory_space<vmem>>, vector<1x2x12x32xf32>
    %332 = vector.shape_cast %331 : vector<1x2x12x32xf32> to vector<2x12x32xf32>
    %c1_128 = arith.constant 1 : index
    %c0_129 = arith.constant 0 : index
    %c0_130 = arith.constant 0 : index
    %c0_131 = arith.constant 0 : index
    %333 = vector.load %arg4[%c1_128, %c0_129, %c0_130, %c0_131] : memref<2x2x12x64xf32, #tpu.memory_space<vmem>>, vector<1x2x12x64xf32>
    %334 = vector.shape_cast %333 : vector<1x2x12x64xf32> to vector<2x12x64xf32>
    %335 = vector.extract_strided_slice %322 {offsets = [0, 0], sizes = [2, 8], strides = [1, 1]} : vector<2x32xf32> to vector<2x8xf32>
    %336 = vector.shape_cast %335 : vector<2x8xf32> to vector<2x1x8xf32>
    %337 = vector.extract_strided_slice %323 {offsets = [0, 0], sizes = [2, 8], strides = [1, 1]} : vector<2x32xf32> to vector<2x8xf32>
    %338 = vector.shape_cast %337 : vector<2x8xf32> to vector<2x1x8xf32>
    %339 = vector.extract_strided_slice %324 {offsets = [0, 0], sizes = [2, 16], strides = [1, 1]} : vector<2x64xf32> to vector<2x16xf32>
    %340 = vector.shape_cast %339 : vector<2x16xf32> to vector<2x1x16xf32>
    %341 = vector.extract_strided_slice %332 {offsets = [0, 0, 0], sizes = [2, 12, 8], strides = [1, 1, 1]} : vector<2x12x32xf32> to vector<2x12x8xf32>
    %342 = vector.extract_strided_slice %334 {offsets = [0, 0, 0], sizes = [2, 12, 16], strides = [1, 1, 1]} : vector<2x12x64xf32> to vector<2x12x16xf32>
    "tpu.trace_start"() <{level = 10 : i32, message = "bqd,bkd->bqk"}> : () -> ()
    %cst_132 = arith.constant dense<0.000000e+00> : vector<2x1x12xf32>
    %343 = tpu.matmul %336, %341, %cst_132 {dimension_numbers = #tpu.dot_dimension_numbers<[2], [2], [1], [1], [0, 0, 0, 1, 1, 1], [0], [0]>} : vector<2x1x8xf32>, vector<2x12x8xf32>, vector<2x1x12xf32> -> vector<2x1x12xf32>
    "tpu.trace_stop"() : () -> ()
    %344 = vector.broadcast %25 : vector<1x1x12xf32> to vector<2x1x12xf32>
    %345 = arith.addf %343, %344 : vector<2x1x12xf32>
    %346 = arith.mulf %336, %338 : vector<2x1x8xf32>
    %cst_133 = arith.constant dense<0.000000e+00> : vector<2x1xf32>
    %347 = vector.multi_reduction <add>, %346, %cst_133 [2] : vector<2x1x8xf32> to vector<2x1xf32>
    %348 = vector.shape_cast %347 : vector<2x1xf32> to vector<2x1x1xf32>
    %cst_134 = arith.constant dense<0xFF800000> : vector<2x1xf32>
    %349 = vector.multi_reduction <maximumf>, %345, %cst_134 [2] : vector<2x1x12xf32> to vector<2x1xf32>
    %350 = vector.shape_cast %349 : vector<2x1xf32> to vector<2x1x1xf32>
    %351 = arith.maximumf %350, %348 : vector<2x1x1xf32>
    %352 = vector.broadcast %351 : vector<2x1x1xf32> to vector<2x1x12xf32>
    %353 = arith.subf %345, %352 : vector<2x1x12xf32>
    %354 = math.exp %353 : vector<2x1x12xf32>
    %355 = arith.subf %348, %351 : vector<2x1x1xf32>
    %356 = math.exp %355 : vector<2x1x1xf32>
    %cst_135 = arith.constant dense<0.000000e+00> : vector<2x1xf32>
    %357 = vector.multi_reduction <add>, %354, %cst_135 [2] : vector<2x1x12xf32> to vector<2x1xf32>
    %358 = vector.shape_cast %357 : vector<2x1xf32> to vector<2x1x1xf32>
    %359 = arith.addf %358, %356 : vector<2x1x1xf32>
    %360 = tpu.reciprocal %359 {approx = true} : vector<2x1x1xf32> -> vector<2x1x1xf32>
    "tpu.trace_start"() <{level = 10 : i32, message = "bqk,bkd->bqd"}> : () -> ()
    %cst_136 = arith.constant dense<0.000000e+00> : vector<2x1x16xf32>
    %361 = tpu.matmul %354, %342, %cst_136 {dimension_numbers = #tpu.dot_dimension_numbers<[2], [1], [1], [2], [0, 0, 0, 1, 1, 2], [0], [0]>} : vector<2x1x12xf32>, vector<2x12x16xf32>, vector<2x1x16xf32> -> vector<2x1x16xf32>
    "tpu.trace_stop"() : () -> ()
    %362 = vector.broadcast %356 : vector<2x1x1xf32> to vector<2x1x16xf32>
    %363 = arith.mulf %362, %340 : vector<2x1x16xf32>
    %364 = arith.addf %361, %363 : vector<2x1x16xf32>
    %365 = vector.broadcast %360 : vector<2x1x1xf32> to vector<2x1x16xf32>
    %366 = arith.mulf %364, %365 : vector<2x1x16xf32>
    %367 = vector.shape_cast %366 : vector<2x1x16xf32> to vector<2x16xf32>
    %368 = vector.extract_strided_slice %322 {offsets = [0, 8], sizes = [2, 8], strides = [1, 1]} : vector<2x32xf32> to vector<2x8xf32>
    %369 = vector.shape_cast %368 : vector<2x8xf32> to vector<2x1x8xf32>
    %370 = vector.extract_strided_slice %323 {offsets = [0, 8], sizes = [2, 8], strides = [1, 1]} : vector<2x32xf32> to vector<2x8xf32>
    %371 = vector.shape_cast %370 : vector<2x8xf32> to vector<2x1x8xf32>
    %372 = vector.extract_strided_slice %324 {offsets = [0, 16], sizes = [2, 16], strides = [1, 1]} : vector<2x64xf32> to vector<2x16xf32>
    %373 = vector.shape_cast %372 : vector<2x16xf32> to vector<2x1x16xf32>
    %374 = vector.extract_strided_slice %332 {offsets = [0, 0, 8], sizes = [2, 12, 8], strides = [1, 1, 1]} : vector<2x12x32xf32> to vector<2x12x8xf32>
    %375 = vector.extract_strided_slice %334 {offsets = [0, 0, 16], sizes = [2, 12, 16], strides = [1, 1, 1]} : vector<2x12x64xf32> to vector<2x12x16xf32>
    "tpu.trace_start"() <{level = 10 : i32, message = "bqd,bkd->bqk"}> : () -> ()
    %cst_137 = arith.constant dense<0.000000e+00> : vector<2x1x12xf32>
    %376 = tpu.matmul %369, %374, %cst_137 {dimension_numbers = #tpu.dot_dimension_numbers<[2], [2], [1], [1], [0, 0, 0, 1, 1, 1], [0], [0]>} : vector<2x1x8xf32>, vector<2x12x8xf32>, vector<2x1x12xf32> -> vector<2x1x12xf32>
    "tpu.trace_stop"() : () -> ()
    %377 = vector.broadcast %25 : vector<1x1x12xf32> to vector<2x1x12xf32>
    %378 = arith.addf %376, %377 : vector<2x1x12xf32>
    %379 = arith.mulf %369, %371 : vector<2x1x8xf32>
    %cst_138 = arith.constant dense<0.000000e+00> : vector<2x1xf32>
    %380 = vector.multi_reduction <add>, %379, %cst_138 [2] : vector<2x1x8xf32> to vector<2x1xf32>
    %381 = vector.shape_cast %380 : vector<2x1xf32> to vector<2x1x1xf32>
    %cst_139 = arith.constant dense<0xFF800000> : vector<2x1xf32>
    %382 = vector.multi_reduction <maximumf>, %378, %cst_139 [2] : vector<2x1x12xf32> to vector<2x1xf32>
    %383 = vector.shape_cast %382 : vector<2x1xf32> to vector<2x1x1xf32>
    %384 = arith.maximumf %383, %381 : vector<2x1x1xf32>
    %385 = vector.broadcast %384 : vector<2x1x1xf32> to vector<2x1x12xf32>
    %386 = arith.subf %378, %385 : vector<2x1x12xf32>
    %387 = math.exp %386 : vector<2x1x12xf32>
    %388 = arith.subf %381, %384 : vector<2x1x1xf32>
    %389 = math.exp %388 : vector<2x1x1xf32>
    %cst_140 = arith.constant dense<0.000000e+00> : vector<2x1xf32>
    %390 = vector.multi_reduction <add>, %387, %cst_140 [2] : vector<2x1x12xf32> to vector<2x1xf32>
    %391 = vector.shape_cast %390 : vector<2x1xf32> to vector<2x1x1xf32>
    %392 = arith.addf %391, %389 : vector<2x1x1xf32>
    %393 = tpu.reciprocal %392 {approx = true} : vector<2x1x1xf32> -> vector<2x1x1xf32>
    "tpu.trace_start"() <{level = 10 : i32, message = "bqk,bkd->bqd"}> : () -> ()
    %cst_141 = arith.constant dense<0.000000e+00> : vector<2x1x16xf32>
    %394 = tpu.matmul %387, %375, %cst_141 {dimension_numbers = #tpu.dot_dimension_numbers<[2], [1], [1], [2], [0, 0, 0, 1, 1, 2], [0], [0]>} : vector<2x1x12xf32>, vector<2x12x16xf32>, vector<2x1x16xf32> -> vector<2x1x16xf32>
    "tpu.trace_stop"() : () -> ()
    %395 = vector.broadcast %389 : vector<2x1x1xf32> to vector<2x1x16xf32>
    %396 = arith.mulf %395, %373 : vector<2x1x16xf32>
    %397 = arith.addf %394, %396 : vector<2x1x16xf32>
    %398 = vector.broadcast %393 : vector<2x1x1xf32> to vector<2x1x16xf32>
    %399 = arith.mulf %397, %398 : vector<2x1x16xf32>
    %400 = vector.shape_cast %399 : vector<2x1x16xf32> to vector<2x16xf32>
    %401 = vector.extract_strided_slice %322 {offsets = [0, 16], sizes = [2, 8], strides = [1, 1]} : vector<2x32xf32> to vector<2x8xf32>
    %402 = vector.shape_cast %401 : vector<2x8xf32> to vector<2x1x8xf32>
    %403 = vector.extract_strided_slice %323 {offsets = [0, 16], sizes = [2, 8], strides = [1, 1]} : vector<2x32xf32> to vector<2x8xf32>
    %404 = vector.shape_cast %403 : vector<2x8xf32> to vector<2x1x8xf32>
    %405 = vector.extract_strided_slice %324 {offsets = [0, 32], sizes = [2, 16], strides = [1, 1]} : vector<2x64xf32> to vector<2x16xf32>
    %406 = vector.shape_cast %405 : vector<2x16xf32> to vector<2x1x16xf32>
    %407 = vector.extract_strided_slice %332 {offsets = [0, 0, 16], sizes = [2, 12, 8], strides = [1, 1, 1]} : vector<2x12x32xf32> to vector<2x12x8xf32>
    %408 = vector.extract_strided_slice %334 {offsets = [0, 0, 32], sizes = [2, 12, 16], strides = [1, 1, 1]} : vector<2x12x64xf32> to vector<2x12x16xf32>
    "tpu.trace_start"() <{level = 10 : i32, message = "bqd,bkd->bqk"}> : () -> ()
    %cst_142 = arith.constant dense<0.000000e+00> : vector<2x1x12xf32>
    %409 = tpu.matmul %402, %407, %cst_142 {dimension_numbers = #tpu.dot_dimension_numbers<[2], [2], [1], [1], [0, 0, 0, 1, 1, 1], [0], [0]>} : vector<2x1x8xf32>, vector<2x12x8xf32>, vector<2x1x12xf32> -> vector<2x1x12xf32>
    "tpu.trace_stop"() : () -> ()
    %410 = vector.broadcast %25 : vector<1x1x12xf32> to vector<2x1x12xf32>
    %411 = arith.addf %409, %410 : vector<2x1x12xf32>
    %412 = arith.mulf %402, %404 : vector<2x1x8xf32>
    %cst_143 = arith.constant dense<0.000000e+00> : vector<2x1xf32>
    %413 = vector.multi_reduction <add>, %412, %cst_143 [2] : vector<2x1x8xf32> to vector<2x1xf32>
    %414 = vector.shape_cast %413 : vector<2x1xf32> to vector<2x1x1xf32>
    %cst_144 = arith.constant dense<0xFF800000> : vector<2x1xf32>
    %415 = vector.multi_reduction <maximumf>, %411, %cst_144 [2] : vector<2x1x12xf32> to vector<2x1xf32>
    %416 = vector.shape_cast %415 : vector<2x1xf32> to vector<2x1x1xf32>
    %417 = arith.maximumf %416, %414 : vector<2x1x1xf32>
    %418 = vector.broadcast %417 : vector<2x1x1xf32> to vector<2x1x12xf32>
    %419 = arith.subf %411, %418 : vector<2x1x12xf32>
    %420 = math.exp %419 : vector<2x1x12xf32>
    %421 = arith.subf %414, %417 : vector<2x1x1xf32>
    %422 = math.exp %421 : vector<2x1x1xf32>
    %cst_145 = arith.constant dense<0.000000e+00> : vector<2x1xf32>
    %423 = vector.multi_reduction <add>, %420, %cst_145 [2] : vector<2x1x12xf32> to vector<2x1xf32>
    %424 = vector.shape_cast %423 : vector<2x1xf32> to vector<2x1x1xf32>
    %425 = arith.addf %424, %422 : vector<2x1x1xf32>
    %426 = tpu.reciprocal %425 {approx = true} : vector<2x1x1xf32> -> vector<2x1x1xf32>
    "tpu.trace_start"() <{level = 10 : i32, message = "bqk,bkd->bqd"}> : () -> ()
    %cst_146 = arith.constant dense<0.000000e+00> : vector<2x1x16xf32>
    %427 = tpu.matmul %420, %408, %cst_146 {dimension_numbers = #tpu.dot_dimension_numbers<[2], [1], [1], [2], [0, 0, 0, 1, 1, 2], [0], [0]>} : vector<2x1x12xf32>, vector<2x12x16xf32>, vector<2x1x16xf32> -> vector<2x1x16xf32>
    "tpu.trace_stop"() : () -> ()
    %428 = vector.broadcast %422 : vector<2x1x1xf32> to vector<2x1x16xf32>
    %429 = arith.mulf %428, %406 : vector<2x1x16xf32>
    %430 = arith.addf %427, %429 : vector<2x1x16xf32>
    %431 = vector.broadcast %426 : vector<2x1x1xf32> to vector<2x1x16xf32>
    %432 = arith.mulf %430, %431 : vector<2x1x16xf32>
    %433 = vector.shape_cast %432 : vector<2x1x16xf32> to vector<2x16xf32>
    %434 = vector.extract_strided_slice %322 {offsets = [0, 24], sizes = [2, 8], strides = [1, 1]} : vector<2x32xf32> to vector<2x8xf32>
    %435 = vector.shape_cast %434 : vector<2x8xf32> to vector<2x1x8xf32>
    %436 = vector.extract_strided_slice %323 {offsets = [0, 24], sizes = [2, 8], strides = [1, 1]} : vector<2x32xf32> to vector<2x8xf32>
    %437 = vector.shape_cast %436 : vector<2x8xf32> to vector<2x1x8xf32>
    %438 = vector.extract_strided_slice %324 {offsets = [0, 48], sizes = [2, 16], strides = [1, 1]} : vector<2x64xf32> to vector<2x16xf32>
    %439 = vector.shape_cast %438 : vector<2x16xf32> to vector<2x1x16xf32>
    %440 = vector.extract_strided_slice %332 {offsets = [0, 0, 24], sizes = [2, 12, 8], strides = [1, 1, 1]} : vector<2x12x32xf32> to vector<2x12x8xf32>
    %441 = vector.extract_strided_slice %334 {offsets = [0, 0, 48], sizes = [2, 12, 16], strides = [1, 1, 1]} : vector<2x12x64xf32> to vector<2x12x16xf32>
    "tpu.trace_start"() <{level = 10 : i32, message = "bqd,bkd->bqk"}> : () -> ()
    %cst_147 = arith.constant dense<0.000000e+00> : vector<2x1x12xf32>
    %442 = tpu.matmul %435, %440, %cst_147 {dimension_numbers = #tpu.dot_dimension_numbers<[2], [2], [1], [1], [0, 0, 0, 1, 1, 1], [0], [0]>} : vector<2x1x8xf32>, vector<2x12x8xf32>, vector<2x1x12xf32> -> vector<2x1x12xf32>
    "tpu.trace_stop"() : () -> ()
    %443 = vector.broadcast %25 : vector<1x1x12xf32> to vector<2x1x12xf32>
    %444 = arith.addf %442, %443 : vector<2x1x12xf32>
    %445 = arith.mulf %435, %437 : vector<2x1x8xf32>
    %cst_148 = arith.constant dense<0.000000e+00> : vector<2x1xf32>
    %446 = vector.multi_reduction <add>, %445, %cst_148 [2] : vector<2x1x8xf32> to vector<2x1xf32>
    %447 = vector.shape_cast %446 : vector<2x1xf32> to vector<2x1x1xf32>
    %cst_149 = arith.constant dense<0xFF800000> : vector<2x1xf32>
    %448 = vector.multi_reduction <maximumf>, %444, %cst_149 [2] : vector<2x1x12xf32> to vector<2x1xf32>
    %449 = vector.shape_cast %448 : vector<2x1xf32> to vector<2x1x1xf32>
    %450 = arith.maximumf %449, %447 : vector<2x1x1xf32>
    %451 = vector.broadcast %450 : vector<2x1x1xf32> to vector<2x1x12xf32>
    %452 = arith.subf %444, %451 : vector<2x1x12xf32>
    %453 = math.exp %452 : vector<2x1x12xf32>
    %454 = arith.subf %447, %450 : vector<2x1x1xf32>
    %455 = math.exp %454 : vector<2x1x1xf32>
    %cst_150 = arith.constant dense<0.000000e+00> : vector<2x1xf32>
    %456 = vector.multi_reduction <add>, %453, %cst_150 [2] : vector<2x1x12xf32> to vector<2x1xf32>
    %457 = vector.shape_cast %456 : vector<2x1xf32> to vector<2x1x1xf32>
    %458 = arith.addf %457, %455 : vector<2x1x1xf32>
    %459 = tpu.reciprocal %458 {approx = true} : vector<2x1x1xf32> -> vector<2x1x1xf32>
    "tpu.trace_start"() <{level = 10 : i32, message = "bqk,bkd->bqd"}> : () -> ()
    %cst_151 = arith.constant dense<0.000000e+00> : vector<2x1x16xf32>
    %460 = tpu.matmul %453, %441, %cst_151 {dimension_numbers = #tpu.dot_dimension_numbers<[2], [1], [1], [2], [0, 0, 0, 1, 1, 2], [0], [0]>} : vector<2x1x12xf32>, vector<2x12x16xf32>, vector<2x1x16xf32> -> vector<2x1x16xf32>
    "tpu.trace_stop"() : () -> ()
    %461 = vector.broadcast %455 : vector<2x1x1xf32> to vector<2x1x16xf32>
    %462 = arith.mulf %461, %439 : vector<2x1x16xf32>
    %463 = arith.addf %460, %462 : vector<2x1x16xf32>
    %464 = vector.broadcast %459 : vector<2x1x1xf32> to vector<2x1x16xf32>
    %465 = arith.mulf %463, %464 : vector<2x1x16xf32>
    %466 = vector.shape_cast %465 : vector<2x1x16xf32> to vector<2x16xf32>
    %467 = tpu.concatenate %367, %400, %433, %466 in 1 : vector<2x16xf32>, vector<2x16xf32>, vector<2x16xf32>, vector<2x16xf32> -> vector<2x64xf32>
    %cst_152 = arith.constant dense<0.000000e+00> : vector<2x32xf32>
    %468 = tpu.matmul %467, %16, %cst_152 {dimension_numbers = #tpu.dot_dimension_numbers<[1], [0], [0], [1], [0, 0, 1, 1], [], []>} : vector<2x64xf32>, vector<64x32xf32>, vector<2x32xf32> -> vector<2x32xf32>
    %469 = vector.broadcast %17 : vector<1x32xf32> to vector<2x32xf32>
    %470 = arith.addf %468, %469 : vector<2x32xf32>
    %cst_153 = arith.constant 0.000000e+00 : f32
    %471 = vector.broadcast %cst_153 : f32 to vector<2x32xf32>
    %472 = arith.cmpf oge, %470, %471 : vector<2x32xf32>
    %cst_154 = arith.constant 0.00999999977 : f32
    %473 = vector.broadcast %cst_154 : f32 to vector<2x32xf32>
    %474 = arith.mulf %473, %470 : vector<2x32xf32>
    %475 = arith.select %472, %470, %474 : vector<2x32xi1>, vector<2x32xf32>
    %476 = arith.addf %311, %475 : vector<2x32xf32>
    %cst_155 = arith.constant dense<0.000000e+00> : vector<2xf32>
    %477 = vector.multi_reduction <add>, %476, %cst_155 [1] : vector<2x32xf32> to vector<2xf32>
    %478 = vector.shape_cast %477 : vector<2xf32> to vector<2x1xf32>
    %cst_156 = arith.constant 3.200000e+01 : f32
    %479 = vector.broadcast %cst_156 : f32 to vector<2x1xf32>
    %480 = arith.divf %478, %479 : vector<2x1xf32>
    %481 = vector.broadcast %480 : vector<2x1xf32> to vector<2x32xf32>
    %482 = arith.subf %476, %481 : vector<2x32xf32>
    %483 = arith.mulf %482, %482 : vector<2x32xf32>
    %cst_157 = arith.constant dense<0.000000e+00> : vector<2xf32>
    %484 = vector.multi_reduction <add>, %483, %cst_157 [1] : vector<2x32xf32> to vector<2xf32>
    %485 = vector.shape_cast %484 : vector<2xf32> to vector<2x1xf32>
    %cst_158 = arith.constant 3.200000e+01 : f32
    %486 = vector.broadcast %cst_158 : f32 to vector<2x1xf32>
    %487 = arith.divf %485, %486 : vector<2x1xf32>
    %cst_159 = arith.constant 9.99999974E-6 : f32
    %488 = vector.broadcast %cst_159 : f32 to vector<2x1xf32>
    %489 = arith.addf %487, %488 : vector<2x1xf32>
    %490 = math.rsqrt %489 : vector<2x1xf32>
    %491 = vector.broadcast %490 : vector<2x1xf32> to vector<2x32xf32>
    %492 = arith.mulf %482, %491 : vector<2x32xf32>
    %493 = vector.broadcast %18 : vector<1x32xf32> to vector<2x32xf32>
    %494 = arith.mulf %492, %493 : vector<2x32xf32>
    %495 = vector.broadcast %19 : vector<1x32xf32> to vector<2x32xf32>
    %496 = arith.addf %494, %495 : vector<2x32xf32>
    %cst_160 = arith.constant dense<0.000000e+00> : vector<2x32xf32>
    %497 = tpu.matmul %496, %20, %cst_160 {dimension_numbers = #tpu.dot_dimension_numbers<[1], [0], [0], [1], [0, 0, 1, 1], [], []>} : vector<2x32xf32>, vector<32x32xf32>, vector<2x32xf32> -> vector<2x32xf32>
    %498 = vector.broadcast %21 : vector<1x32xf32> to vector<2x32xf32>
    %499 = arith.addf %497, %498 : vector<2x32xf32>
    %cst_161 = arith.constant 0.000000e+00 : f32
    %500 = vector.broadcast %cst_161 : f32 to vector<2x32xf32>
    %501 = arith.cmpf ogt, %499, %500 : vector<2x32xf32>
    %502 = math.exp %499 : vector<2x32xf32>
    %cst_162 = arith.constant 1.000000e+00 : f32
    %503 = vector.broadcast %cst_162 : f32 to vector<2x32xf32>
    %504 = arith.subf %502, %503 : vector<2x32xf32>
    %cst_163 = arith.constant 1.67326319 : f32
    %505 = vector.broadcast %cst_163 : f32 to vector<2x32xf32>
    %506 = arith.mulf %505, %504 : vector<2x32xf32>
    %507 = arith.select %501, %499, %506 : vector<2x32xi1>, vector<2x32xf32>
    %cst_164 = arith.constant 1.05070102 : f32
    %508 = vector.broadcast %cst_164 : f32 to vector<2x32xf32>
    %509 = arith.mulf %508, %507 : vector<2x32xf32>
    %cst_165 = arith.constant dense<0.000000e+00> : vector<2x32xf32>
    %510 = tpu.matmul %509, %22, %cst_165 {dimension_numbers = #tpu.dot_dimension_numbers<[1], [0], [0], [1], [0, 0, 1, 1], [], []>} : vector<2x32xf32>, vector<32x32xf32>, vector<2x32xf32> -> vector<2x32xf32>
    %511 = vector.broadcast %23 : vector<1x32xf32> to vector<2x32xf32>
    %512 = arith.addf %510, %511 : vector<2x32xf32>
    %cst_166 = arith.constant 0.707106769 : f32
    %513 = vector.broadcast %cst_166 : f32 to vector<2x32xf32>
    %514 = arith.mulf %512, %513 : vector<2x32xf32>
    %515 = math.absf %514 : vector<2x32xf32>
    %cst_167 = arith.constant 0.327591091 : f32
    %516 = vector.broadcast %cst_167 : f32 to vector<2x32xf32>
    %517 = arith.mulf %516, %515 : vector<2x32xf32>
    %cst_168 = arith.constant 1.000000e+00 : f32
    %518 = vector.broadcast %cst_168 : f32 to vector<2x32xf32>
    %519 = arith.addf %518, %517 : vector<2x32xf32>
    %cst_169 = arith.constant 1.000000e+00 : f32
    %520 = vector.broadcast %cst_169 : f32 to vector<2x32xf32>
    %521 = arith.divf %520, %519 : vector<2x32xf32>
    %cst_170 = arith.constant 1.06140542 : f32
    %522 = vector.broadcast %cst_170 : f32 to vector<2x32xf32>
    %523 = arith.mulf %521, %522 : vector<2x32xf32>
    %cst_171 = arith.constant -1.45315206 : f32
    %524 = vector.broadcast %cst_171 : f32 to vector<2x32xf32>
    %525 = arith.addf %524, %523 : vector<2x32xf32>
    %526 = arith.mulf %521, %525 : vector<2x32xf32>
    %cst_172 = arith.constant 1.42141378 : f32
    %527 = vector.broadcast %cst_172 : f32 to vector<2x32xf32>
    %528 = arith.addf %527, %526 : vector<2x32xf32>
    %529 = arith.mulf %521, %528 : vector<2x32xf32>
    %cst_173 = arith.constant -0.284496725 : f32
    %530 = vector.broadcast %cst_173 : f32 to vector<2x32xf32>
    %531 = arith.addf %530, %529 : vector<2x32xf32>
    %532 = arith.mulf %521, %531 : vector<2x32xf32>
    %cst_174 = arith.constant 0.254829586 : f32
    %533 = vector.broadcast %cst_174 : f32 to vector<2x32xf32>
    %534 = arith.addf %533, %532 : vector<2x32xf32>
    %535 = arith.mulf %521, %534 : vector<2x32xf32>
    %cst_175 = arith.constant 0.000000e+00 : f32
    %536 = vector.broadcast %cst_175 : f32 to vector<2x32xf32>
    %537 = arith.subf %536, %515 : vector<2x32xf32>
    %538 = arith.mulf %537, %515 : vector<2x32xf32>
    %539 = math.exp %538 : vector<2x32xf32>
    %540 = arith.mulf %535, %539 : vector<2x32xf32>
    %cst_176 = arith.constant 1.000000e+00 : f32
    %541 = vector.broadcast %cst_176 : f32 to vector<2x32xf32>
    %542 = arith.subf %541, %540 : vector<2x32xf32>
    %cst_177 = arith.constant 0.000000e+00 : f32
    %543 = vector.broadcast %cst_177 : f32 to vector<2x32xf32>
    %544 = arith.cmpf oge, %514, %543 : vector<2x32xf32>
    %cst_178 = arith.constant 0.000000e+00 : f32
    %545 = vector.broadcast %cst_178 : f32 to vector<2x32xf32>
    %546 = arith.subf %545, %542 : vector<2x32xf32>
    %547 = arith.select %544, %542, %546 : vector<2x32xi1>, vector<2x32xf32>
    %cst_179 = arith.constant 5.000000e-01 : f32
    %548 = vector.broadcast %cst_179 : f32 to vector<2x32xf32>
    %549 = arith.mulf %548, %512 : vector<2x32xf32>
    %cst_180 = arith.constant 1.000000e+00 : f32
    %550 = vector.broadcast %cst_180 : f32 to vector<2x32xf32>
    %551 = arith.addf %550, %547 : vector<2x32xf32>
    %552 = arith.mulf %549, %551 : vector<2x32xf32>
    %553 = arith.addf %496, %552 : vector<2x32xf32>
    %c0_181 = arith.constant 0 : index
    %c0_182 = arith.constant 0 : index
    %554 = vector.load %arg21[%c0_181, %c0_182] : memref<1x32xf32, #tpu.memory_space<vmem>>, vector<1x32xf32>
    %c0_183 = arith.constant 0 : index
    %c0_184 = arith.constant 0 : index
    %555 = vector.load %arg22[%c0_183, %c0_184] : memref<1x32xf32, #tpu.memory_space<vmem>>, vector<1x32xf32>
    %cst_185 = arith.constant dense<0.000000e+00> : vector<2xf32>
    %556 = vector.multi_reduction <add>, %553, %cst_185 [1] : vector<2x32xf32> to vector<2xf32>
    %557 = vector.shape_cast %556 : vector<2xf32> to vector<2x1xf32>
    %cst_186 = arith.constant 3.200000e+01 : f32
    %558 = vector.broadcast %cst_186 : f32 to vector<2x1xf32>
    %559 = arith.divf %557, %558 : vector<2x1xf32>
    %560 = vector.broadcast %559 : vector<2x1xf32> to vector<2x32xf32>
    %561 = arith.subf %553, %560 : vector<2x32xf32>
    %562 = arith.mulf %561, %561 : vector<2x32xf32>
    %cst_187 = arith.constant dense<0.000000e+00> : vector<2xf32>
    %563 = vector.multi_reduction <add>, %562, %cst_187 [1] : vector<2x32xf32> to vector<2xf32>
    %564 = vector.shape_cast %563 : vector<2xf32> to vector<2x1xf32>
    %cst_188 = arith.constant 3.200000e+01 : f32
    %565 = vector.broadcast %cst_188 : f32 to vector<2x1xf32>
    %566 = arith.divf %564, %565 : vector<2x1xf32>
    %cst_189 = arith.constant 9.99999974E-6 : f32
    %567 = vector.broadcast %cst_189 : f32 to vector<2x1xf32>
    %568 = arith.addf %566, %567 : vector<2x1xf32>
    %569 = math.rsqrt %568 : vector<2x1xf32>
    %570 = vector.broadcast %569 : vector<2x1xf32> to vector<2x32xf32>
    %571 = arith.mulf %561, %570 : vector<2x32xf32>
    %572 = vector.broadcast %554 : vector<1x32xf32> to vector<2x32xf32>
    %573 = arith.mulf %571, %572 : vector<2x32xf32>
    %574 = vector.broadcast %555 : vector<1x32xf32> to vector<2x32xf32>
    %575 = arith.addf %573, %574 : vector<2x32xf32>
    %c0_190 = arith.constant 0 : index
    %c0_191 = arith.constant 0 : index
    %576 = vector.load %arg23[%c0_190, %c0_191] : memref<32x16xf32, #tpu.memory_space<vmem>>, vector<32x16xf32>
    %c0_192 = arith.constant 0 : index
    %c0_193 = arith.constant 0 : index
    %577 = vector.load %arg24[%c0_192, %c0_193] : memref<1x16xf32, #tpu.memory_space<vmem>>, vector<1x16xf32>
    %c0_194 = arith.constant 0 : index
    %c0_195 = arith.constant 0 : index
    %578 = vector.load %arg25[%c0_194, %c0_195] : memref<16x128xf32, #tpu.memory_space<vmem>>, vector<16x128xf32>
    %cst_196 = arith.constant dense<0.000000e+00> : vector<2x16xf32>
    %579 = tpu.matmul %575, %576, %cst_196 {dimension_numbers = #tpu.dot_dimension_numbers<[1], [0], [0], [1], [0, 0, 1, 1], [], []>} : vector<2x32xf32>, vector<32x16xf32>, vector<2x16xf32> -> vector<2x16xf32>
    %580 = vector.broadcast %577 : vector<1x16xf32> to vector<2x16xf32>
    %581 = arith.addf %579, %580 : vector<2x16xf32>
    %cst_197 = arith.constant 0.000000e+00 : f32
    %582 = vector.broadcast %cst_197 : f32 to vector<2x16xf32>
    %583 = arith.cmpf oge, %581, %582 : vector<2x16xf32>
    %cst_198 = arith.constant 0.00999999977 : f32
    %584 = vector.broadcast %cst_198 : f32 to vector<2x16xf32>
    %585 = arith.mulf %584, %581 : vector<2x16xf32>
    %586 = arith.select %583, %581, %585 : vector<2x16xi1>, vector<2x16xf32>
    %cst_199 = arith.constant dense<0.000000e+00> : vector<2x128xf32>
    %587 = tpu.matmul %586, %578, %cst_199 {dimension_numbers = #tpu.dot_dimension_numbers<[1], [0], [0], [1], [0, 0, 1, 1], [], []>} : vector<2x16xf32>, vector<16x128xf32>, vector<2x128xf32> -> vector<2x128xf32>
    %cst_200 = arith.constant 1.11111116 : f32
    %588 = vector.broadcast %cst_200 : f32 to vector<2x128xf32>
    %589 = arith.mulf %587, %588 : vector<2x128xf32>
    %c0_201 = arith.constant 0 : index
    %c0_202 = arith.constant 0 : index
    %590 = vector.load %arg26[%c0_201, %c0_202] : memref<2x128xf32, #tpu.memory_space<vmem>>, vector<2x128xf32>
    tpu.vector_store %arg26[%c0_201, %c0_202], %589 {strides = array<i32>} : memref<2x128xf32, #tpu.memory_space<vmem>>, vector<2x128xf32>,
    return
  }
  func.func @transform_0(%arg0: i32) -> (i32, i32) {
    %c0_i32 = arith.constant 0 : i32
    %c0_i32_0 = arith.constant 0 : i32
    %c0_i32_1 = arith.constant 0 : i32
    return %c0_i32, %c0_i32_0 : i32, i32
  }
  func.func @transform_1(%arg0: i32) -> (i32, i32) {
    %c0_i32 = arith.constant 0 : i32
    %c0_i32_0 = arith.constant 0 : i32
    %c0_i32_1 = arith.constant 0 : i32
    return %c0_i32, %c0_i32_0 : i32, i32
  }
  func.func @transform_2(%arg0: i32) -> (i32, i32, i32, i32) {
    %c0_i32 = arith.constant 0 : i32
    %c0_i32_0 = arith.constant 0 : i32
    %c0_i32_1 = arith.constant 0 : i32
    %c0_i32_2 = arith.constant 0 : i32
    %c0_i32_3 = arith.constant 0 : i32
    return %c0_i32, %c0_i32_0, %c0_i32_1, %c0_i32_2 : i32, i32, i32, i32
  }
  func.func @transform_3(%arg0: i32) -> (i32, i32, i32, i32) {
    %c0_i32 = arith.constant 0 : i32
    %c0_i32_0 = arith.constant 0 : i32
    %c0_i32_1 = arith.constant 0 : i32
    %c0_i32_2 = arith.constant 0 : i32
    %c0_i32_3 = arith.constant 0 : i32
    return %c0_i32, %c0_i32_0, %c0_i32_1, %c0_i32_2 : i32, i32, i32, i32
  }
  func.func @transform_4(%arg0: i32) -> (i32, i32) {
    %c0_i32 = arith.constant 0 : i32
    %c0_i32_0 = arith.constant 0 : i32
    %c0_i32_1 = arith.constant 0 : i32
    return %c0_i32, %c0_i32_0 : i32, i32
  }
  func.func @transform_5(%arg0: i32) -> (i32, i32) {
    %c0_i32 = arith.constant 0 : i32
    %c0_i32_0 = arith.constant 0 : i32
    %c0_i32_1 = arith.constant 0 : i32
    return %c0_i32, %c0_i32_0 : i32, i32
  }
  func.func @transform_6(%arg0: i32) -> (i32, i32) {
    %c0_i32 = arith.constant 0 : i32
    %c0_i32_0 = arith.constant 0 : i32
    %c0_i32_1 = arith.constant 0 : i32
    return %c0_i32, %c0_i32_0 : i32, i32
  }
  func.func @transform_7(%arg0: i32) -> (i32, i32) {
    %c0_i32 = arith.constant 0 : i32
    %c0_i32_0 = arith.constant 0 : i32
    %c0_i32_1 = arith.constant 0 : i32
    return %c0_i32, %c0_i32_0 : i32, i32
  }
  func.func @transform_8(%arg0: i32) -> (i32, i32) {
    %c0_i32 = arith.constant 0 : i32
    %c0_i32_0 = arith.constant 0 : i32
    %c0_i32_1 = arith.constant 0 : i32
    return %c0_i32, %c0_i32_0 : i32, i32
  }
  func.func @transform_9(%arg0: i32) -> (i32, i32) {
    %c0_i32 = arith.constant 0 : i32
    %c0_i32_0 = arith.constant 0 : i32
    %c0_i32_1 = arith.constant 0 : i32
    return %c0_i32, %c0_i32_0 : i32, i32
  }
  func.func @transform_10(%arg0: i32) -> (i32, i32) {
    %c0_i32 = arith.constant 0 : i32
    %c0_i32_0 = arith.constant 0 : i32
    %c0_i32_1 = arith.constant 0 : i32
    return %c0_i32, %c0_i32_0 : i32, i32
  }
  func.func @transform_11(%arg0: i32) -> (i32, i32) {
    %c0_i32 = arith.constant 0 : i32
    %c0_i32_0 = arith.constant 0 : i32
    %c0_i32_1 = arith.constant 0 : i32
    return %c0_i32, %c0_i32_0 : i32, i32
  }
  func.func @transform_12(%arg0: i32) -> (i32, i32) {
    %c0_i32 = arith.constant 0 : i32
    %c0_i32_0 = arith.constant 0 : i32
    %c0_i32_1 = arith.constant 0 : i32
    return %c0_i32, %c0_i32_0 : i32, i32
  }
  func.func @transform_13(%arg0: i32) -> (i32, i32) {
    %c0_i32 = arith.constant 0 : i32
    %c0_i32_0 = arith.constant 0 : i32
    %c0_i32_1 = arith.constant 0 : i32
    return %c0_i32, %c0_i32_0 : i32, i32
  }
  func.func @transform_14(%arg0: i32) -> (i32, i32) {
    %c0_i32 = arith.constant 0 : i32
    %c0_i32_0 = arith.constant 0 : i32
    %c0_i32_1 = arith.constant 0 : i32
    return %c0_i32, %c0_i32_0 : i32, i32
  }
  func.func @transform_15(%arg0: i32) -> (i32, i32) {
    %c0_i32 = arith.constant 0 : i32
    %c0_i32_0 = arith.constant 0 : i32
    %c0_i32_1 = arith.constant 0 : i32
    return %c0_i32, %c0_i32_0 : i32, i32
  }
  func.func @transform_16(%arg0: i32) -> (i32, i32) {
    %c0_i32 = arith.constant 0 : i32
    %c0_i32_0 = arith.constant 0 : i32
    %c0_i32_1 = arith.constant 0 : i32
    return %c0_i32, %c0_i32_0 : i32, i32
  }
  func.func @transform_17(%arg0: i32) -> (i32, i32) {
    %c0_i32 = arith.constant 0 : i32
    %c0_i32_0 = arith.constant 0 : i32
    %c0_i32_1 = arith.constant 0 : i32
    return %c0_i32, %c0_i32_0 : i32, i32
  }
  func.func @transform_18(%arg0: i32) -> (i32, i32) {
    %c0_i32 = arith.constant 0 : i32
    %c0_i32_0 = arith.constant 0 : i32
    %c0_i32_1 = arith.constant 0 : i32
    return %c0_i32, %c0_i32_0 : i32, i32
  }
  func.func @transform_19(%arg0: i32) -> (i32, i32) {
    %c0_i32 = arith.constant 0 : i32
    %c0_i32_0 = arith.constant 0 : i32
    %c0_i32_1 = arith.constant 0 : i32
    return %c0_i32, %c0_i32_0 : i32, i32
  }
  func.func @transform_20(%arg0: i32) -> (i32, i32) {
    %c0_i32 = arith.constant 0 : i32
    %c0_i32_0 = arith.constant 0 : i32
    %c0_i32_1 = arith.constant 0 : i32
    return %c0_i32, %c0_i32_0 : i32, i32
  }
  func.func @transform_21(%arg0: i32) -> (i32, i32) {
    %c0_i32 = arith.constant 0 : i32
    %c0_i32_0 = arith.constant 0 : i32
    %c0_i32_1 = arith.constant 0 : i32
    return %c0_i32, %c0_i32_0 : i32, i32
  }
  func.func @transform_22(%arg0: i32) -> (i32, i32) {
    %c0_i32 = arith.constant 0 : i32
    %c0_i32_0 = arith.constant 0 : i32
    %c0_i32_1 = arith.constant 0 : i32
    return %c0_i32, %c0_i32_0 : i32, i32
  }
  func.func @transform_23(%arg0: i32) -> (i32, i32) {
    %c0_i32 = arith.constant 0 : i32
    %c0_i32_0 = arith.constant 0 : i32
    %c0_i32_1 = arith.constant 0 : i32
    return %c0_i32, %c0_i32_0 : i32, i32
  }
  func.func @transform_24(%arg0: i32) -> (i32, i32) {
    %c0_i32 = arith.constant 0 : i32
    %c0_i32_0 = arith.constant 0 : i32
    %c0_i32_1 = arith.constant 0 : i32
    return %c0_i32, %c0_i32_0 : i32, i32
  }
  func.func @transform_25(%arg0: i32) -> (i32, i32) {
    %c0_i32 = arith.constant 0 : i32
    %c0_i32_0 = arith.constant 0 : i32
    %c0_i32_1 = arith.constant 0 : i32
    return %c0_i32, %c0_i32_0 : i32, i32
  }
  func.func @transform_26(%arg0: i32) -> (i32, i32) {
    %c0_i32 = arith.constant 0 : i32
    %c0_i32_0 = arith.constant 0 : i32
    %c0_i32_1 = arith.constant 0 : i32
    return %c0_i32, %c0_i32_0 : i32, i32
  }
  func.func @transform_27(%arg0: i32) -> (i32, i32, i32) {
    %c0_i32 = arith.constant 0 : i32
    %c0_i32_0 = arith.constant 0 : i32
    %c0_i32_1 = arith.constant 0 : i32
    %c0_i32_2 = arith.constant 0 : i32
    return %c0_i32, %c0_i32_0, %c0_i32_1 : i32, i32, i32
  }
  func.func @transform_28(%arg0: i32) -> (i32, i32, i32) {
    %c0_i32 = arith.constant 0 : i32
    %c0_i32_0 = arith.constant 0 : i32
    %c0_i32_1 = arith.constant 0 : i32
    %c0_i32_2 = arith.constant 0 : i32
    return %c0_i32, %c0_i32_0, %c0_i32_1 : i32, i32, i32
  }
}

</mosaic_0001>

<bundles_post_ra>
// kernel: custom-call.4
= control target key start
LH: loop header
LB: loop body
LE: loop exit
PB: predicated region body
PF: predicated region fallthrough
CT: control target
= control target key end

     0   :  { %s6_s0 = inlined_call_operand.vmem [shape: s32[4,2], index: 0, kind: output, shape index: {}]  }

// kernel: gpt_forward.1
= control target key start
LH: loop header
LB: loop body
LE: loop exit
PB: predicated region body
PF: predicated region fallthrough
CT: control target
= control target key end

     0   :  { %vm80_vm0 = vcmask 130048   ;;  %v2677_v7 = vmov 0.0   ;;  %vm149_vm1 = vcmask 1041409   ;;  %vm114_vm2 = vcmask 261120   ;;  %s2683_s26 = smov 112   ;;  %s3560_s28 = smov 72   ;;  %s3521_s1 = inlined_call_operand.vmem [shape: f32[16,32], index: 1, kind: input, shape index: {}]   ;;  %s3522_s2 = inlined_call_operand.vmem [shape: f32[32,32], index: 2, kind: input, shape index: {}]   ;;  %s3523_s0 = inlined_call_operand.vmem [shape: f32[2,8,16], index: 0, kind: input, shape index: {}]   ;;  %s3524_s3 = inlined_call_operand.vmem [shape: f32[1,32], index: 3, kind: input, shape index: {}]   ;;  %s3525_s22 = inlined_call_operand.vmem [shape: f32[2,32], index: 22, kind: output, shape index: {1}]   ;;  %s3526_s7 = inlined_call_operand.vmem [shape: f32[1,128], index: 7, kind: input, shape index: {}]   ;;  %s3527_s6 = inlined_call_operand.vmem [shape: f32[32,128], index: 6, kind: input, shape index: {}]   ;;  %s3528_s4 = inlined_call_operand.vmem [shape: f32[2,32], index: 4, kind: input, shape index: {}]   ;;  %s3529_s5 = inlined_call_operand.vmem [shape: f32[2,32], index: 5, kind: input, shape index: {}]   ;;  %s3530_s23 = inlined_call_operand.vmem [shape: f32[2,2,8,32], index: 23, kind: output, shape index: {2}]   ;;  %s3531_s24 = inlined_call_operand.vmem [shape: f32[2,2,8,64], index: 24, kind: output, shape index: {3}]   ;;  %s3532_s9 = inlined_call_operand.vmem [shape: f32[1,32], index: 9, kind: input, shape index: {}]   ;;  %s3533_s8 = inlined_call_operand.vmem [shape: f32[64,32], index: 8, kind: input, shape index: {}]   ;;  %s3534_s10 = inlined_call_operand.vmem [shape: f32[1,32], index: 10, kind: input, shape index: {}]   ;;  %s3535_s11 = inlined_call_operand.vmem [shape: f32[1,32], index: 11, kind: input, shape index: {}]   ;;  %s3536_s13 = inlined_call_operand.vmem [shape: f32[1,32], index: 13, kind: input, shape index: {}]   ;;  %s3537_s12 = inlined_call_operand.vmem [shape: f32[32,32], index: 12, kind: input, shape index: {}]   ;;  %s3538_s15 = inlined_call_operand.vmem [shape: f32[1,32], index: 15, kind: input, shape index: {}]   ;;  %s3539_s14 = inlined_call_operand.vmem [shape: f32[32,32], index: 14, kind: input, shape index: {}]   ;;  %s3540_s16 = inlined_call_operand.vmem [shape: f32[1,32], index: 16, kind: input, shape index: {}]   ;;  %s3541_s17 = inlined_call_operand.vmem [shape: f32[1,32], index: 17, kind: input, shape index: {}]   ;;  %s3542_s19 = inlined_call_operand.vmem [shape: f32[1,16], index: 19, kind: input, shape index: {}]   ;;  %s3543_s18 = inlined_call_operand.vmem [shape: f32[32,16], index: 18, kind: input, shape index: {}]   ;;  %s3544_s20 = inlined_call_operand.vmem [shape: f32[16,128], index: 20, kind: input, shape index: {}]   ;;  %s3545_s21 = inlined_call_operand.vmem [shape: f32[2,128], index: 21, kind: output, shape index: {0}]  }
   0x1   :  { %3566 = sst [smem:[#allocation2_spill]] %s3521_s1  ;;  %vm405_vm3 = vcmask 1040384   ;;  %vm408_vm4 = vcmask 1041408   ;;  %vm411_vm5 = vcmask 1042432   ;;  %vm414_vm6 = vcmask 1043456   ;;  %s3564_s29 = smov 48  }
   0x2   :  { %3567 = sst [smem:[#allocation3_spill]] %s3522_s2  ;;  %vm417_vm7 = vcmask 1044480   ;;  %vm420_vm8 = vcmask 1045504   ;;  %vm401_vm9 = vcmask 261127   ;;  %vm423_vm10 = vcmask 1046528   ;;  %s3554_s2 = smov 64  }
   0x3   :  { %3568 = sst [smem:[#allocation4_spill]] %s3523_s0  ;;  %vm403_vm11 = vcmask 253952  }
   0x4   :  { %3569 = sst [smem:[#allocation5_spill]] %s3524_s3  ;;  %s3562_s3 = smov 32  }
   0x5   :  { %3570 = sst [smem:[#allocation6_spill]] %s3525_s22  ;;  %s2680_s22 = smov 96  }
   0x6   :  { %3571 = sst [smem:[#allocation7_spill]] %s3526_s7  ;;  %s2682_s7 = smov 120  }
   0x7   :  { %3572 = sst [smem:[#allocation8_spill]] %s3527_s6 }
   0x8   :  { %3573 = sst [smem:[#allocation9_spill]] %s3528_s4 }
   0x9   :  { %3574 = sst [smem:[#allocation10_spill]] %s3529_s5 }
   0xa   :  { %3575 = sst [smem:[#allocation11_spill]] %s3540_s16 }
   0xb   :  { %s3576_s27 = sld [smem:[#allocation2_spill]] }
   0xc   :  { %s3577_s16 = sld [smem:[#allocation3_spill]] }
   0xd   :  { %s3578_s25 = sld [smem:[#allocation4_spill]] }
   0xe   :  { %s3579_s6 = sld [smem:[#allocation5_spill]] }
   0xf   :  { %s3580_s1 = sld [smem:[#allocation6_spill]] }
  0x10   :  { %s3581_s5 = sld [smem:[#allocation8_spill]] }
  0x11   :  { %v75_v0 = vld [vmem:[%s3576_s27 + $0x8] sm:$0xff]  ;;  %v74_v2 = vld [vmem:[%s3576_s27] sm:$0xff]  ;;  %s3582_s0 = sld [smem:[#allocation9_spill]]  ;;  %s2684_s27 = smov 80  }
  0x12   :  { %v113_v1 = vld [vmem:[%s3577_s16 + $0x18] sm:$0xff]  ;;  %101 = vmatpush.msra.mxu0 %v75_v0  ;;  %v112_v3 = vld [vmem:[%s3577_s16 + $0x10] sm:$0xff]  ;;  %v111_v5 = vld [vmem:[%s3577_s16 + $0x8] sm:$0xff]  ;;  %s3583_s4 = sld [smem:[#allocation10_spill]] }
  0x13   :  { %130 = vmatpush.msra.mxu1 %v113_v1  ;;  %v72_v4 = vld [vmem:[%s3578_s25] sm:$0xff]  ;;  %165 = vmatpush.msra.mxu2 %v113_v1  ;;  %v73_v8 = vld [vmem:[%s3578_s25 + $0x8] sm:$0xff]  ;;  %s3584_s25 = sld [smem:[#allocation7_spill]] }
  0x14   :  { %199 = vmatpush.msra.mxu3 %v113_v1  ;;  %102 = vmatpush.msra.mxu0 %v74_v2  ;;  %v110_v6 = vld [vmem:[%s3577_s16] sm:$0xff]  ;;  %s3556_s16 = smov 104  }
  0x15   :  { %131 = vmatpush.msra.mxu1 %v112_v3  ;;  %2408 = vmatmul.msk.f32.vlgmr.msra.gmra.mxu0 %vm80_vm0, %v72_v4  ;;  %v2519_v10 = vld [vmem:[%s3579_s6] ss:$0 sm:$0xff]  ;;  %s3558_s6 = smov 16  }
  0x16   :  { %166 = vmatpush.msra.mxu2 %v112_v3  ;;  %200 = vmatpush.msra.mxu3 %v112_v3 }
  0x17   :  { %132 = vmatpush.msra.mxu1 %v111_v5  ;;  %343 = vmatpush.msrb.mxu0 %v113_v1 }
  0x18   :  { %167 = vmatpush.msra.mxu2 %v111_v5  ;;  %201 = vmatpush.msra.mxu3 %v111_v5 }
  0x19   :  { %133 = vmatpush.msra.mxu1 %v110_v6  ;;  %344 = vmatpush.msrb.mxu0 %v112_v3 }
  0x1a   :  { %134 = vmatmul.f32.vlgmr.msra.gmra.mxu1 %v2677_v7  ;;  %168 = vmatpush.msra.mxu2 %v110_v6 }
  0x1b   :  { %202 = vmatpush.msra.mxu3 %v110_v6  ;;  %235 = vmatpush.msrb.mxu1 %v113_v1 }
  0x1c   :  { %271 = vmatpush.msrb.mxu2 %v113_v1  ;;  %345 = vmatpush.msrb.mxu0 %v111_v5 }
  0x1d   :  { %307 = vmatpush.msrb.mxu3 %v113_v1  ;;  %236 = vmatpush.msrb.mxu1 %v112_v3 }
  0x1e   :  { %2409 = vmatmul.msk.f32.gmra.mxu0 %vm80_vm0, %v73_v8  ;;  %272 = vmatpush.msrb.mxu2 %v112_v3 }
  0x1f   :  { %237 = vmatpush.msrb.mxu1 %v111_v5  ;;  %308 = vmatpush.msrb.mxu3 %v112_v3 }
  0x20   :  { %273 = vmatpush.msrb.mxu2 %v111_v5  ;;  %346 = vmatpush.msrb.mxu0 %v110_v6 }
  0x21   :  { %238 = vmatpush.msrb.mxu1 %v110_v6  ;;  %309 = vmatpush.msrb.mxu3 %v111_v5 }
  0x22   :  { %274 = vmatpush.msrb.mxu2 %v110_v6 }
  0x23   :  { %310 = vmatpush.msrb.mxu3 %v110_v6  ;;  %379 = vmatpush.msra.mxu1 %v113_v1 }
  0x25   :  { %380 = vmatpush.msra.mxu1 %v112_v3 }
  0x27   :  { %381 = vmatpush.msra.mxu1 %v111_v5 }
  0x29   :  { %382 = vmatpush.msra.mxu1 %v110_v6 }
  0x92   :  { %v104_v9 = vpop.f32.mrf.mxu0 }
  0x93   :  { %v2844_v14 = vadd.f32 %v2519_v10, %v104_v9 }
  0x97   :  { %v135_v11 = vpop.f32.mrf.mxu1 }
  0x98   :  { %v139_v12 = vrot.slane %v135_v11, 1  ;;  %v142_v16 = vadd.f32 %v135_v11, %v2844_v14 }
  0x9b   :  { %v107_v13 = vpop.f32.mrf.mxu0 }
  0x9c   :  { %v2846_v15 = vadd.f32 %v2519_v10, %v107_v13 }
  0x9e   :  { %v143_v17 = vadd.f32 %v139_v12, %v2846_v15 }
  0xa0   :  { %2529 = vtanh.f32 %v143_v17 }
  0xa1   :  { %2531 = vtanh.f32 %v142_v16 }
  0xa6   :  { %v2530_v18 = vpop.eup %2529 }
  0xa7   :  { %v148_v19 = vrot.slane %v2530_v18, 7  ;;  %v2532_v20 = vpop.eup %2531 }
  0xa9   :  { %v150_v21 = vsel %vm149_vm1, %v148_v19, %v2532_v20 }
  0xaa   :  { %2410 = vmatmul.msk.f32.vlgmr.msra.gmra.mxu2 %vm114_vm2, %v150_v21 }
 0x12d   :  { %v170_v22 = vpop.f32.mrf.mxu2 }
 0x12e   :  { %v174_v23 = vrot.slane %v170_v22, 7  ;;  %v178_v25 = vadd.f32 %v170_v22, %v2846_v15 }
 0x130   :  { %v177_v24 = vadd.f32 %v174_v23, %v2844_v14 }
 0x132   :  { %2533 = vtanh.f32 %v177_v24 }
 0x133   :  { %2535 = vtanh.f32 %v178_v25 }
 0x138   :  { %v2534_v26 = vpop.eup %2533 }
 0x139   :  { %v183_v27 = vrot.slane %v2534_v26, 1  ;;  %v2536_v28 = vpop.eup %2535  ;;  %v406_v36 = vsel %vm405_vm3, %v2532_v20, %v2534_v26 }
 0x13a   :  { %v407_v39 = vsel %vm405_vm3, %v2530_v18, %v2536_v28 }
 0x13b   :  { %v184_v29 = vsel %vm149_vm1, %v2536_v28, %v183_v27 }
 0x13c   :  { %2411 = vmatmul.msk.f32.vlgmr.msra.gmra.mxu3 %vm114_vm2, %v184_v29 }
 0x1bf   :  { %v204_v30 = vpop.f32.mrf.mxu3 }
 0x1c0   :  { %v208_v31 = vrot.slane %v204_v30, 6  ;;  %v209_v32 = vrot.slane %v204_v30, 7 }
 0x1c2   :  { %v212_v33 = vadd.f32 %v208_v31, %v2844_v14  ;;  %v213_v34 = vadd.f32 %v209_v32, %v2846_v15 }
 0x1c4   :  { %2537 = vtanh.f32 %v212_v33 }
 0x1c5   :  { %2539 = vtanh.f32 %v213_v34 }
 0x1ca   :  { %v2538_v35 = vpop.eup %2537 }
 0x1cb   :  { %v2540_v37 = vpop.eup %2539  ;;  %v218_v38 = vrot.slane %v2538_v35, 2  ;;  %v409_v40 = vsel %vm408_vm4, %v406_v36, %v2538_v35 }
 0x1cc   :  { %v219_v41 = vrot.slane %v2540_v37, 1  ;;  %v410_v42 = vsel %vm408_vm4, %v407_v39, %v2540_v37 }
 0x1ce   :  { %v220_v43 = vsel %vm149_vm1, %v219_v41, %v218_v38 }
 0x1cf   :  { %2412 = vmatmul.msk.f32.vlgmr.msrb.gmra.mxu1 %vm114_vm2, %v220_v43 }
 0x24c   :  { %v240_v44 = vpop.f32.mrf.mxu1 }
 0x24d   :  { %v244_v45 = vrot.slane %v240_v44, 5  ;;  %v245_v46 = vrot.slane %v240_v44, 6 }
 0x24f   :  { %v248_v47 = vadd.f32 %v244_v45, %v2844_v14  ;;  %v249_v48 = vadd.f32 %v245_v46, %v2846_v15 }
 0x251   :  { %2541 = vtanh.f32 %v248_v47 }
 0x252   :  { %2543 = vtanh.f32 %v249_v48 }
 0x257   :  { %v2542_v49 = vpop.eup %2541 }
 0x258   :  { %v2544_v50 = vpop.eup %2543  ;;  %v254_v51 = vrot.slane %v2542_v49, 3  ;;  %v412_v52 = vsel %vm411_vm5, %v409_v40, %v2542_v49 }
 0x259   :  { %v255_v53 = vrot.slane %v2544_v50, 2  ;;  %v413_v54 = vsel %vm411_vm5, %v410_v42, %v2544_v50 }
 0x25b   :  { %v256_v55 = vsel %vm149_vm1, %v255_v53, %v254_v51 }
 0x25c   :  { %2413 = vmatmul.msk.f32.vlgmr.msrb.gmra.mxu2 %vm114_vm2, %v256_v55 }
 0x2df   :  { %v276_v56 = vpop.f32.mrf.mxu2 }
 0x2e0   :  { %v280_v57 = vrot.slane %v276_v56, 4  ;;  %v281_v58 = vrot.slane %v276_v56, 5 }
 0x2e2   :  { %v284_v59 = vadd.f32 %v280_v57, %v2844_v14  ;;  %v285_v60 = vadd.f32 %v281_v58, %v2846_v15  ;;  %v2895_v57 = vld [vmem:[%s3581_s5 + $0x18] sm:$0xff]  ;;  %v2901_v58 = vld [vmem:[%s3581_s5 + $0x10] sm:$0xff] }
 0x2e3   :  { %537 = vmatpush.msra.mxu2 %v2895_v57 }
 0x2e4   :  { %2545 = vtanh.f32 %v284_v59  ;;  %v2907_v59 = vld [vmem:[%s3581_s5 + $0x8] sm:$0xff] }
 0x2e5   :  { %2547 = vtanh.f32 %v285_v60  ;;  %538 = vmatpush.msra.mxu2 %v2901_v58  ;;  %v2912_v60 = vld [vmem:[%s3581_s5] sm:$0xff]  ;;  %s2679_s5 = smov 88  }
 0x2e7   :  { %539 = vmatpush.msra.mxu2 %v2907_v59 }
 0x2e9   :  { %540 = vmatpush.msra.mxu2 %v2912_v60 }
 0x2ea   :  { %v2546_v61 = vpop.eup %2545 }
 0x2eb   :  { %v2548_v62 = vpop.eup %2547  ;;  %v290_v63 = vrot.slane %v2546_v61, 4  ;;  %v415_v0 = vsel %vm414_vm6, %v412_v52, %v2546_v61 }
 0x2ec   :  { %v291_v1 = vrot.slane %v2548_v62, 3  ;;  %v416_v2 = vsel %vm414_vm6, %v413_v54, %v2548_v62 }
 0x2ee   :  { %v292_v3 = vsel %vm149_vm1, %v291_v1, %v290_v63 }
 0x2ef   :  { %2414 = vmatmul.msk.f32.vlgmr.msrb.gmra.mxu3 %vm114_vm2, %v292_v3 }
 0x372   :  { %v312_v4 = vpop.f32.mrf.mxu3 }
 0x373   :  { %v316_v5 = vrot.slane %v312_v4, 3  ;;  %v317_v6 = vrot.slane %v312_v4, 4 }
 0x375   :  { %v320_v7 = vadd.f32 %v316_v5, %v2844_v14  ;;  %v321_v8 = vadd.f32 %v317_v6, %v2846_v15 }
 0x377   :  { %2549 = vtanh.f32 %v320_v7 }
 0x378   :  { %2551 = vtanh.f32 %v321_v8 }
 0x37d   :  { %v2550_v9 = vpop.eup %2549 }
 0x37e   :  { %v2552_v10 = vpop.eup %2551  ;;  %v326_v11 = vrot.slane %v2550_v9, 5  ;;  %v418_v12 = vsel %vm417_vm7, %v415_v0, %v2550_v9 }
 0x37f   :  { %v327_v13 = vrot.slane %v2552_v10, 4  ;;  %v419_v16 = vsel %vm417_vm7, %v416_v2, %v2552_v10 }
 0x381   :  { %v328_v17 = vsel %vm149_vm1, %v327_v13, %v326_v11  ;;  %v426_v11 = vld [vmem:[%s3582_s0] sm:$0x3] }
 0x382   :  { %2415 = vmatmul.msk.f32.vlgmr.msrb.gmra.mxu0 %vm114_vm2, %v328_v17  ;;  %v427_v17 = vld [vmem:[%s3583_s4] sm:$0x3] }
 0x3ff   :  { %v348_v18 = vpop.f32.mrf.mxu0 }
 0x400   :  { %v352_v19 = vrot.slane %v348_v18, 2  ;;  %v353_v20 = vrot.slane %v348_v18, 3 }
 0x402   :  { %v356_v21 = vadd.f32 %v352_v19, %v2844_v14  ;;  %v357_v22 = vadd.f32 %v353_v20, %v2846_v15  ;;  %v510_v19 = vperm.slane %v426_v11, 0 }
 0x404   :  { %2553 = vtanh.f32 %v356_v21 }
 0x405   :  { %2555 = vtanh.f32 %v357_v22  ;;  %v513_v22 = vperm.slane %v427_v17, 0 }
 0x40a   :  { %v2554_v23 = vpop.eup %2553 }
 0x40b   :  { %v2556_v24 = vpop.eup %2555  ;;  %v362_v25 = vrot.slane %v2554_v23, 6  ;;  %v421_v26 = vsel %vm420_vm8, %v418_v12, %v2554_v23 }
 0x40c   :  { %v363_v27 = vrot.slane %v2556_v24, 5  ;;  %v422_v28 = vsel %vm420_vm8, %v419_v16, %v2556_v24  ;;  %vm575_vm8 = vcmask 64512  }
 0x40e   :  { %v364_v29 = vsel %vm149_vm1, %v363_v27, %v362_v25 }
 0x40f   :  { %2416 = vmatmul.msk.f32.vlgmr.msra.gmra.mxu1 %vm114_vm2, %v364_v29  ;;  %v2520_v29 = vld [vmem:[%s3584_s25] ss:$0 sm:$0xff] }
 0x48c   :  { %v384_v30 = vpop.f32.mrf.mxu1 }
 0x48d   :  { %v388_v31 = vrot.slane %v384_v30, 1  ;;  %v389_v32 = vrot.slane %v384_v30, 2 }
 0x48f   :  { %v392_v33 = vadd.f32 %v388_v31, %v2844_v14  ;;  %v393_v34 = vadd.f32 %v389_v32, %v2846_v15  ;;  %v2678_v15 = vmov 32.0  }
 0x491   :  { %2557 = vtanh.f32 %v392_v33 }
 0x492   :  { %2559 = vtanh.f32 %v393_v34 }
 0x493   :  { %2561 = vrcp.f32 %v2678_v15 }
 0x497   :  { %v2558_v35 = vpop.eup %2557 }
 0x498   :  { %v2560_v36 = vpop.eup %2559  ;;  %402 = vst.msk [vmem:[%s3580_s1 - $0x7] sm:$0x80] %vm401_vm9, %v2558_v35  ;;  %v424_v37 = vsel %vm423_vm10, %v421_v26, %v2558_v35  ;;  %vm572_vm9 = vcmask 523264  }
 0x499   :  { %v398_v38 = vrot.slane %v2560_v36, 7  ;;  %v425_v39 = vsel %vm423_vm10, %v422_v28, %v2560_v36  ;;  %v459_v40 = vsel %vm114_vm2, %v424_v37, 0.0  ;;  %v2562_v41 = vpop.eup %2561 }
 0x49a   :  { %v462_v14 = vsel %vm114_vm2, %v425_v39, 0.0  ;;  %460 = vadd.xlane.f32.xlu0 %v459_v40  ;;  %v466_v42 = vmul.f32 32.0, %v2562_v41  ;;  %vm470_vm12 = vweird.f32 %v2562_v41 }
 0x49b   :  { %404 = vst.msk [vmem:[%s3580_s1 + $0x1] sm:$0x1] %vm403_vm11, %v398_v38  ;;  %463 = vadd.xlane.f32.xlu1 %v462_v14  ;;  %vm1122_vm11 = vcmask 392192  }
 0x49c   :  { %v467_v43 = vsub.f32 1.0, %v466_v42 }
 0x49e   :  { %v468_v44 = vmul.f32 %v2562_v41, %v467_v43 }
 0x4a0   :  { %v469_v45 = vadd.f32 %v2562_v41, %v468_v44 }
 0x4a2   :  { %v2886_v46 = vsel %vm470_vm12, %v2562_v41, %v469_v45 }
 0x50d   :  { %v461_v47 = vpop.xlane.xlu0 %460 }
 0x50e   :  { %v464_v48 = vpop.xlane.xlu1 %463  ;;  %v472_v49 = vmul.f32 %v2886_v46, %v461_v47  ;;  %v454_v47 = vlaneseq }
 0x50f   :  { %v473_v50 = vmul.f32 %v2886_v46, %v464_v48 }
 0x510   :  { %v474_v51 = vsub.f32 %v424_v37, %v472_v49  ;;  %v455_v48 = vshrl.u32 %v454_v47, 7  ;;  %v457_v49 = vand.u32 127, %v454_v47 }
 0x511   :  { %v475_v52 = vsub.f32 %v425_v39, %v473_v50 }
 0x512   :  { %v476_v53 = vmul.f32 %v474_v51, %v474_v51  ;;  %vm2982_vm10 = vcmp.gt.s32.totalorder %v457_v49, %v455_v48 }
 0x513   :  { %v477_v54 = vmul.f32 %v475_v52, %v475_v52 }
 0x514   :  { %v478_v55 = vsel %vm114_vm2, %v476_v53, 0.0 }
 0x515   :  { %v481_v56 = vsel %vm114_vm2, %v477_v54, 0.0  ;;  %479 = vadd.xlane.f32.xlu0 %v478_v55 }
 0x516   :  { %482 = vadd.xlane.f32.xlu2 %v481_v56 }
 0x588   :  { %v480_v61 = vpop.xlane.xlu0 %479 }
 0x589   :  { %v483_v62 = vpop.xlane.xlu2 %482  ;;  %v484_v63 = vmul.f32 %v480_v61, %v2886_v46 }
 0x58a   :  { %v485_v0 = vmul.f32 %v483_v62, %v2886_v46 }
 0x58b   :  { %v486_v1 = vadd.f32 1e-05, %v484_v63 }
 0x58c   :  { %v487_v2 = vadd.f32 1e-05, %v485_v0 }
 0x58d   :  { %2563 = vrsqrt.f32 %v486_v1  ;;  %vm494_vm15 = vweird.f32 %v486_v1 }
 0x58e   :  { %2565 = vrsqrt.f32 %v487_v2  ;;  %vm504_vm4 = vweird.f32 %v487_v2 }
 0x593   :  { %v2564_v3 = vpop.eup %2563 }
 0x594   :  { %v2566_v4 = vpop.eup %2565  ;;  %v489_v5 = vmul.f32 %v2564_v3, %v486_v1  ;;  %vm495_vm13 = vweird.f32 %v2564_v3 }
 0x595   :  { %v499_v6 = vmul.f32 %v2566_v4, %v487_v2  ;;  %vm505_vm14 = vweird.f32 %v2566_v4  ;;  %vm496_vm3 = vmor %vm494_vm15, %vm495_vm13 }
 0x596   :  { %v490_v7 = vmul.f32 %v2564_v3, %v489_v5  ;;  %vm506_vm5 = vmor %vm504_vm4, %vm505_vm14 }
 0x597   :  { %v500_v8 = vmul.f32 %v2566_v4, %v499_v6 }
 0x598   :  { %v491_v9 = vmul.f32 0.5, %v490_v7 }
 0x599   :  { %v501_v10 = vmul.f32 0.5, %v500_v8 }
 0x59a   :  { %v492_v12 = vsub.f32 1.5, %v491_v9 }
 0x59b   :  { %v502_v13 = vsub.f32 1.5, %v501_v10 }
 0x59c   :  { %v493_v16 = vmul.f32 %v2564_v3, %v492_v12 }
 0x59d   :  { %v503_v18 = vmul.f32 %v2566_v4, %v502_v13 }
 0x59e   :  { %v497_v20 = vsel %vm496_vm3, %v2564_v3, %v493_v16 }
 0x59f   :  { %v508_v21 = vmul.f32 %v497_v20, %v474_v51  ;;  %v507_v23 = vsel %vm506_vm5, %v2566_v4, %v503_v18 }
 0x5a0   :  { %v509_v26 = vmul.f32 %v507_v23, %v475_v52 }
 0x5a1   :  { %v511_v24 = vmul.f32 %v510_v19, %v508_v21 }
 0x5a2   :  { %v512_v27 = vmul.f32 %v510_v19, %v509_v26 }
 0x5a3   :  { %v2924_v25 = vadd.f32 %v513_v22, %v511_v24 }
 0x5a4   :  { %v2928_v28 = vadd.f32 %v513_v22, %v512_v27 }
 0x5a5   :  { %2417 = vmatmul.msk.f32.vlgmr.msra.gmra.mxu2 %vm114_vm2, %v2924_v25 }
 0x5ad   :  { %2418 = vmatmul.msk.f32.gmra.mxu2 %vm114_vm2, %v2928_v28 }
 0x628   :  { %v542_v30 = vpop.f32.mrf.mxu2 }
 0x629   :  { %v543_v31 = vadd.f32 %v2520_v29, %v542_v30 }
 0x62b   :  { %vm548_vm6 = vcmp.ge.f32.partialorder %v543_v31, 0.0  ;;  %v550_v32 = vmul.f32 0.01, %v543_v31 }
 0x62d   :  { %v2935_v33 = vsel %vm548_vm6, %v543_v31, %v550_v32 }
 0x62e   :  { %700 = vrot.lane.b32.xlu2 %v2935_v33, %s2679_s5  ;;  %558 = vrot.lane.b32.xlu1 %v2935_v33, %s2680_s22  ;;  %v554_v39 = vmul.f32 0.35355338, %v2935_v33 }
 0x630   :  { %v545_v34 = vpop.f32.mrf.mxu2 }
 0x631   :  { %v546_v35 = vadd.f32 %v2520_v29, %v545_v34 }
 0x633   :  { %vm549_vm7 = vcmp.ge.f32.partialorder %v546_v35, 0.0  ;;  %v551_v36 = vmul.f32 0.01, %v546_v35 }
 0x635   :  { %v2941_v37 = vsel %vm549_vm7, %v546_v35, %v551_v36 }
 0x636   :  { %560 = vrot.lane.b32.xlu0 %v2941_v37, %s2680_s22  ;;  %566 = vrot.lane.b32.xlu1 %v2935_v33, %s3554_s2  ;;  %v555_v38 = vmul.f32 0.35355338, %v2941_v37 }
 0x638   :  { %726 = vrot.lane.b32.xlu2 %v555_v38, %s2682_s7 }
 0x63e   :  { %728 = vrot.lane.b32.xlu1 %v2941_v37, %s2679_s5  ;;  %698 = vrot.lane.b32.xlu0 %v554_v39, %s2682_s7 }
 0x646   :  { %830 = vrot.lane.b32.xlu1 %v554_v39, %s2683_s26  ;;  %832 = vrot.lane.b32.xlu0 %v2935_v33, %s2684_s27 }
 0x64e   :  { %858 = vrot.lane.b32.xlu1 %v555_v38, %s2683_s26  ;;  %860 = vrot.lane.b32.xlu0 %v2941_v37, %s2684_s27 }
 0x656   :  { %990 = vrot.lane.b32.xlu1 %v555_v38, %s3556_s16  ;;  %962 = vrot.lane.b32.xlu0 %v554_v39, %s3556_s16 }
 0x688   :  { %v701_v41 = vpop.permute.xlu2 %700 }
 0x692   :  { %v727_v1 = vpop.permute.xlu2 %726 }
 0x6a0   :  { %v559_v40 = vpop.permute.xlu1 %558 }
 0x6a1   :  { %564 = vst.msk [vmem:[%s3530_s23] sm:$0xff] %vm114_vm2, %v559_v40  ;;  %2419 = vmatpush.xpose.msk.msra.mxu3 %vm575_vm8, %v559_v40 }
 0x6a4   :  { %2420 = vmatmul.msk.f32.vlgmr.msra.gmra.mxu3 %vm575_vm8, %v554_v39 }
 0x6a8   :  { %v561_v14 = vpop.permute.xlu0 %560  ;;  %v567_v15 = vpop.permute.xlu1 %566 }
 0x6a9   :  { %565 = vst.msk [vmem:[%s3530_s23 + $0x8] sm:$0xff] %vm114_vm2, %v561_v14  ;;  %2421 = vmatpush.xpose.msk.msra.mxu0 %vm575_vm8, %v561_v14  ;;  %670 = vmatpush.msrb.mxu1 %v567_v15 }
 0x6aa   :  { %573 = vst.msk [vmem:[%s3531_s24] sm:$0xff] %vm572_vm9, %v567_v15 }
 0x6ac   :  { %2422 = vmatmul.msk.f32.vlgmr.msra.gmra.mxu0 %vm575_vm8, %v555_v38 }
 0x6ad   :  { %2425 = vmatpush.xpose.msk.msrb.mxu0 %vm575_vm8, %v701_v41 }
 0x6b0   :  { %v729_v42 = vpop.permute.xlu1 %728  ;;  %v699_v43 = vpop.permute.xlu0 %698 }
 0x6b1   :  { %2427 = vmatpush.xpose.msk.msra.mxu1 %vm575_vm8, %v729_v42 }
 0x6b4   :  { %2426 = vmatmul.msk.f32.vlgmr.msrb.gmra.mxu0 %vm575_vm8, %v699_v43 }
 0x6b8   :  { %v833_v44 = vpop.permute.xlu0 %832  ;;  %v831_v45 = vpop.permute.xlu1 %830 }
 0x6b9   :  { %2431 = vmatpush.xpose.msk.msra.mxu0 %vm575_vm8, %v833_v44 }
 0x6bc   :  { %2432 = vmatmul.msk.f32.vlgmr.msra.gmra.mxu0 %vm575_vm8, %v831_v45 }
 0x6c0   :  { %v861_v3 = vpop.permute.xlu0 %860  ;;  %v859_v30 = vpop.permute.xlu1 %858 }
 0x6c8   :  { %v963_v8 = vpop.permute.xlu0 %962  ;;  %v991_v31 = vpop.permute.xlu1 %990 }
 0x727   :  { %v598_v51 = vpop.f32.mrf.mxu3 }
 0x728   :  { %v628_v52 = vsel %vm2982_vm10, -inf, %v598_v51 }
 0x729   :  { %v623_v53 = vpop.f32.mrf.mxu0  ;;  %v630_v54 = vsel %vm575_vm8, %v628_v52, -inf }
 0x72a   :  { %v629_v55 = vsel %vm2982_vm10, -inf, %v623_v53  ;;  %631 = vmax.xlane.f32.xlu2 %v630_v54 }
 0x72b   :  { %v633_v56 = vsel %vm575_vm8, %v629_v55, -inf }
 0x72c   :  { %634 = vmax.xlane.f32.xlu0 %v633_v56 }
 0x731   :  { %v723_v61 = vpop.f32.mrf.mxu0 }
 0x732   :  { %v754_v16 = vsel %vm2982_vm10, -inf, %v723_v61 }
 0x733   :  { %v756_v18 = vsel %vm575_vm8, %v754_v16, -inf }
 0x739   :  { %v855_v62 = vpop.f32.mrf.mxu0 }
 0x73a   :  { %v886_v63 = vsel %vm2982_vm10, -inf, %v855_v62 }
 0x73b   :  { %v888_v0 = vsel %vm575_vm8, %v886_v63, -inf }
 0x73c   :  { %889 = vmax.xlane.f32.xlu0 %v888_v0 }
 0x742   :  { %964 = vrot.lane.b32.xlu2 %v2935_v33, %s3560_s28 }
 0x79d   :  { %v632_v2 = vpop.xlane.xlu2 %631 }
 0x79e   :  { %v636_v4 = vsub.f32 %v628_v52, %v632_v2 }
 0x79f   :  { %v635_v10 = vpop.xlane.xlu0 %634 }
 0x7a0   :  { %v638_v5 = vmul.f32 1.442695, %v636_v4  ;;  %v637_v11 = vsub.f32 %v629_v55, %v635_v10 }
 0x7a2   :  { %2567 = vpow2.f32 %v638_v5  ;;  %v640_v12 = vmul.f32 1.442695, %v637_v11 }
 0x7a4   :  { %2569 = vpow2.f32 %v640_v12 }
 0x7a5   :  { %v965_v6 = vpop.permute.xlu2 %964 }
 0x7a6   :  { %2437 = vmatpush.xpose.msk.msrb.mxu0 %vm575_vm8, %v965_v6 }
 0x7a8   :  { %v2568_v7 = vpop.eup %2567 }
 0x7a9   :  { %2438 = vmatmul.msk.f32.vlgmr.msrb.gmra.mxu0 %vm575_vm8, %v963_v8  ;;  %v642_v9 = vsel %vm575_vm8, %v2568_v7, 0.0 }
 0x7aa   :  { %643 = vadd.xlane.f32.xlu2 %v642_v9  ;;  %v3005_v20 = vpop.eup %2569  ;;  %v2504_v9 = vpack.i.bf16 %v2941_v37, %v2935_v33 }
 0x7ab   :  { %v645_v21 = vsel %vm575_vm8, %v3005_v20, 0.0 }
 0x7af   :  { %v890_v13 = vpop.xlane.xlu0 %889 }
 0x7b0   :  { %v894_v17 = vsub.f32 %v886_v63, %v890_v13 }
 0x7b2   :  { %v896_v19 = vmul.f32 1.442695, %v894_v17 }
 0x7b4   :  { %2571 = vpow2.f32 %v896_v19 }
 0x7ba   :  { %v3009_v22 = vpop.eup %2571 }
 0x7bb   :  { %v900_v23 = vsel %vm575_vm8, %v3009_v22, 0.0 }
 0x7c2   :  { %992 = vrot.lane.b32.xlu2 %v2941_v37, %s3560_s28 }
 0x7eb   :  { %757 = vmax.xlane.f32.xlu2 %v756_v18 }
 0x7f3   :  { %646 = vadd.xlane.f32.xlu2 %v645_v21 }
 0x7fb   :  { %901 = vadd.xlane.f32.xlu2 %v900_v23 }
 0x81d   :  { %v644_v24 = vpop.xlane.xlu2 %643 }
 0x81e   :  { %2573 = vrcp.f32 %v644_v24 }
 0x824   :  { %v2574_v26 = vpop.eup %2573 }
 0x825   :  { %v650_v27 = vmul.f32 %v2574_v26, %v2568_v7  ;;  %v993_v29 = vpop.permute.xlu2 %992 }
 0x826   :  { %v987_v40 = vpop.f32.mrf.mxu0 }
 0x827   :  { %2423 = vmatmul.msk.f32.vlgmr.msrb.gmra.mxu1 %vm575_vm8, %v650_v27  ;;  %v1018_v15 = vsel %vm2982_vm10, -inf, %v987_v40 }
 0x828   :  { %2433 = vmatpush.xpose.msk.msrb.mxu1 %vm575_vm8, %v861_v3  ;;  %v1020_v44 = vsel %vm575_vm8, %v1018_v15, -inf }
 0x82f   :  { %2428 = vmatmul.msk.f32.vlgmr.msra.gmra.mxu1 %vm575_vm8, %v727_v1 }
 0x830   :  { %2439 = vmatpush.xpose.msk.msra.mxu1 %vm575_vm8, %v993_v29 }
 0x837   :  { %2434 = vmatmul.msk.f32.vlgmr.msrb.gmra.mxu1 %vm575_vm8, %v859_v30 }
 0x83f   :  { %2440 = vmatmul.msk.f32.vlgmr.msra.gmra.mxu1 %vm575_vm8, %v991_v31 }
 0x85e   :  { %v758_v34 = vpop.xlane.xlu2 %757 }
 0x85f   :  { %v762_v36 = vsub.f32 %v754_v16, %v758_v34 }
 0x861   :  { %v764_v14 = vmul.f32 1.442695, %v762_v36 }
 0x863   :  { %2575 = vpow2.f32 %v764_v14 }
 0x866   :  { %v647_v52 = vpop.xlane.xlu2 %646 }
 0x869   :  { %v3030_v45 = vpop.eup %2575 }
 0x86a   :  { %v768_v51 = vsel %vm575_vm8, %v3030_v45, 0.0 }
 0x86e   :  { %v902_v53 = vpop.xlane.xlu2 %901 }
 0x8a4   :  { %v3019_v32 = vpop.f32.mrf.mxu1 }
 0x8ac   :  { %v751_v35 = vpop.f32.mrf.mxu1 }
 0x8ad   :  { %v755_v38 = vsel %vm2982_vm10, -inf, %v751_v35 }
 0x8ae   :  { %v759_v39 = vsel %vm575_vm8, %v755_v38, -inf }
 0x8af   :  { %760 = vmax.xlane.f32.xlu1 %v759_v39 }
 0x8b4   :  { %v883_v41 = vpop.f32.mrf.mxu1 }
 0x8b5   :  { %v887_v42 = vsel %vm2982_vm10, -inf, %v883_v41 }
 0x8b6   :  { %v891_v43 = vsel %vm575_vm8, %v887_v42, -inf }
 0x8b7   :  { %892 = vmax.xlane.f32.xlu2 %v891_v43  ;;  %1021 = vmax.xlane.f32.xlu1 %v1020_v44 }
 0x8bc   :  { %v1015_v47 = vpop.f32.mrf.mxu1 }
 0x8bd   :  { %v1019_v48 = vsel %vm2982_vm10, -inf, %v1015_v47 }
 0x8be   :  { %v1023_v49 = vsel %vm575_vm8, %v1019_v48, -inf }
 0x8bf   :  { %1024 = vmax.xlane.f32.xlu0 %v1023_v49  ;;  %769 = vadd.xlane.f32.xlu1 %v768_v51  ;;  %v3082_v51 = vld [vmem:[%s3533_s8 + $0x38] sm:$0xff] }
 0x8c0   :  { %1142 = vmatpush.msra.mxu0 %v3082_v51 }
 0x8d8   :  { %568 = vrot.lane.b32.xlu1 %v2941_v37, %s3554_s2 }
 0x8e0   :  { %1042 = vrot.lane.b32.xlu1 %v2935_v33, %s3558_s6 }
 0x8e8   :  { %1068 = vrot.lane.b32.xlu1 %v2941_v37, %s3558_s6 }
 0x922   :  { %v761_v54 = vpop.xlane.xlu1 %760 }
 0x923   :  { %v763_v55 = vsub.f32 %v755_v38, %v761_v54  ;;  %v3099_v54 = vld [vmem:[%s3533_s8 + $0x20] sm:$0xff] }
 0x925   :  { %v766_v56 = vmul.f32 1.442695, %v763_v55  ;;  %v3105_v55 = vld [vmem:[%s3533_s8 + $0x18] sm:$0xff] }
 0x927   :  { %2577 = vpow2.f32 %v766_v56  ;;  %v3111_v56 = vld [vmem:[%s3533_s8 + $0x10] sm:$0xff] }
 0x92a   :  { %v1022_v61 = vpop.xlane.xlu1 %1021  ;;  %v893_v62 = vpop.xlane.xlu2 %892 }
 0x92b   :  { %v1026_v63 = vsub.f32 %v1018_v15, %v1022_v61  ;;  %v895_v2 = vsub.f32 %v887_v42, %v893_v62  ;;  %v3117_v61 = vld [vmem:[%s3533_s8 + $0x8] sm:$0xff]  ;;  %v3124_v62 = vld [vmem:[%s3533_s8] sm:$0xff] }
 0x92d   :  { %v2578_v0 = vpop.eup %2577  ;;  %v1028_v1 = vmul.f32 1.442695, %v1026_v63  ;;  %v898_v4 = vmul.f32 1.442695, %v895_v2 }
 0x92e   :  { %v771_v3 = vsel %vm575_vm8, %v2578_v0, 0.0 }
 0x92f   :  { %2579 = vpow2.f32 %v1028_v1  ;;  %772 = vadd.xlane.f32.xlu0 %v771_v3 }
 0x930   :  { %2581 = vpow2.f32 %v898_v4 }
 0x931   :  { %2583 = vrcp.f32 %v647_v52  ;;  %v3087_v52 = vld [vmem:[%s3533_s8 + $0x30] sm:$0xff] }
 0x932   :  { %v770_v10 = vpop.xlane.xlu1 %769  ;;  %v1025_v33 = vpop.xlane.xlu0 %1024  ;;  %1143 = vmatpush.msra.mxu0 %v3087_v52 }
 0x933   :  { %v1027_v37 = vsub.f32 %v1019_v48, %v1025_v33 }
 0x935   :  { %v3044_v5 = vpop.eup %2579  ;;  %v1030_v16 = vmul.f32 1.442695, %v1027_v37 }
 0x936   :  { %v1032_v6 = vsel %vm575_vm8, %v3044_v5, 0.0  ;;  %v2582_v7 = vpop.eup %2581 }
 0x937   :  { %1033 = vadd.xlane.f32.xlu2 %v1032_v6  ;;  %v903_v8 = vsel %vm575_vm8, %v2582_v7, 0.0  ;;  %v2584_v11 = vpop.eup %2583  ;;  %2585 = vpow2.f32 %v1030_v16 }
 0x938   :  { %v651_v12 = vmul.f32 %v2584_v11, %v3005_v20  ;;  %2587 = vrcp.f32 %v770_v10 }
 0x93d   :  { %v2586_v17 = vpop.eup %2585 }
 0x93e   :  { %v1035_v18 = vsel %vm575_vm8, %v2586_v17, 0.0  ;;  %v2588_v23 = vpop.eup %2587 }
 0x93f   :  { %904 = vadd.xlane.f32.xlu2 %v903_v8  ;;  %v776_v31 = vmul.f32 %v2588_v23, %v3030_v45 }
 0x943   :  { %2505 = vrot.lane.b32.xlu0 %v2504_v9, %s3564_s29 }
 0x94a   :  { %v569_v13 = vpop.permute.xlu1 %568 }
 0x94b   :  { %574 = vst.msk [vmem:[%s3531_s24 + $0x8] sm:$0xff] %vm572_vm9, %v569_v13  ;;  %693 = vmatpush.msrb.mxu3 %v569_v13 }
 0x94c   :  { %2424 = vmatmul.msk.f32.vlgmr.msrb.gmra.mxu3 %vm575_vm8, %v651_v12 }
 0x952   :  { %v1043_v24 = vpop.permute.xlu1 %1042 }
 0x957   :  { %2510 = vrot.lane.b32.xlu2 %v2504_v9, %s3562_s3 }
 0x95a   :  { %v1069_v14 = vpop.permute.xlu1 %1068 }
 0x96d   :  { %1036 = vadd.xlane.f32.xlu0 %v1035_v18 }
 0x9a2   :  { %v773_v20 = vpop.xlane.xlu0 %772 }
 0x9a3   :  { %2589 = vrcp.f32 %v773_v20 }
 0x9a4   :  { %2591 = vrcp.f32 %v902_v53  ;;  %v3093_v53 = vld [vmem:[%s3533_s8 + $0x28] sm:$0xff] }
 0x9a5   :  { %1144 = vmatpush.msra.mxu0 %v3093_v53 }
 0x9a7   :  { %1145 = vmatpush.msra.mxu0 %v3099_v54 }
 0x9a9   :  { %v2590_v26 = vpop.eup %2589  ;;  %1146 = vmatpush.msra.mxu0 %v3105_v55 }
 0x9aa   :  { %v1034_v19 = vpop.xlane.xlu2 %1033  ;;  %v777_v34 = vmul.f32 %v2590_v26, %v2578_v0  ;;  %v2592_v36 = vpop.eup %2591 }
 0x9ab   :  { %v908_v15 = vmul.f32 %v2592_v36, %v3009_v22  ;;  %1147 = vmatpush.msra.mxu0 %v3111_v56 }
 0x9ad   :  { %1148 = vmatpush.msra.mxu0 %v3117_v61 }
 0x9af   :  { %1149 = vmatpush.msra.mxu0 %v3124_v62 }
 0x9b2   :  { %v905_v21 = vpop.xlane.xlu2 %904 }
 0x9b3   :  { %2593 = vrcp.f32 %v905_v21 }
 0x9b4   :  { %2595 = vrcp.f32 %v1034_v19 }
 0x9b5   :  { %v2506_v27 = vpop.permute.xlu0 %2505 }
 0x9b6   :  { %v2508_v29 = vunpack.i.h.bf16 %v2506_v27  ;;  %v2507_v30 = vunpack.i.l.bf16 %v2506_v27 }
 0x9b8   :  { %799 = vmatpush.msrb.mxu2 %v2507_v30  ;;  %825 = vmatpush.msra.mxu3 %v2508_v29 }
 0x9b9   :  { %2429 = vmatmul.msk.f32.vlgmr.msrb.gmra.mxu2 %vm575_vm8, %v776_v31  ;;  %2430 = vmatmul.msk.f32.vlgmr.msra.gmra.mxu3 %vm575_vm8, %v777_v34  ;;  %v2594_v40 = vpop.eup %2593 }
 0x9ba   :  { %v2511_v35 = vpop.permute.xlu2 %2510  ;;  %v909_v41 = vmul.f32 %v2594_v40, %v2582_v7  ;;  %v2596_v42 = vpop.eup %2595  ;;  %v3168_v40 = vld [vmem:[%s3537_s12] sm:$0xff] }
 0x9bb   :  { %v2513_v38 = vunpack.i.h.bf16 %v2511_v35  ;;  %v2512_v39 = vunpack.i.l.bf16 %v2511_v35  ;;  %v1040_v43 = vmul.f32 %v2596_v42, %v3044_v5 }
 0x9bd   :  { %931 = vmatpush.msra.mxu2 %v2512_v39  ;;  %957 = vmatpush.msrb.mxu3 %v2513_v38  ;;  %v3156_v38 = vld [vmem:[%s3537_s12 + $0x10] sm:$0xff]  ;;  %v3162_v39 = vld [vmem:[%s3537_s12 + $0x8] sm:$0xff] }
 0x9bf   :  { %1063 = vmatpush.msrb.mxu2 %v1043_v24  ;;  %1089 = vmatpush.msra.mxu3 %v1069_v14 }
 0x9c1   :  { %2435 = vmatmul.msk.f32.vlgmr.msra.gmra.mxu2 %vm575_vm8, %v908_v15  ;;  %2436 = vmatmul.msk.f32.vlgmr.msrb.gmra.mxu3 %vm575_vm8, %v909_v41 }
 0x9c2   :  { %1447 = vmatpush.msrb.mxu3 %v2895_v57 }
 0x9c4   :  { %1448 = vmatpush.msrb.mxu3 %v2901_v58 }
 0x9c6   :  { %1449 = vmatpush.msrb.mxu3 %v2907_v59 }
 0x9c8   :  { %1450 = vmatpush.msrb.mxu3 %v2912_v60 }
 0x9c9   :  { %2441 = vmatmul.msk.f32.vlgmr.msrb.gmra.mxu2 %vm575_vm8, %v1040_v43 }
 0x9cf   :  { %v695_v57 = vpop.f32.mrf.mxu3 }
 0x9e0   :  { %v1037_v44 = vpop.xlane.xlu0 %1036 }
 0x9e1   :  { %2597 = vrcp.f32 %v1037_v44 }
 0x9e7   :  { %v2598_v22 = vpop.eup %2597 }
 0x9e8   :  { %v1041_v45 = vmul.f32 %v2598_v22, %v2586_v17 }
 0x9ea   :  { %2442 = vmatmul.msk.f32.vlgmr.msra.gmra.mxu3 %vm575_vm8, %v1041_v45 }
 0xa3c   :  { %v801_v47 = vpop.f32.mrf.mxu2  ;;  %v827_v58 = vpop.f32.mrf.mxu3 }
 0xa3d   :  { %1096 = vrot.lane.b32.xlu1 %v801_v47, %s3558_s6 }
 0xa44   :  { %v933_v48 = vpop.f32.mrf.mxu2  ;;  %v959_v60 = vpop.f32.mrf.mxu3 }
 0xa45   :  { %1104 = vrot.lane.b32.xlu2 %v933_v48, %s3562_s3 }
 0xa4c   :  { %v1065_v59 = vpop.f32.mrf.mxu2 }
 0xa4d   :  { %1098 = vrot.lane.b32.xlu2 %v827_v58, %s3558_s6  ;;  %1112 = vrot.lane.b32.xlu1 %v1065_v59, %s3564_s29 }
 0xa55   :  { %1106 = vrot.lane.b32.xlu1 %v959_v60, %s3562_s3  ;;  %v3176_v60 = vld [vmem:[%s3534_s10] ss:$0 sm:$0xff]  ;;  %s3591_s3 = smov 32  }
 0xa6d   :  { %v1091_v49 = vpop.f32.mrf.mxu3 }
 0xa6e   :  { %1114 = vrot.lane.b32.xlu2 %v1091_v49, %s3564_s29  ;;  %s3590_s29 = smov 48  }
 0xa9f   :  { %v1105_v63 = vpop.permute.xlu2 %1104 }
 0xaa7   :  { %v1099_v4 = vpop.permute.xlu2 %1098 }
 0xaa8   :  { %v1119_v6 = vsel %vm80_vm0, %v695_v57, %v1099_v4 }
 0xaaf   :  { %v1097_v0 = vpop.permute.xlu1 %1096 }
 0xab0   :  { %v1118_v1 = vsel %vm80_vm0, %v3019_v32, %v1097_v0  ;;  %v2521_v32 = vld [vmem:[%s3532_s9] ss:$0 sm:$0xff] }
 0xab1   :  { %v1120_v2 = vsel %vm114_vm2, %v1118_v1, %v1105_v63 }
 0xabf   :  { %v1113_v3 = vpop.permute.xlu1 %1112 }
 0xac0   :  { %v1123_v5 = vsel %vm1122_vm11, %v1120_v2, %v1113_v3  ;;  %v3181_v2 = vld [vmem:[%s3535_s11] ss:$0 sm:$0xff] }
 0xac1   :  { %2443 = vmatmul.msk.f32.vlgmr.msra.gmra.mxu0 %vm572_vm9, %v1123_v5 }
 0xac7   :  { %v1107_v7 = vpop.permute.xlu1 %1106 }
 0xac8   :  { %v1121_v8 = vsel %vm114_vm2, %v1119_v6, %v1107_v7  ;;  %v1115_v9 = vpop.permute.xlu2 %1114 }
 0xac9   :  { %v1124_v10 = vsel %vm1122_vm11, %v1121_v8, %v1115_v9 }
 0xaca   :  { %2444 = vmatmul.msk.f32.gmra.mxu0 %vm572_vm9, %v1124_v10 }
 0xb3e   :  { %v1151_v11 = vpop.f32.mrf.mxu0 }
 0xb3f   :  { %v1152_v12 = vadd.f32 %v2521_v32, %v1151_v11  ;;  %v3198_v11 = vld [vmem:[%s3539_s14 + $0x18] sm:$0xff] }
 0xb40   :  { %1286 = vmatpush.msra.mxu2 %v3198_v11 }
 0xb41   :  { %vm1157_vm12 = vcmp.ge.f32.partialorder %v1152_v12, 0.0  ;;  %v1159_v13 = vmul.f32 0.01, %v1152_v12 }
 0xb43   :  { %v1161_v33 = vsel %vm1157_vm12, %v1152_v12, %v1159_v13  ;;  %v3204_v12 = vld [vmem:[%s3539_s14 + $0x10] sm:$0xff]  ;;  %v3210_v13 = vld [vmem:[%s3539_s14 + $0x8] sm:$0xff] }
 0xb44   :  { %v1163_v37 = vadd.f32 %v1161_v33, %v2924_v25  ;;  %1287 = vmatpush.msra.mxu2 %v3204_v12  ;;  %v3216_v33 = vld [vmem:[%s3539_s14] sm:$0xff] }
 0xb46   :  { %v1165_v16 = vsel %vm114_vm2, %v1163_v37, 0.0  ;;  %1288 = vmatpush.msra.mxu2 %v3210_v13 }
 0xb47   :  { %1166 = vadd.xlane.f32.xlu0 %v1165_v16  ;;  %v1154_v17 = vpop.f32.mrf.mxu0 }
 0xb48   :  { %v1155_v18 = vadd.f32 %v2521_v32, %v1154_v17  ;;  %1289 = vmatpush.msra.mxu2 %v3216_v33 }
 0xb4a   :  { %vm1158_vm13 = vcmp.ge.f32.partialorder %v1155_v18, 0.0  ;;  %v1160_v19 = vmul.f32 0.01, %v1155_v18 }
 0xb4c   :  { %v1162_v20 = vsel %vm1158_vm13, %v1155_v18, %v1160_v19 }
 0xb4d   :  { %v1164_v21 = vadd.f32 %v1162_v20, %v2928_v28  ;;  %v3150_v28 = vld [vmem:[%s3537_s12 + $0x18] sm:$0xff]  ;;  %s3592_s12 = smov 16  }
 0xb4e   :  { %1240 = vmatpush.msrb.mxu1 %v3150_v28 }
 0xb4f   :  { %v1168_v23 = vsel %vm114_vm2, %v1164_v21, 0.0 }
 0xb50   :  { %1169 = vadd.xlane.f32.xlu1 %v1168_v23  ;;  %1241 = vmatpush.msrb.mxu1 %v3156_v38 }
 0xb52   :  { %1242 = vmatpush.msrb.mxu1 %v3162_v39 }
 0xb54   :  { %1243 = vmatpush.msrb.mxu1 %v3168_v40 }
 0xbba   :  { %v1167_v24 = vpop.xlane.xlu0 %1166 }
 0xbbb   :  { %v1171_v26 = vmul.f32 %v1167_v24, %v2886_v46 }
 0xbbd   :  { %v1173_v27 = vsub.f32 %v1163_v37, %v1171_v26  ;;  %v3222_v37 = vld [vmem:[%s3536_s13] ss:$0 sm:$0xff] }
 0xbbf   :  { %v1175_v29 = vmul.f32 %v1173_v27, %v1173_v27 }
 0xbc1   :  { %v1177_v25 = vsel %vm114_vm2, %v1175_v29, 0.0 }
 0xbc2   :  { %1178 = vadd.xlane.f32.xlu2 %v1177_v25 }
 0xbc3   :  { %v1170_v30 = vpop.xlane.xlu1 %1169 }
 0xbc4   :  { %v1172_v31 = vmul.f32 %v1170_v30, %v2886_v46 }
 0xbc6   :  { %v1174_v34 = vsub.f32 %v1164_v21, %v1172_v31 }
 0xbc8   :  { %v1176_v35 = vmul.f32 %v1174_v34, %v1174_v34 }
 0xbca   :  { %v1180_v36 = vsel %vm114_vm2, %v1176_v35, 0.0 }
 0xbcb   :  { %1181 = vadd.xlane.f32.xlu0 %v1180_v36  ;;  %v3231_v36 = vld [vmem:[%s3538_s15] ss:$0 sm:$0xff] }
 0xc35   :  { %v1179_v14 = vpop.xlane.xlu2 %1178 }
 0xc36   :  { %v1183_v15 = vmul.f32 %v1179_v14, %v2886_v46 }
 0xc38   :  { %v1185_v41 = vadd.f32 1e-05, %v1183_v15 }
 0xc3a   :  { %2599 = vrsqrt.f32 %v1185_v41  ;;  %vm1193_vm15 = vweird.f32 %v1185_v41 }
 0xc3e   :  { %v1182_v42 = vpop.xlane.xlu0 %1181 }
 0xc3f   :  { %v1184_v43 = vmul.f32 %v1182_v42, %v2886_v46 }
 0xc40   :  { %v2600_v44 = vpop.eup %2599 }
 0xc41   :  { %v1188_v22 = vmul.f32 %v2600_v44, %v1185_v41  ;;  %v1186_v45 = vadd.f32 1e-05, %v1184_v43  ;;  %vm1194_vm14 = vweird.f32 %v2600_v44 }
 0xc42   :  { %vm1195_vm3 = vmor %vm1193_vm15, %vm1194_vm14 }
 0xc43   :  { %v1189_v47 = vmul.f32 %v2600_v44, %v1188_v22  ;;  %2601 = vrsqrt.f32 %v1186_v45  ;;  %vm1203_vm5 = vweird.f32 %v1186_v45 }
 0xc45   :  { %v1190_v57 = vmul.f32 0.5, %v1189_v47 }
 0xc47   :  { %v1191_v48 = vsub.f32 1.5, %v1190_v57 }
 0xc49   :  { %v2602_v58 = vpop.eup %2601  ;;  %v1192_v59 = vmul.f32 %v2600_v44, %v1191_v48 }
 0xc4a   :  { %v1198_v49 = vmul.f32 %v2602_v58, %v1186_v45  ;;  %vm1204_vm4 = vweird.f32 %v2602_v58 }
 0xc4b   :  { %v1196_v63 = vsel %vm1195_vm3, %v2600_v44, %v1192_v59  ;;  %vm1205_vm6 = vmor %vm1203_vm5, %vm1204_vm4 }
 0xc4c   :  { %v1207_v0 = vmul.f32 %v1196_v63, %v1173_v27  ;;  %v1199_v1 = vmul.f32 %v2602_v58, %v1198_v49 }
 0xc4e   :  { %v1212_v3 = vmul.f32 %v3176_v60, %v1207_v0  ;;  %v1200_v4 = vmul.f32 0.5, %v1199_v1 }
 0xc50   :  { %v1201_v5 = vsub.f32 1.5, %v1200_v4  ;;  %v3185_v6 = vadd.f32 %v3181_v2, %v1212_v3 }
 0xc52   :  { %v1202_v7 = vmul.f32 %v2602_v58, %v1201_v5  ;;  %2445 = vmatmul.msk.f32.vlgmr.msrb.gmra.mxu1 %vm114_vm2, %v3185_v6 }
 0xc54   :  { %v1206_v8 = vsel %vm1205_vm6, %v2602_v58, %v1202_v7 }
 0xc55   :  { %v1208_v9 = vmul.f32 %v1206_v8, %v1174_v34 }
 0xc57   :  { %v1213_v10 = vmul.f32 %v3176_v60, %v1208_v9 }
 0xc59   :  { %v3191_v32 = vadd.f32 %v3181_v2, %v1213_v10 }
 0xc5b   :  { %2446 = vmatmul.msk.f32.gmra.mxu1 %vm114_vm2, %v3191_v32 }
 0xccf   :  { %v1245_v16 = vpop.f32.mrf.mxu1 }
 0xcd0   :  { %v1246_v17 = vadd.f32 %v3222_v37, %v1245_v16 }
 0xcd2   :  { %v1253_v18 = vmul.f32 1.442695, %v1246_v17  ;;  %vm1251_vm7 = vcmp.gt.f32.partialorder %v1246_v17, 0.0 }
 0xcd4   :  { %2603 = vpow2.f32 %v1253_v18 }
 0xcd8   :  { %v1248_v19 = vpop.f32.mrf.mxu1 }
 0xcd9   :  { %v1249_v20 = vadd.f32 %v3222_v37, %v1248_v19 }
 0xcda   :  { %v2604_v21 = vpop.eup %2603 }
 0xcdb   :  { %v2447_v23 = vadd.f32 -1.0, %v2604_v21  ;;  %v1255_v24 = vmul.f32 1.442695, %v1249_v20  ;;  %vm1252_vm12 = vcmp.gt.f32.partialorder %v1249_v20, 0.0 }
 0xcdd   :  { %v1259_v26 = vmul.f32 1.6732632, %v2447_v23  ;;  %2605 = vpow2.f32 %v1255_v24 }
 0xcdf   :  { %v1261_v27 = vsel %vm1251_vm7, %v1246_v17, %v1259_v26 }
 0xce0   :  { %v1263_v29 = vmul.f32 1.050701, %v1261_v27 }
 0xce2   :  { %2449 = vmatmul.msk.f32.vlgmr.msra.gmra.mxu2 %vm114_vm2, %v1263_v29 }
 0xce3   :  { %v2606_v25 = vpop.eup %2605 }
 0xce4   :  { %v2448_v30 = vadd.f32 -1.0, %v2606_v25 }
 0xce6   :  { %v1260_v31 = vmul.f32 1.6732632, %v2448_v30 }
 0xce8   :  { %v1262_v34 = vsel %vm1252_vm12, %v1249_v20, %v1260_v31 }
 0xce9   :  { %v1264_v35 = vmul.f32 1.050701, %v1262_v34 }
 0xceb   :  { %2450 = vmatmul.msk.f32.gmra.mxu2 %vm114_vm2, %v1264_v35 }
 0xd65   :  { %v1291_v14 = vpop.f32.mrf.mxu2 }
 0xd66   :  { %v3234_v15 = vadd.f32 %v3231_v36, %v1291_v14 }
 0xd68   :  { %v3237_v41 = vmul.f32 0.70710677, %v3234_v15 }
 0xd6a   :  { %v1299_v42 = vand.u32 2147483647, %v3237_v41  ;;  %vm1365_vm12 = vcmp.ge.f32.partialorder %v3237_v41, 0.0 }
 0xd6c   :  { %v1301_v43 = vmul.f32 0.3275911, %v1299_v42  ;;  %v1353_v9 = vsub.f32 0.0, %v1299_v42 }
 0xd6e   :  { %v1303_v44 = vadd.f32 1.0, %v1301_v43  ;;  %v1294_v22 = vpop.f32.mrf.mxu2  ;;  %v1355_v21 = vmul.f32 %v1353_v9, %v1299_v42 }
 0xd6f   :  { %v3241_v45 = vadd.f32 %v3231_v36, %v1294_v22 }
 0xd70   :  { %2607 = vrcp.f32 %v1303_v44  ;;  %v1316_v0 = vand.u32 2147483648, %v1303_v44  ;;  %v1314_v3 = vand.u32 2147483647, %v1303_v44  ;;  %vm1310_vm14 = vweird.f32 %v1303_v44 }
 0xd71   :  { %v3244_v47 = vmul.f32 0.70710677, %v3241_v45  ;;  %v1357_v30 = vmul.f32 1.442695, %v1355_v21  ;;  %v1372_v41 = vmul.f32 0.5, %v3241_v45 }
 0xd72   :  { %v1317_v5 = vor.u32 1.1754944e-38, %v1316_v0  ;;  %vm1315_vm3 = vcmp.eq.f32.partialorder %v1314_v3, 8.507059e+37 }
 0xd73   :  { %v1300_v57 = vand.u32 2147483647, %v3244_v47 }
 0xd75   :  { %v1302_v48 = vmul.f32 0.3275911, %v1300_v57  ;;  %v1354_v34 = vsub.f32 0.0, %v1300_v57 }
 0xd76   :  { %v2608_v58 = vpop.eup %2607 }
 0xd77   :  { %v1306_v59 = vmul.f32 %v2608_v58, %v1303_v44  ;;  %v1304_v49 = vadd.f32 1.0, %v1302_v48  ;;  %vm1311_vm13 = vweird.f32 %v2608_v58  ;;  %v1356_v42 = vmul.f32 %v1354_v34, %v1300_v57 }
 0xd78   :  { %vm1312_vm15 = vmor %vm1310_vm14, %vm1311_vm13  ;;  %v1371_v57 = vmul.f32 0.5, %v3234_v15  ;;  %vm1366_vm13 = vcmp.ge.f32.partialorder %v3244_v47, 0.0 }
 0xd79   :  { %v1307_v63 = vsub.f32 1.0, %v1306_v59  ;;  %2609 = vrcp.f32 %v1304_v49  ;;  %v1331_v19 = vand.u32 2147483648, %v1304_v49  ;;  %v1329_v24 = vand.u32 2147483647, %v1304_v49 }
 0xd7a   :  { %vm1325_vm5 = vweird.f32 %v1304_v49  ;;  %2611 = vpow2.f32 %v1357_v30  ;;  %v1359_v0 = vmul.f32 1.442695, %v1356_v42 }
 0xd7b   :  { %v1308_v1 = vmul.f32 %v2608_v58, %v1307_v63  ;;  %v1332_v29 = vor.u32 1.1754944e-38, %v1331_v19  ;;  %vm1330_vm7 = vcmp.eq.f32.partialorder %v1329_v24, 8.507059e+37 }
 0xd7c   :  { %2613 = vpow2.f32 %v1359_v0 }
 0xd7d   :  { %v1309_v4 = vadd.f32 %v2608_v58, %v1308_v1 }
 0xd7f   :  { %v2610_v7 = vpop.eup %2609  ;;  %v1313_v8 = vsel %vm1312_vm15, %v2608_v58, %v1309_v4 }
 0xd80   :  { %v1321_v10 = vmul.f32 %v2610_v7, %v1304_v49  ;;  %v1318_v16 = vsel %vm1315_vm3, %v1317_v5, %v1313_v8  ;;  %vm1326_vm4 = vweird.f32 %v2610_v7  ;;  %v2612_v1 = vpop.eup %2611 }
 0xd81   :  { %v1335_v17 = vmul.f32 1.0614054, %v1318_v16  ;;  %vm1327_vm6 = vmor %vm1325_vm5, %vm1326_vm4 }
 0xd82   :  { %v1322_v18 = vsub.f32 1.0, %v1321_v10 }
 0xd83   :  { %v1337_v20 = vadd.f32 -1.4531521, %v1335_v17 }
 0xd84   :  { %v1323_v23 = vmul.f32 %v2610_v7, %v1322_v18 }
 0xd85   :  { %v1339_v26 = vmul.f32 %v1337_v20, %v1318_v16  ;;  %v2614_v20 = vpop.eup %2613 }
 0xd86   :  { %v1324_v27 = vadd.f32 %v2610_v7, %v1323_v23 }
 0xd87   :  { %v1341_v25 = vadd.f32 1.4214138, %v1339_v26 }
 0xd88   :  { %v1328_v31 = vsel %vm1327_vm6, %v2610_v7, %v1324_v27 }
 0xd89   :  { %v1343_v35 = vmul.f32 %v1341_v25, %v1318_v16  ;;  %v1333_v14 = vsel %vm1330_vm7, %v1332_v29, %v1328_v31 }
 0xd8a   :  { %v1336_v43 = vmul.f32 1.0614054, %v1333_v14 }
 0xd8b   :  { %v1345_v44 = vadd.f32 -0.28449672, %v1343_v35 }
 0xd8c   :  { %v1338_v22 = vadd.f32 -1.4531521, %v1336_v43 }
 0xd8d   :  { %v1347_v48 = vmul.f32 %v1345_v44, %v1318_v16 }
 0xd8e   :  { %v1340_v58 = vmul.f32 %v1338_v22, %v1333_v14 }
 0xd8f   :  { %v1349_v59 = vadd.f32 0.2548296, %v1347_v48 }
 0xd90   :  { %v1342_v63 = vadd.f32 1.4214138, %v1340_v58 }
 0xd91   :  { %v1351_v49 = vmul.f32 %v1349_v59, %v1318_v16 }
 0xd92   :  { %v1344_v3 = vmul.f32 %v1342_v63, %v1333_v14 }
 0xd93   :  { %v1361_v4 = vmul.f32 %v2612_v1, %v1351_v49 }
 0xd94   :  { %v1346_v5 = vadd.f32 -0.28449672, %v1344_v3 }
 0xd95   :  { %v1363_v7 = vsub.f32 1.0, %v1361_v4 }
 0xd96   :  { %v1348_v8 = vmul.f32 %v1346_v5, %v1333_v14 }
 0xd97   :  { %v1367_v9 = vsub.f32 0.0, %v1363_v7 }
 0xd98   :  { %v1350_v10 = vadd.f32 0.2548296, %v1348_v8 }
 0xd99   :  { %v1369_v17 = vsel %vm1365_vm12, %v1363_v7, %v1367_v9  ;;  %v2671_v9 = vld [vmem:[%s3582_s0] sm:$0x3] }
 0xd9a   :  { %v1373_v18 = vadd.f32 1.0, %v1369_v17  ;;  %v1352_v19 = vmul.f32 %v1350_v10, %v1333_v14  ;;  %v1423_v10 = vperm.slane %v2671_v9, 1 }
 0xd9c   :  { %v1375_v21 = vmul.f32 %v1373_v18, %v1371_v57  ;;  %v1362_v23 = vmul.f32 %v2614_v20, %v1352_v19  ;;  %v2672_v20 = vld [vmem:[%s3583_s4] sm:$0x3] }
 0xd9e   :  { %v1377_v16 = vadd.f32 %v1375_v21, %v3185_v6  ;;  %v1364_v24 = vsub.f32 1.0, %v1362_v23  ;;  %v1426_v21 = vperm.slane %v2672_v20, 1 }
 0xda0   :  { %v1379_v26 = vsel %vm114_vm2, %v1377_v16, 0.0  ;;  %v1368_v27 = vsub.f32 0.0, %v1364_v24 }
 0xda1   :  { %1380 = vadd.xlane.f32.xlu0 %v1379_v26 }
 0xda2   :  { %v1370_v29 = vsel %vm1366_vm13, %v1364_v24, %v1368_v27 }
 0xda3   :  { %v1374_v25 = vadd.f32 1.0, %v1370_v29 }
 0xda5   :  { %v1376_v30 = vmul.f32 %v1374_v25, %v1372_v41 }
 0xda7   :  { %v1378_v15 = vadd.f32 %v1376_v30, %v3191_v32 }
 0xda9   :  { %v1382_v31 = vsel %vm114_vm2, %v1378_v15, 0.0 }
 0xdaa   :  { %1383 = vadd.xlane.f32.xlu0 %v1382_v31  ;;  %v2673_v31 = vld [vmem:[%s3584_s25] ss:$0 sm:$0xff]  ;;  %s3587_s25 = smov 72  }
 0xe14   :  { %v1381_v34 = vpop.xlane.xlu0 %1380 }
 0xe15   :  { %v1385_v6 = vmul.f32 %v1381_v34, %v2886_v46 }
 0xe17   :  { %v1387_v35 = vsub.f32 %v1377_v16, %v1385_v6 }
 0xe19   :  { %v1389_v14 = vmul.f32 %v1387_v35, %v1387_v35 }
 0xe1b   :  { %v1391_v43 = vsel %vm114_vm2, %v1389_v14, 0.0 }
 0xe1c   :  { %1392 = vadd.xlane.f32.xlu0 %v1391_v43 }
 0xe1d   :  { %v1384_v47 = vpop.xlane.xlu0 %1383 }
 0xe1e   :  { %v1386_v44 = vmul.f32 %v1384_v47, %v2886_v46 }
 0xe20   :  { %v1388_v22 = vsub.f32 %v1378_v15, %v1386_v44 }
 0xe22   :  { %v1390_v45 = vmul.f32 %v1388_v22, %v1388_v22 }
 0xe24   :  { %v1394_v42 = vsel %vm114_vm2, %v1390_v45, 0.0 }
 0xe25   :  { %1395 = vadd.xlane.f32.xlu0 %v1394_v42 }
 0xe8f   :  { %v1393_v32 = vpop.xlane.xlu0 %1392 }
 0xe90   :  { %v1397_v48 = vmul.f32 %v1393_v32, %v2886_v46 }
 0xe92   :  { %v1399_v58 = vadd.f32 1e-05, %v1397_v48 }
 0xe94   :  { %2615 = vrsqrt.f32 %v1399_v58  ;;  %vm1407_vm15 = vweird.f32 %v1399_v58 }
 0xe98   :  { %v1396_v59 = vpop.xlane.xlu0 %1395 }
 0xe99   :  { %v1398_v63 = vmul.f32 %v1396_v59, %v2886_v46 }
 0xe9a   :  { %v2616_v0 = vpop.eup %2615 }
 0xe9b   :  { %v1402_v49 = vmul.f32 %v2616_v0, %v1399_v58  ;;  %v1400_v1 = vadd.f32 1e-05, %v1398_v63  ;;  %vm1408_vm14 = vweird.f32 %v2616_v0 }
 0xe9c   :  { %vm1409_vm3 = vmor %vm1407_vm15, %vm1408_vm14 }
 0xe9d   :  { %v1403_v3 = vmul.f32 %v2616_v0, %v1402_v49  ;;  %2617 = vrsqrt.f32 %v1400_v1  ;;  %vm1417_vm5 = vweird.f32 %v1400_v1 }
 0xe9f   :  { %v1404_v4 = vmul.f32 0.5, %v1403_v3 }
 0xea1   :  { %v1405_v5 = vsub.f32 1.5, %v1404_v4 }
 0xea3   :  { %v2618_v7 = vpop.eup %2617  ;;  %v1406_v8 = vmul.f32 %v2616_v0, %v1405_v5 }
 0xea4   :  { %v1412_v17 = vmul.f32 %v2618_v7, %v1400_v1  ;;  %vm1418_vm4 = vweird.f32 %v2618_v7 }
 0xea5   :  { %v1410_v57 = vsel %vm1409_vm3, %v2616_v0, %v1406_v8  ;;  %vm1419_vm6 = vmor %vm1417_vm5, %vm1418_vm4 }
 0xea6   :  { %v1421_v18 = vmul.f32 %v1410_v57, %v1387_v35  ;;  %v1413_v19 = vmul.f32 %v2618_v7, %v1412_v17 }
 0xea8   :  { %v1424_v23 = vmul.f32 %v1423_v10, %v1421_v18  ;;  %v1414_v16 = vmul.f32 0.5, %v1413_v19 }
 0xeaa   :  { %v1415_v24 = vsub.f32 1.5, %v1414_v16  ;;  %v3267_v26 = vadd.f32 %v1426_v21, %v1424_v23 }
 0xeac   :  { %v1416_v27 = vmul.f32 %v2618_v7, %v1415_v24  ;;  %2451 = vmatmul.msk.f32.vlgmr.msrb.gmra.mxu3 %vm114_vm2, %v3267_v26 }
 0xeae   :  { %v1420_v29 = vsel %vm1419_vm6, %v2618_v7, %v1416_v27 }
 0xeaf   :  { %v1422_v41 = vmul.f32 %v1420_v29, %v1388_v22 }
 0xeb1   :  { %v1425_v25 = vmul.f32 %v1423_v10, %v1422_v41 }
 0xeb3   :  { %v3271_v30 = vadd.f32 %v1426_v21, %v1425_v25 }
 0xeb5   :  { %2452 = vmatmul.msk.f32.gmra.mxu3 %vm114_vm2, %v3271_v30 }
 0xf2f   :  { %v1452_v15 = vpop.f32.mrf.mxu3 }
 0xf30   :  { %v1453_v34 = vadd.f32 %v2673_v31, %v1452_v15 }
 0xf32   :  { %vm1458_vm7 = vcmp.ge.f32.partialorder %v1453_v34, 0.0  ;;  %v1460_v6 = vmul.f32 0.01, %v1453_v34 }
 0xf34   :  { %v3278_v35 = vsel %vm1458_vm7, %v1453_v34, %v1460_v6 }
 0xf35   :  { %1608 = vrot.lane.b32.xlu0 %v3278_v35, %s2679_s5  ;;  %1468 = vrot.lane.b32.xlu1 %v3278_v35, %s2680_s22  ;;  %v1464_v44 = vmul.f32 0.35355338, %v3278_v35 }
 0xf38   :  { %v1455_v14 = vpop.f32.mrf.mxu3 }
 0xf39   :  { %v1456_v43 = vadd.f32 %v2673_v31, %v1455_v14 }
 0xf3b   :  { %vm1459_vm12 = vcmp.ge.f32.partialorder %v1456_v43, 0.0  ;;  %v1461_v47 = vmul.f32 0.01, %v1456_v43 }
 0xf3d   :  { %v3285_v22 = vsel %vm1459_vm12, %v1456_v43, %v1461_v47  ;;  %1606 = vrot.lane.b32.xlu1 %v1464_v44, %s2682_s7 }
 0xf3e   :  { %1636 = vrot.lane.b32.xlu0 %v3285_v22, %s2679_s5  ;;  %1470 = vrot.lane.b32.xlu2 %v3285_v22, %s2680_s22  ;;  %v1465_v45 = vmul.f32 0.35355338, %v3285_v22  ;;  %s3588_s5 = smov 104   ;;  %v2514_v50 = vpack.i.bf16 %v3285_v22, %v3278_v35 }
 0xf45   :  { %1634 = vrot.lane.b32.xlu1 %v1465_v45, %s2682_s7  ;;  %s3593_s7 = sld [smem:[#allocation11_spill]] }
 0xf46   :  { %1738 = vrot.lane.b32.xlu0 %v1464_v44, %s2683_s26  ;;  %1740 = vrot.lane.b32.xlu2 %v3278_v35, %s2684_s27 }
 0xf4d   :  { %1872 = vrot.lane.b32.xlu1 %v3278_v35, %s3587_s25 }
 0xf4e   :  { %1768 = vrot.lane.b32.xlu2 %v3285_v22, %s2684_s27  ;;  %1766 = vrot.lane.b32.xlu0 %v1465_v45, %s2683_s26 }
 0xf55   :  { %1900 = vrot.lane.b32.xlu1 %v3285_v22, %s3587_s25 }
 0xf56   :  { %1870 = vrot.lane.b32.xlu2 %v1464_v44, %s3588_s5  ;;  %1898 = vrot.lane.b32.xlu0 %v1465_v45, %s3588_s5 }
 0xf98   :  { %v1471_v42 = vpop.permute.xlu2 %1470 }
 0xf99   :  { %2454 = vst.msk [vmem:[%s3530_s23 + $0x18] sm:$0xff] %vm114_vm2, %v1471_v42  ;;  %2459 = vmatpush.xpose.msk.msrb.mxu2 %vm575_vm8, %v1471_v42 }
 0xf9c   :  { %2460 = vmatmul.msk.f32.vlgmr.msrb.gmra.mxu2 %vm575_vm8, %v1465_v45 }
 0xfa0   :  { %v1741_v32 = vpop.permute.xlu2 %1740 }
 0xfa7   :  { %v1469_v48 = vpop.permute.xlu1 %1468  ;;  %v1609_v58 = vpop.permute.xlu0 %1608 }
 0xfa8   :  { %2453 = vst.msk [vmem:[%s3530_s23 + $0x10] sm:$0xff] %vm114_vm2, %v1469_v48  ;;  %2457 = vmatpush.xpose.msk.msra.mxu1 %vm575_vm8, %v1469_v48  ;;  %v1769_v0 = vpop.permute.xlu2 %1768  ;;  %s3589_s23 = smov 64  }
 0xfab   :  { %2458 = vmatmul.msk.f32.vlgmr.msra.gmra.mxu1 %vm575_vm8, %v1464_v44 }
 0xfac   :  { %2463 = vmatpush.xpose.msk.msrb.mxu1 %vm575_vm8, %v1609_v58 }
 0xfaf   :  { %v1607_v59 = vpop.permute.xlu1 %1606 }
 0xfb0   :  { %2469 = vmatpush.xpose.msk.msra.mxu1 %vm575_vm8, %v1741_v32  ;;  %v1637_v63 = vpop.permute.xlu0 %1636  ;;  %v1871_v5 = vpop.permute.xlu2 %1870 }
 0xfb1   :  { %2465 = vmatpush.xpose.msk.msra.mxu2 %vm575_vm8, %v1637_v63 }
 0xfb3   :  { %2464 = vmatmul.msk.f32.vlgmr.msrb.gmra.mxu1 %vm575_vm8, %v1607_v59 }
 0xfb5   :  { %2471 = vmatpush.xpose.msk.msrb.mxu2 %vm575_vm8, %v1769_v0 }
 0xfb7   :  { %v1635_v49 = vpop.permute.xlu1 %1634 }
 0xfb8   :  { %2466 = vmatmul.msk.f32.vlgmr.msra.gmra.mxu2 %vm575_vm8, %v1635_v49  ;;  %v1739_v1 = vpop.permute.xlu0 %1738 }
 0xfbb   :  { %2470 = vmatmul.msk.f32.vlgmr.msra.gmra.mxu1 %vm575_vm8, %v1739_v1 }
 0xfbf   :  { %v1873_v3 = vpop.permute.xlu1 %1872 }
 0xfc0   :  { %2475 = vmatpush.xpose.msk.msrb.mxu1 %vm575_vm8, %v1873_v3  ;;  %v1767_v4 = vpop.permute.xlu0 %1766 }
 0xfc1   :  { %2472 = vmatmul.msk.f32.vlgmr.msrb.gmra.mxu2 %vm575_vm8, %v1767_v4 }
 0xfc3   :  { %2476 = vmatmul.msk.f32.vlgmr.msrb.gmra.mxu1 %vm575_vm8, %v1871_v5 }
 0xfc4   :  { %2046 = vmatpush.msra.mxu1 %v3082_v51 }
 0xfc6   :  { %2047 = vmatpush.msra.mxu1 %v3087_v52 }
 0xfc7   :  { %v1901_v7 = vpop.permute.xlu1 %1900 }
 0xfc8   :  { %2048 = vmatpush.msra.mxu1 %v3093_v53  ;;  %2477 = vmatpush.xpose.msk.msra.mxu2 %vm575_vm8, %v1901_v7  ;;  %v1899_v8 = vpop.permute.xlu0 %1898 }
 0xfca   :  { %2049 = vmatpush.msra.mxu1 %v3099_v54 }
 0xfcb   :  { %2478 = vmatmul.msk.f32.vlgmr.msra.gmra.mxu2 %vm575_vm8, %v1899_v8 }
 0xfcc   :  { %2135 = vmatpush.msrb.mxu2 %v3150_v28  ;;  %2050 = vmatpush.msra.mxu1 %v3105_v55 }
 0xfce   :  { %2051 = vmatpush.msra.mxu1 %v3111_v56  ;;  %2136 = vmatpush.msrb.mxu2 %v3156_v38 }
 0xfd0   :  { %2052 = vmatpush.msra.mxu1 %v3117_v61  ;;  %2137 = vmatpush.msrb.mxu2 %v3162_v39 }
 0xfd2   :  { %2053 = vmatpush.msra.mxu1 %v3124_v62  ;;  %2138 = vmatpush.msrb.mxu2 %v3168_v40 }
0x101f   :  { %v1533_v61 = vpop.f32.mrf.mxu2 }
0x1020   :  { %v1537_v34 = vsel %vm2982_vm10, -inf, %v1533_v61 }
0x1021   :  { %v1541_v43 = vsel %vm575_vm8, %v1537_v34, -inf }
0x1028   :  { %v1508_v51 = vpop.f32.mrf.mxu1 }
0x1029   :  { %v1536_v52 = vsel %vm2982_vm10, -inf, %v1508_v51 }
0x102a   :  { %v1538_v53 = vsel %vm575_vm8, %v1536_v52, -inf }
0x102b   :  { %1539 = vmax.xlane.f32.xlu2 %v1538_v53 }
0x1030   :  { %v1631_v54 = vpop.f32.mrf.mxu1 }
0x1031   :  { %v1662_v55 = vsel %vm2982_vm10, -inf, %v1631_v54 }
0x1032   :  { %v1664_v56 = vsel %vm575_vm8, %v1662_v55, -inf }
0x1033   :  { %1665 = vmax.xlane.f32.xlu1 %v1664_v56 }
0x1038   :  { %v1763_v28 = vpop.f32.mrf.mxu1 }
0x1039   :  { %v1794_v62 = vsel %vm2982_vm10, -inf, %v1763_v28 }
0x103a   :  { %v1796_v38 = vsel %vm575_vm8, %v1794_v62, -inf }
0x103b   :  { %v1659_v39 = vpop.f32.mrf.mxu2  ;;  %1797 = vmax.xlane.f32.xlu2 %v1796_v38 }
0x103c   :  { %v1663_v40 = vsel %vm2982_vm10, -inf, %v1659_v39 }
0x103d   :  { %v1667_v9 = vsel %vm575_vm8, %v1663_v40, -inf }
0x103e   :  { %1668 = vmax.xlane.f32.xlu1 %v1667_v9 }
0x1040   :  { %v1895_v10 = vpop.f32.mrf.mxu1 }
0x1041   :  { %v1926_v17 = vsel %vm2982_vm10, -inf, %v1895_v10 }
0x1042   :  { %v1928_v57 = vsel %vm575_vm8, %v1926_v17, -inf }
0x1043   :  { %1929 = vmax.xlane.f32.xlu0 %v1928_v57 }
0x1044   :  { %v1791_v18 = vpop.f32.mrf.mxu2 }
0x1045   :  { %v1795_v42 = vsel %vm2982_vm10, -inf, %v1791_v18 }
0x1046   :  { %v1799_v58 = vsel %vm575_vm8, %v1795_v42, -inf }
0x104e   :  { %v1923_v19 = vpop.f32.mrf.mxu2 }
0x104f   :  { %v3359_v20 = vsel %vm2982_vm10, -inf, %v1923_v19 }
0x1050   :  { %v1931_v21 = vsel %vm575_vm8, %v3359_v20, -inf }
0x1051   :  { %1932 = vmax.xlane.f32.xlu1 %v1931_v21 }
0x106a   :  { %1477 = vrot.lane.b32.xlu1 %v3278_v35, %s3589_s23 }
0x109e   :  { %v1540_v23 = vpop.xlane.xlu2 %1539 }
0x109f   :  { %v1544_v16 = vsub.f32 %v1536_v52, %v1540_v23 }
0x10a1   :  { %v1546_v24 = vmul.f32 1.442695, %v1544_v16 }
0x10a3   :  { %2619 = vpow2.f32 %v1546_v24 }
0x10a6   :  { %v1666_v27 = vpop.xlane.xlu1 %1665 }
0x10a7   :  { %v1670_v29 = vsub.f32 %v1662_v55, %v1666_v27 }
0x10a9   :  { %v2620_v41 = vpop.eup %2619  ;;  %v1672_v25 = vmul.f32 1.442695, %v1670_v29 }
0x10aa   :  { %v1550_v15 = vsel %vm575_vm8, %v2620_v41, 0.0 }
0x10ab   :  { %2621 = vpow2.f32 %v1672_v25  ;;  %1551 = vadd.xlane.f32.xlu0 %v1550_v15 }
0x10ae   :  { %v1798_v31 = vpop.xlane.xlu2 %1797 }
0x10af   :  { %v1802_v14 = vsub.f32 %v1794_v62, %v1798_v31 }
0x10b1   :  { %v3368_v6 = vpop.eup %2621  ;;  %v1804_v44 = vmul.f32 1.442695, %v1802_v14  ;;  %v1669_v1 = vpop.xlane.xlu1 %1668 }
0x10b2   :  { %v1676_v47 = vsel %vm575_vm8, %v3368_v6, 0.0  ;;  %v1671_v5 = vsub.f32 %v1663_v40, %v1669_v1 }
0x10b3   :  { %1542 = vmax.xlane.f32.xlu0 %v1541_v43  ;;  %1677 = vadd.xlane.f32.xlu2 %v1676_v47  ;;  %2623 = vpow2.f32 %v1804_v44 }
0x10b4   :  { %v1674_v7 = vmul.f32 1.442695, %v1671_v5 }
0x10b6   :  { %v1930_v45 = vpop.xlane.xlu0 %1929 }
0x10b7   :  { %v1934_v32 = vsub.f32 %v1926_v17, %v1930_v45 }
0x10b9   :  { %v1936_v48 = vmul.f32 1.442695, %v1934_v32  ;;  %v3376_v59 = vpop.eup %2623 }
0x10ba   :  { %v1808_v0 = vsel %vm575_vm8, %v3376_v59, 0.0 }
0x10bb   :  { %2625 = vpow2.f32 %v1936_v48  ;;  %1800 = vmax.xlane.f32.xlu2 %v1799_v58 }
0x10bc   :  { %2627 = vpow2.f32 %v1674_v7 }
0x10c1   :  { %v3378_v63 = vpop.eup %2625 }
0x10c2   :  { %v1940_v49 = vsel %vm575_vm8, %v3378_v63, 0.0  ;;  %v3397_v8 = vpop.eup %2627 }
0x10c3   :  { %1809 = vadd.xlane.f32.xlu2 %v1808_v0  ;;  %1941 = vadd.xlane.f32.xlu1 %v1940_v49  ;;  %v1679_v51 = vsel %vm575_vm8, %v3397_v8, 0.0 }
0x10c4   :  { %v1933_v3 = vpop.xlane.xlu1 %1932 }
0x10c7   :  { %2515 = vrot.lane.b32.xlu0 %v2514_v50, %s3590_s29 }
0x10cf   :  { %1818 = vrot.lane.b32.xlu0 %v3278_v35, %s3591_s3 }
0x10db   :  { %1479 = vrot.lane.b32.xlu2 %v3285_v22, %s3589_s23 }
0x10dc   :  { %v1478_v4 = vpop.permute.xlu1 %1477  ;;  %1844 = vrot.lane.b32.xlu1 %v3285_v22, %s3591_s3 }
0x10dd   :  { %2455 = vst.msk [vmem:[%s3531_s24 + $0x10] sm:$0xff] %vm572_vm9, %v1478_v4  ;;  %1578 = vmatpush.msra.mxu3 %v1478_v4 }
0x1104   :  { %1680 = vadd.xlane.f32.xlu2 %v1679_v51 }
0x111c   :  { %1950 = vrot.lane.b32.xlu2 %v3278_v35, %s3592_s12  ;;  %v1935_v35 = vsub.f32 %v3359_v20, %v1933_v3 }
0x111e   :  { %v1552_v52 = vpop.xlane.xlu0 %1551  ;;  %v1938_v17 = vmul.f32 1.442695, %v1935_v35 }
0x111f   :  { %2629 = vrcp.f32 %v1552_v52 }
0x1125   :  { %v2630_v53 = vpop.eup %2629 }
0x1126   :  { %v1558_v54 = vmul.f32 %v2630_v53, %v2620_v41  ;;  %v1678_v55 = vpop.xlane.xlu2 %1677  ;;  %v1543_v56 = vpop.xlane.xlu0 %1542 }
0x1127   :  { %v1545_v61 = vsub.f32 %v1537_v34, %v1543_v56 }
0x1128   :  { %2461 = vmatmul.msk.f32.vlgmr.msra.gmra.mxu3 %vm575_vm8, %v1558_v54 }
0x1129   :  { %v1548_v28 = vmul.f32 1.442695, %v1545_v61 }
0x112b   :  { %2631 = vpow2.f32 %v1548_v28 }
0x112c   :  { %2633 = vrcp.f32 %v1678_v55 }
0x112e   :  { %v1801_v62 = vpop.xlane.xlu2 %1800 }
0x112f   :  { %v1803_v38 = vsub.f32 %v1795_v42, %v1801_v62 }
0x1131   :  { %v2632_v39 = vpop.eup %2631  ;;  %v1806_v40 = vmul.f32 1.442695, %v1803_v38 }
0x1132   :  { %v1553_v9 = vsel %vm575_vm8, %v2632_v39, 0.0  ;;  %v2634_v57 = vpop.eup %2633 }
0x1133   :  { %2635 = vpow2.f32 %v1806_v40  ;;  %1554 = vadd.xlane.f32.xlu0 %v1553_v9  ;;  %v1684_v16 = vmul.f32 %v2634_v57, %v3368_v6  ;;  %v2674_v40 = vld [vmem:[%s3532_s9] ss:$0 sm:$0xff] }
0x1136   :  { %v1810_v10 = vpop.xlane.xlu2 %1809  ;;  %v1942_v31 = vpop.xlane.xlu1 %1941 }
0x1137   :  { %2637 = vrcp.f32 %v1810_v10 }
0x1138   :  { %2639 = vpow2.f32 %v1938_v17 }
0x1139   :  { %v2636_v18 = vpop.eup %2635  ;;  %v2516_v19 = vpop.permute.xlu0 %2515  ;;  %2641 = vrcp.f32 %v1942_v31 }
0x113a   :  { %v2517_v21 = vunpack.i.l.bf16 %v2516_v19  ;;  %v1811_v23 = vsel %vm575_vm8, %v2636_v18, 0.0  ;;  %v2518_v24 = vunpack.i.h.bf16 %v2516_v19 }
0x113b   :  { %1812 = vadd.xlane.f32.xlu0 %v1811_v23 }
0x113c   :  { %1707 = vmatpush.msrb.mxu3 %v2517_v21 }
0x113d   :  { %2467 = vmatmul.msk.f32.vlgmr.msrb.gmra.mxu3 %vm575_vm8, %v1684_v16  ;;  %v2638_v27 = vpop.eup %2637 }
0x113e   :  { %v1480_v20 = vpop.permute.xlu2 %1479  ;;  %v2640_v29 = vpop.eup %2639  ;;  %v1816_v25 = vmul.f32 %v2638_v27, %v3376_v59 }
0x113f   :  { %2456 = vst.msk [vmem:[%s3531_s24 + $0x18] sm:$0xff] %vm572_vm9, %v1480_v20  ;;  %1601 = vmatpush.msrb.mxu0 %v1480_v20  ;;  %v1943_v15 = vsel %vm575_vm8, %v2640_v29, 0.0  ;;  %v2642_v6 = vpop.eup %2641 }
0x1140   :  { %v1948_v14 = vmul.f32 %v2642_v6, %v3378_v63 }
0x1141   :  { %1733 = vmatpush.msra.mxu0 %v2518_v24  ;;  %v1819_v41 = vpop.permute.xlu0 %1818 }
0x1142   :  { %1839 = vmatpush.msra.mxu3 %v1819_v41 }
0x1145   :  { %1944 = vadd.xlane.f32.xlu2 %v1943_v15  ;;  %2473 = vmatmul.msk.f32.vlgmr.msra.gmra.mxu3 %vm575_vm8, %v1816_v25 }
0x114e   :  { %v1845_v45 = vpop.permute.xlu1 %1844 }
0x114f   :  { %1976 = vrot.lane.b32.xlu0 %v3285_v22, %s3592_s12 }
0x1177   :  { %v1681_v34 = vpop.xlane.xlu2 %1680 }
0x117f   :  { %v1951_v43 = vpop.permute.xlu2 %1950 }
0x1180   :  { %1971 = vmatpush.msrb.mxu3 %v1951_v43 }
0x1181   :  { %2479 = vmatmul.msk.f32.vlgmr.msrb.gmra.mxu3 %vm575_vm8, %v1948_v14 }
0x1182   :  { %2178 = vmatpush.msra.mxu3 %v3198_v11 }
0x1184   :  { %2179 = vmatpush.msra.mxu3 %v3204_v12 }
0x1186   :  { %2180 = vmatpush.msra.mxu3 %v3210_v13 }
0x1188   :  { %2181 = vmatpush.msra.mxu3 %v3216_v33 }
0x11a6   :  { %v1555_v47 = vpop.xlane.xlu0 %1554 }
0x11a7   :  { %2643 = vrcp.f32 %v1555_v47 }
0x11a8   :  { %2645 = vrcp.f32 %v1681_v34 }
0x11ab   :  { %v1580_v48 = vpop.f32.mrf.mxu3 }
0x11ad   :  { %v2644_v22 = vpop.eup %2643 }
0x11ae   :  { %v1559_v44 = vmul.f32 %v2644_v22, %v2632_v39  ;;  %v1813_v42 = vpop.xlane.xlu0 %1812  ;;  %v2646_v32 = vpop.eup %2645 }
0x11af   :  { %2647 = vrcp.f32 %v1813_v42  ;;  %v1685_v11 = vmul.f32 %v2646_v32, %v3397_v8 }
0x11b0   :  { %2462 = vmatmul.msk.f32.vlgmr.msrb.gmra.mxu0 %vm575_vm8, %v1559_v44 }
0x11b1   :  { %1865 = vmatpush.msrb.mxu0 %v1845_v45 }
0x11b5   :  { %v2648_v13 = vpop.eup %2647 }
0x11b6   :  { %v1817_v33 = vmul.f32 %v2648_v13, %v2636_v18 }
0x11b8   :  { %2468 = vmatmul.msk.f32.vlgmr.msra.gmra.mxu0 %vm575_vm8, %v1685_v11  ;;  %v1945_v12 = vpop.xlane.xlu2 %1944 }
0x11b9   :  { %2649 = vrcp.f32 %v1945_v12 }
0x11bf   :  { %v2650_v63 = vpop.eup %2649 }
0x11c0   :  { %v1709_v58 = vpop.f32.mrf.mxu3  ;;  %2474 = vmatmul.msk.f32.vlgmr.msrb.gmra.mxu0 %vm575_vm8, %v1817_v33  ;;  %v1949_v0 = vmul.f32 %v2650_v63, %v2640_v29 }
0x11c1   :  { %v1977_v59 = vpop.permute.xlu0 %1976  ;;  %2004 = vrot.lane.b32.xlu2 %v1709_v58, %s3592_s12 }
0x11c2   :  { %1997 = vmatpush.msra.mxu0 %v1977_v59 }
0x11c8   :  { %v1841_v49 = vpop.f32.mrf.mxu3  ;;  %2480 = vmatmul.msk.f32.vlgmr.msra.gmra.mxu0 %vm575_vm8, %v1949_v0 }
0x11c9   :  { %2012 = vrot.lane.b32.xlu1 %v1841_v49, %s3591_s3 }
0x1204   :  { %v1973_v50 = vpop.f32.mrf.mxu3 }
0x1205   :  { %2020 = vrot.lane.b32.xlu0 %v1973_v50, %s3590_s29 }
0x121b   :  { %v2005_v7 = vpop.permute.xlu2 %2004 }
0x121c   :  { %v2026_v51 = vsel %vm80_vm0, %v1580_v48, %v2005_v7 }
0x122d   :  { %v1603_v1 = vpop.f32.mrf.mxu0 }
0x1235   :  { %v1735_v3 = vpop.f32.mrf.mxu0 }
0x1236   :  { %2006 = vrot.lane.b32.xlu1 %v1735_v3, %s3592_s12 }
0x123b   :  { %v2013_v8 = vpop.permute.xlu1 %2012 }
0x123c   :  { %v2028_v52 = vsel %vm114_vm2, %v2026_v51, %v2013_v8 }
0x123d   :  { %v1867_v4 = vpop.f32.mrf.mxu0 }
0x123e   :  { %2014 = vrot.lane.b32.xlu0 %v1867_v4, %s3591_s3 }
0x1245   :  { %v1999_v5 = vpop.f32.mrf.mxu0 }
0x1246   :  { %2022 = vrot.lane.b32.xlu1 %v1999_v5, %s3590_s29  ;;  %v2675_v5 = vld [vmem:[%s3534_s10] ss:$0 sm:$0xff] }
0x1277   :  { %v2021_v53 = vpop.permute.xlu0 %2020 }
0x1278   :  { %v2030_v54 = vsel %vm1122_vm11, %v2028_v52, %v2021_v53 }
0x1279   :  { %2481 = vmatmul.msk.f32.vlgmr.msra.gmra.mxu1 %vm572_vm9, %v2030_v54 }
0x12a8   :  { %v2007_v55 = vpop.permute.xlu1 %2006 }
0x12a9   :  { %v2027_v61 = vsel %vm80_vm0, %v1603_v1, %v2007_v55 }
0x12b0   :  { %v2015_v56 = vpop.permute.xlu0 %2014 }
0x12b1   :  { %v2029_v28 = vsel %vm114_vm2, %v2027_v61, %v2015_v56 }
0x12b8   :  { %v2023_v62 = vpop.permute.xlu1 %2022 }
0x12b9   :  { %v2031_v38 = vsel %vm1122_vm11, %v2029_v28, %v2023_v62 }
0x12ba   :  { %2482 = vmatmul.msk.f32.gmra.mxu1 %vm572_vm9, %v2031_v38 }
0x12f6   :  { %v2055_v39 = vpop.f32.mrf.mxu1 }
0x12f7   :  { %v2056_v9 = vadd.f32 %v2674_v40, %v2055_v39 }
0x12f9   :  { %vm2061_vm8 = vcmp.ge.f32.partialorder %v2056_v9, 0.0  ;;  %v2063_v35 = vmul.f32 0.01, %v2056_v9 }
0x12fb   :  { %v2065_v10 = vsel %vm2061_vm8, %v2056_v9, %v2063_v35 }
0x12fc   :  { %v2067_v17 = vadd.f32 %v2065_v10, %v3267_v26 }
0x12fe   :  { %v2069_v57 = vsel %vm114_vm2, %v2067_v17, 0.0 }
0x12ff   :  { %2070 = vadd.xlane.f32.xlu0 %v2069_v57 }
0x1337   :  { %v2058_v18 = vpop.f32.mrf.mxu1 }
0x1338   :  { %v2059_v19 = vadd.f32 %v2674_v40, %v2058_v18 }
0x133a   :  { %vm2062_vm10 = vcmp.ge.f32.partialorder %v2059_v19, 0.0  ;;  %v2064_v21 = vmul.f32 0.01, %v2059_v19 }
0x133c   :  { %v2066_v23 = vsel %vm2062_vm10, %v2059_v19, %v2064_v21 }
0x133d   :  { %v2068_v16 = vadd.f32 %v2066_v23, %v3271_v30 }
0x133f   :  { %v2072_v24 = vsel %vm114_vm2, %v2068_v16, 0.0 }
0x1340   :  { %2073 = vadd.xlane.f32.xlu2 %v2072_v24 }
0x1372   :  { %v2071_v20 = vpop.xlane.xlu0 %2070 }
0x1373   :  { %v2075_v27 = vmul.f32 %v2071_v20, %v2886_v46 }
0x1375   :  { %v2077_v29 = vsub.f32 %v2067_v17, %v2075_v27 }
0x1377   :  { %v2079_v41 = vmul.f32 %v2077_v29, %v2077_v29 }
0x1379   :  { %v2081_v26 = vsel %vm114_vm2, %v2079_v41, 0.0 }
0x137a   :  { %2082 = vadd.xlane.f32.xlu1 %v2081_v26 }
0x13b3   :  { %v2074_v25 = vpop.xlane.xlu2 %2073 }
0x13b4   :  { %v2076_v15 = vmul.f32 %v2074_v25, %v2886_v46 }
0x13b6   :  { %v2078_v31 = vsub.f32 %v2068_v16, %v2076_v15 }
0x13b8   :  { %v2080_v34 = vmul.f32 %v2078_v31, %v2078_v31 }
0x13ba   :  { %v2084_v6 = vsel %vm114_vm2, %v2080_v34, 0.0 }
0x13bb   :  { %2085 = vadd.xlane.f32.xlu2 %v2084_v6 }
0x13ed   :  { %v2083_v30 = vpop.xlane.xlu1 %2082 }
0x13ee   :  { %v2087_v14 = vmul.f32 %v2083_v30, %v2886_v46 }
0x13f0   :  { %v2089_v43 = vadd.f32 1e-05, %v2087_v14 }
0x13f2   :  { %2651 = vrsqrt.f32 %v2089_v43  ;;  %vm2097_vm11 = vweird.f32 %v2089_v43 }
0x13f8   :  { %v2652_v47 = vpop.eup %2651 }
0x13f9   :  { %v2092_v22 = vmul.f32 %v2652_v47, %v2089_v43  ;;  %vm2098_vm9 = vweird.f32 %v2652_v47 }
0x13fa   :  { %vm2099_vm13 = vmor %vm2097_vm11, %vm2098_vm9 }
0x13fb   :  { %v2093_v44 = vmul.f32 %v2652_v47, %v2092_v22 }
0x13fd   :  { %v2094_v45 = vmul.f32 0.5, %v2093_v44 }
0x13ff   :  { %v2095_v42 = vsub.f32 1.5, %v2094_v45 }
0x1401   :  { %v2096_v32 = vmul.f32 %v2652_v47, %v2095_v42 }
0x1403   :  { %v2100_v11 = vsel %vm2099_vm13, %v2652_v47, %v2096_v32 }
0x1404   :  { %v2111_v48 = vmul.f32 %v2100_v11, %v2077_v29 }
0x1406   :  { %v2113_v12 = vmul.f32 %v3176_v60, %v2111_v48 }
0x1408   :  { %v3457_v13 = vadd.f32 %v3181_v2, %v2113_v12 }
0x140a   :  { %2483 = vmatmul.msk.f32.vlgmr.msrb.gmra.mxu2 %vm114_vm2, %v3457_v13 }
0x142e   :  { %v2086_v33 = vpop.xlane.xlu2 %2085 }
0x142f   :  { %v2088_v58 = vmul.f32 %v2086_v33, %v2886_v46 }
0x1431   :  { %v2090_v59 = vadd.f32 1e-05, %v2088_v58 }
0x1433   :  { %2653 = vrsqrt.f32 %v2090_v59  ;;  %vm2107_vm15 = vweird.f32 %v2090_v59 }
0x1439   :  { %v2654_v63 = vpop.eup %2653 }
0x143a   :  { %v2102_v0 = vmul.f32 %v2654_v63, %v2090_v59  ;;  %vm2108_vm14 = vweird.f32 %v2654_v63 }
0x143b   :  { %vm2109_vm3 = vmor %vm2107_vm15, %vm2108_vm14 }
0x143c   :  { %v2103_v49 = vmul.f32 %v2654_v63, %v2102_v0 }
0x143e   :  { %v2104_v50 = vmul.f32 0.5, %v2103_v49 }
0x1440   :  { %v2105_v1 = vsub.f32 1.5, %v2104_v50 }
0x1442   :  { %v2106_v3 = vmul.f32 %v2654_v63, %v2105_v1  ;;  %v2676_v1 = vld [vmem:[%s3538_s15] ss:$0 sm:$0xff] }
0x1444   :  { %v2110_v60 = vsel %vm2109_vm3, %v2654_v63, %v2106_v3 }
0x1445   :  { %v2112_v4 = vmul.f32 %v2110_v60, %v2078_v31 }
0x1447   :  { %v2114_v7 = vmul.f32 %v2675_v5, %v2112_v4 }
0x1449   :  { %v3466_v8 = vadd.f32 %v3181_v2, %v2114_v7 }
0x144b   :  { %2484 = vmatmul.msk.f32.gmra.mxu2 %vm114_vm2, %v3466_v8 }
0x148d   :  { %v2140_v51 = vpop.f32.mrf.mxu2 }
0x148e   :  { %v2141_v52 = vadd.f32 %v3222_v37, %v2140_v51 }
0x1490   :  { %v2148_v53 = vmul.f32 1.442695, %v2141_v52  ;;  %vm2146_vm4 = vcmp.gt.f32.partialorder %v2141_v52, 0.0 }
0x1492   :  { %2655 = vpow2.f32 %v2148_v53 }
0x1498   :  { %v2656_v54 = vpop.eup %2655 }
0x1499   :  { %v2485_v55 = vadd.f32 -1.0, %v2656_v54 }
0x149b   :  { %v2154_v56 = vmul.f32 1.6732632, %v2485_v55 }
0x149d   :  { %v2156_v61 = vsel %vm2146_vm4, %v2141_v52, %v2154_v56 }
0x149e   :  { %v2158_v28 = vmul.f32 1.050701, %v2156_v61 }
0x14a0   :  { %2487 = vmatmul.msk.f32.vlgmr.msra.gmra.mxu3 %vm114_vm2, %v2158_v28 }
0x14ce   :  { %v2143_v62 = vpop.f32.mrf.mxu2 }
0x14cf   :  { %v2144_v2 = vadd.f32 %v3222_v37, %v2143_v62 }
0x14d1   :  { %v2150_v38 = vmul.f32 1.442695, %v2144_v2  ;;  %vm2147_vm5 = vcmp.gt.f32.partialorder %v2144_v2, 0.0 }
0x14d3   :  { %2657 = vpow2.f32 %v2150_v38 }
0x14d9   :  { %v2658_v39 = vpop.eup %2657 }
0x14da   :  { %v2486_v40 = vadd.f32 -1.0, %v2658_v39 }
0x14dc   :  { %v2155_v9 = vmul.f32 1.6732632, %v2486_v40 }
0x14de   :  { %v2157_v35 = vsel %vm2147_vm5, %v2144_v2, %v2155_v9 }
0x14df   :  { %v2159_v10 = vmul.f32 1.050701, %v2157_v35 }
0x14e1   :  { %2488 = vmatmul.msk.f32.gmra.mxu3 %vm114_vm2, %v2159_v10 }
0x1523   :  { %v2183_v17 = vpop.f32.mrf.mxu3 }
0x1524   :  { %v2184_v57 = vadd.f32 %v3231_v36, %v2183_v17 }
0x1526   :  { %v2189_v18 = vmul.f32 0.70710677, %v2184_v57  ;;  %v2263_v58 = vmul.f32 0.5, %v2184_v57 }
0x1528   :  { %v2191_v19 = vand.u32 2147483647, %v2189_v18  ;;  %vm2257_vm10 = vcmp.ge.f32.partialorder %v2189_v18, 0.0 }
0x152a   :  { %v2193_v21 = vmul.f32 0.3275911, %v2191_v19  ;;  %v2245_v15 = vsub.f32 0.0, %v2191_v19 }
0x152c   :  { %v2195_v23 = vadd.f32 1.0, %v2193_v21  ;;  %v2247_v6 = vmul.f32 %v2245_v15, %v2191_v19 }
0x152e   :  { %2659 = vrcp.f32 %v2195_v23  ;;  %v2208_v20 = vand.u32 2147483648, %v2195_v23  ;;  %v2206_v29 = vand.u32 2147483647, %v2195_v23  ;;  %vm2202_vm7 = vweird.f32 %v2195_v23 }
0x152f   :  { %v2249_v43 = vmul.f32 1.442695, %v2247_v6 }
0x1530   :  { %v2209_v26 = vor.u32 1.1754944e-38, %v2208_v20  ;;  %vm2207_vm8 = vcmp.eq.f32.partialorder %v2206_v29, 8.507059e+37 }
0x1531   :  { %2661 = vpow2.f32 %v2249_v43 }
0x1534   :  { %v2660_v16 = vpop.eup %2659 }
0x1535   :  { %v2198_v37 = vmul.f32 %v2660_v16, %v2195_v23  ;;  %vm2203_vm6 = vweird.f32 %v2660_v16 }
0x1536   :  { %vm2204_vm12 = vmor %vm2202_vm7, %vm2203_vm6 }
0x1537   :  { %v2199_v24 = vsub.f32 1.0, %v2198_v37  ;;  %v2662_v32 = vpop.eup %2661 }
0x1539   :  { %v2200_v27 = vmul.f32 %v2660_v16, %v2199_v24 }
0x153b   :  { %v2201_v41 = vadd.f32 %v2660_v16, %v2200_v27 }
0x153d   :  { %v2205_v25 = vsel %vm2204_vm12, %v2660_v16, %v2201_v41 }
0x153e   :  { %v2210_v36 = vsel %vm2207_vm8, %v2209_v26, %v2205_v25 }
0x153f   :  { %v2227_v31 = vmul.f32 1.0614054, %v2210_v36 }
0x1541   :  { %v2229_v34 = vadd.f32 -1.4531521, %v2227_v31 }
0x1543   :  { %v2231_v30 = vmul.f32 %v2229_v34, %v2210_v36 }
0x1545   :  { %v2233_v14 = vadd.f32 1.4214138, %v2231_v30 }
0x1547   :  { %v2235_v47 = vmul.f32 %v2233_v14, %v2210_v36 }
0x1549   :  { %v2237_v22 = vadd.f32 -0.28449672, %v2235_v47 }
0x154b   :  { %v2239_v44 = vmul.f32 %v2237_v22, %v2210_v36 }
0x154d   :  { %v2241_v45 = vadd.f32 0.2548296, %v2239_v44 }
0x154f   :  { %v2243_v42 = vmul.f32 %v2241_v45, %v2210_v36 }
0x1551   :  { %v2253_v11 = vmul.f32 %v2662_v32, %v2243_v42  ;;  %v2330_v32 = vld [vmem:[%s3543_s18 + $0x18] sm:$0xff] }
0x1552   :  { %2356 = vmatpush.msrb.mxu0 %v2330_v32 }
0x1553   :  { %v2255_v48 = vsub.f32 1.0, %v2253_v11  ;;  %v2329_v11 = vld [vmem:[%s3543_s18 + $0x10] sm:$0xff] }
0x1554   :  { %2357 = vmatpush.msrb.mxu0 %v2329_v11 }
0x1555   :  { %v2259_v12 = vsub.f32 0.0, %v2255_v48 }
0x1557   :  { %v2261_v33 = vsel %vm2257_vm10, %v2255_v48, %v2259_v12  ;;  %v2328_v12 = vld [vmem:[%s3543_s18 + $0x8] sm:$0xff] }
0x1558   :  { %v2265_v59 = vadd.f32 1.0, %v2261_v33  ;;  %v2327_v33 = vld [vmem:[%s3543_s18] sm:$0xff]  ;;  %2358 = vmatpush.msrb.mxu0 %v2328_v12 }
0x155a   :  { %v2267_v63 = vmul.f32 %v2265_v59, %v2263_v58  ;;  %2359 = vmatpush.msrb.mxu0 %v2327_v33 }
0x155c   :  { %v2269_v0 = vadd.f32 %v2267_v63, %v3457_v13 }
0x155e   :  { %v2273_v49 = vsel %vm114_vm2, %v2269_v0, 0.0 }
0x155f   :  { %2274 = vadd.xlane.f32.xlu0 %v2273_v49 }
0x1564   :  { %v2186_v50 = vpop.f32.mrf.mxu3 }
0x1565   :  { %v2187_v3 = vadd.f32 %v2676_v1, %v2186_v50 }
0x1567   :  { %v2190_v60 = vmul.f32 0.70710677, %v2187_v3  ;;  %v2264_v27 = vmul.f32 0.5, %v2187_v3 }
0x1569   :  { %v2192_v4 = vand.u32 2147483647, %v2190_v60  ;;  %vm2258_vm15 = vcmp.ge.f32.partialorder %v2190_v60, 0.0 }
0x156b   :  { %v2194_v5 = vmul.f32 0.3275911, %v2192_v4  ;;  %v2246_v62 = vsub.f32 0.0, %v2192_v4 }
0x156d   :  { %v2196_v7 = vadd.f32 1.0, %v2194_v5  ;;  %v2248_v40 = vmul.f32 %v2246_v62, %v2192_v4 }
0x156f   :  { %2663 = vrcp.f32 %v2196_v7  ;;  %v2223_v54 = vand.u32 2147483648, %v2196_v7  ;;  %v2221_v13 = vand.u32 2147483647, %v2196_v7  ;;  %vm2217_vm11 = vweird.f32 %v2196_v7 }
0x1570   :  { %v2251_v10 = vmul.f32 1.442695, %v2248_v40  ;;  %v2333_v40 = vld [vmem:[%s3544_s20 + $0x8] sm:$0xff] }
0x1571   :  { %v2224_v61 = vor.u32 1.1754944e-38, %v2223_v54  ;;  %vm2222_vm14 = vcmp.eq.f32.partialorder %v2221_v13, 8.507059e+37  ;;  %2384 = vmatpush.msra.mxu0 %v2333_v40 }
0x1572   :  { %2665 = vpow2.f32 %v2251_v10 }
0x1575   :  { %v2664_v51 = vpop.eup %2663 }
0x1576   :  { %v2213_v52 = vmul.f32 %v2664_v51, %v2196_v7  ;;  %vm2218_vm9 = vweird.f32 %v2664_v51 }
0x1577   :  { %vm2219_vm13 = vmor %vm2217_vm11, %vm2218_vm9 }
0x1578   :  { %v2214_v53 = vsub.f32 1.0, %v2213_v52  ;;  %v2666_v23 = vpop.eup %2665 }
0x157a   :  { %v2215_v55 = vmul.f32 %v2664_v51, %v2214_v53 }
0x157c   :  { %v2216_v56 = vadd.f32 %v2664_v51, %v2215_v55  ;;  %v2527_v55 = vld [vmem:[%s3541_s17] ss:$0 sm:$0xff] }
0x157e   :  { %v2220_v28 = vsel %vm2219_vm13, %v2664_v51, %v2216_v56  ;;  %v2526_v51 = vld [vmem:[%s3593_s7] ss:$0 sm:$0xff] }
0x157f   :  { %v2225_v2 = vsel %vm2222_vm14, %v2224_v61, %v2220_v28 }
0x1580   :  { %v2228_v38 = vmul.f32 1.0614054, %v2225_v2 }
0x1582   :  { %v2230_v39 = vadd.f32 -1.4531521, %v2228_v38 }
0x1584   :  { %v2232_v9 = vmul.f32 %v2230_v39, %v2225_v2 }
0x1586   :  { %v2234_v35 = vadd.f32 1.4214138, %v2232_v9  ;;  %v2332_v9 = vld [vmem:[%s3544_s20] sm:$0xff] }
0x1587   :  { %2385 = vmatpush.msra.mxu0 %v2332_v9 }
0x1588   :  { %v2236_v17 = vmul.f32 %v2234_v35, %v2225_v2  ;;  %v2528_v35 = vld [vmem:[%s3542_s19] ss:$0 sm:$0xff] }
0x158a   :  { %v2238_v57 = vadd.f32 -0.28449672, %v2236_v17 }
0x158c   :  { %v2240_v18 = vmul.f32 %v2238_v57, %v2225_v2 }
0x158e   :  { %v2242_v19 = vadd.f32 0.2548296, %v2240_v18 }
0x1590   :  { %v2244_v21 = vmul.f32 %v2242_v19, %v2225_v2 }
0x1592   :  { %v2254_v16 = vmul.f32 %v2666_v23, %v2244_v21 }
0x1594   :  { %v2256_v37 = vsub.f32 1.0, %v2254_v16 }
0x1596   :  { %v2260_v24 = vsub.f32 0.0, %v2256_v37 }
0x1598   :  { %v2262_v20 = vsel %vm2258_vm15, %v2256_v37, %v2260_v24 }
0x1599   :  { %v2266_v29 = vadd.f32 1.0, %v2262_v20 }
0x159b   :  { %v2268_v41 = vmul.f32 %v2266_v29, %v2264_v27 }
0x159d   :  { %v2270_v26 = vadd.f32 %v2268_v41, %v3466_v8 }
0x159f   :  { %v2276_v25 = vsel %vm114_vm2, %v2270_v26, 0.0 }
0x15a0   :  { %2277 = vadd.xlane.f32.xlu1 %v2276_v25 }
0x15d2   :  { %v2275_v15 = vpop.xlane.xlu0 %2274 }
0x15d3   :  { %v2279_v36 = vmul.f32 %v2275_v15, %v2886_v46 }
0x15d5   :  { %v2281_v31 = vsub.f32 %v2269_v0, %v2279_v36 }
0x15d7   :  { %v2283_v34 = vmul.f32 %v2281_v31, %v2281_v31 }
0x15d9   :  { %v2285_v6 = vsel %vm114_vm2, %v2283_v34, 0.0 }
0x15da   :  { %2286 = vadd.xlane.f32.xlu2 %v2285_v6 }
0x1613   :  { %v2278_v30 = vpop.xlane.xlu1 %2277 }
0x1614   :  { %v2280_v14 = vmul.f32 %v2278_v30, %v2886_v46 }
0x1616   :  { %v2282_v43 = vsub.f32 %v2270_v26, %v2280_v14 }
0x1618   :  { %v2284_v47 = vmul.f32 %v2282_v43, %v2282_v43 }
0x161a   :  { %v2288_v22 = vsel %vm114_vm2, %v2284_v47, 0.0 }
0x161b   :  { %2289 = vadd.xlane.f32.xlu0 %v2288_v22 }
0x164d   :  { %v2287_v8 = vpop.xlane.xlu2 %2286 }
0x164e   :  { %v2291_v44 = vmul.f32 %v2287_v8, %v2886_v46 }
0x1650   :  { %v2293_v45 = vadd.f32 1e-05, %v2291_v44 }
0x1652   :  { %2667 = vrsqrt.f32 %v2293_v45  ;;  %vm2301_vm4 = vweird.f32 %v2293_v45 }
0x1658   :  { %v2668_v42 = vpop.eup %2667 }
0x1659   :  { %v2296_v48 = vmul.f32 %v2668_v42, %v2293_v45  ;;  %vm2302_vm3 = vweird.f32 %v2668_v42 }
0x165a   :  { %vm2303_vm5 = vmor %vm2301_vm4, %vm2302_vm3 }
0x165b   :  { %v2297_v58 = vmul.f32 %v2668_v42, %v2296_v48 }
0x165d   :  { %v2298_v0 = vmul.f32 0.5, %v2297_v58 }
0x165f   :  { %v2299_v50 = vsub.f32 1.5, %v2298_v0 }
0x1661   :  { %v2300_v1 = vmul.f32 %v2668_v42, %v2299_v50 }
0x1663   :  { %v2304_v4 = vsel %vm2303_vm5, %v2668_v42, %v2300_v1 }
0x1664   :  { %v2315_v52 = vmul.f32 %v2304_v4, %v2281_v31 }
0x1666   :  { %v2320_v54 = vmul.f32 %v2526_v51, %v2315_v52 }
0x1668   :  { %v2325_v28 = vadd.f32 %v2527_v55, %v2320_v54 }
0x166a   :  { %v2339_v2 = vrot.slane %v2325_v28, 7 }
0x168e   :  { %v2290_v59 = vpop.xlane.xlu0 %2289 }
0x168f   :  { %v2292_v63 = vmul.f32 %v2290_v59, %v2886_v46 }
0x1691   :  { %v2294_v49 = vadd.f32 1e-05, %v2292_v63 }
0x1693   :  { %2669 = vrsqrt.f32 %v2294_v49  ;;  %vm2311_vm7 = vweird.f32 %v2294_v49 }
0x1699   :  { %v2670_v3 = vpop.eup %2669 }
0x169a   :  { %v2306_v60 = vmul.f32 %v2670_v3, %v2294_v49  ;;  %vm2312_vm6 = vweird.f32 %v2670_v3 }
0x169b   :  { %vm2313_vm12 = vmor %vm2311_vm7, %vm2312_vm6 }
0x169c   :  { %v2307_v5 = vmul.f32 %v2670_v3, %v2306_v60 }
0x169e   :  { %v2308_v7 = vmul.f32 0.5, %v2307_v5 }
0x16a0   :  { %v2309_v53 = vsub.f32 1.5, %v2308_v7 }
0x16a2   :  { %v2310_v46 = vmul.f32 %v2670_v3, %v2309_v53 }
0x16a4   :  { %v2314_v13 = vsel %vm2313_vm12, %v2670_v3, %v2310_v46 }
0x16a5   :  { %v2316_v56 = vmul.f32 %v2314_v13, %v2282_v43 }
0x16a7   :  { %v2321_v61 = vmul.f32 %v2526_v51, %v2316_v56 }
0x16a9   :  { %v2326_v62 = vadd.f32 %v2527_v55, %v2321_v61 }
0x16ab   :  { %v2340_v38 = vrot.slane %v2326_v62, 6 }
0x16ad   :  { %v2341_v39 = vsel %vm149_vm1, %v2340_v38, %v2339_v2 }
0x16ae   :  { %2489 = vmatmul.msk.f32.vlgmr.msrb.gmra.mxu0 %vm114_vm2, %v2341_v39 }
0x172b   :  { %v2361_v10 = vpop.f32.mrf.mxu0 }
0x172c   :  { %v2362_v17 = vadd.f32 %v2528_v35, %v2361_v10 }
0x172e   :  { %vm2364_vm8 = vcmp.ge.f32.partialorder %v2362_v17, 0.0  ;;  %v2365_v57 = vmul.f32 0.01, %v2362_v17 }
0x1730   :  { %v2366_v18 = vsel %vm2364_vm8, %v2362_v17, %v2365_v57 }
0x1731   :  { %2490 = vmatmul.msk.f32.vlgmr.msra.gmra.mxu0 %vm80_vm0, %v2366_v18 }
0x17ae   :  { %v2387_v19 = vpop.f32.mrf.mxu0 }
0x17af   :  { %v2390_v21 = vmul.f32 1.1111112, %v2387_v19 }
0x17b1   :  { %2391 = vst [vmem:[%s3545_s21] sm:$0x3] %v2390_v21 }

// kernel: closed_call.41
= control target key start
LH: loop header
LB: loop body
LE: loop exit
PB: predicated region body
PF: predicated region fallthrough
CT: control target
= control target key end

     0   :  { %vm116_vm0 = vcmask 130048   ;;  %vm92_vm1 = vcmask 261120   ;;  %vm146_vm2 = vcmask 254976   ;;  %v2489_v15 = vmov 32.0   ;;  %s3659_s29 = smov 104   ;;  %s3611_s6 = inlined_call_operand.vmem [shape: f32[32,32], index: 6, kind: input, shape index: {}]   ;;  %s3612_s5 = inlined_call_operand.vmem [shape: f32[16,32], index: 5, kind: input, shape index: {}]   ;;  %s3613_s0 = inlined_call_operand.vmem [shape: f32[2,16], index: 0, kind: input, shape index: {}]   ;;  %s3614_s1 = inlined_call_operand.vmem [shape: f32[2,32], index: 1, kind: input, shape index: {}]   ;;  %s3615_s7 = inlined_call_operand.vmem [shape: f32[1,32], index: 7, kind: input, shape index: {}]   ;;  %s3616_s26 = inlined_call_operand.vmem [shape: f32[2,32], index: 26, kind: output, shape index: {1}]   ;;  %s3617_s11 = inlined_call_operand.vmem [shape: f32[1,128], index: 11, kind: input, shape index: {}]   ;;  %s3618_s10 = inlined_call_operand.vmem [shape: f32[32,128], index: 10, kind: input, shape index: {}]   ;;  %s3619_s2 = inlined_call_operand.vmem [shape: f32[2,2,12,32], index: 2, kind: input, shape index: {}]   ;;  %s3620_s8 = inlined_call_operand.vmem [shape: f32[2,32], index: 8, kind: input, shape index: {}]   ;;  %s3621_s9 = inlined_call_operand.vmem [shape: f32[2,32], index: 9, kind: input, shape index: {}]   ;;  %s3622_s3 = inlined_call_operand.vmem [shape: f32[2,2,12,64], index: 3, kind: input, shape index: {}]   ;;  %s3623_s27 = inlined_call_operand.vmem [shape: f32[2,2,32], index: 27, kind: output, shape index: {2}]   ;;  %s3624_s4 = inlined_call_operand.vmem [shape: f32[1,12], index: 4, kind: input, shape index: {}]   ;;  %s3625_s13 = inlined_call_operand.vmem [shape: f32[1,32], index: 13, kind: input, shape index: {}]   ;;  %s3626_s12 = inlined_call_operand.vmem [shape: f32[64,32], index: 12, kind: input, shape index: {}]   ;;  %s3627_s14 = inlined_call_operand.vmem [shape: f32[1,32], index: 14, kind: input, shape index: {}]   ;;  %s3628_s15 = inlined_call_operand.vmem [shape: f32[1,32], index: 15, kind: input, shape index: {}]   ;;  %s3629_s17 = inlined_call_operand.vmem [shape: f32[1,32], index: 17, kind: input, shape index: {}]   ;;  %s3630_s16 = inlined_call_operand.vmem [shape: f32[32,32], index: 16, kind: input, shape index: {}]   ;;  %s3631_s19 = inlined_call_operand.vmem [shape: f32[1,32], index: 19, kind: input, shape index: {}]   ;;  %s3632_s18 = inlined_call_operand.vmem [shape: f32[32,32], index: 18, kind: input, shape index: {}]   ;;  %s3633_s28 = inlined_call_operand.vmem [shape: f32[2,2,64], index: 28, kind: output, shape index: {3}]   ;;  %s3634_s20 = inlined_call_operand.vmem [shape: f32[1,32], index: 20, kind: input, shape index: {}]   ;;  %s3635_s21 = inlined_call_operand.vmem [shape: f32[1,32], index: 21, kind: input, shape index: {}]   ;;  %s3636_s23 = inlined_call_operand.vmem [shape: f32[1,16], index: 23, kind: input, shape index: {}]   ;;  %s3637_s22 = inlined_call_operand.vmem [shape: f32[32,16], index: 22, kind: input, shape index: {}]   ;;  %s3638_s24 = inlined_call_operand.vmem [shape: f32[16,128], index: 24, kind: input, shape index: {}]   ;;  %s3639_s25 = inlined_call_operand.vmem [shape: f32[2,128], index: 25, kind: output, shape index: {0}]  }
   0x1   :  { %3665 = sst [smem:[#allocation2_spill]] %s3611_s6  ;;  %vm262_vm7 = vcmask 64512   ;;  %vm324_vm9 = vcmask 57344   ;;  %vm331_vm10 = vcmask 90112   ;;  %vm376_vm11 = vcmask 1043456  }
   0x2   :  { %3666 = sst [smem:[#allocation3_spill]] %s3612_s5  ;;  %vm372_vm12 = vcmask 97280   ;;  %vm967_vm13 = vcmask 1041409   ;;  %vm993_vm14 = vcmask 392192   ;;  %vm998_vm15 = vcmask 523264  }
   0x3   :  { %3667 = sst [smem:[#allocation4_spill]] %s3613_s0 }
   0x4   :  { %3668 = sst [smem:[#allocation5_spill]] %s3614_s1 }
   0x5   :  { %3669 = sst [smem:[#allocation6_spill]] %s3615_s7  ;;  %s3655_s7 = smov 80  }
   0x6   :  { %3670 = sst [smem:[#allocation7_spill]] %s3616_s26 }
   0x7   :  { %3671 = sst [smem:[#allocation8_spill]] %s3617_s11  ;;  %s3653_s11 = smov 32  }
   0x8   :  { %3672 = sst [smem:[#allocation9_spill]] %s3618_s10  ;;  %s3651_s10 = smov 16  }
   0x9   :  { %3673 = sst [smem:[#allocation10_spill]] %s3619_s2 }
   0xa   :  { %3674 = sst [smem:[#allocation11_spill]] %s3620_s8  ;;  %s3663_s8 = smov 112  }
   0xb   :  { %3675 = sst [smem:[#allocation12_spill]] %s3621_s9 }
   0xc   :  { %3676 = sst [smem:[#allocation13_spill]] %s3622_s3 }
   0xd   :  { %3677 = sst [smem:[#allocation14_spill]] %s3623_s27 }
   0xe   :  { %s3678_s26 = sld [smem:[#allocation2_spill]] }
   0xf   :  { %s3679_s0 = sld [smem:[#allocation3_spill]] }
  0x10   :  { %s3680_s1 = sld [smem:[#allocation4_spill]] }
  0x11   :  { %s3681_s6 = sld [smem:[#allocation5_spill]] }
  0x12   :  { %s3682_s3 = sld [smem:[#allocation6_spill]] }
  0x13   :  { %s3683_s5 = sld [smem:[#allocation7_spill]] }
  0x14   :  { %v91_v0 = vld [vmem:[%s3678_s26 + $0x18] sm:$0xff]  ;;  %v90_v1 = vld [vmem:[%s3678_s26 + $0x10] sm:$0xff]  ;;  %v89_v4 = vld [vmem:[%s3678_s26 + $0x8] sm:$0xff]  ;;  %s3684_s2 = sld [smem:[#allocation9_spill]] }
  0x15   :  { %108 = vmatpush.msra.mxu0 %v91_v0  ;;  %v86_v2 = vld [vmem:[%s3679_s0 + $0x8] sm:$0xff]  ;;  %v85_v3 = vld [vmem:[%s3679_s0] sm:$0xff]  ;;  %s3686_s9 = sld [smem:[#allocation11_spill]] }
  0x16   :  { %134 = vmatpush.msra.mxu1 %v86_v2  ;;  %v84_v5 = vld [vmem:[%s3680_s1] sm:$0x3]  ;;  %s3687_s0 = sld [smem:[#allocation12_spill]]  ;;  %s3649_s1 = smov 64  }
  0x17   :  { %109 = vmatpush.msra.mxu0 %v90_v1  ;;  %v88_v6 = vld [vmem:[%s3678_s26] sm:$0xff]  ;;  %s2490_s26 = smov 120   ;;  %s3688_s27 = sld [smem:[#allocation8_spill]] }
  0x18   :  { %135 = vmatpush.msra.mxu1 %v85_v3  ;;  %v87_v7 = vld [vmem:[%s3681_s6] sm:$0x3]  ;;  %s3689_s30 = sld [smem:[#allocation13_spill]]  ;;  %s3661_s6 = smov 48  }
  0x19   :  { %110 = vmatpush.msra.mxu0 %v89_v4  ;;  %2215 = vmatmul.msk.f32.vlgmr.msra.gmra.mxu1 %vm116_vm0, %v84_v5  ;;  %v2348_v9 = vld [vmem:[%s3682_s3] ss:$0 sm:$0xff]  ;;  %s3685_s3 = sld [smem:[#allocation10_spill]] }
  0x1a   :  { %v2685_v27 = vld [vmem:[%s3684_s2 + $0x18] sm:$0xff]  ;;  %v2690_v28 = vld [vmem:[%s3684_s2 + $0x10] sm:$0xff]  ;;  %v2696_v29 = vld [vmem:[%s3684_s2 + $0x8] sm:$0xff] }
  0x1b   :  { %111 = vmatpush.msra.mxu0 %v88_v6  ;;  %228 = vmatpush.msra.mxu2 %v2685_v27  ;;  %v2702_v30 = vld [vmem:[%s3684_s2] sm:$0xff]  ;;  %s3657_s2 = smov 96  }
  0x1c   :  { %2214 = vmatmul.msk.f32.vlgmr.msra.gmra.mxu0 %vm92_vm1, %v87_v7  ;;  %v148_v43 = vld [vmem:[%s3686_s9] sm:$0x3] }
  0x1d   :  { %229 = vmatpush.msra.mxu2 %v2690_v28  ;;  %v149_v45 = vld [vmem:[%s3687_s0] sm:$0x3]  ;;  %v206_v46 = vperm.slane %v148_v43, 0 }
  0x1e   :  { %v208_v49 = vperm.slane %v149_v45, 0  ;;  %v2349_v52 = vld [vmem:[%s3688_s27] ss:$0 sm:$0xff]  ;;  %v2772_v63 = vld [vmem:[%s3689_s30 + $0x18] sm:$0xf]  ;;  %v2790_v4 = vld [vmem:[%s3689_s30 + $0x10] sm:$0xff] }
  0x1f   :  { %230 = vmatpush.msra.mxu2 %v2696_v29  ;;  %v253_v31 = vld [vmem:[%s3685_s3 + $0x18] sm:$0xf]  ;;  %v2713_v32 = vld [vmem:[%s3685_s3 + $0x10] sm:$0xff]  ;;  %v251_v36 = vld [vmem:[%s3685_s3 + $0x8] sm:$0xf] }
  0x20   :  { %466 = vrot.lane.b32.xlu1 %v253_v31, %s2490_s26  ;;  %464 = vrot.lane.b32.xlu2 %v2713_v32, %s2490_s26  ;;  %v250_v37 = vld [vmem:[%s3685_s3] sm:$0xff]  ;;  %v2798_v6 = vld [vmem:[%s3689_s30 + $0x8] sm:$0xf] }
  0x21   :  { %231 = vmatpush.msra.mxu2 %v2702_v30  ;;  %2217 = vmatpush.xpose.msk.msra.mxu3 %vm262_vm7, %v251_v36  ;;  %v2785_v3 = vld [vmem:[%s3689_s30] sm:$0xff] }
  0x22   :  { %2220 = vmatpush.xpose.msk.msrb.mxu1 %vm262_vm7, %v253_v31  ;;  %v2328_v5 = vpack.i.bf16 %v2785_v3, %v2790_v4  ;;  %2223 = vmatpush.msk.msrb.mxu0 %vm376_vm11, %v2798_v6 }
  0x23   :  { %2225 = vmatpush.msk.msrb.mxu2 %vm376_vm11, %v2772_v63 }
  0x24   :  { %395 = vmatpush.msrb.mxu0 %v2785_v3 }
  0x25   :  { %2218 = vmatpush.xpose.msk.msra.mxu3 %vm262_vm7, %v250_v37  ;;  %421 = vmatpush.msrb.mxu2 %v2790_v4 }
  0x26   :  { %2221 = vmatpush.xpose.msk.msrb.mxu1 %vm262_vm7, %v2713_v32 }
  0x28   :  { %433 = vrot.lane.b32.xlu1 %v251_v36, %s2490_s26  ;;  %431 = vrot.lane.b32.xlu2 %v250_v37, %s2490_s26 }
  0x30   :  { %648 = vrot.lane.b32.xlu1 %v253_v31, %s3663_s8  ;;  %646 = vrot.lane.b32.xlu2 %v2713_v32, %s3663_s8 }
  0x38   :  { %616 = vrot.lane.b32.xlu1 %v251_v36, %s3663_s8  ;;  %792 = vrot.lane.b32.xlu2 %v251_v36, %s3659_s29  ;;  %v2844_v36 = vld [vmem:[%s3624_s4] sm:$0x1] }
  0x40   :  { %614 = vrot.lane.b32.xlu1 %v250_v37, %s3663_s8 }
  0x7a   :  { %v465_v62 = vpop.permute.xlu2 %464 }
  0x82   :  { %v432_v2 = vpop.permute.xlu2 %431 }
  0x92   :  { %v467_v61 = vpop.permute.xlu1 %466 }
  0x93   :  { %2230 = vmatpush.xpose.msk.msra.mxu1 %vm262_vm7, %v467_v61 }
  0x96   :  { %v137_v8 = vpop.f32.mrf.mxu1 }
  0x97   :  { %2231 = vmatpush.xpose.msk.msra.mxu1 %vm262_vm7, %v465_v62 }
  0x99   :  { %v113_v10 = vpop.f32.mrf.mxu0 }
  0x9a   :  { %v138_v11 = vadd.f32 %v137_v8, %v113_v10  ;;  %v434_v1 = vpop.permute.xlu1 %433  ;;  %v647_v8 = vpop.permute.xlu2 %646 }
  0x9b   :  { %2227 = vmatpush.xpose.msk.msrb.mxu3 %vm262_vm7, %v434_v1 }
  0x9c   :  { %v144_v12 = vadd.f32 %v2348_v9, %v138_v11 }
  0x9e   :  { %2358 = vtanh.f32 %v144_v12 }
  0x9f   :  { %2360 = vrcp.f32 %v2489_v15  ;;  %2228 = vmatpush.xpose.msk.msrb.mxu3 %vm262_vm7, %v432_v2 }
  0xa2   :  { %v649_v7 = vpop.permute.xlu1 %648  ;;  %v793_v11 = vpop.permute.xlu2 %792 }
  0xa4   :  { %v2359_v13 = vpop.eup %2358 }
  0xa5   :  { %147 = vst.msk [vmem:[%s3683_s5] sm:$0x3] %vm146_vm2, %v2359_v13  ;;  %v177_v14 = vsel %vm146_vm2, %v2359_v13, 0.0  ;;  %v2361_v16 = vpop.eup %2360  ;;  %s3690_s5 = sld [smem:[#allocation14_spill]] }
  0xa6   :  { %178 = vadd.xlane.f32.xlu0 %v177_v14  ;;  %v181_v17 = vmul.f32 32.0, %v2361_v16  ;;  %vm185_vm3 = vweird.f32 %v2361_v16 }
  0xa8   :  { %v182_v18 = vsub.f32 1.0, %v181_v17 }
  0xaa   :  { %v183_v19 = vmul.f32 %v2361_v16, %v182_v18  ;;  %v617_v9 = vpop.permute.xlu1 %616 }
  0xac   :  { %v184_v20 = vadd.f32 %v2361_v16, %v183_v19 }
  0xae   :  { %v2678_v21 = vsel %vm185_vm3, %v2361_v16, %v184_v20 }
  0xb2   :  { %v615_v10 = vpop.permute.xlu1 %614 }
 0x119   :  { %v179_v22 = vpop.xlane.xlu0 %178 }
 0x11a   :  { %v187_v23 = vmul.f32 %v2678_v21, %v179_v22 }
 0x11c   :  { %v188_v24 = vsub.f32 %v2359_v13, %v187_v23 }
 0x11e   :  { %v189_v25 = vmul.f32 %v188_v24, %v188_v24 }
 0x120   :  { %v190_v26 = vsel %vm146_vm2, %v189_v25, 0.0 }
 0x121   :  { %191 = vadd.xlane.f32.xlu0 %v190_v26 }
 0x135   :  { %824 = vrot.lane.b32.xlu0 %v253_v31, %s3659_s29 }
 0x194   :  { %v192_v33 = vpop.xlane.xlu0 %191 }
 0x195   :  { %v193_v34 = vmul.f32 %v192_v33, %v2678_v21 }
 0x197   :  { %v194_v35 = vadd.f32 1e-05, %v193_v34 }
 0x199   :  { %2362 = vrsqrt.f32 %v194_v35  ;;  %vm201_vm5 = vweird.f32 %v194_v35 }
 0x19f   :  { %v2363_v38 = vpop.eup %2362 }
 0x1a0   :  { %v196_v39 = vmul.f32 %v2363_v38, %v194_v35  ;;  %vm202_vm4 = vweird.f32 %v2363_v38 }
 0x1a1   :  { %vm203_vm6 = vmor %vm201_vm5, %vm202_vm4 }
 0x1a2   :  { %v197_v40 = vmul.f32 %v2363_v38, %v196_v39 }
 0x1a4   :  { %v198_v41 = vmul.f32 0.5, %v197_v40 }
 0x1a6   :  { %v199_v42 = vsub.f32 1.5, %v198_v41 }
 0x1a7   :  { %v825_v18 = vpop.permute.xlu0 %824 }
 0x1a8   :  { %v200_v44 = vmul.f32 %v2363_v38, %v199_v42 }
 0x1aa   :  { %v204_v47 = vsel %vm203_vm6, %v2363_v38, %v200_v44 }
 0x1ab   :  { %v205_v48 = vmul.f32 %v204_v47, %v188_v24 }
 0x1ad   :  { %v207_v50 = vmul.f32 %v206_v46, %v205_v48 }
 0x1af   :  { %v2736_v51 = vadd.f32 %v208_v49, %v207_v50 }
 0x1b1   :  { %2216 = vmatmul.msk.f32.vlgmr.msra.gmra.mxu2 %vm92_vm1, %v2736_v51 }
 0x234   :  { %v233_v53 = vpop.f32.mrf.mxu2 }
 0x235   :  { %v234_v54 = vadd.f32 %v2349_v52, %v233_v53 }
 0x237   :  { %vm236_vm8 = vcmp.ge.f32.partialorder %v234_v54, 0.0  ;;  %v237_v55 = vmul.f32 0.01, %v234_v54 }
 0x239   :  { %v2751_v56 = vsel %vm236_vm8, %v234_v54, %v237_v55 }
 0x23a   :  { %v239_v57 = vmul.f32 0.35355338, %v2751_v56  ;;  %v261_v0 = vrot.slane %v2751_v56, 1 }
 0x23c   :  { %2219 = vmatmul.msk.f32.vlgmr.msra.gmra.mxu3 %vm262_vm7, %v239_v57  ;;  %v428_v58 = vperm.slane %v239_v57, 0  ;;  %v2755_v59 = vrot.slane %v239_v57, 1 }
 0x23d   :  { %2237 = vmatpush.xpose.msk.msra.mxu3 %vm262_vm7, %v617_v9 }
 0x23e   :  { %612 = vrot.lane.b32.xlu1 %v428_v58, %s3663_s8  ;;  %429 = vrot.lane.b32.xlu2 %v428_v58, %s2490_s26  ;;  %v461_v60 = vperm.slane %v2755_v59, 0 }
 0x23f   :  { %2222 = vmatmul.msk.f32.vlgmr.msrb.gmra.mxu1 %vm262_vm7, %v2755_v59 }
 0x240   :  { %462 = vrot.lane.b32.xlu0 %v461_v60, %s2490_s26  ;;  %2240 = vmatpush.xpose.msk.msrb.mxu1 %vm262_vm7, %v649_v7 }
 0x241   :  { %2238 = vmatpush.xpose.msk.msra.mxu3 %vm262_vm7, %v615_v10 }
 0x244   :  { %2241 = vmatpush.xpose.msk.msrb.mxu1 %vm262_vm7, %v647_v8 }
 0x246   :  { %790 = vrot.lane.b32.xlu1 %v250_v37, %s3659_s29  ;;  %241 = vrot.lane.b32.xlu2 %v2751_v56, %s3657_s2 }
 0x248   :  { %822 = vrot.lane.b32.xlu0 %v2713_v32, %s3659_s29 }
 0x24e   :  { %319 = vrot.lane.b32.xlu1 %v261_v0, %s3657_s2  ;;  %582 = vrot.lane.b32.xlu2 %v2772_v63, %s3663_s8 }
 0x250   :  { %788 = vrot.lane.b32.xlu0 %v428_v58, %s3659_s29 }
 0x256   :  { %728 = vrot.lane.b32.xlu2 %v2798_v6, %s3657_s2  ;;  %2329 = vrot.lane.b32.xlu1 %v2328_v5, %s3663_s8 }
 0x258   :  { %758 = vrot.lane.b32.xlu0 %v2772_v63, %s3657_s2 }
 0x25e   :  { %644 = vrot.lane.b32.xlu2 %v461_v60, %s3663_s8  ;;  %551 = vrot.lane.b32.xlu1 %v2798_v6, %s3663_s8 }
 0x266   :  { %820 = vrot.lane.b32.xlu2 %v461_v60, %s3659_s29  ;;  %756 = vrot.lane.b32.xlu1 %v2790_v4, %s3657_s2 }
 0x298   :  { %v430_v12 = vpop.permute.xlu2 %429 }
 0x299   :  { %2229 = vmatmul.msk.f32.vlgmr.msrb.gmra.mxu3 %vm262_vm7, %v430_v12 }
 0x29a   :  { %2247 = vmatpush.xpose.msk.msrb.mxu3 %vm262_vm7, %v793_v11 }
 0x2a0   :  { %v242_v13 = vpop.permute.xlu2 %241 }
 0x2a1   :  { %244 = vst.msk [vmem:[%s3690_s5] sm:$0x3] %vm146_vm2, %v242_v13  ;;  %v322_v14 = vmul.f32 %v242_v13, %v239_v57 }
 0x2a3   :  { %v496_v15 = vperm.slane %v322_v14, 0  ;;  %v325_v16 = vsel %vm324_vm9, %v322_v14, 0.0 }
 0x2a4   :  { %326 = vadd.xlane.f32.xlu2 %v325_v16 }
 0x2a5   :  { %498 = vrot.lane.b32.xlu1 %v496_v15, %s2490_s26  ;;  %676 = vrot.lane.b32.xlu0 %v496_v15, %s3663_s8 }
 0x2a8   :  { %v583_v17 = vpop.permute.xlu2 %582 }
 0x2a9   :  { %2235 = vmatpush.msk.msra.mxu2 %vm376_vm11, %v583_v17  ;;  %v2894_v17 = vperm.slane %v261_v0, 0 }
 0x2b0   :  { %v613_v19 = vpop.permute.xlu1 %612  ;;  %v2825_v20 = vpop.permute.xlu2 %728 }
 0x2b1   :  { %2239 = vmatmul.msk.f32.vlgmr.msra.gmra.mxu3 %vm262_vm7, %v613_v19 }
 0x2b2   :  { %v463_v22 = vpop.permute.xlu0 %462 }
 0x2b3   :  { %2232 = vmatmul.msk.f32.vlgmr.msra.gmra.mxu1 %vm262_vm7, %v463_v22 }
 0x2b4   :  { %2250 = vmatpush.xpose.msk.msra.mxu1 %vm262_vm7, %v825_v18 }
 0x2b8   :  { %v791_v23 = vpop.permute.xlu1 %790  ;;  %v645_v24 = vpop.permute.xlu2 %644 }
 0x2b9   :  { %2248 = vmatpush.xpose.msk.msrb.mxu3 %vm262_vm7, %v791_v23 }
 0x2ba   :  { %v823_v25 = vpop.permute.xlu0 %822 }
 0x2bb   :  { %2242 = vmatmul.msk.f32.vlgmr.msrb.gmra.mxu1 %vm262_vm7, %v645_v24 }
 0x2bc   :  { %852 = vrot.lane.b32.xlu2 %v496_v15, %s3659_s29  ;;  %2251 = vmatpush.xpose.msk.msra.mxu1 %vm262_vm7, %v823_v25  ;;  %v316_v37 = vpop.f32.mrf.mxu1 }
 0x2bd   :  { %v2847_v38 = vadd.f32 %v316_v37, %v2844_v36 }
 0x2bf   :  { %v335_v39 = vsel %vm331_vm10, %v2847_v38, -inf  ;;  %v288_v44 = vpop.f32.mrf.mxu3 }
 0x2c0   :  { %v320_v26 = vpop.permute.xlu1 %319  ;;  %v821_v32 = vpop.permute.xlu2 %820  ;;  %v2860_v45 = vadd.f32 %v288_v44, %v2844_v36 }
 0x2c1   :  { %v323_v31 = vmul.f32 %v320_v26, %v2755_v59 }
 0x2c2   :  { %v789_v33 = vpop.permute.xlu0 %788  ;;  %v332_v46 = vsel %vm331_vm10, %v2860_v45, -inf }
 0x2c3   :  { %v497_v34 = vperm.slane %v323_v31, 0  ;;  %2249 = vmatmul.msk.f32.vlgmr.msrb.gmra.mxu3 %vm262_vm7, %v789_v33  ;;  %2252 = vmatmul.msk.f32.vlgmr.msra.gmra.mxu1 %vm262_vm7, %v821_v32  ;;  %v328_v35 = vsel %vm324_vm9, %v323_v31, 0.0 }
 0x2c5   :  { %854 = vrot.lane.b32.xlu1 %v497_v34, %s3659_s29  ;;  %678 = vrot.lane.b32.xlu2 %v497_v34, %s3663_s8  ;;  %s3698_s8 = smov 64  }
 0x2c8   :  { %v2330_v40 = vpop.permute.xlu1 %2329 }
 0x2c9   :  { %v2332_v41 = vunpack.i.h.bf16 %v2330_v40  ;;  %v2331_v42 = vunpack.i.l.bf16 %v2330_v40 }
 0x2ca   :  { %v759_v48 = vpop.permute.xlu0 %758 }
 0x2cb   :  { %605 = vmatpush.msra.mxu2 %v2331_v42 }
 0x2cf   :  { %329 = vadd.xlane.f32.xlu0 %v328_v35 }
 0x2d0   :  { %v552_v43 = vpop.permute.xlu1 %551 }
 0x2d1   :  { %2233 = vmatpush.msk.msra.mxu0 %vm376_vm11, %v552_v43 }
 0x2d3   :  { %574 = vmatpush.msra.mxu0 %v2332_v41 }
 0x2d8   :  { %v757_v47 = vpop.permute.xlu1 %756 }
 0x2e3   :  { %500 = vrot.lane.b32.xlu0 %v497_v34, %s2490_s26 }
 0x2ef   :  { %336 = vmax.xlane.f32.xlu1 %v335_v39 }
 0x30d   :  { %333 = vmax.xlane.f32.xlu0 %v332_v46 }
 0x317   :  { %v499_v49 = vpop.permute.xlu1 %498  ;;  %v2864_v50 = vpop.xlane.xlu2 %326 }
 0x318   :  { %v504_v52 = vsel %vm324_vm9, %v499_v49, 0.0  ;;  %v677_v53 = vpop.permute.xlu0 %676 }
 0x319   :  { %505 = vadd.xlane.f32.xlu0 %v504_v52  ;;  %v682_v57 = vsel %vm324_vm9, %v677_v53, 0.0 }
 0x31c   :  { %v458_v5 = vpop.f32.mrf.mxu3 }
 0x31d   :  { %v2929_v34 = vadd.f32 %v458_v5, %v2844_v36 }
 0x31f   :  { %v853_v54 = vpop.permute.xlu2 %852  ;;  %v510_v35 = vsel %vm331_vm10, %v2929_v34, -inf }
 0x320   :  { %v858_v55 = vsel %vm324_vm9, %v853_v54, 0.0 }
 0x321   :  { %859 = vadd.xlane.f32.xlu1 %v858_v55  ;;  %683 = vadd.xlane.f32.xlu0 %v682_v57 }
 0x327   :  { %v679_v58 = vpop.permute.xlu2 %678 }
 0x328   :  { %v685_v59 = vsel %vm324_vm9, %v679_v58, 0.0 }
 0x329   :  { %686 = vadd.xlane.f32.xlu1 %v685_v59  ;;  %v2970_v59 = vperm.slane %v2751_v56, 0 }
 0x330   :  { %v491_v60 = vpop.f32.mrf.mxu1 }
 0x331   :  { %v2871_v61 = vadd.f32 %v491_v60, %v2844_v36 }
 0x333   :  { %v513_v62 = vsel %vm331_vm10, %v2871_v61, -inf }
 0x334   :  { %514 = vmax.xlane.f32.xlu1 %v513_v62  ;;  %v641_v10 = vpop.f32.mrf.mxu3 }
 0x335   :  { %v2879_v11 = vadd.f32 %v641_v10, %v2844_v36 }
 0x337   :  { %v855_v1 = vpop.permute.xlu1 %854  ;;  %v688_v12 = vsel %vm331_vm10, %v2879_v11, -inf }
 0x338   :  { %v861_v2 = vsel %vm324_vm9, %v855_v1, 0.0  ;;  %v673_v7 = vpop.f32.mrf.mxu1 }
 0x339   :  { %862 = vadd.xlane.f32.xlu0 %v861_v2  ;;  %v674_v8 = vadd.f32 %v673_v7, %v2844_v36 }
 0x33b   :  { %v691_v9 = vsel %vm331_vm10, %v674_v8, -inf }
 0x340   :  { %v849_v37 = vpop.f32.mrf.mxu1 }
 0x341   :  { %692 = vmax.xlane.f32.xlu0 %v691_v9  ;;  %v2936_v39 = vadd.f32 %v849_v37, %v2844_v36 }
 0x342   :  { %v2886_v15 = vpop.xlane.xlu0 %329 }
 0x343   :  { %v867_v40 = vsel %vm331_vm10, %v2936_v39, -inf }
 0x346   :  { %v817_v13 = vpop.f32.mrf.mxu3 }
 0x347   :  { %v2884_v14 = vadd.f32 %v817_v13, %v2844_v36 }
 0x349   :  { %689 = vmax.xlane.f32.xlu0 %v688_v12  ;;  %v864_v16 = vsel %vm331_vm10, %v2884_v14, -inf }
 0x34d   :  { %934 = vrot.lane.b32.xlu1 %v2772_v63, %s3655_s7 }
 0x351   :  { %865 = vmax.xlane.f32.xlu0 %v864_v16 }
 0x355   :  { %542 = vrot.lane.b32.xlu1 %v2894_v17, %s3661_s6  ;;  %v501_v18 = vpop.permute.xlu0 %500 }
 0x356   :  { %v507_v19 = vsel %vm324_vm9, %v501_v18, 0.0 }
 0x357   :  { %508 = vadd.xlane.f32.xlu2 %v507_v19 }
 0x362   :  { %v337_v22 = vpop.xlane.xlu1 %336 }
 0x363   :  { %v2900_v23 = vmax.f32 %v337_v22, %v2886_v15 }
 0x365   :  { %v341_v63 = vsub.f32 %v2847_v38, %v2900_v23  ;;  %v347_v24 = vsub.f32 %v2886_v15, %v2900_v23  ;;  %932 = vrot.lane.b32.xlu0 %v2790_v4, %s3655_s7 }
 0x367   :  { %v344_v0 = vmul.f32 1.442695, %v341_v63 }
 0x369   :  { %2364 = vpow2.f32 %v344_v0 }
 0x36d   :  { %720 = vrot.lane.b32.xlu0 %v2894_v17, %s3653_s11 }
 0x36f   :  { %v2910_v25 = vpop.eup %2364  ;;  %726 = vrot.lane.b32.xlu2 %v2785_v3, %s3657_s2 }
 0x370   :  { %2226 = vmatmul.msk.f32.vlgmr.msrb.gmra.mxu2 %vm372_vm12, %v2910_v25 }
 0x371   :  { %2245 = vmatpush.msk.msrb.mxu2 %vm376_vm11, %v759_v48 }
 0x373   :  { %781 = vmatpush.msrb.mxu2 %v757_v47 }
 0x380   :  { %v334_v26 = vpop.xlane.xlu0 %333 }
 0x381   :  { %v2918_v4 = vmax.f32 %v334_v26, %v2864_v50 }
 0x383   :  { %v340_v31 = vsub.f32 %v2860_v45, %v2918_v4 }
 0x385   :  { %v342_v32 = vmul.f32 1.442695, %v340_v31 }
 0x387   :  { %2366 = vpow2.f32 %v342_v32 }
 0x38c   :  { %v2933_v38 = vpop.xlane.xlu0 %505 }
 0x38d   :  { %v2922_v33 = vpop.eup %2366 }
 0x38e   :  { %2224 = vmatmul.msk.f32.vlgmr.msrb.gmra.mxu0 %vm372_vm12, %v2922_v33 }
 0x38f   :  { %2243 = vmatpush.msk.msrb.mxu0 %vm376_vm11, %v2825_v20 }
 0x394   :  { %v2940_v41 = vpop.xlane.xlu0 %683  ;;  %v2942_v20 = vpop.xlane.xlu1 %859 }
 0x398   :  { %511 = vmax.xlane.f32.xlu2 %v510_v35 }
 0x39c   :  { %v2946_v43 = vpop.xlane.xlu1 %686 }
 0x3a0   :  { %868 = vmax.xlane.f32.xlu2 %v867_v40 }
 0x3a7   :  { %v515_v62 = vpop.xlane.xlu1 %514 }
 0x3ac   :  { %v2944_v42 = vpop.xlane.xlu0 %862 }
 0x3b4   :  { %v693_v44 = vpop.xlane.xlu0 %692 }
 0x3b5   :  { %v2949_v45 = vmax.f32 %v693_v44, %v2946_v43 }
 0x3b7   :  { %v697_v46 = vsub.f32 %v674_v8, %v2949_v45  ;;  %v703_v36 = vsub.f32 %v2946_v43, %v2949_v45 }
 0x3b8   :  { %904 = vrot.lane.b32.xlu2 %v2798_v6, %s3655_s7 }
 0x3b9   :  { %v700_v47 = vmul.f32 1.442695, %v697_v46 }
 0x3bb   :  { %2368 = vpow2.f32 %v700_v47 }
 0x3bc   :  { %v690_v48 = vpop.xlane.xlu0 %689 }
 0x3bd   :  { %v2957_v49 = vmax.f32 %v690_v48, %v2940_v41 }
 0x3bf   :  { %v696_v52 = vsub.f32 %v2879_v11, %v2957_v49  ;;  %v702_v53 = vsub.f32 %v2940_v41, %v2957_v49  ;;  %v935_v12 = vpop.permute.xlu1 %934 }
 0x3c0   :  { %902 = vrot.lane.b32.xlu2 %v2785_v3, %s3655_s7 }
 0x3c1   :  { %v2369_v54 = vpop.eup %2368  ;;  %v698_v55 = vmul.f32 1.442695, %v696_v52 }
 0x3c2   :  { %v711_v57 = vsel %vm331_vm10, %v2369_v54, 0.0 }
 0x3c3   :  { %2370 = vpow2.f32 %v698_v55  ;;  %712 = vadd.xlane.f32.xlu0 %v711_v57 }
 0x3c4   :  { %v866_v6 = vpop.xlane.xlu0 %865 }
 0x3c5   :  { %v2967_v58 = vmax.f32 %v866_v6, %v2942_v20 }
 0x3c7   :  { %v878_v60 = vsub.f32 %v2942_v20, %v2967_v58  ;;  %v872_v26 = vsub.f32 %v2884_v14, %v2967_v58  ;;  %v352_v14 = vsel %vm331_vm10, %v2922_v33, 0.0  ;;  %v543_v47 = vpop.permute.xlu1 %542 }
 0x3c8   :  { %540 = vrot.lane.b32.xlu2 %v2970_v59, %s3661_s6 }
 0x3c9   :  { %v2371_v3 = vpop.eup %2370  ;;  %v874_v32 = vmul.f32 1.442695, %v872_v26 }
 0x3ca   :  { %v2976_v1 = vpop.xlane.xlu2 %508  ;;  %v708_v2 = vsel %vm331_vm10, %v2371_v3, 0.0 }
 0x3cb   :  { %v2980_v5 = vmax.f32 %v515_v62, %v2976_v1  ;;  %709 = vadd.xlane.f32.xlu0 %v708_v2 }
 0x3cd   :  { %v519_v7 = vsub.f32 %v2871_v61, %v2980_v5  ;;  %v525_v8 = vsub.f32 %v2976_v1, %v2980_v5  ;;  %v355_v61 = vsel %vm331_vm10, %v2910_v25, 0.0 }
 0x3cf   :  { %v522_v9 = vmul.f32 1.442695, %v519_v7  ;;  %v528_v48 = vmul.f32 1.442695, %v525_v8 }
 0x3d1   :  { %2372 = vpow2.f32 %v522_v9 }
 0x3d2   :  { %v727_v10 = vpop.permute.xlu2 %726 }
 0x3d3   :  { %751 = vmatpush.msrb.mxu0 %v727_v10 }
 0x3d7   :  { %v2373_v11 = vpop.eup %2372  ;;  %v933_v16 = vpop.permute.xlu0 %932 }
 0x3d8   :  { %2236 = vmatmul.msk.f32.vlgmr.msra.gmra.mxu2 %vm372_vm12, %v2373_v11  ;;  %v533_v13 = vsel %vm331_vm10, %v2373_v11, 0.0 }
 0x3d9   :  { %534 = vadd.xlane.f32.xlu1 %v533_v13  ;;  %2255 = vmatpush.msk.msra.mxu2 %vm376_vm11, %v935_v12 }
 0x3db   :  { %957 = vmatpush.msra.mxu2 %v933_v16 }
 0x3df   :  { %896 = vrot.lane.b32.xlu0 %v2894_v17, %s3651_s10  ;;  %v3025_v44 = vpop.permute.xlu0 %720 }
 0x3e0   :  { %2246 = vmatmul.msk.f32.vlgmr.msrb.gmra.mxu2 %vm372_vm12, %v2369_v54 }
 0x3e1   :  { %1197 = vmatpush.msrb.mxu2 %v2685_v27 }
 0x3e3   :  { %1198 = vmatpush.msrb.mxu2 %v2690_v28 }
 0x3e5   :  { %1199 = vmatpush.msrb.mxu2 %v2696_v29 }
 0x3e7   :  { %1200 = vmatpush.msrb.mxu2 %v2702_v30 }
 0x3f3   :  { %v423_v57 = vpop.f32.mrf.mxu2 }
 0x409   :  { %356 = vadd.xlane.f32.xlu0 %v355_v61 }
 0x40b   :  { %v512_v18 = vpop.xlane.xlu2 %511  ;;  %v397_v5 = vpop.f32.mrf.mxu0 }
 0x40c   :  { %v516_v19 = vmax.f32 %v512_v18, %v2933_v38 }
 0x40e   :  { %v518_v22 = vsub.f32 %v2929_v34, %v516_v19 }
 0x410   :  { %v520_v63 = vmul.f32 1.442695, %v518_v22  ;;  %v706_v22 = vmul.f32 1.442695, %v703_v36 }
 0x412   :  { %2374 = vpow2.f32 %v520_v63 }
 0x413   :  { %v869_v0 = vpop.xlane.xlu2 %868 }
 0x414   :  { %v3001_v27 = vmax.f32 %v869_v0, %v2944_v42 }
 0x416   :  { %v873_v28 = vsub.f32 %v2936_v39, %v3001_v27 }
 0x418   :  { %v2375_v29 = vpop.eup %2374  ;;  %v876_v30 = vmul.f32 1.442695, %v873_v28 }
 0x419   :  { %2234 = vmatmul.msk.f32.vlgmr.msra.gmra.mxu0 %vm372_vm12, %v2375_v29  ;;  %v530_v25 = vsel %vm331_vm10, %v2375_v29, 0.0 }
 0x41a   :  { %2376 = vpow2.f32 %v876_v30  ;;  %531 = vadd.xlane.f32.xlu2 %v530_v25  ;;  %v704_v30 = vmul.f32 1.442695, %v702_v53 }
 0x41b   :  { %v905_v31 = vpop.permute.xlu2 %904  ;;  %2378 = vpow2.f32 %v874_v32 }
 0x41c   :  { %2253 = vmatpush.msk.msra.mxu0 %vm376_vm11, %v905_v31  ;;  %2380 = vpow2.f32 %v528_v48 }
 0x420   :  { %v2377_v34 = vpop.eup %2376 }
 0x421   :  { %2244 = vmatmul.msk.f32.vlgmr.msrb.gmra.mxu0 %vm372_vm12, %v2371_v3  ;;  %2256 = vmatmul.msk.f32.vlgmr.msra.gmra.mxu2 %vm372_vm12, %v2377_v34  ;;  %v887_v35 = vsel %vm331_vm10, %v2377_v34, 0.0  ;;  %v2379_v39 = vpop.eup %2378  ;;  %v350_v3 = vmul.f32 1.442695, %v347_v24  ;;  %v346_v24 = vsub.f32 %v2864_v50, %v2918_v4 }
 0x422   :  { %888 = vadd.xlane.f32.xlu1 %v887_v35  ;;  %v884_v40 = vsel %vm331_vm10, %v2379_v39, 0.0 }
 0x423   :  { %v903_v37 = vpop.permute.xlu2 %902  ;;  %v348_v28 = vmul.f32 1.442695, %v346_v24 }
 0x424   :  { %927 = vmatpush.msra.mxu0 %v903_v37 }
 0x429   :  { %2254 = vmatmul.msk.f32.vlgmr.msra.gmra.mxu0 %vm372_vm12, %v2379_v39 }
 0x42b   :  { %v541_v55 = vpop.permute.xlu2 %540 }
 0x432   :  { %894 = vrot.lane.b32.xlu2 %v2970_v59, %s3651_s10 }
 0x436   :  { %v713_v46 = vpop.xlane.xlu0 %712 }
 0x43a   :  { %366 = vrot.lane.b32.xlu2 %v2894_v17, %s3649_s1  ;;  %v524_v17 = vsub.f32 %v2933_v38, %v516_v19 }
 0x43b   :  { %718 = vrot.lane.b32.xlu1 %v2970_v59, %s3653_s11 }
 0x43c   :  { %v526_v52 = vmul.f32 1.442695, %v524_v17 }
 0x43e   :  { %v710_v54 = vpop.xlane.xlu0 %709  ;;  %2382 = vpow2.f32 %v526_v52 }
 0x442   :  { %364 = vrot.lane.b32.xlu2 %v2970_v59, %s3649_s1  ;;  %v2381_v59 = vpop.eup %2380 }
 0x443   :  { %v547_v8 = vmul.f32 %v2381_v59, %v543_v47 }
 0x444   :  { %v2383_v1 = vpop.eup %2382 }
 0x445   :  { %v546_v12 = vmul.f32 %v2383_v1, %v541_v55 }
 0x44c   :  { %v535_v6 = vpop.xlane.xlu1 %534 }
 0x44d   :  { %v537_v33 = vadd.f32 %v2381_v59, %v535_v6 }
 0x44f   :  { %2384 = vrcp.f32 %v537_v33  ;;  %v880_v33 = vmul.f32 1.442695, %v878_v60 }
 0x450   :  { %2386 = vpow2.f32 %v350_v3 }
 0x451   :  { %v3031_v62 = vpop.permute.xlu0 %896 }
 0x455   :  { %v2385_v10 = vpop.eup %2384 }
 0x456   :  { %v2387_v15 = vpop.eup %2386 }
 0x45b   :  { %v607_v38 = vpop.f32.mrf.mxu2 }
 0x45c   :  { %v608_v9 = vadd.f32 %v607_v38, %v547_v8 }
 0x45e   :  { %v611_v13 = vmul.f32 %v2385_v10, %v608_v9 }
 0x460   :  { %v972_v63 = vrot.slane %v611_v13, 7 }
 0x463   :  { %v783_v41 = vpop.f32.mrf.mxu2 }
 0x465   :  { %353 = vadd.xlane.f32.xlu1 %v352_v14 }
 0x46b   :  { %885 = vadd.xlane.f32.xlu2 %v884_v40 }
 0x47c   :  { %v357_v11 = vpop.xlane.xlu0 %356 }
 0x47d   :  { %v359_v61 = vadd.f32 %v2387_v15, %v357_v11 }
 0x48d   :  { %v532_v2 = vpop.xlane.xlu2 %531 }
 0x48e   :  { %v536_v7 = vadd.f32 %v2383_v1, %v532_v2 }
 0x490   :  { %2388 = vrcp.f32 %v536_v7 }
 0x491   :  { %2390 = vrcp.f32 %v359_v61 }
 0x492   :  { %2392 = vpow2.f32 %v706_v22  ;;  %v3072_v22 = vld [vmem:[%s3626_s12 + $0x28] sm:$0xff] }
 0x493   :  { %2394 = vpow2.f32 %v348_v28  ;;  %v3090_v28 = vld [vmem:[%s3626_s12 + $0x10] sm:$0xff] }
 0x494   :  { %2396 = vpow2.f32 %v704_v30  ;;  %v3103_v30 = vld [vmem:[%s3626_s12] sm:$0xff] }
 0x495   :  { %v3033_v16 = vpop.permute.xlu2 %894  ;;  %v889_v32 = vpop.xlane.xlu1 %888 }
 0x496   :  { %v576_v23 = vpop.f32.mrf.mxu0  ;;  %v2389_v19 = vpop.eup %2388 }
 0x497   :  { %v577_v18 = vadd.f32 %v576_v23, %v546_v12  ;;  %v2391_v45 = vpop.eup %2390 }
 0x498   :  { %v2393_v36 = vpop.eup %2392 }
 0x499   :  { %v610_v0 = vmul.f32 %v2389_v19, %v577_v18  ;;  %v715_v26 = vadd.f32 %v2393_v36, %v713_v46  ;;  %v2395_v31 = vpop.eup %2394  ;;  %v725_v49 = vmul.f32 %v2393_v36, %v3025_v44  ;;  %v3061_v19 = vld [vmem:[%s3626_s12 + $0x38] sm:$0xff] }
 0x49a   :  { %v2397_v35 = vpop.eup %2396  ;;  %1010 = vmatpush.msra.mxu3 %v3061_v19 }
 0x49b   :  { %v973_v29 = vsel %vm967_vm13, %v972_v63, %v610_v0  ;;  %2398 = vrcp.f32 %v715_v26  ;;  %v714_v39 = vadd.f32 %v2397_v35, %v710_v54  ;;  %v784_v14 = vadd.f32 %v783_v41, %v725_v49  ;;  %v3078_v63 = vld [vmem:[%s3626_s12 + $0x20] sm:$0xff]  ;;  %v3084_v0 = vld [vmem:[%s3626_s12 + $0x18] sm:$0xff] }
 0x49c   :  { %974 = vrot.lane.b32.xlu2 %v973_v29, %s3651_s10  ;;  %v879_v54 = vsub.f32 %v2944_v42, %v3001_v27  ;;  %v3096_v29 = vld [vmem:[%s3626_s12 + $0x8] sm:$0xff]  ;;  %v2350_v26 = vld [vmem:[%s3625_s13] ss:$0 sm:$0xff] }
 0x49d   :  { %v367_v50 = vpop.permute.xlu2 %366  ;;  %2400 = vrcp.f32 %v714_v39 }
 0x49e   :  { %v371_v4 = vmul.f32 %v2387_v15, %v367_v50  ;;  %v753_v52 = vpop.f32.mrf.mxu0  ;;  %v882_v44 = vmul.f32 1.442695, %v879_v54 }
 0x4a0   :  { %v424_v43 = vadd.f32 %v423_v57, %v371_v4  ;;  %2402 = vpow2.f32 %v882_v44 }
 0x4a1   :  { %v2399_v40 = vpop.eup %2398  ;;  %2404 = vpow2.f32 %v880_v33 }
 0x4a2   :  { %v427_v25 = vmul.f32 %v2391_v45, %v424_v43  ;;  %v787_v48 = vmul.f32 %v2399_v40, %v784_v14 }
 0x4a3   :  { %v2401_v46 = vpop.eup %2400 }
 0x4a4   :  { %v979_v57 = vrot.slane %v787_v48, 7  ;;  %v959_v38 = vpop.f32.mrf.mxu2  ;;  %v966_v11 = vrot.slane %v427_v25, 7  ;;  %v3132_v48 = vld [vmem:[%s3630_s16 + $0x8] sm:$0xff] }
 0x4a5   :  { %v365_v34 = vpop.permute.xlu2 %364 }
 0x4a6   :  { %v370_v37 = vmul.f32 %v2395_v31, %v365_v34  ;;  %v2403_v3 = vpop.eup %2402  ;;  %v929_v58 = vpop.f32.mrf.mxu0 }
 0x4a7   :  { %v891_v2 = vadd.f32 %v2403_v3, %v889_v32  ;;  %v2405_v7 = vpop.eup %2404  ;;  %v901_v8 = vmul.f32 %v2403_v3, %v3031_v62  ;;  %v2351_v3 = vld [vmem:[%s3627_s14] ss:$0 sm:$0xff] }
 0x4a8   :  { %v398_v53 = vadd.f32 %v397_v5, %v370_v37  ;;  %v900_v60 = vmul.f32 %v2405_v7, %v3033_v16  ;;  %v3066_v16 = vld [vmem:[%s3626_s12 + $0x30] sm:$0xff] }
 0x4a9   :  { %v960_v42 = vadd.f32 %v959_v38, %v901_v8  ;;  %1011 = vmatpush.msra.mxu3 %v3066_v16  ;;  %v3155_v8 = vld [vmem:[%s3632_s18 + $0x18] sm:$0xff] }
 0x4aa   :  { %v930_v23 = vadd.f32 %v929_v58, %v900_v60  ;;  %1107 = vmatpush.msrb.mxu0 %v3155_v8 }
 0x4ab   :  { %1012 = vmatpush.msra.mxu3 %v3072_v22 }
 0x4ad   :  { %v719_v47 = vpop.permute.xlu1 %718  ;;  %1013 = vmatpush.msra.mxu3 %v3078_v63 }
 0x4ae   :  { %v724_v17 = vmul.f32 %v2397_v35, %v719_v47  ;;  %v3120_v47 = vld [vmem:[%s3630_s16 + $0x18] sm:$0xff] }
 0x4af   :  { %1014 = vmatpush.msra.mxu3 %v3084_v0  ;;  %1074 = vmatpush.msrb.mxu1 %v3120_v47 }
 0x4b0   :  { %v754_v55 = vadd.f32 %v753_v52, %v724_v17  ;;  %v3137_v17 = vld [vmem:[%s3630_s16] sm:$0xff] }
 0x4b1   :  { %1015 = vmatpush.msra.mxu3 %v3090_v28 }
 0x4b2   :  { %v786_v6 = vmul.f32 %v2401_v46, %v754_v55 }
 0x4b3   :  { %1016 = vmatpush.msra.mxu3 %v3096_v29 }
 0x4b4   :  { %v980_v59 = vsel %vm967_vm13, %v979_v57, %v786_v6 }
 0x4b5   :  { %981 = vrot.lane.b32.xlu2 %v980_v59, %s3653_s11  ;;  %1017 = vmatpush.msra.mxu3 %v3103_v30  ;;  %s3691_s11 = smov 112  }
 0x4d8   :  { %v354_v1 = vpop.xlane.xlu1 %353 }
 0x4d9   :  { %v358_v5 = vadd.f32 %v2395_v31, %v354_v1 }
 0x4db   :  { %2406 = vrcp.f32 %v358_v5  ;;  %v2352_v5 = vld [vmem:[%s3628_s15] ss:$0 sm:$0xff] }
 0x4dc   :  { %2408 = vrcp.f32 %v891_v2 }
 0x4de   :  { %v886_v9 = vpop.xlane.xlu2 %885 }
 0x4df   :  { %v890_v10 = vadd.f32 %v2405_v7, %v886_v9  ;;  %v3161_v9 = vld [vmem:[%s3632_s18 + $0x10] sm:$0xff] }
 0x4e0   :  { %1108 = vmatpush.msrb.mxu0 %v3161_v9 }
 0x4e1   :  { %v2407_v27 = vpop.eup %2406  ;;  %2410 = vrcp.f32 %v890_v10  ;;  %v3167_v10 = vld [vmem:[%s3632_s18 + $0x8] sm:$0xff] }
 0x4e2   :  { %v426_v12 = vmul.f32 %v2407_v27, %v398_v53  ;;  %v2409_v20 = vpop.eup %2408  ;;  %1109 = vmatpush.msrb.mxu0 %v3167_v10  ;;  %v2353_v27 = vld [vmem:[%s3629_s17] ss:$0 sm:$0xff] }
 0x4e3   :  { %v963_v13 = vmul.f32 %v2409_v20, %v960_v42  ;;  %v3173_v42 = vld [vmem:[%s3632_s18] sm:$0xff] }
 0x4e4   :  { %v968_v15 = vsel %vm967_vm13, %v966_v11, %v426_v12  ;;  %1110 = vmatpush.msrb.mxu0 %v3173_v42 }
 0x4e5   :  { %v986_v61 = vrot.slane %v963_v13, 7 }
 0x4e7   :  { %v2411_v24 = vpop.eup %2410 }
 0x4e8   :  { %v962_v18 = vmul.f32 %v2411_v24, %v930_v23  ;;  %v2354_v24 = vld [vmem:[%s3631_s19] ss:$0 sm:$0xff] }
 0x4ea   :  { %v987_v62 = vsel %vm967_vm13, %v986_v61, %v962_v18 }
 0x4eb   :  { %988 = vrot.lane.b32.xlu2 %v987_v62, %s3661_s6 }
 0x4f6   :  { %v975_v50 = vpop.permute.xlu2 %974 }
 0x4f7   :  { %v991_v43 = vsel %vm116_vm0, %v968_v15, %v975_v50 }
 0x50f   :  { %v982_v4 = vpop.permute.xlu2 %981 }
 0x510   :  { %v992_v45 = vsel %vm92_vm1, %v991_v43, %v982_v4 }
 0x545   :  { %v989_v36 = vpop.permute.xlu2 %988 }
 0x546   :  { %v994_v25 = vsel %vm993_vm14, %v992_v45, %v989_v36 }
 0x547   :  { %2257 = vmatmul.msk.f32.vlgmr.msra.gmra.mxu3 %vm998_vm15, %v994_v25 }
 0x5ca   :  { %v1019_v31 = vpop.f32.mrf.mxu3 }
 0x5cb   :  { %v1020_v32 = vadd.f32 %v2350_v26, %v1019_v31 }
 0x5cd   :  { %vm1022_vm3 = vcmp.ge.f32.partialorder %v1020_v32, 0.0  ;;  %v1023_v34 = vmul.f32 0.01, %v1020_v32 }
 0x5cf   :  { %v1024_v35 = vsel %vm1022_vm3, %v1020_v32, %v1023_v34 }
 0x5d0   :  { %v1025_v37 = vadd.f32 %v1024_v35, %v2736_v51  ;;  %v3126_v51 = vld [vmem:[%s3630_s16 + $0x10] sm:$0xff] }
 0x5d1   :  { %1075 = vmatpush.msrb.mxu1 %v3126_v51 }
 0x5d2   :  { %v1026_v39 = vsel %vm146_vm2, %v1025_v37, 0.0 }
 0x5d3   :  { %1027 = vadd.xlane.f32.xlu0 %v1026_v39  ;;  %1076 = vmatpush.msrb.mxu1 %v3132_v48 }
 0x5d5   :  { %1077 = vmatpush.msrb.mxu1 %v3137_v17 }
 0x646   :  { %v1028_v41 = vpop.xlane.xlu0 %1027 }
 0x647   :  { %v1029_v49 = vmul.f32 %v1028_v41, %v2678_v21 }
 0x649   :  { %v1030_v53 = vsub.f32 %v1025_v37, %v1029_v49 }
 0x64b   :  { %v1031_v14 = vmul.f32 %v1030_v53, %v1030_v53 }
 0x64d   :  { %v1032_v40 = vsel %vm146_vm2, %v1031_v14, 0.0 }
 0x64e   :  { %1033 = vadd.xlane.f32.xlu1 %v1032_v40 }
 0x6c1   :  { %v1034_v52 = vpop.xlane.xlu1 %1033 }
 0x6c2   :  { %v1035_v55 = vmul.f32 %v1034_v52, %v2678_v21 }
 0x6c4   :  { %v1036_v46 = vadd.f32 1e-05, %v1035_v55 }
 0x6c6   :  { %2412 = vrsqrt.f32 %v1036_v46  ;;  %vm1043_vm5 = vweird.f32 %v1036_v46 }
 0x6cc   :  { %v2413_v57 = vpop.eup %2412 }
 0x6cd   :  { %v1038_v6 = vmul.f32 %v2413_v57, %v1036_v46  ;;  %vm1044_vm4 = vweird.f32 %v2413_v57 }
 0x6ce   :  { %vm1045_vm6 = vmor %vm1043_vm5, %vm1044_vm4 }
 0x6cf   :  { %v1039_v59 = vmul.f32 %v2413_v57, %v1038_v6 }
 0x6d1   :  { %v1040_v54 = vmul.f32 0.5, %v1039_v59 }
 0x6d3   :  { %v1041_v44 = vsub.f32 1.5, %v1040_v54 }
 0x6d5   :  { %v1042_v33 = vmul.f32 %v2413_v57, %v1041_v44 }
 0x6d7   :  { %v1046_v1 = vsel %vm1045_vm6, %v2413_v57, %v1042_v33 }
 0x6d8   :  { %v1047_v2 = vmul.f32 %v1046_v1, %v1030_v53 }
 0x6da   :  { %v1051_v38 = vmul.f32 %v2351_v3, %v1047_v2 }
 0x6dc   :  { %v3148_v7 = vadd.f32 %v2352_v5, %v1051_v38 }
 0x6de   :  { %2258 = vmatmul.msk.f32.vlgmr.msrb.gmra.mxu1 %vm92_vm1, %v3148_v7 }
 0x75b   :  { %v1079_v11 = vpop.f32.mrf.mxu1 }
 0x75c   :  { %v1080_v12 = vadd.f32 %v2353_v27, %v1079_v11 }
 0x75e   :  { %v1083_v20 = vmul.f32 1.442695, %v1080_v12  ;;  %vm1082_vm8 = vcmp.gt.f32.partialorder %v1080_v12, 0.0 }
 0x760   :  { %2414 = vpow2.f32 %v1083_v20 }
 0x766   :  { %v2415_v58 = vpop.eup %2414 }
 0x767   :  { %v2259_v60 = vadd.f32 -1.0, %v2415_v58 }
 0x769   :  { %v1086_v13 = vmul.f32 1.6732632, %v2259_v60 }
 0x76b   :  { %v1087_v15 = vsel %vm1082_vm8, %v1080_v12, %v1086_v13 }
 0x76c   :  { %v1088_v23 = vmul.f32 1.050701, %v1087_v15 }
 0x76e   :  { %2260 = vmatmul.msk.f32.vlgmr.msrb.gmra.mxu0 %vm92_vm1, %v1088_v23  ;;  %v2265_v23 = vld [vmem:[%s3685_s3 + $0x28] sm:$0xf] }
 0x76f   :  { %2272 = vmatpush.xpose.msk.msra.mxu1 %vm262_vm7, %v2265_v23 }
 0x7eb   :  { %v1112_v61 = vpop.f32.mrf.mxu0 }
 0x7ec   :  { %v1113_v18 = vadd.f32 %v2354_v24, %v1112_v61  ;;  %v2267_v24 = vld [vmem:[%s3685_s3 + $0x38] sm:$0xf] }
 0x7ed   :  { %1433 = vrot.lane.b32.xlu1 %v2267_v24, %s2490_s26  ;;  %2275 = vmatpush.xpose.msk.msra.mxu0 %vm262_vm7, %v2267_v24 }
 0x7ee   :  { %v1115_v62 = vmul.f32 0.70710677, %v1113_v18  ;;  %v1152_v5 = vmul.f32 0.5, %v1113_v18  ;;  %v2266_v18 = vld [vmem:[%s3685_s3 + $0x30] sm:$0xff] }
 0x7f0   :  { %v1116_v50 = vand.u32 2147483647, %v1115_v62  ;;  %vm1149_vm8 = vcmp.ge.f32.partialorder %v1115_v62, 0.0  ;;  %v2264_v62 = vld [vmem:[%s3685_s3 + $0x20] sm:$0xff] }
 0x7f1   :  { %2273 = vmatpush.xpose.msk.msra.mxu1 %vm262_vm7, %v2264_v62  ;;  %2276 = vmatpush.xpose.msk.msra.mxu0 %vm262_vm7, %v2266_v18 }
 0x7f2   :  { %v1117_v4 = vmul.f32 0.3275911, %v1116_v50  ;;  %v1143_v39 = vsub.f32 0.0, %v1116_v50 }
 0x7f4   :  { %v1118_v43 = vadd.f32 1.0, %v1117_v4  ;;  %v1144_v14 = vmul.f32 %v1143_v39, %v1116_v50 }
 0x7f5   :  { %1398 = vrot.lane.b32.xlu1 %v2264_v62, %s2490_s26 }
 0x7f6   :  { %2416 = vrcp.f32 %v1118_v43  ;;  %v1130_v26 = vand.u32 2147483648, %v1118_v43  ;;  %v1128_v32 = vand.u32 2147483647, %v1118_v43  ;;  %vm1124_vm4 = vweird.f32 %v1118_v43 }
 0x7f7   :  { %v1145_v55 = vmul.f32 1.442695, %v1144_v14  ;;  %v2482_v14 = vld [vmem:[%s3688_s27] ss:$0 sm:$0xff]  ;;  %s3693_s27 = smov 96  }
 0x7f8   :  { %v1131_v35 = vor.u32 1.1754944e-38, %v1130_v26  ;;  %vm1129_vm6 = vcmp.eq.f32.partialorder %v1128_v32, 8.507059e+37 }
 0x7f9   :  { %2418 = vpow2.f32 %v1145_v55  ;;  %v3228_v55 = vld [vmem:[%s3689_s30 + $0x38] sm:$0xf] }
 0x7fa   :  { %2280 = vmatpush.msk.msrb.mxu3 %vm376_vm11, %v3228_v55 }
 0x7fc   :  { %v2417_v45 = vpop.eup %2416 }
 0x7fd   :  { %v1120_v36 = vmul.f32 %v2417_v45, %v1118_v43  ;;  %vm1125_vm3 = vweird.f32 %v2417_v45  ;;  %1615 = vrot.lane.b32.xlu1 %v2267_v24, %s3691_s11 }
 0x7fe   :  { %vm1126_vm5 = vmor %vm1124_vm4, %vm1125_vm3 }
 0x7ff   :  { %v1121_v25 = vsub.f32 1.0, %v1120_v36  ;;  %v2419_v44 = vpop.eup %2418 }
 0x801   :  { %v1122_v31 = vmul.f32 %v2417_v45, %v1121_v25 }
 0x803   :  { %v1123_v34 = vadd.f32 %v2417_v45, %v1122_v31  ;;  %v2480_v31 = vld [vmem:[%s3686_s9] sm:$0x3]  ;;  %s3697_s9 = smov 16  }
 0x804   :  { %v1178_v32 = vperm.slane %v2480_v31, 1 }
 0x805   :  { %v1127_v37 = vsel %vm1126_vm5, %v2417_v45, %v1123_v34  ;;  %1613 = vrot.lane.b32.xlu1 %v2266_v18, %s3691_s11 }
 0x806   :  { %v1132_v41 = vsel %vm1129_vm6, %v1131_v35, %v1127_v37  ;;  %v2481_v35 = vld [vmem:[%s3687_s0] sm:$0x3]  ;;  %s3692_s0 = smov 104  }
 0x807   :  { %v1134_v49 = vmul.f32 1.0614054, %v1132_v41  ;;  %v1180_v37 = vperm.slane %v2481_v35, 1 }
 0x809   :  { %v1135_v53 = vadd.f32 -1.4531521, %v1134_v49 }
 0x80b   :  { %v1136_v40 = vmul.f32 %v1135_v53, %v1132_v41 }
 0x80d   :  { %v1137_v52 = vadd.f32 1.4214138, %v1136_v40 }
 0x80f   :  { %v1138_v46 = vmul.f32 %v1137_v52, %v1132_v41 }
 0x811   :  { %v1139_v57 = vadd.f32 -0.28449672, %v1138_v46 }
 0x813   :  { %v1140_v6 = vmul.f32 %v1139_v57, %v1132_v41 }
 0x815   :  { %v1141_v59 = vadd.f32 0.2548296, %v1140_v6 }
 0x817   :  { %v1142_v54 = vmul.f32 %v1141_v59, %v1132_v41 }
 0x819   :  { %v1147_v33 = vmul.f32 %v2419_v44, %v1142_v54 }
 0x81b   :  { %v1148_v3 = vsub.f32 1.0, %v1147_v33 }
 0x81d   :  { %v1150_v1 = vsub.f32 0.0, %v1148_v3 }
 0x81f   :  { %v1151_v2 = vsel %vm1149_vm8, %v1148_v3, %v1150_v1 }
 0x820   :  { %v1153_v38 = vadd.f32 1.0, %v1151_v2 }
 0x822   :  { %v1154_v27 = vmul.f32 %v1153_v38, %v1152_v5 }
 0x824   :  { %v1155_v11 = vadd.f32 %v1154_v27, %v3148_v7 }
 0x826   :  { %v1156_v12 = vsel %vm146_vm2, %v1155_v11, 0.0 }
 0x827   :  { %1157 = vadd.xlane.f32.xlu2 %v1156_v12  ;;  %v2270_v12 = vld [vmem:[%s3689_s30 + $0x30] sm:$0xff] }
 0x828   :  { %1388 = vmatpush.msrb.mxu3 %v2270_v12 }
 0x85f   :  { %v1434_v33 = vpop.permute.xlu1 %1433 }
 0x860   :  { %2285 = vmatpush.xpose.msk.msrb.mxu0 %vm262_vm7, %v1434_v33 }
 0x867   :  { %v1399_v1 = vpop.permute.xlu1 %1398 }
 0x86f   :  { %v1616_v27 = vpop.permute.xlu1 %1615 }
 0x89a   :  { %v1158_v20 = vpop.xlane.xlu2 %1157 }
 0x89b   :  { %v1159_v58 = vmul.f32 %v1158_v20, %v2678_v21  ;;  %v3276_v20 = vld [vmem:[%s3689_s30 + $0x28] sm:$0xf] }
 0x89c   :  { %2278 = vmatpush.msk.msra.mxu2 %vm376_vm11, %v3276_v20 }
 0x89d   :  { %v1160_v60 = vsub.f32 %v1155_v11, %v1159_v58  ;;  %v2268_v11 = vld [vmem:[%s3689_s30 + $0x20] sm:$0xff] }
 0x89e   :  { %v3279_v58 = vpack.i.bf16 %v2268_v11, %v2270_v12  ;;  %1362 = vmatpush.msra.mxu2 %v2268_v11 }
 0x89f   :  { %v1161_v13 = vmul.f32 %v1160_v60, %v1160_v60 }
 0x8a1   :  { %v1162_v15 = vsel %vm146_vm2, %v1161_v13, 0.0 }
 0x8a2   :  { %1163 = vadd.xlane.f32.xlu0 %v1162_v15 }
 0x8b6   :  { %1400 = vrot.lane.b32.xlu0 %v2265_v23, %s2490_s26 }
 0x8be   :  { %1431 = vrot.lane.b32.xlu0 %v2266_v18, %s2490_s26 }
 0x8c6   :  { %1583 = vrot.lane.b32.xlu0 %v2265_v23, %s3691_s11 }
 0x8ce   :  { %1581 = vrot.lane.b32.xlu0 %v2264_v62, %s3691_s11 }
 0x915   :  { %v1164_v7 = vpop.xlane.xlu0 %1163 }
 0x916   :  { %v1165_v61 = vmul.f32 %v1164_v7, %v2678_v21 }
 0x918   :  { %v1166_v50 = vadd.f32 1e-05, %v1165_v61 }
 0x91a   :  { %2420 = vrsqrt.f32 %v1166_v50  ;;  %vm1173_vm4 = vweird.f32 %v1166_v50 }
 0x920   :  { %v2421_v4 = vpop.eup %2420 }
 0x921   :  { %v1168_v43 = vmul.f32 %v2421_v4, %v1166_v50  ;;  %vm1174_vm3 = vweird.f32 %v2421_v4 }
 0x922   :  { %vm1175_vm5 = vmor %vm1173_vm4, %vm1174_vm3 }
 0x923   :  { %v1169_v45 = vmul.f32 %v2421_v4, %v1168_v43 }
 0x925   :  { %v1170_v36 = vmul.f32 0.5, %v1169_v45 }
 0x927   :  { %v1171_v25 = vsub.f32 1.5, %v1170_v36 }
 0x928   :  { %v1401_v44 = vpop.permute.xlu0 %1400 }
 0x929   :  { %v1172_v26 = vmul.f32 %v2421_v4, %v1171_v25  ;;  %2282 = vmatpush.xpose.msk.msrb.mxu1 %vm262_vm7, %v1401_v44 }
 0x92b   :  { %v1176_v34 = vsel %vm1175_vm5, %v2421_v4, %v1172_v26 }
 0x92c   :  { %v1177_v39 = vmul.f32 %v1176_v34, %v1160_v60  ;;  %v1614_v60 = vpop.permute.xlu1 %1613 }
 0x92d   :  { %2283 = vmatpush.xpose.msk.msrb.mxu1 %vm262_vm7, %v1399_v1 }
 0x92e   :  { %v1179_v41 = vmul.f32 %v1178_v32, %v1177_v39 }
 0x930   :  { %v3218_v49 = vadd.f32 %v1180_v37, %v1179_v41  ;;  %v1432_v3 = vpop.permute.xlu0 %1431 }
 0x931   :  { %2286 = vmatpush.xpose.msk.msrb.mxu0 %vm262_vm7, %v1432_v3 }
 0x932   :  { %2261 = vmatmul.msk.f32.vlgmr.msrb.gmra.mxu2 %vm92_vm1, %v3218_v49 }
 0x938   :  { %v1584_v2 = vpop.permute.xlu0 %1583 }
 0x940   :  { %v1582_v38 = vpop.permute.xlu0 %1581 }
 0x9b5   :  { %v1202_v53 = vpop.f32.mrf.mxu2 }
 0x9b6   :  { %v1203_v40 = vadd.f32 %v2482_v14, %v1202_v53 }
 0x9b8   :  { %vm1205_vm6 = vcmp.ge.f32.partialorder %v1203_v40, 0.0  ;;  %v1206_v52 = vmul.f32 0.01, %v1203_v40 }
 0x9ba   :  { %v3230_v46 = vsel %vm1205_vm6, %v1203_v40, %v1206_v52 }
 0x9bb   :  { %v1208_v57 = vmul.f32 0.35355338, %v3230_v46  ;;  %v1233_v5 = vrot.slane %v3230_v46, 1 }
 0x9bd   :  { %2274 = vmatmul.msk.f32.vlgmr.msra.gmra.mxu1 %vm262_vm7, %v1208_v57  ;;  %v1395_v6 = vperm.slane %v1208_v57, 0  ;;  %v3236_v59 = vrot.slane %v1208_v57, 1 }
 0x9be   :  { %2292 = vmatpush.xpose.msk.msra.mxu1 %vm262_vm7, %v1584_v2 }
 0x9bf   :  { %1579 = vrot.lane.b32.xlu1 %v1395_v6, %s3691_s11  ;;  %1396 = vrot.lane.b32.xlu2 %v1395_v6, %s2490_s26  ;;  %v1428_v54 = vperm.slane %v3236_v59, 0 }
 0x9c0   :  { %2277 = vmatmul.msk.f32.vlgmr.msra.gmra.mxu0 %vm262_vm7, %v3236_v59 }
 0x9c1   :  { %1429 = vrot.lane.b32.xlu0 %v1428_v54, %s2490_s26  ;;  %2295 = vmatpush.xpose.msk.msra.mxu0 %vm262_vm7, %v1616_v27 }
 0x9c2   :  { %2293 = vmatpush.xpose.msk.msra.mxu1 %vm262_vm7, %v1582_v38 }
 0x9c5   :  { %2296 = vmatpush.xpose.msk.msra.mxu0 %vm262_vm7, %v1614_v60 }
 0x9c7   :  { %1759 = vrot.lane.b32.xlu2 %v2265_v23, %s3692_s0  ;;  %1611 = vrot.lane.b32.xlu1 %v1428_v54, %s3691_s11 }
 0x9c9   :  { %1791 = vrot.lane.b32.xlu0 %v2267_v24, %s3692_s0 }
 0x9cf   :  { %1787 = vrot.lane.b32.xlu2 %v1428_v54, %s3692_s0  ;;  %1757 = vrot.lane.b32.xlu1 %v2264_v62, %s3692_s0 }
 0x9d1   :  { %1789 = vrot.lane.b32.xlu0 %v2266_v18, %s3692_s0 }
 0x9d7   :  { %1210 = vrot.lane.b32.xlu2 %v3230_v46, %s3693_s27  ;;  %1290 = vrot.lane.b32.xlu1 %v1233_v5, %s3693_s27 }
 0x9d9   :  { %1755 = vrot.lane.b32.xlu0 %v1395_v6, %s3692_s0 }
 0x9df   :  { %1549 = vrot.lane.b32.xlu2 %v3228_v55, %s3691_s11  ;;  %2334 = vrot.lane.b32.xlu1 %v3279_v58, %s3691_s11 }
 0x9e1   :  { %1518 = vrot.lane.b32.xlu0 %v3276_v20, %s3691_s11 }
 0x9e7   :  { %1725 = vrot.lane.b32.xlu2 %v3228_v55, %s3693_s27  ;;  %1695 = vrot.lane.b32.xlu1 %v3276_v20, %s3693_s27 }
 0x9e9   :  { %2339 = vrot.lane.b32.xlu0 %v3279_v58, %s3693_s27 }
 0xa19   :  { %v1397_v13 = vpop.permute.xlu2 %1396 }
 0xa1a   :  { %2284 = vmatmul.msk.f32.vlgmr.msrb.gmra.mxu1 %vm262_vm7, %v1397_v13 }
 0xa21   :  { %v1760_v15 = vpop.permute.xlu2 %1759 }
 0xa22   :  { %2302 = vmatpush.xpose.msk.msrb.mxu1 %vm262_vm7, %v1760_v15 }
 0xa29   :  { %v1788_v23 = vpop.permute.xlu2 %1787 }
 0xa31   :  { %v1211_v24 = vpop.permute.xlu2 %1210  ;;  %v1580_v7 = vpop.permute.xlu1 %1579 }
 0xa32   :  { %2262 = vst.msk [vmem:[%s3690_s5 + $0x2] sm:$0x3] %vm146_vm2, %v1211_v24  ;;  %v1293_v61 = vmul.f32 %v1211_v24, %v1208_v57  ;;  %2294 = vmatmul.msk.f32.vlgmr.msra.gmra.mxu1 %vm262_vm7, %v1580_v7 }
 0xa33   :  { %v1430_v18 = vpop.permute.xlu0 %1429 }
 0xa34   :  { %v1463_v62 = vperm.slane %v1293_v61, 0  ;;  %2287 = vmatmul.msk.f32.vlgmr.msrb.gmra.mxu0 %vm262_vm7, %v1430_v18  ;;  %v1295_v50 = vsel %vm324_vm9, %v1293_v61, 0.0  ;;  %v3379_v61 = vperm.slane %v1233_v5, 0 }
 0xa35   :  { %1296 = vadd.xlane.f32.xlu2 %v1295_v50  ;;  %v3385_v50 = vperm.slane %v3230_v46, 0 }
 0xa36   :  { %1465 = vrot.lane.b32.xlu1 %v1463_v62, %s2490_s26  ;;  %1643 = vrot.lane.b32.xlu0 %v1463_v62, %s3691_s11 }
 0xa39   :  { %v1612_v4 = vpop.permute.xlu1 %1611 }
 0xa3b   :  { %v1792_v43 = vpop.permute.xlu0 %1791 }
 0xa3c   :  { %2297 = vmatmul.msk.f32.vlgmr.msra.gmra.mxu0 %vm262_vm7, %v1612_v4 }
 0xa3d   :  { %2305 = vmatpush.xpose.msk.msrb.mxu0 %vm262_vm7, %v1792_v43 }
 0xa41   :  { %v1758_v45 = vpop.permute.xlu1 %1757 }
 0xa42   :  { %2303 = vmatpush.xpose.msk.msrb.mxu1 %vm262_vm7, %v1758_v45 }
 0xa43   :  { %v1790_v36 = vpop.permute.xlu0 %1789 }
 0xa44   :  { %2306 = vmatpush.xpose.msk.msrb.mxu0 %vm262_vm7, %v1790_v36 }
 0xa46   :  { %1971 = vmatpush.msra.mxu1 %v3061_v19 }
 0xa47   :  { %2307 = vmatmul.msk.f32.vlgmr.msrb.gmra.mxu0 %vm262_vm7, %v1788_v23 }
 0xa48   :  { %1972 = vmatpush.msra.mxu1 %v3066_v16  ;;  %2026 = vmatpush.msra.mxu0 %v3120_v47  ;;  %v1550_v16 = vpop.permute.xlu2 %1549 }
 0xa49   :  { %v1291_v25 = vpop.permute.xlu1 %1290  ;;  %2290 = vmatpush.msk.msra.mxu3 %vm376_vm11, %v1550_v16 }
 0xa4a   :  { %1973 = vmatpush.msra.mxu1 %v3072_v22  ;;  %2027 = vmatpush.msra.mxu0 %v3126_v51  ;;  %v1294_v26 = vmul.f32 %v1291_v25, %v3236_v59 }
 0xa4b   :  { %v1756_v19 = vpop.permute.xlu0 %1755 }
 0xa4c   :  { %1974 = vmatpush.msra.mxu1 %v3078_v63  ;;  %2028 = vmatpush.msra.mxu0 %v3132_v48  ;;  %v1464_v31 = vperm.slane %v1294_v26, 0  ;;  %v1298_v22 = vsel %vm324_vm9, %v1294_v26, 0.0  ;;  %v1287_v63 = vpop.f32.mrf.mxu0 }
 0xa4d   :  { %2304 = vmatmul.msk.f32.vlgmr.msrb.gmra.mxu1 %vm262_vm7, %v1756_v19  ;;  %1819 = vrot.lane.b32.xlu2 %v1463_v62, %s3692_s0 }
 0xa4e   :  { %1975 = vmatpush.msra.mxu1 %v3084_v0  ;;  %2029 = vmatpush.msra.mxu0 %v3137_v17  ;;  %v3330_v0 = vld [vmem:[%s3624_s4] sm:$0x1]  ;;  %s3694_s4 = smov 80  }
 0xa4f   :  { %1821 = vrot.lane.b32.xlu1 %v1464_v31, %s3692_s0 }
 0xa50   :  { %1976 = vmatpush.msra.mxu1 %v3090_v28  ;;  %v3333_v28 = vadd.f32 %v3330_v0, %v1287_v63  ;;  %v1726_v39 = vpop.permute.xlu2 %1725 }
 0xa51   :  { %v2335_v51 = vpop.permute.xlu1 %2334 }
 0xa52   :  { %1977 = vmatpush.msra.mxu1 %v3096_v29  ;;  %v1259_v29 = vpop.f32.mrf.mxu1  ;;  %v2337_v17 = vunpack.i.h.bf16 %v2335_v51  ;;  %v2336_v32 = vunpack.i.l.bf16 %v2335_v51 }
 0xa53   :  { %v1519_v47 = vpop.permute.xlu0 %1518  ;;  %v3339_v48 = vadd.f32 %v3330_v0, %v1259_v29 }
 0xa54   :  { %1978 = vmatpush.msra.mxu1 %v3103_v30  ;;  %v1304_v30 = vsel %vm331_vm10, %v3333_v28, -inf  ;;  %2288 = vmatpush.msk.msrb.mxu2 %vm376_vm11, %v1519_v47 }
 0xa55   :  { %1645 = vrot.lane.b32.xlu2 %v1464_v31, %s3691_s11  ;;  %1572 = vmatpush.msra.mxu3 %v2336_v32  ;;  %v1301_v34 = vsel %vm331_vm10, %v3339_v48, -inf  ;;  %s3696_s11 = smov 32  }
 0xa56   :  { %1541 = vmatpush.msrb.mxu2 %v2337_v17 }
 0xa59   :  { %v3346_v37 = vpop.permute.xlu1 %1695 }
 0xa5b   :  { %v3344_v35 = vpop.permute.xlu0 %2339 }
 0xa5c   :  { %v2342_v51 = vunpack.i.h.bf16 %v3344_v35 }
 0xa60   :  { %1299 = vadd.xlane.f32.xlu0 %v1298_v22 }
 0xa74   :  { %1467 = vrot.lane.b32.xlu0 %v1464_v31, %s2490_s26  ;;  %s3695_s26 = smov 48  }
 0xa79   :  { %1305 = vmax.xlane.f32.xlu1 %v1304_v30 }
 0xa7e   :  { %1302 = vmax.xlane.f32.xlu2 %v1301_v34 }
 0xa97   :  { %v1425_v3 = vpop.f32.mrf.mxu1 }
 0xa98   :  { %v3401_v26 = vadd.f32 %v3330_v0, %v1425_v3 }
 0xa9a   :  { %v1477_v16 = vsel %vm331_vm10, %v3401_v26, -inf }
 0xaa8   :  { %v3348_v41 = vpop.xlane.xlu2 %1296  ;;  %v1644_v53 = vpop.permute.xlu0 %1643 }
 0xaa9   :  { %v1466_v14 = vpop.permute.xlu1 %1465  ;;  %v1649_v40 = vsel %vm324_vm9, %v1644_v53, 0.0 }
 0xaaa   :  { %1650 = vadd.xlane.f32.xlu0 %v1649_v40  ;;  %v1471_v52 = vsel %vm324_vm9, %v1466_v14, 0.0 }
 0xaab   :  { %1472 = vadd.xlane.f32.xlu2 %v1471_v52 }
 0xaaf   :  { %v1608_v11 = vpop.f32.mrf.mxu1 }
 0xab0   :  { %v1820_v57 = vpop.permute.xlu2 %1819  ;;  %v1609_v60 = vadd.f32 %v3330_v0, %v1608_v11 }
 0xab1   :  { %v1458_v6 = vpop.f32.mrf.mxu0  ;;  %v1825_v59 = vsel %vm324_vm9, %v1820_v57, 0.0 }
 0xab2   :  { %1826 = vadd.xlane.f32.xlu1 %v1825_v59  ;;  %v3360_v38 = vadd.f32 %v3330_v0, %v1458_v6  ;;  %v1655_v23 = vsel %vm331_vm10, %v1609_v60, -inf }
 0xab4   :  { %v1480_v27 = vsel %vm331_vm10, %v3360_v38, -inf }
 0xab8   :  { %v1646_v54 = vpop.permute.xlu2 %1645 }
 0xab9   :  { %v1640_v44 = vpop.f32.mrf.mxu0  ;;  %v1652_v33 = vsel %vm324_vm9, %v1646_v54, 0.0 }
 0xaba   :  { %v3355_v1 = vadd.f32 %v3330_v0, %v1640_v44  ;;  %1653 = vadd.xlane.f32.xlu1 %v1652_v33 }
 0xabc   :  { %v1658_v2 = vsel %vm331_vm10, %v3355_v1, -inf }
 0xabd   :  { %1659 = vmax.xlane.f32.xlu2 %v1658_v2 }
 0xac1   :  { %v1822_v7 = vpop.permute.xlu1 %1821 }
 0xac2   :  { %1481 = vmax.xlane.f32.xlu1 %v1480_v27  ;;  %v1828_v43 = vsel %vm324_vm9, %v1822_v7, 0.0 }
 0xac4   :  { %v1816_v12 = vpop.f32.mrf.mxu0 }
 0xac5   :  { %v3366_v13 = vadd.f32 %v3330_v0, %v1816_v12 }
 0xac7   :  { %v1834_v15 = vsel %vm331_vm10, %v3366_v13, -inf }
 0xac8   :  { %1835 = vmax.xlane.f32.xlu2 %v1834_v15 }
 0xaca   :  { %1656 = vmax.xlane.f32.xlu1 %v1655_v23  ;;  %v1784_v63 = vpop.f32.mrf.mxu1 }
 0xacb   :  { %v3414_v29 = vadd.f32 %v3330_v0, %v1784_v63 }
 0xacd   :  { %v1831_v47 = vsel %vm331_vm10, %v3414_v29, -inf }
 0xad3   :  { %v3371_v24 = vpop.xlane.xlu0 %1299 }
 0xae0   :  { %1901 = vrot.lane.b32.xlu2 %v3228_v55, %s3694_s4 }
 0xae3   :  { %2344 = vrot.lane.b32.xlu1 %v3279_v58, %s3694_s4 }
 0xae6   :  { %v1468_v18 = vpop.permute.xlu0 %1467 }
 0xae7   :  { %v1474_v62 = vsel %vm324_vm9, %v1468_v18, 0.0  ;;  %vm248_vm9 = vcmask 517120  }
 0xae8   :  { %1475 = vadd.xlane.f32.xlu0 %v1474_v62  ;;  %1509 = vrot.lane.b32.xlu2 %v3379_v61, %s3695_s26 }
 0xaeb   :  { %1507 = vrot.lane.b32.xlu1 %v3385_v50, %s3695_s26 }
 0xaec   :  { %v1306_v55 = vpop.xlane.xlu1 %1305 }
 0xaed   :  { %v3390_v58 = vmax.f32 %v1306_v55, %v3371_v24 }
 0xaef   :  { %v1310_v5 = vsub.f32 %v3333_v28, %v3390_v58  ;;  %v1316_v4 = vsub.f32 %v3371_v24, %v3390_v58  ;;  %v2341_v28 = vunpack.i.l.bf16 %v3344_v35 }
 0xaf0   :  { %1829 = vadd.xlane.f32.xlu0 %v1828_v43 }
 0xaf1   :  { %v1313_v45 = vmul.f32 1.442695, %v1310_v5  ;;  %v1303_v36 = vpop.xlane.xlu2 %1302 }
 0xaf2   :  { %v3398_v25 = vmax.f32 %v1303_v36, %v3348_v41 }
 0xaf3   :  { %2422 = vpow2.f32 %v1313_v45 }
 0xaf4   :  { %v1309_v19 = vsub.f32 %v3339_v48, %v3398_v25 }
 0xaf6   :  { %v1311_v31 = vmul.f32 1.442695, %v1309_v19 }
 0xaf8   :  { %2424 = vpow2.f32 %v1311_v31  ;;  %1478 = vmax.xlane.f32.xlu0 %v1477_v16 }
 0xaf9   :  { %v3407_v22 = vpop.eup %2422 }
 0xafa   :  { %2281 = vmatmul.msk.f32.vlgmr.msrb.gmra.mxu3 %vm372_vm12, %v3407_v22 }
 0xafb   :  { %2300 = vmatpush.msk.msrb.mxu3 %vm376_vm11, %v1726_v39 }
 0xafd   :  { %1748 = vmatpush.msrb.mxu3 %v2341_v28 }
 0xafe   :  { %v3416_v30 = vpop.eup %2424 }
 0xaff   :  { %2279 = vmatmul.msk.f32.vlgmr.msra.gmra.mxu2 %vm372_vm12, %v3416_v30 }
 0xb00   :  { %2298 = vmatpush.msk.msra.mxu2 %vm376_vm11, %v3346_v37  ;;  %1832 = vmax.xlane.f32.xlu0 %v1831_v47 }
 0xb02   :  { %1718 = vmatpush.msra.mxu2 %v2342_v51 }
 0xb14   :  { %1871 = vrot.lane.b32.xlu0 %v3276_v20, %s3694_s4 }
 0xb1c   :  { %1687 = vrot.lane.b32.xlu0 %v3379_v61, %s3696_s11 }
 0xb1d   :  { %v3440_v39 = vpop.xlane.xlu0 %1650 }
 0xb1e   :  { %v3431_v48 = vpop.xlane.xlu2 %1472 }
 0xb25   :  { %v3429_v0 = vpop.xlane.xlu1 %1826 }
 0xb2d   :  { %v3433_v17 = vpop.xlane.xlu1 %1653 }
 0xb30   :  { %v1660_v32 = vpop.xlane.xlu2 %1659 }
 0xb31   :  { %v3436_v34 = vmax.f32 %v1660_v32, %v3433_v17 }
 0xb33   :  { %v1670_v35 = vsub.f32 %v3433_v17, %v3436_v34  ;;  %v1664_v52 = vsub.f32 %v3355_v1, %v3436_v34 }
 0xb35   :  { %v1482_v37 = vpop.xlane.xlu1 %1481  ;;  %v1667_v6 = vmul.f32 1.442695, %v1664_v52 }
 0xb3b   :  { %v1836_v11 = vpop.xlane.xlu2 %1835 }
 0xb3d   :  { %v1657_v20 = vpop.xlane.xlu1 %1656 }
 0xb3e   :  { %v3443_v53 = vmax.f32 %v1657_v20, %v3440_v39 }
 0xb40   :  { %v1663_v14 = vsub.f32 %v1609_v60, %v3443_v53  ;;  %v1669_v40 = vsub.f32 %v3440_v39, %v3443_v53 }
 0xb42   :  { %v1665_v57 = vmul.f32 1.442695, %v1663_v14 }
 0xb43   :  { %v1902_v5 = vpop.permute.xlu2 %1901 }
 0xb44   :  { %2426 = vpow2.f32 %v1665_v57 }
 0xb45   :  { %2428 = vpow2.f32 %v1667_v6 }
 0xb4a   :  { %v2427_v59 = vpop.eup %2426 }
 0xb4b   :  { %v1675_v54 = vsel %vm331_vm10, %v2427_v59, 0.0  ;;  %v2429_v44 = vpop.eup %2428 }
 0xb4c   :  { %1676 = vadd.xlane.f32.xlu0 %v1675_v54  ;;  %v1678_v33 = vsel %vm331_vm10, %v2429_v44, 0.0 }
 0xb54   :  { %1679 = vadd.xlane.f32.xlu0 %v1678_v33 }
 0xb55   :  { %v2345_v18 = vpop.permute.xlu1 %2344 }
 0xb56   :  { %v2347_v14 = vunpack.i.h.bf16 %v2345_v18 }
 0xb5b   :  { %v3452_v3 = vpop.xlane.xlu0 %1475 }
 0xb5c   :  { %v3455_v2 = vmax.f32 %v1482_v37, %v3452_v3 }
 0xb5e   :  { %v1486_v1 = vsub.f32 %v3360_v38, %v3455_v2  ;;  %v1492_v27 = vsub.f32 %v3452_v3, %v3455_v2  ;;  %v2346_v38 = vunpack.i.l.bf16 %v2345_v18 }
 0xb60   :  { %v1489_v12 = vmul.f32 1.442695, %v1486_v1  ;;  %v1495_v57 = vmul.f32 1.442695, %v1492_v27 }
 0xb62   :  { %2430 = vpow2.f32 %v1489_v12 }
 0xb63   :  { %v3461_v60 = vpop.xlane.xlu0 %1829 }
 0xb64   :  { %v3464_v15 = vmax.f32 %v1836_v11, %v3461_v60 }
 0xb66   :  { %v1840_v23 = vsub.f32 %v3366_v13, %v3464_v15  ;;  %v1846_v7 = vsub.f32 %v3461_v60, %v3464_v15 }
 0xb68   :  { %v2431_v62 = vpop.eup %2430  ;;  %v1843_v55 = vmul.f32 1.442695, %v1840_v23  ;;  %1863 = vrot.lane.b32.xlu0 %v3379_v61, %s3697_s9 }
 0xb69   :  { %2291 = vmatmul.msk.f32.vlgmr.msra.gmra.mxu3 %vm372_vm12, %v2431_v62  ;;  %v1500_v43 = vsel %vm331_vm10, %v2431_v62, 0.0 }
 0xb6a   :  { %2432 = vpow2.f32 %v1843_v55  ;;  %1501 = vadd.xlane.f32.xlu2 %v1500_v43  ;;  %2310 = vmatpush.msk.msra.mxu3 %vm376_vm11, %v1902_v5 }
 0xb6b   :  { %v1479_v13 = vpop.xlane.xlu0 %1478 }
 0xb6c   :  { %v1483_v45 = vmax.f32 %v1479_v13, %v3431_v48  ;;  %1924 = vmatpush.msra.mxu3 %v2346_v38 }
 0xb6e   :  { %v1485_v36 = vsub.f32 %v3401_v26, %v1483_v45  ;;  %v1491_v19 = vsub.f32 %v3431_v48, %v1483_v45 }
 0xb70   :  { %v2433_v31 = vpop.eup %2432  ;;  %v1487_v16 = vmul.f32 1.442695, %v1485_v36 }
 0xb71   :  { %2301 = vmatmul.msk.f32.vlgmr.msrb.gmra.mxu3 %vm372_vm12, %v2429_v44  ;;  %v1854_v63 = vsel %vm331_vm10, %v2433_v31, 0.0 }
 0xb72   :  { %2434 = vpow2.f32 %v1487_v16  ;;  %1855 = vadd.xlane.f32.xlu2 %v1854_v63 }
 0xb73   :  { %v1833_v28 = vpop.xlane.xlu0 %1832 }
 0xb74   :  { %v3481_v47 = vmax.f32 %v1833_v28, %v3429_v0 }
 0xb76   :  { %v1839_v51 = vsub.f32 %v3414_v29, %v3481_v47  ;;  %v1324_v29 = vsel %vm331_vm10, %v3407_v22, 0.0  ;;  %v1508_v22 = vpop.permute.xlu1 %1507  ;;  %v1845_v39 = vsub.f32 %v3429_v0, %v3481_v47 }
 0xb78   :  { %v2435_v32 = vpop.eup %2434  ;;  %v1841_v37 = vmul.f32 1.442695, %v1839_v51  ;;  %v1847_v62 = vmul.f32 1.442695, %v1845_v39 }
 0xb79   :  { %2289 = vmatmul.msk.f32.vlgmr.msrb.gmra.mxu2 %vm372_vm12, %v2435_v32  ;;  %2311 = vmatmul.msk.f32.vlgmr.msra.gmra.mxu3 %vm372_vm12, %v2433_v31  ;;  %v1497_v26 = vsel %vm331_vm10, %v2435_v32, 0.0 }
 0xb7a   :  { %2436 = vpow2.f32 %v1841_v37  ;;  %1498 = vadd.xlane.f32.xlu1 %v1497_v26  ;;  %v1319_v37 = vmul.f32 1.442695, %v1316_v4 }
 0xb7b   :  { %2438 = vpow2.f32 %v1495_v57 }
 0xb7d   :  { %v3508_v6 = vpop.f32.mrf.mxu3 }
 0xb80   :  { %v2437_v48 = vpop.eup %2436 }
 0xb81   :  { %2299 = vmatmul.msk.f32.vlgmr.msra.gmra.mxu2 %vm372_vm12, %v2427_v59  ;;  %v1851_v20 = vsel %vm331_vm10, %v2437_v48, 0.0 }
 0xb82   :  { %1852 = vadd.xlane.f32.xlu1 %v1851_v20  ;;  %v3516_v1 = vpop.f32.mrf.mxu2 }
 0xb86   :  { %v1872_v52 = vpop.permute.xlu0 %1871 }
 0xb87   :  { %2308 = vmatpush.msk.msrb.mxu2 %vm376_vm11, %v1872_v52 }
 0xb89   :  { %1894 = vmatpush.msrb.mxu2 %v2347_v14 }
 0xb8a   :  { %1685 = vrot.lane.b32.xlu2 %v3385_v50, %s3696_s11  ;;  %2309 = vmatmul.msk.f32.vlgmr.msrb.gmra.mxu2 %vm372_vm12, %v2437_v48 }
 0xb8b   :  { %2056 = vmatpush.msra.mxu2 %v3155_v8  ;;  %v1321_v8 = vsel %vm331_vm10, %v3416_v30, 0.0  ;;  %v1671_v30 = vmul.f32 1.442695, %v1669_v40 }
 0xb8d   :  { %2057 = vmatpush.msra.mxu2 %v3161_v9 }
 0xb8e   :  { %v1688_v9 = vpop.permute.xlu0 %1687 }
 0xb8f   :  { %2058 = vmatpush.msra.mxu2 %v3167_v10  ;;  %v1510_v10 = vpop.permute.xlu2 %1509 }
 0xb91   :  { %2059 = vmatpush.msra.mxu2 %v3173_v42  ;;  %v1493_v42 = vmul.f32 1.442695, %v1491_v19 }
 0xb92   :  { %1325 = vadd.xlane.f32.xlu0 %v1324_v29 }
 0xb93   :  { %2440 = vpow2.f32 %v1493_v42 }
 0xb9b   :  { %1861 = vrot.lane.b32.xlu1 %v3385_v50, %s3697_s9 }
 0xba3   :  { %1335 = vrot.lane.b32.xlu1 %v3379_v61, %s3698_s8  ;;  %v1673_v61 = vmul.f32 1.442695, %v1670_v35  ;;  %v1849_v35 = vmul.f32 1.442695, %v1846_v7 }
 0xba5   :  { %2442 = vpow2.f32 %v1673_v61 }
 0xbab   :  { %1333 = vrot.lane.b32.xlu1 %v3385_v50, %s3698_s8  ;;  %v2439_v50 = vpop.eup %2438 }
 0xbac   :  { %v2441_v2 = vpop.eup %2440  ;;  %v1514_v12 = vmul.f32 %v2439_v50, %v1510_v10 }
 0xbad   :  { %v2443_v34 = vpop.eup %2442  ;;  %v1513_v55 = vmul.f32 %v2441_v2, %v1508_v22 }
 0xbae   :  { %v1692_v45 = vmul.f32 %v2443_v34, %v1688_v9 }
 0xbb3   :  { %1322 = vadd.xlane.f32.xlu2 %v1321_v8 }
 0xbbf   :  { %v1677_v59 = vpop.xlane.xlu0 %1676 }
 0xbc7   :  { %v1680_v11 = vpop.xlane.xlu0 %1679 }
 0xbc8   :  { %v1682_v40 = vadd.f32 %v2443_v34, %v1680_v11 }
 0xbda   :  { %v1864_v28 = vpop.permute.xlu0 %1863 }
 0xbdd   :  { %v1502_v54 = vpop.xlane.xlu2 %1501 }
 0xbde   :  { %v1504_v44 = vadd.f32 %v2439_v50, %v1502_v54  ;;  %v1315_v50 = vsub.f32 %v3348_v41, %v3398_v25 }
 0xbe0   :  { %2444 = vrcp.f32 %v1504_v44  ;;  %v1317_v11 = vmul.f32 1.442695, %v1315_v50 }
 0xbe1   :  { %2446 = vpow2.f32 %v1671_v30 }
 0xbe5   :  { %v1856_v17 = vpop.xlane.xlu2 %1855 }
 0xbe6   :  { %v2445_v23 = vpop.eup %2444 }
 0xbe7   :  { %v2447_v18 = vpop.eup %2446 }
 0xbe8   :  { %v1681_v5 = vadd.f32 %v2447_v18, %v1677_v59 }
 0xbec   :  { %v1574_v3 = vpop.f32.mrf.mxu3 }
 0xbed   :  { %v1499_v33 = vpop.xlane.xlu1 %1498  ;;  %v1575_v53 = vadd.f32 %v1574_v3, %v1514_v12  ;;  %v1686_v19 = vpop.permute.xlu2 %1685 }
 0xbee   :  { %v1503_v27 = vadd.f32 %v2441_v2, %v1499_v33  ;;  %v1691_v51 = vmul.f32 %v2447_v18, %v1686_v19 }
 0xbef   :  { %v1578_v38 = vmul.f32 %v2445_v23, %v1575_v53 }
 0xbf0   :  { %2448 = vrcp.f32 %v1503_v27 }
 0xbf1   :  { %2450 = vpow2.f32 %v1849_v35  ;;  %v1938_v15 = vrot.slane %v1578_v38, 7 }
 0xbf2   :  { %2452 = vrcp.f32 %v1682_v40 }
 0xbf3   :  { %2454 = vpow2.f32 %v1847_v62 }
 0xbf4   :  { %v1750_v43 = vpop.f32.mrf.mxu3  ;;  %2456 = vrcp.f32 %v1681_v5 }
 0xbf5   :  { %v1751_v7 = vadd.f32 %v1750_v43, %v1692_v45  ;;  %v1853_v26 = vpop.xlane.xlu1 %1852 }
 0xbf6   :  { %v2449_v60 = vpop.eup %2448 }
 0xbf7   :  { %v2451_v31 = vpop.eup %2450 }
 0xbf8   :  { %v2453_v63 = vpop.eup %2452  ;;  %v1858_v47 = vadd.f32 %v2451_v31, %v1856_v17  ;;  %v1868_v57 = vmul.f32 %v2451_v31, %v1864_v28 }
 0xbf9   :  { %v1754_v32 = vmul.f32 %v2453_v63, %v1751_v7  ;;  %v2455_v20 = vpop.eup %2454  ;;  %v2484_v7 = vld [vmem:[%s3625_s13] ss:$0 sm:$0xff] }
 0xbfa   :  { %v2457_v52 = vpop.eup %2456  ;;  %2458 = vrcp.f32 %v1858_v47  ;;  %v1857_v8 = vadd.f32 %v2455_v20, %v1853_v26 }
 0xbfb   :  { %v1945_v29 = vrot.slane %v1754_v32, 7  ;;  %2460 = vpow2.f32 %v1319_v37 }
 0xbfc   :  { %v1543_v13 = vpop.f32.mrf.mxu2  ;;  %v1926_v9 = vpop.f32.mrf.mxu3  ;;  %2462 = vrcp.f32 %v1857_v8 }
 0xbfd   :  { %v1544_v36 = vadd.f32 %v1543_v13, %v1513_v55  ;;  %v1927_v42 = vadd.f32 %v1926_v9, %v1868_v57 }
 0xbff   :  { %v1577_v0 = vmul.f32 %v2449_v60, %v1544_v36 }
 0xc00   :  { %v2459_v58 = vpop.eup %2458 }
 0xc01   :  { %v1939_v16 = vsel %vm967_vm13, %v1938_v15, %v1577_v0  ;;  %v2461_v59 = vpop.eup %2460  ;;  %v1930_v54 = vmul.f32 %v2459_v58, %v1927_v42 }
 0xc02   :  { %1940 = vrot.lane.b32.xlu1 %v1939_v16, %s3697_s9  ;;  %v2463_v3 = vpop.eup %2462 }
 0xc03   :  { %v1952_v2 = vrot.slane %v1930_v54, 7 }
 0xc04   :  { %v1720_v48 = vpop.f32.mrf.mxu2 }
 0xc05   :  { %v1721_v14 = vadd.f32 %v1720_v48, %v1691_v51  ;;  %v1326_v24 = vpop.xlane.xlu0 %1325 }
 0xc06   :  { %v1328_v44 = vadd.f32 %v2461_v59, %v1326_v24  ;;  %v2486_v24 = vld [vmem:[%s3628_s15] ss:$0 sm:$0xff] }
 0xc07   :  { %v1753_v10 = vmul.f32 %v2457_v52, %v1721_v14 }
 0xc08   :  { %2464 = vrcp.f32 %v1328_v44 }
 0xc09   :  { %v1946_v22 = vsel %vm967_vm13, %v1945_v29, %v1753_v10  ;;  %2466 = vpow2.f32 %v1317_v11 }
 0xc0a   :  { %1947 = vrot.lane.b32.xlu1 %v1946_v22, %s3696_s11  ;;  %v2485_v22 = vld [vmem:[%s3627_s14] ss:$0 sm:$0xff] }
 0xc0d   :  { %v1862_v4 = vpop.permute.xlu1 %1861  ;;  %v1896_v30 = vpop.f32.mrf.mxu2 }
 0xc0e   :  { %v1867_v61 = vmul.f32 %v2455_v20, %v1862_v4  ;;  %v2465_v39 = vpop.eup %2464 }
 0xc0f   :  { %v2467_v41 = vpop.eup %2466 }
 0xc10   :  { %v1897_v33 = vadd.f32 %v1896_v30, %v1867_v61 }
 0xc12   :  { %v1929_v27 = vmul.f32 %v2463_v3, %v1897_v33 }
 0xc14   :  { %v1953_v12 = vsel %vm967_vm13, %v1952_v2, %v1929_v27  ;;  %v2488_v27 = vld [vmem:[%s3631_s19] ss:$0 sm:$0xff] }
 0xc15   :  { %v1336_v17 = vpop.permute.xlu1 %1335  ;;  %1954 = vrot.lane.b32.xlu1 %v1953_v12, %s3695_s26 }
 0xc16   :  { %v1340_v34 = vmul.f32 %v2461_v59, %v1336_v17  ;;  %v2487_v59 = vld [vmem:[%s3629_s17] ss:$0 sm:$0xff] }
 0xc18   :  { %v1391_v35 = vadd.f32 %v3508_v6, %v1340_v34 }
 0xc1a   :  { %v1394_v53 = vmul.f32 %v2465_v39, %v1391_v35 }
 0xc1c   :  { %v1933_v55 = vrot.slane %v1394_v53, 7 }
 0xc1d   :  { %v1334_v25 = vpop.permute.xlu1 %1333 }
 0xc1e   :  { %v1339_v40 = vmul.f32 %v2467_v41, %v1334_v25 }
 0xc20   :  { %v1365_v23 = vadd.f32 %v3516_v1, %v1339_v40 }
 0xc26   :  { %v1323_v18 = vpop.xlane.xlu2 %1322 }
 0xc27   :  { %v1327_v62 = vadd.f32 %v2467_v41, %v1323_v18 }
 0xc29   :  { %2468 = vrcp.f32 %v1327_v62 }
 0xc2f   :  { %v2469_v38 = vpop.eup %2468 }
 0xc30   :  { %v1393_v5 = vmul.f32 %v2469_v38, %v1365_v23 }
 0xc32   :  { %v1934_v43 = vsel %vm967_vm13, %v1933_v55, %v1393_v5 }
 0xc74   :  { %v1941_v13 = vpop.permute.xlu1 %1940 }
 0xc75   :  { %v1957_v36 = vsel %vm116_vm0, %v1934_v43, %v1941_v13 }
 0xc7c   :  { %v1948_v45 = vpop.permute.xlu1 %1947 }
 0xc7d   :  { %v1958_v6 = vsel %vm92_vm1, %v1957_v36, %v1948_v45 }
 0xc87   :  { %v1955_v60 = vpop.permute.xlu1 %1954 }
 0xc88   :  { %v1959_v15 = vsel %vm993_vm14, %v1958_v6, %v1955_v60 }
 0xc89   :  { %2312 = vmatmul.msk.f32.vlgmr.msra.gmra.mxu1 %vm998_vm15, %v1959_v15 }
 0xd06   :  { %v1980_v1 = vpop.f32.mrf.mxu1 }
 0xd07   :  { %v1981_v0 = vadd.f32 %v2484_v7, %v1980_v1 }
 0xd09   :  { %vm1983_vm7 = vcmp.ge.f32.partialorder %v1981_v0, 0.0  ;;  %v1984_v19 = vmul.f32 0.01, %v1981_v0 }
 0xd0b   :  { %v1985_v31 = vsel %vm1983_vm7, %v1981_v0, %v1984_v19 }
 0xd0c   :  { %v1986_v16 = vadd.f32 %v1985_v31, %v3218_v49 }
 0xd0e   :  { %v1987_v63 = vsel %vm146_vm2, %v1986_v16, 0.0 }
 0xd0f   :  { %1988 = vadd.xlane.f32.xlu0 %v1987_v63 }
 0xd82   :  { %v1989_v28 = vpop.xlane.xlu0 %1988 }
 0xd83   :  { %v1990_v47 = vmul.f32 %v1989_v28, %v2678_v21 }
 0xd85   :  { %v1991_v51 = vsub.f32 %v1986_v16, %v1990_v47 }
 0xd87   :  { %v1992_v32 = vmul.f32 %v1991_v51, %v1991_v51 }
 0xd89   :  { %v1993_v37 = vsel %vm146_vm2, %v1992_v32, 0.0 }
 0xd8a   :  { %1994 = vadd.xlane.f32.xlu2 %v1993_v37 }
 0xda2   :  { %245 = vrot.lane.b32.xlu2 %v2751_v56, %s3698_s8 }
 0xdfd   :  { %v1995_v26 = vpop.xlane.xlu2 %1994 }
 0xdfe   :  { %v1996_v48 = vmul.f32 %v1995_v26, %v2678_v21 }
 0xe00   :  { %v1997_v20 = vadd.f32 1e-05, %v1996_v48 }
 0xe02   :  { %2470 = vrsqrt.f32 %v1997_v20  ;;  %vm2004_vm11 = vweird.f32 %v1997_v20 }
 0xe05   :  { %v246_v49 = vpop.permute.xlu2 %245 }
 0xe06   :  { %249 = vst.msk [vmem:[%s3633_s28] sm:$0x3] %vm248_vm9, %v246_v49 }
 0xe08   :  { %v2471_v14 = vpop.eup %2470 }
 0xe09   :  { %v1999_v52 = vmul.f32 %v2471_v14, %v1997_v20  ;;  %vm2005_vm10 = vweird.f32 %v2471_v14 }
 0xe0a   :  { %vm2006_vm12 = vmor %vm2004_vm11, %vm2005_vm10 }
 0xe0b   :  { %v2000_v29 = vmul.f32 %v2471_v14, %v1999_v52 }
 0xe0d   :  { %v2001_v8 = vmul.f32 0.5, %v2000_v29 }
 0xe0f   :  { %v2002_v9 = vsub.f32 1.5, %v2001_v8  ;;  %v2140_v8 = vld [vmem:[%s3637_s22 + $0x18] sm:$0xff] }
 0xe10   :  { %2162 = vmatpush.msrb.mxu3 %v2140_v8 }
 0xe11   :  { %v2003_v10 = vmul.f32 %v2471_v14, %v2002_v9  ;;  %v2139_v9 = vld [vmem:[%s3637_s22 + $0x10] sm:$0xff] }
 0xe12   :  { %2163 = vmatpush.msrb.mxu3 %v2139_v9 }
 0xe13   :  { %v2007_v56 = vsel %vm2006_vm12, %v2471_v14, %v2003_v10  ;;  %v2138_v10 = vld [vmem:[%s3637_s22 + $0x8] sm:$0xff] }
 0xe14   :  { %v2008_v57 = vmul.f32 %v2007_v56, %v1991_v51  ;;  %v2137_v56 = vld [vmem:[%s3637_s22] sm:$0xff]  ;;  %2164 = vmatpush.msrb.mxu3 %v2138_v10 }
 0xe16   :  { %v2009_v42 = vmul.f32 %v2485_v22, %v2008_v57  ;;  %2165 = vmatpush.msrb.mxu3 %v2137_v56 }
 0xe18   :  { %v2010_v58 = vadd.f32 %v2486_v24, %v2009_v42 }
 0xe1a   :  { %2313 = vmatmul.msk.f32.vlgmr.msra.gmra.mxu0 %vm92_vm1, %v2010_v58 }
 0xe97   :  { %v2031_v4 = vpop.f32.mrf.mxu0 }
 0xe98   :  { %v2032_v54 = vadd.f32 %v2487_v59, %v2031_v4 }
 0xe9a   :  { %v2035_v61 = vmul.f32 1.442695, %v2032_v54  ;;  %vm2034_vm13 = vcmp.gt.f32.partialorder %v2032_v54, 0.0 }
 0xe9c   :  { %2472 = vpow2.f32 %v2035_v61 }
 0xea2   :  { %v2473_v50 = vpop.eup %2472 }
 0xea3   :  { %v2314_v44 = vadd.f32 -1.0, %v2473_v50 }
 0xea5   :  { %v2038_v30 = vmul.f32 1.6732632, %v2314_v44 }
 0xea7   :  { %v2039_v33 = vsel %vm2034_vm13, %v2032_v54, %v2038_v30  ;;  %v2356_v30 = vld [vmem:[%s3635_s21] ss:$0 sm:$0xff] }
 0xea8   :  { %v2040_v3 = vmul.f32 1.050701, %v2039_v33 }
 0xeaa   :  { %2315 = vmatmul.msk.f32.vlgmr.msra.gmra.mxu2 %vm92_vm1, %v2040_v3 }
 0xf2d   :  { %v2061_v2 = vpop.f32.mrf.mxu2 }
 0xf2e   :  { %v2062_v11 = vadd.f32 %v2488_v27, %v2061_v2  ;;  %v2143_v2 = vld [vmem:[%s3638_s24 + $0x8] sm:$0xff]  ;;  %v2142_v27 = vld [vmem:[%s3638_s24] sm:$0xff] }
 0xf2f   :  { %2190 = vmatpush.msrb.mxu0 %v2143_v2 }
 0xf30   :  { %v2064_v12 = vmul.f32 0.70710677, %v2062_v11  ;;  %v2101_v51 = vmul.f32 0.5, %v2062_v11  ;;  %v2357_v11 = vld [vmem:[%s3636_s23] ss:$0 sm:$0xff] }
 0xf31   :  { %2191 = vmatpush.msrb.mxu0 %v2142_v27 }
 0xf32   :  { %v2065_v17 = vand.u32 2147483647, %v2064_v12  ;;  %vm2098_vm4 = vcmp.ge.f32.partialorder %v2064_v12, 0.0 }
 0xf34   :  { %v2066_v34 = vmul.f32 0.3275911, %v2065_v17  ;;  %v2092_v5 = vsub.f32 0.0, %v2065_v17 }
 0xf36   :  { %v2067_v35 = vadd.f32 1.0, %v2066_v34  ;;  %v2093_v45 = vmul.f32 %v2092_v5, %v2065_v17 }
 0xf38   :  { %2474 = vrcp.f32 %v2067_v35  ;;  %v2079_v25 = vand.u32 2147483648, %v2067_v35  ;;  %v2077_v23 = vand.u32 2147483647, %v2067_v35  ;;  %vm2073_vm15 = vweird.f32 %v2067_v35 }
 0xf39   :  { %v2094_v60 = vmul.f32 1.442695, %v2093_v45 }
 0xf3a   :  { %v2080_v62 = vor.u32 1.1754944e-38, %v2079_v25  ;;  %vm2078_vm3 = vcmp.eq.f32.partialorder %v2077_v23, 8.507059e+37 }
 0xf3b   :  { %2476 = vpow2.f32 %v2094_v60 }
 0xf3e   :  { %v2475_v39 = vpop.eup %2474 }
 0xf3f   :  { %v2069_v53 = vmul.f32 %v2475_v39, %v2067_v35  ;;  %vm2074_vm14 = vweird.f32 %v2475_v39 }
 0xf40   :  { %vm2075_vm8 = vmor %vm2073_vm15, %vm2074_vm14 }
 0xf41   :  { %v2070_v41 = vsub.f32 1.0, %v2069_v53  ;;  %v2477_v31 = vpop.eup %2476 }
 0xf43   :  { %v2071_v40 = vmul.f32 %v2475_v39, %v2070_v41 }
 0xf45   :  { %v2072_v18 = vadd.f32 %v2475_v39, %v2071_v40 }
 0xf47   :  { %v2076_v38 = vsel %vm2075_vm8, %v2475_v39, %v2072_v18 }
 0xf48   :  { %v2081_v55 = vsel %vm2078_vm3, %v2080_v62, %v2076_v38 }
 0xf49   :  { %v2083_v43 = vmul.f32 1.0614054, %v2081_v55 }
 0xf4b   :  { %v2084_v13 = vadd.f32 -1.4531521, %v2083_v43 }
 0xf4d   :  { %v2085_v36 = vmul.f32 %v2084_v13, %v2081_v55 }
 0xf4f   :  { %v2086_v6 = vadd.f32 1.4214138, %v2085_v36 }
 0xf51   :  { %v2087_v15 = vmul.f32 %v2086_v6, %v2081_v55 }
 0xf53   :  { %v2088_v1 = vadd.f32 -0.28449672, %v2087_v15 }
 0xf55   :  { %v2089_v7 = vmul.f32 %v2088_v1, %v2081_v55 }
 0xf57   :  { %v2090_v0 = vadd.f32 0.2548296, %v2089_v7 }
 0xf59   :  { %v2091_v19 = vmul.f32 %v2090_v0, %v2081_v55 }
 0xf5b   :  { %v2096_v16 = vmul.f32 %v2477_v31, %v2091_v19 }
 0xf5d   :  { %v2097_v63 = vsub.f32 1.0, %v2096_v16 }
 0xf5f   :  { %v2099_v28 = vsub.f32 0.0, %v2097_v63 }
 0xf61   :  { %v2100_v47 = vsel %vm2098_vm4, %v2097_v63, %v2099_v28 }
 0xf62   :  { %v2102_v32 = vadd.f32 1.0, %v2100_v47 }
 0xf64   :  { %v2103_v37 = vmul.f32 %v2102_v32, %v2101_v51 }
 0xf66   :  { %v2104_v26 = vadd.f32 %v2103_v37, %v2010_v58 }
 0xf68   :  { %v2107_v48 = vsel %vm146_vm2, %v2104_v26, 0.0 }
 0xf69   :  { %2108 = vadd.xlane.f32.xlu1 %v2107_v48 }
 0xfdc   :  { %v2109_v20 = vpop.xlane.xlu1 %2108 }
 0xfdd   :  { %v2110_v49 = vmul.f32 %v2109_v20, %v2678_v21 }
 0xfdf   :  { %v2111_v14 = vsub.f32 %v2104_v26, %v2110_v49 }
 0xfe1   :  { %v2112_v52 = vmul.f32 %v2111_v14, %v2111_v14 }
 0xfe3   :  { %v2113_v29 = vsel %vm146_vm2, %v2112_v52, 0.0 }
 0xfe4   :  { %2114 = vadd.xlane.f32.xlu0 %v2113_v29 }
 0xff8   :  { %1215 = vrot.lane.b32.xlu0 %v3230_v46, %s3698_s8 }
0x1057   :  { %v2115_v46 = vpop.xlane.xlu0 %2114 }
0x1058   :  { %v2116_v57 = vmul.f32 %v2115_v46, %v2678_v21  ;;  %v2355_v21 = vld [vmem:[%s3634_s20] ss:$0 sm:$0xff] }
0x105a   :  { %v2117_v22 = vadd.f32 1e-05, %v2116_v57 }
0x105c   :  { %2478 = vrsqrt.f32 %v2117_v22  ;;  %vm2124_vm5 = vweird.f32 %v2117_v22 }
0x1062   :  { %v2479_v42 = vpop.eup %2478 }
0x1063   :  { %v2119_v24 = vmul.f32 %v2479_v42, %v2117_v22  ;;  %vm2125_vm2 = vweird.f32 %v2479_v42 }
0x1064   :  { %vm2126_vm6 = vmor %vm2124_vm5, %vm2125_vm2 }
0x1065   :  { %v2120_v58 = vmul.f32 %v2479_v42, %v2119_v24 }
0x1067   :  { %v2121_v4 = vmul.f32 0.5, %v2120_v58 }
0x1069   :  { %v2122_v59 = vsub.f32 1.5, %v2121_v4 }
0x106a   :  { %v1216_v54 = vpop.permute.xlu0 %1215 }
0x106b   :  { %v2123_v61 = vmul.f32 %v2479_v42, %v2122_v59  ;;  %2263 = vst.msk [vmem:[%s3633_s28 + $0x2] sm:$0x3] %vm248_vm9, %v1216_v54 }
0x106d   :  { %v2127_v50 = vsel %vm2126_vm6, %v2479_v42, %v2123_v61 }
0x106e   :  { %v2128_v44 = vmul.f32 %v2127_v50, %v2111_v14 }
0x1070   :  { %v2132_v33 = vmul.f32 %v2355_v21, %v2128_v44 }
0x1072   :  { %v2136_v3 = vadd.f32 %v2356_v30, %v2132_v33 }
0x1074   :  { %2316 = vmatmul.msk.f32.vlgmr.msrb.gmra.mxu3 %vm92_vm1, %v2136_v3 }
0x10f7   :  { %v2167_v12 = vpop.f32.mrf.mxu3 }
0x10f8   :  { %v2168_v17 = vadd.f32 %v2357_v11, %v2167_v12 }
0x10fa   :  { %vm2170_vm7 = vcmp.ge.f32.partialorder %v2168_v17, 0.0  ;;  %v2171_v34 = vmul.f32 0.01, %v2168_v17 }
0x10fc   :  { %v2172_v35 = vsel %vm2170_vm7, %v2168_v17, %v2171_v34 }
0x10fd   :  { %2317 = vmatmul.msk.f32.vlgmr.msrb.gmra.mxu0 %vm116_vm0, %v2172_v35 }
0x117a   :  { %v2193_v39 = vpop.f32.mrf.mxu0 }
0x117b   :  { %v2196_v53 = vmul.f32 1.1111112, %v2193_v39 }
0x117d   :  { %2197 = vst [vmem:[%s3639_s25] sm:$0x3] %v2196_v53 }

</bundles_post_ra>
